<compile_context>
chip_gen: v7x
topology: tpu7x:2x2x1
jax: 0.10.0
libtpu: 0.0.40
codegen_flags: <defaults>
</compile_context>

<pallas_src>
import numpy as np

import jax
import jax.numpy as jnp
from jax.experimental import pallas as pl
from jax.experimental.pallas import tpu as pltpu


# --------------------------------------------------------------------------
# Batch-independent constant 0/1 gather matrices (9, 64, 64):
# tap t = kh*3 + kw reads input pixel (h + kh - 1, w + kw - 1), zero padded.
# Applied on the MXU, so shift + boundary masking is exact and costs no
# relayouts.  72 KiB resident for the whole conv kernel.
# --------------------------------------------------------------------------
def _shift_mats_np(hw=8):
    g = np.zeros((9, hw * hw, hw * hw), np.float32)
    for t in range(9):
        dh, dw = t // 3 - 1, t % 3 - 1
        for h in range(hw):
            hi = h + dh
            if not (0 <= hi < hw):
                continue
            for w in range(hw):
                wi = w + dw
                if 0 <= wi < hw:
                    g[t, h * hw + w, hi * hw + wi] = 1.0
    return g


# --------------------------------------------------------------------------
# Kernel 1: fused conv stack.  One (64, C) board per grid step.
# --------------------------------------------------------------------------
def fused_convs_kernel(x_ref, g_ref,
                       w1_ref, s1_ref, b1_ref,
                       w2_ref, s2_ref, b2_ref,
                       w3_ref, s3_ref, b3_ref,
                       wp_ref, sp_ref, bp_ref,
                       out_ref):
    # x_ref : (64, 32)   bf16  one board, pixel rows (h*8+w) x channel lanes
    # g_ref : (9, 64, 64) bf16 constant 0/1 shift+pad gather matrices
    # w*_ref: (9, Cin, Cout) bf16 conv weights (tap-major); s*/b*: (1, Cout) f32
    # wp_ref: (256, 32)  bf16 1x1 policy conv;              sp/bp: (1, 32) f32
    # out   : (64, 32)   bf16 relu(policy_bn(policy_conv(...)))
    def conv3x3_bn_relu(x_bf, w_ref, s_ref, b_ref):
        # Center tap first: its gather is the identity.
        acc = jnp.dot(x_bf, w_ref[4], preferred_element_type=jnp.float32)
        for t in range(9):
            if t == 4:
                continue
            # Shift + zero-pad as an exact 0/1 gather on the MXU.
            xt = jnp.dot(g_ref[t], x_bf,
                         preferred_element_type=jnp.float32).astype(jnp.bfloat16)
            acc = acc + jnp.dot(xt, w_ref[t], preferred_element_type=jnp.float32)
        y = acc * s_ref[...] + b_ref[...]          # folded BN affine, f32
        return jnp.maximum(y, 0.0).astype(jnp.bfloat16)

    h = conv3x3_bn_relu(x_ref[...], w1_ref, s1_ref, b1_ref)   # (64, 64)
    h = conv3x3_bn_relu(h, w2_ref, s2_ref, b2_ref)            # (64, 128)
    h = conv3x3_bn_relu(h, w3_ref, s3_ref, b3_ref)            # (64, 256)

    yp = jnp.dot(h, wp_ref[...], preferred_element_type=jnp.float32)
    yp = jnp.maximum(yp * sp_ref[...] + bp_ref[...], 0.0)     # (64, 32) f32
    out_ref[...] = yp.astype(jnp.bfloat16)


def fused_convs(x, g, p):
    P, cin = x.shape
    assert P % 64 == 0 and cin == 32, (P, cin)
    B = P // 64

    def full(a):
        return pl.BlockSpec(a.shape, lambda i, _nd=a.ndim: (0,) * _nd)

    return pl.pallas_call(
        fused_convs_kernel,
        out_shape=jax.ShapeDtypeStruct((P, 32), jnp.bfloat16),
        grid=(B,),
        in_specs=[
            pl.BlockSpec((64, cin), lambda i: (i, 0)),
            full(g),
            full(p["w1"]), full(p["s1"]), full(p["b1"]),
            full(p["w2"]), full(p["s2"]), full(p["b2"]),
            full(p["w3"]), full(p["s3"]), full(p["b3"]),
            full(p["wp"]), full(p["sp"]), full(p["bp"]),
        ],
        out_specs=pl.BlockSpec((64, 32), lambda i: (i, 0)),
        compiler_params=pltpu.CompilerParams(
            dimension_semantics=("parallel",)),
    )(x, g,
      p["w1"], p["s1"], p["b1"],
      p["w2"], p["s2"], p["b2"],
      p["w3"], p["s3"], p["b3"],
      p["wp"], p["sp"], p["bp"])


# --------------------------------------------------------------------------
# Kernel 2: Linear(2048 -> 4096) + row softmax, fused.
# Weight streamed in (K, tn) bf16 tiles; logits resident in VMEM as the
# output block; softmax (exact f32 normalization) on the last grid step.
# --------------------------------------------------------------------------
def fc_softmax_kernel(x_ref, w_ref, b_ref, out_ref):
    j = pl.program_id(0)
    tile = jnp.dot(x_ref[...], w_ref[...],
                   preferred_element_type=jnp.float32) + b_ref[...]
    out_ref[j] = tile                                  # logits tile (Bp, tn)

    @pl.when(j == pl.num_programs(0) - 1)
    def _():
        z = out_ref[...]                               # (T, Bp, tn) all logits
        m = jnp.max(z, axis=2, keepdims=True)
        m = jnp.max(m, axis=0, keepdims=True)          # (1, Bp, 1) row max
        e = jnp.exp(z - m)
        s = jnp.sum(e, axis=2, keepdims=True)
        s = jnp.sum(s, axis=0, keepdims=True)          # (1, Bp, 1) row sum
        out_ref[...] = e * (1.0 / s)                   # exact f32 normalization


def fc_softmax(x, w, b, *, tn=1024):
    Bp, K = x.shape
    Kw, N = w.shape
    assert Kw == K, (Kw, K)
    assert N % tn == 0 and tn % 128 == 0, (N, tn)
    assert Bp % 8 == 0 and K % 128 == 0, (Bp, K)
    T = N // tn
    out = pl.pallas_call(
        fc_softmax_kernel,
        out_shape=jax.ShapeDtypeStruct((T, Bp, tn), jnp.float32),
        grid=(T,),
        in_specs=[
            pl.BlockSpec((Bp, K), lambda j: (0, 0)),
            pl.BlockSpec((K, tn), lambda j: (0, j)),
            pl.BlockSpec((1, tn), lambda j: (0, j)),
        ],
        out_specs=pl.BlockSpec((T, Bp, tn), lambda j: (0, 0, 0)),
        compiler_params=pltpu.CompilerParams(
            dimension_semantics=("arbitrary",)),
    )(x, w, b)
    # (T, Bp, tn) -> (Bp, N): tiny (~128 KiB) relayout done by XLA outside the kernel.
    return jnp.transpose(out, (1, 0, 2)).reshape(Bp, N)


# --------------------------------------------------------------------------
# Full forward pass (matches ChessPolicy.forward at inference).
# --------------------------------------------------------------------------
def chess_policy_forward(params, x_nchw):
    B, C, H, W = x_nchw.shape
    assert H == 8 and W == 8, (H, W)
    # Tiny one-time input prep (single XLA fusion, ~10 KiB):
    # NCHW -> (B*64, 32) pixel rows, channels zero-padded 19 -> 32
    # (exact: the matching extra w1 input rows are zero too).
    x = jnp.transpose(x_nchw, (0, 2, 3, 1)).astype(jnp.float32)
    x = jnp.pad(x, ((0, 0), (0, 0), (0, 0), (0, 32 - C)))
    x = x.reshape(B * 64, 32).astype(jnp.bfloat16)

    g = jnp.asarray(_shift_mats_np(), jnp.bfloat16)     # (9, 64, 64), 72 KiB

    pol = fused_convs(x, g, params)          # (B*64, 32) bf16, rows=(b,h,w), lanes=c
    fc_in = pol.reshape(B, 64 * 32)          # free reshape; matches permuted wfc rows
    # dropout(0.3): identity at inference
    Bp = ((B + 7) // 8) * 8                  # pad batch to a sublane multiple
    fc_in = jnp.pad(fc_in, ((0, Bp - B), (0, 0)))
    probs = fc_softmax(fc_in, params["wfc"], params["bfc"], tn=1024)
    return probs[:B]


# --------------------------------------------------------------------------
# Deterministic synthetic parameters (shapes from ChessPolicy.__init__).
# Conv bias + BN(eval) folded into per-channel (scale, bias); MXU weights in
# bf16; the NCHW-flatten permutation is folded into the FC weight rows.
# --------------------------------------------------------------------------
def _conv_bn_params(key, kh, kw, cin, cout, eps=1e-5):
    kw_, kb_, kg_, kbe_, km_, kv_ = jax.random.split(key, 6)
    w = 0.05 * jax.random.normal(kw_, (kh, kw, cin, cout), jnp.float32)
    b = 0.05 * jax.random.normal(kb_, (cout,), jnp.float32)
    gamma = 1.0 + 0.1 * jax.random.normal(kg_, (cout,), jnp.float32)
    beta = 0.1 * jax.random.normal(kbe_, (cout,), jnp.float32)
    mean = 0.1 * jax.random.normal(km_, (cout,), jnp.float32)
    var = 1.0 + 0.1 * jnp.abs(jax.random.normal(kv_, (cout,), jnp.float32))
    scale = gamma / jnp.sqrt(var + eps)
    eff_bias = scale * (b - mean) + beta
    return w, scale.reshape(1, cout), eff_bias.reshape(1, cout)


def make_params(key):
    k1, k2, k3, kp, kfw, kfb = jax.random.split(key, 6)

    w1, s1, b1 = _conv_bn_params(k1, 3, 3, 19, 64)
    w1 = jnp.pad(w1, ((0, 0), (0, 0), (0, 32 - 19), (0, 0)))   # cin 19 -> 32
    w2, s2, b2 = _conv_bn_params(k2, 3, 3, 64, 128)
    w3, s3, b3 = _conv_bn_params(k3, 3, 3, 128, 256)
    wp, sp, bp = _conv_bn_params(kp, 1, 1, 256, 32)

    # FC weight laid out torch-style: rows indexed by k = c*64 + h*8 + w.
    wfc = 0.02 * jax.random.normal(kfw, (32 * 8 * 8, 64 * 64), jnp.float32)
    bfc = 0.02 * jax.random.normal(kfb, (64 * 64,), jnp.float32)
    # Conv kernel emits pixel-major rows (j = p*32 + c); fold the NCHW flatten
    # permutation into the weight once: wfc_perm[j] = wfc[(j % 32)*64 + j//32].
    j = jnp.arange(32 * 64)
    perm = (j % 32) * 64 + (j // 32)
    wfc_perm = wfc[perm, :]

    to9 = lambda w: w.reshape(9, w.shape[2], w.shape[3]).astype(jnp.bfloat16)
    return dict(
        w1=to9(w1), s1=s1, b1=b1,
        w2=to9(w2), s2=s2, b2=b2,
        w3=to9(w3), s3=s3, b3=b3,
        wp=wp.reshape(256, 32).astype(jnp.bfloat16), sp=sp, bp=bp,
        wfc=wfc_perm.astype(jnp.bfloat16),
        bfc=bfc.reshape(1, 64 * 64),
    )


if __name__ == "__main__":
    key = jax.random.PRNGKey(0)
    pkey, xkey = jax.random.split(key)
    params = make_params(pkey)

    B = 2
    x = jax.random.normal(xkey, (B, 19, 8, 8), jnp.float32)   # NCHW like torch

    fwd = jax.jit(chess_policy_forward)
    out = jax.block_until_ready(fwd(params, x))

    assert out.shape == (B, 64 * 64), out.shape
    assert out.dtype == jnp.float32
    assert bool(jnp.all(jnp.isfinite(out)))
    assert bool(jnp.all(out >= 0.0))
    row_sums = jnp.sum(out, axis=1)
    assert bool(jnp.all(jnp.abs(row_sums - 1.0) < 1e-3)), row_sums
    print("KERNEL_OK")
</pallas_src>

<mosaic_0001>
module attributes {stable_mosaic.version = 11 : i64} {
  func.func @fused_convs_kernel(%arg0: i32, %arg1: memref<64x32xbf16, #tpu.memory_space<vmem>>, %arg2: memref<9x64x64xbf16, #tpu.memory_space<vmem>>, %arg3: memref<9x32x64xbf16, #tpu.memory_space<vmem>>, %arg4: memref<1x64xf32, #tpu.memory_space<vmem>>, %arg5: memref<1x64xf32, #tpu.memory_space<vmem>>, %arg6: memref<9x64x128xbf16, #tpu.memory_space<vmem>>, %arg7: memref<1x128xf32, #tpu.memory_space<vmem>>, %arg8: memref<1x128xf32, #tpu.memory_space<vmem>>, %arg9: memref<9x128x256xbf16, #tpu.memory_space<vmem>>, %arg10: memref<1x256xf32, #tpu.memory_space<vmem>>, %arg11: memref<1x256xf32, #tpu.memory_space<vmem>>, %arg12: memref<256x32xbf16, #tpu.memory_space<vmem>>, %arg13: memref<1x32xf32, #tpu.memory_space<vmem>>, %arg14: memref<1x32xf32, #tpu.memory_space<vmem>>, %arg15: memref<64x32xbf16, #tpu.memory_space<vmem>>) attributes {dimension_semantics = [#tpu.dimension_semantics<parallel>], iteration_bounds = array<i64: 2>, scalar_prefetch = 0 : i64, scratch_operands = 0 : i64, tpu.core_type = #tpu.core_type<tc>, window_params = [{transform_indices = @transform_0, window_bounds = array<i64: 64, 32>}, {pipeline_mode = #tpu.pipeline_mode<synchronous>, transform_indices = @transform_1, window_bounds = array<i64: 9, 64, 64>}, {pipeline_mode = #tpu.pipeline_mode<synchronous>, transform_indices = @transform_2, window_bounds = array<i64: 9, 32, 64>}, {pipeline_mode = #tpu.pipeline_mode<synchronous>, transform_indices = @transform_3, window_bounds = array<i64: 1, 64>}, {pipeline_mode = #tpu.pipeline_mode<synchronous>, transform_indices = @transform_4, window_bounds = array<i64: 1, 64>}, {pipeline_mode = #tpu.pipeline_mode<synchronous>, transform_indices = @transform_5, window_bounds = array<i64: 9, 64, 128>}, {pipeline_mode = #tpu.pipeline_mode<synchronous>, transform_indices = @transform_6, window_bounds = array<i64: 1, 128>}, {pipeline_mode = #tpu.pipeline_mode<synchronous>, transform_indices = @transform_7, window_bounds = array<i64: 1, 128>}, {pipeline_mode = #tpu.pipeline_mode<synchronous>, transform_indices = @transform_8, window_bounds = array<i64: 9, 128, 256>}, {pipeline_mode = #tpu.pipeline_mode<synchronous>, transform_indices = @transform_9, window_bounds = array<i64: 1, 256>}, {pipeline_mode = #tpu.pipeline_mode<synchronous>, transform_indices = @transform_10, window_bounds = array<i64: 1, 256>}, {pipeline_mode = #tpu.pipeline_mode<synchronous>, transform_indices = @transform_11, window_bounds = array<i64: 256, 32>}, {pipeline_mode = #tpu.pipeline_mode<synchronous>, transform_indices = @transform_12, window_bounds = array<i64: 1, 32>}, {pipeline_mode = #tpu.pipeline_mode<synchronous>, transform_indices = @transform_13, window_bounds = array<i64: 1, 32>}, {transform_indices = @transform_14, window_bounds = array<i64: 64, 32>}]} {
    %c0 = arith.constant 0 : index
    %c0_0 = arith.constant 0 : index
    %0 = vector.load %arg1[%c0, %c0_0] : memref<64x32xbf16, #tpu.memory_space<vmem>>, vector<64x32xbf16>
    %c4 = arith.constant 4 : index
    %c0_1 = arith.constant 0 : index
    %c0_2 = arith.constant 0 : index
    %1 = vector.load %arg3[%c4, %c0_1, %c0_2] : memref<9x32x64xbf16, #tpu.memory_space<vmem>>, vector<1x32x64xbf16>
    %2 = vector.shape_cast %1 : vector<1x32x64xbf16> to vector<32x64xbf16>
    %cst = arith.constant dense<0.000000e+00> : vector<64x64xf32>
    %3 = tpu.matmul %0, %2, %cst {dimension_numbers = #tpu.dot_dimension_numbers<[1], [0], [0], [1], [0, 0, 1, 1], [], []>} : vector<64x32xbf16>, vector<32x64xbf16>, vector<64x64xf32> -> vector<64x64xf32>
    %c0_3 = arith.constant 0 : index
    %c0_4 = arith.constant 0 : index
    %c0_5 = arith.constant 0 : index
    %4 = vector.load %arg2[%c0_3, %c0_4, %c0_5] : memref<9x64x64xbf16, #tpu.memory_space<vmem>>, vector<1x64x64xbf16>
    %5 = vector.shape_cast %4 : vector<1x64x64xbf16> to vector<64x64xbf16>
    %cst_6 = arith.constant dense<0.000000e+00> : vector<64x32xf32>
    %6 = tpu.matmul %5, %0, %cst_6 {dimension_numbers = #tpu.dot_dimension_numbers<[1], [0], [0], [1], [0, 0, 1, 1], [], []>} : vector<64x64xbf16>, vector<64x32xbf16>, vector<64x32xf32> -> vector<64x32xf32>
    %7 = arith.truncf %6 : vector<64x32xf32> to vector<64x32xbf16>
    %c0_7 = arith.constant 0 : index
    %c0_8 = arith.constant 0 : index
    %c0_9 = arith.constant 0 : index
    %8 = vector.load %arg3[%c0_7, %c0_8, %c0_9] : memref<9x32x64xbf16, #tpu.memory_space<vmem>>, vector<1x32x64xbf16>
    %9 = vector.shape_cast %8 : vector<1x32x64xbf16> to vector<32x64xbf16>
    %cst_10 = arith.constant dense<0.000000e+00> : vector<64x64xf32>
    %10 = tpu.matmul %7, %9, %cst_10 {dimension_numbers = #tpu.dot_dimension_numbers<[1], [0], [0], [1], [0, 0, 1, 1], [], []>} : vector<64x32xbf16>, vector<32x64xbf16>, vector<64x64xf32> -> vector<64x64xf32>
    %11 = arith.addf %3, %10 : vector<64x64xf32>
    %c1 = arith.constant 1 : index
    %c0_11 = arith.constant 0 : index
    %c0_12 = arith.constant 0 : index
    %12 = vector.load %arg2[%c1, %c0_11, %c0_12] : memref<9x64x64xbf16, #tpu.memory_space<vmem>>, vector<1x64x64xbf16>
    %13 = vector.shape_cast %12 : vector<1x64x64xbf16> to vector<64x64xbf16>
    %cst_13 = arith.constant dense<0.000000e+00> : vector<64x32xf32>
    %14 = tpu.matmul %13, %0, %cst_13 {dimension_numbers = #tpu.dot_dimension_numbers<[1], [0], [0], [1], [0, 0, 1, 1], [], []>} : vector<64x64xbf16>, vector<64x32xbf16>, vector<64x32xf32> -> vector<64x32xf32>
    %15 = arith.truncf %14 : vector<64x32xf32> to vector<64x32xbf16>
    %c1_14 = arith.constant 1 : index
    %c0_15 = arith.constant 0 : index
    %c0_16 = arith.constant 0 : index
    %16 = vector.load %arg3[%c1_14, %c0_15, %c0_16] : memref<9x32x64xbf16, #tpu.memory_space<vmem>>, vector<1x32x64xbf16>
    %17 = vector.shape_cast %16 : vector<1x32x64xbf16> to vector<32x64xbf16>
    %cst_17 = arith.constant dense<0.000000e+00> : vector<64x64xf32>
    %18 = tpu.matmul %15, %17, %cst_17 {dimension_numbers = #tpu.dot_dimension_numbers<[1], [0], [0], [1], [0, 0, 1, 1], [], []>} : vector<64x32xbf16>, vector<32x64xbf16>, vector<64x64xf32> -> vector<64x64xf32>
    %19 = arith.addf %11, %18 : vector<64x64xf32>
    %c2 = arith.constant 2 : index
    %c0_18 = arith.constant 0 : index
    %c0_19 = arith.constant 0 : index
    %20 = vector.load %arg2[%c2, %c0_18, %c0_19] : memref<9x64x64xbf16, #tpu.memory_space<vmem>>, vector<1x64x64xbf16>
    %21 = vector.shape_cast %20 : vector<1x64x64xbf16> to vector<64x64xbf16>
    %cst_20 = arith.constant dense<0.000000e+00> : vector<64x32xf32>
    %22 = tpu.matmul %21, %0, %cst_20 {dimension_numbers = #tpu.dot_dimension_numbers<[1], [0], [0], [1], [0, 0, 1, 1], [], []>} : vector<64x64xbf16>, vector<64x32xbf16>, vector<64x32xf32> -> vector<64x32xf32>
    %23 = arith.truncf %22 : vector<64x32xf32> to vector<64x32xbf16>
    %c2_21 = arith.constant 2 : index
    %c0_22 = arith.constant 0 : index
    %c0_23 = arith.constant 0 : index
    %24 = vector.load %arg3[%c2_21, %c0_22, %c0_23] : memref<9x32x64xbf16, #tpu.memory_space<vmem>>, vector<1x32x64xbf16>
    %25 = vector.shape_cast %24 : vector<1x32x64xbf16> to vector<32x64xbf16>
    %cst_24 = arith.constant dense<0.000000e+00> : vector<64x64xf32>
    %26 = tpu.matmul %23, %25, %cst_24 {dimension_numbers = #tpu.dot_dimension_numbers<[1], [0], [0], [1], [0, 0, 1, 1], [], []>} : vector<64x32xbf16>, vector<32x64xbf16>, vector<64x64xf32> -> vector<64x64xf32>
    %27 = arith.addf %19, %26 : vector<64x64xf32>
    %c3 = arith.constant 3 : index
    %c0_25 = arith.constant 0 : index
    %c0_26 = arith.constant 0 : index
    %28 = vector.load %arg2[%c3, %c0_25, %c0_26] : memref<9x64x64xbf16, #tpu.memory_space<vmem>>, vector<1x64x64xbf16>
    %29 = vector.shape_cast %28 : vector<1x64x64xbf16> to vector<64x64xbf16>
    %cst_27 = arith.constant dense<0.000000e+00> : vector<64x32xf32>
    %30 = tpu.matmul %29, %0, %cst_27 {dimension_numbers = #tpu.dot_dimension_numbers<[1], [0], [0], [1], [0, 0, 1, 1], [], []>} : vector<64x64xbf16>, vector<64x32xbf16>, vector<64x32xf32> -> vector<64x32xf32>
    %31 = arith.truncf %30 : vector<64x32xf32> to vector<64x32xbf16>
    %c3_28 = arith.constant 3 : index
    %c0_29 = arith.constant 0 : index
    %c0_30 = arith.constant 0 : index
    %32 = vector.load %arg3[%c3_28, %c0_29, %c0_30] : memref<9x32x64xbf16, #tpu.memory_space<vmem>>, vector<1x32x64xbf16>
    %33 = vector.shape_cast %32 : vector<1x32x64xbf16> to vector<32x64xbf16>
    %cst_31 = arith.constant dense<0.000000e+00> : vector<64x64xf32>
    %34 = tpu.matmul %31, %33, %cst_31 {dimension_numbers = #tpu.dot_dimension_numbers<[1], [0], [0], [1], [0, 0, 1, 1], [], []>} : vector<64x32xbf16>, vector<32x64xbf16>, vector<64x64xf32> -> vector<64x64xf32>
    %35 = arith.addf %27, %34 : vector<64x64xf32>
    %c5 = arith.constant 5 : index
    %c0_32 = arith.constant 0 : index
    %c0_33 = arith.constant 0 : index
    %36 = vector.load %arg2[%c5, %c0_32, %c0_33] : memref<9x64x64xbf16, #tpu.memory_space<vmem>>, vector<1x64x64xbf16>
    %37 = vector.shape_cast %36 : vector<1x64x64xbf16> to vector<64x64xbf16>
    %cst_34 = arith.constant dense<0.000000e+00> : vector<64x32xf32>
    %38 = tpu.matmul %37, %0, %cst_34 {dimension_numbers = #tpu.dot_dimension_numbers<[1], [0], [0], [1], [0, 0, 1, 1], [], []>} : vector<64x64xbf16>, vector<64x32xbf16>, vector<64x32xf32> -> vector<64x32xf32>
    %39 = arith.truncf %38 : vector<64x32xf32> to vector<64x32xbf16>
    %c5_35 = arith.constant 5 : index
    %c0_36 = arith.constant 0 : index
    %c0_37 = arith.constant 0 : index
    %40 = vector.load %arg3[%c5_35, %c0_36, %c0_37] : memref<9x32x64xbf16, #tpu.memory_space<vmem>>, vector<1x32x64xbf16>
    %41 = vector.shape_cast %40 : vector<1x32x64xbf16> to vector<32x64xbf16>
    %cst_38 = arith.constant dense<0.000000e+00> : vector<64x64xf32>
    %42 = tpu.matmul %39, %41, %cst_38 {dimension_numbers = #tpu.dot_dimension_numbers<[1], [0], [0], [1], [0, 0, 1, 1], [], []>} : vector<64x32xbf16>, vector<32x64xbf16>, vector<64x64xf32> -> vector<64x64xf32>
    %43 = arith.addf %35, %42 : vector<64x64xf32>
    %c6 = arith.constant 6 : index
    %c0_39 = arith.constant 0 : index
    %c0_40 = arith.constant 0 : index
    %44 = vector.load %arg2[%c6, %c0_39, %c0_40] : memref<9x64x64xbf16, #tpu.memory_space<vmem>>, vector<1x64x64xbf16>
    %45 = vector.shape_cast %44 : vector<1x64x64xbf16> to vector<64x64xbf16>
    %cst_41 = arith.constant dense<0.000000e+00> : vector<64x32xf32>
    %46 = tpu.matmul %45, %0, %cst_41 {dimension_numbers = #tpu.dot_dimension_numbers<[1], [0], [0], [1], [0, 0, 1, 1], [], []>} : vector<64x64xbf16>, vector<64x32xbf16>, vector<64x32xf32> -> vector<64x32xf32>
    %47 = arith.truncf %46 : vector<64x32xf32> to vector<64x32xbf16>
    %c6_42 = arith.constant 6 : index
    %c0_43 = arith.constant 0 : index
    %c0_44 = arith.constant 0 : index
    %48 = vector.load %arg3[%c6_42, %c0_43, %c0_44] : memref<9x32x64xbf16, #tpu.memory_space<vmem>>, vector<1x32x64xbf16>
    %49 = vector.shape_cast %48 : vector<1x32x64xbf16> to vector<32x64xbf16>
    %cst_45 = arith.constant dense<0.000000e+00> : vector<64x64xf32>
    %50 = tpu.matmul %47, %49, %cst_45 {dimension_numbers = #tpu.dot_dimension_numbers<[1], [0], [0], [1], [0, 0, 1, 1], [], []>} : vector<64x32xbf16>, vector<32x64xbf16>, vector<64x64xf32> -> vector<64x64xf32>
    %51 = arith.addf %43, %50 : vector<64x64xf32>
    %c7 = arith.constant 7 : index
    %c0_46 = arith.constant 0 : index
    %c0_47 = arith.constant 0 : index
    %52 = vector.load %arg2[%c7, %c0_46, %c0_47] : memref<9x64x64xbf16, #tpu.memory_space<vmem>>, vector<1x64x64xbf16>
    %53 = vector.shape_cast %52 : vector<1x64x64xbf16> to vector<64x64xbf16>
    %cst_48 = arith.constant dense<0.000000e+00> : vector<64x32xf32>
    %54 = tpu.matmul %53, %0, %cst_48 {dimension_numbers = #tpu.dot_dimension_numbers<[1], [0], [0], [1], [0, 0, 1, 1], [], []>} : vector<64x64xbf16>, vector<64x32xbf16>, vector<64x32xf32> -> vector<64x32xf32>
    %55 = arith.truncf %54 : vector<64x32xf32> to vector<64x32xbf16>
    %c7_49 = arith.constant 7 : index
    %c0_50 = arith.constant 0 : index
    %c0_51 = arith.constant 0 : index
    %56 = vector.load %arg3[%c7_49, %c0_50, %c0_51] : memref<9x32x64xbf16, #tpu.memory_space<vmem>>, vector<1x32x64xbf16>
    %57 = vector.shape_cast %56 : vector<1x32x64xbf16> to vector<32x64xbf16>
    %cst_52 = arith.constant dense<0.000000e+00> : vector<64x64xf32>
    %58 = tpu.matmul %55, %57, %cst_52 {dimension_numbers = #tpu.dot_dimension_numbers<[1], [0], [0], [1], [0, 0, 1, 1], [], []>} : vector<64x32xbf16>, vector<32x64xbf16>, vector<64x64xf32> -> vector<64x64xf32>
    %59 = arith.addf %51, %58 : vector<64x64xf32>
    %c8 = arith.constant 8 : index
    %c0_53 = arith.constant 0 : index
    %c0_54 = arith.constant 0 : index
    %60 = vector.load %arg2[%c8, %c0_53, %c0_54] : memref<9x64x64xbf16, #tpu.memory_space<vmem>>, vector<1x64x64xbf16>
    %61 = vector.shape_cast %60 : vector<1x64x64xbf16> to vector<64x64xbf16>
    %cst_55 = arith.constant dense<0.000000e+00> : vector<64x32xf32>
    %62 = tpu.matmul %61, %0, %cst_55 {dimension_numbers = #tpu.dot_dimension_numbers<[1], [0], [0], [1], [0, 0, 1, 1], [], []>} : vector<64x64xbf16>, vector<64x32xbf16>, vector<64x32xf32> -> vector<64x32xf32>
    %63 = arith.truncf %62 : vector<64x32xf32> to vector<64x32xbf16>
    %c8_56 = arith.constant 8 : index
    %c0_57 = arith.constant 0 : index
    %c0_58 = arith.constant 0 : index
    %64 = vector.load %arg3[%c8_56, %c0_57, %c0_58] : memref<9x32x64xbf16, #tpu.memory_space<vmem>>, vector<1x32x64xbf16>
    %65 = vector.shape_cast %64 : vector<1x32x64xbf16> to vector<32x64xbf16>
    %cst_59 = arith.constant dense<0.000000e+00> : vector<64x64xf32>
    %66 = tpu.matmul %63, %65, %cst_59 {dimension_numbers = #tpu.dot_dimension_numbers<[1], [0], [0], [1], [0, 0, 1, 1], [], []>} : vector<64x32xbf16>, vector<32x64xbf16>, vector<64x64xf32> -> vector<64x64xf32>
    %67 = arith.addf %59, %66 : vector<64x64xf32>
    %c0_60 = arith.constant 0 : index
    %c0_61 = arith.constant 0 : index
    %68 = vector.load %arg4[%c0_60, %c0_61] : memref<1x64xf32, #tpu.memory_space<vmem>>, vector<1x64xf32>
    %69 = vector.broadcast %68 : vector<1x64xf32> to vector<64x64xf32>
    %70 = arith.mulf %67, %69 : vector<64x64xf32>
    %c0_62 = arith.constant 0 : index
    %c0_63 = arith.constant 0 : index
    %71 = vector.load %arg5[%c0_62, %c0_63] : memref<1x64xf32, #tpu.memory_space<vmem>>, vector<1x64xf32>
    %72 = vector.broadcast %71 : vector<1x64xf32> to vector<64x64xf32>
    %73 = arith.addf %70, %72 : vector<64x64xf32>
    %cst_64 = arith.constant 0.000000e+00 : f32
    %74 = vector.broadcast %cst_64 : f32 to vector<64x64xf32>
    %75 = arith.maximumf %73, %74 : vector<64x64xf32>
    %76 = arith.truncf %75 : vector<64x64xf32> to vector<64x64xbf16>
    %c4_65 = arith.constant 4 : index
    %c0_66 = arith.constant 0 : index
    %c0_67 = arith.constant 0 : index
    %77 = vector.load %arg6[%c4_65, %c0_66, %c0_67] : memref<9x64x128xbf16, #tpu.memory_space<vmem>>, vector<1x64x128xbf16>
    %78 = vector.shape_cast %77 : vector<1x64x128xbf16> to vector<64x128xbf16>
    %cst_68 = arith.constant dense<0.000000e+00> : vector<64x128xf32>
    %79 = tpu.matmul %76, %78, %cst_68 {dimension_numbers = #tpu.dot_dimension_numbers<[1], [0], [0], [1], [0, 0, 1, 1], [], []>} : vector<64x64xbf16>, vector<64x128xbf16>, vector<64x128xf32> -> vector<64x128xf32>
    %c0_69 = arith.constant 0 : index
    %c0_70 = arith.constant 0 : index
    %c0_71 = arith.constant 0 : index
    %80 = vector.load %arg2[%c0_69, %c0_70, %c0_71] : memref<9x64x64xbf16, #tpu.memory_space<vmem>>, vector<1x64x64xbf16>
    %81 = vector.shape_cast %80 : vector<1x64x64xbf16> to vector<64x64xbf16>
    %cst_72 = arith.constant dense<0.000000e+00> : vector<64x64xf32>
    %82 = tpu.matmul %81, %76, %cst_72 {dimension_numbers = #tpu.dot_dimension_numbers<[1], [0], [0], [1], [0, 0, 1, 1], [], []>} : vector<64x64xbf16>, vector<64x64xbf16>, vector<64x64xf32> -> vector<64x64xf32>
    %83 = arith.truncf %82 : vector<64x64xf32> to vector<64x64xbf16>
    %c0_73 = arith.constant 0 : index
    %c0_74 = arith.constant 0 : index
    %c0_75 = arith.constant 0 : index
    %84 = vector.load %arg6[%c0_73, %c0_74, %c0_75] : memref<9x64x128xbf16, #tpu.memory_space<vmem>>, vector<1x64x128xbf16>
    %85 = vector.shape_cast %84 : vector<1x64x128xbf16> to vector<64x128xbf16>
    %cst_76 = arith.constant dense<0.000000e+00> : vector<64x128xf32>
    %86 = tpu.matmul %83, %85, %cst_76 {dimension_numbers = #tpu.dot_dimension_numbers<[1], [0], [0], [1], [0, 0, 1, 1], [], []>} : vector<64x64xbf16>, vector<64x128xbf16>, vector<64x128xf32> -> vector<64x128xf32>
    %87 = arith.addf %79, %86 : vector<64x128xf32>
    %c1_77 = arith.constant 1 : index
    %c0_78 = arith.constant 0 : index
    %c0_79 = arith.constant 0 : index
    %88 = vector.load %arg2[%c1_77, %c0_78, %c0_79] : memref<9x64x64xbf16, #tpu.memory_space<vmem>>, vector<1x64x64xbf16>
    %89 = vector.shape_cast %88 : vector<1x64x64xbf16> to vector<64x64xbf16>
    %cst_80 = arith.constant dense<0.000000e+00> : vector<64x64xf32>
    %90 = tpu.matmul %89, %76, %cst_80 {dimension_numbers = #tpu.dot_dimension_numbers<[1], [0], [0], [1], [0, 0, 1, 1], [], []>} : vector<64x64xbf16>, vector<64x64xbf16>, vector<64x64xf32> -> vector<64x64xf32>
    %91 = arith.truncf %90 : vector<64x64xf32> to vector<64x64xbf16>
    %c1_81 = arith.constant 1 : index
    %c0_82 = arith.constant 0 : index
    %c0_83 = arith.constant 0 : index
    %92 = vector.load %arg6[%c1_81, %c0_82, %c0_83] : memref<9x64x128xbf16, #tpu.memory_space<vmem>>, vector<1x64x128xbf16>
    %93 = vector.shape_cast %92 : vector<1x64x128xbf16> to vector<64x128xbf16>
    %cst_84 = arith.constant dense<0.000000e+00> : vector<64x128xf32>
    %94 = tpu.matmul %91, %93, %cst_84 {dimension_numbers = #tpu.dot_dimension_numbers<[1], [0], [0], [1], [0, 0, 1, 1], [], []>} : vector<64x64xbf16>, vector<64x128xbf16>, vector<64x128xf32> -> vector<64x128xf32>
    %95 = arith.addf %87, %94 : vector<64x128xf32>
    %c2_85 = arith.constant 2 : index
    %c0_86 = arith.constant 0 : index
    %c0_87 = arith.constant 0 : index
    %96 = vector.load %arg2[%c2_85, %c0_86, %c0_87] : memref<9x64x64xbf16, #tpu.memory_space<vmem>>, vector<1x64x64xbf16>
    %97 = vector.shape_cast %96 : vector<1x64x64xbf16> to vector<64x64xbf16>
    %cst_88 = arith.constant dense<0.000000e+00> : vector<64x64xf32>
    %98 = tpu.matmul %97, %76, %cst_88 {dimension_numbers = #tpu.dot_dimension_numbers<[1], [0], [0], [1], [0, 0, 1, 1], [], []>} : vector<64x64xbf16>, vector<64x64xbf16>, vector<64x64xf32> -> vector<64x64xf32>
    %99 = arith.truncf %98 : vector<64x64xf32> to vector<64x64xbf16>
    %c2_89 = arith.constant 2 : index
    %c0_90 = arith.constant 0 : index
    %c0_91 = arith.constant 0 : index
    %100 = vector.load %arg6[%c2_89, %c0_90, %c0_91] : memref<9x64x128xbf16, #tpu.memory_space<vmem>>, vector<1x64x128xbf16>
    %101 = vector.shape_cast %100 : vector<1x64x128xbf16> to vector<64x128xbf16>
    %cst_92 = arith.constant dense<0.000000e+00> : vector<64x128xf32>
    %102 = tpu.matmul %99, %101, %cst_92 {dimension_numbers = #tpu.dot_dimension_numbers<[1], [0], [0], [1], [0, 0, 1, 1], [], []>} : vector<64x64xbf16>, vector<64x128xbf16>, vector<64x128xf32> -> vector<64x128xf32>
    %103 = arith.addf %95, %102 : vector<64x128xf32>
    %c3_93 = arith.constant 3 : index
    %c0_94 = arith.constant 0 : index
    %c0_95 = arith.constant 0 : index
    %104 = vector.load %arg2[%c3_93, %c0_94, %c0_95] : memref<9x64x64xbf16, #tpu.memory_space<vmem>>, vector<1x64x64xbf16>
    %105 = vector.shape_cast %104 : vector<1x64x64xbf16> to vector<64x64xbf16>
    %cst_96 = arith.constant dense<0.000000e+00> : vector<64x64xf32>
    %106 = tpu.matmul %105, %76, %cst_96 {dimension_numbers = #tpu.dot_dimension_numbers<[1], [0], [0], [1], [0, 0, 1, 1], [], []>} : vector<64x64xbf16>, vector<64x64xbf16>, vector<64x64xf32> -> vector<64x64xf32>
    %107 = arith.truncf %106 : vector<64x64xf32> to vector<64x64xbf16>
    %c3_97 = arith.constant 3 : index
    %c0_98 = arith.constant 0 : index
    %c0_99 = arith.constant 0 : index
    %108 = vector.load %arg6[%c3_97, %c0_98, %c0_99] : memref<9x64x128xbf16, #tpu.memory_space<vmem>>, vector<1x64x128xbf16>
    %109 = vector.shape_cast %108 : vector<1x64x128xbf16> to vector<64x128xbf16>
    %cst_100 = arith.constant dense<0.000000e+00> : vector<64x128xf32>
    %110 = tpu.matmul %107, %109, %cst_100 {dimension_numbers = #tpu.dot_dimension_numbers<[1], [0], [0], [1], [0, 0, 1, 1], [], []>} : vector<64x64xbf16>, vector<64x128xbf16>, vector<64x128xf32> -> vector<64x128xf32>
    %111 = arith.addf %103, %110 : vector<64x128xf32>
    %c5_101 = arith.constant 5 : index
    %c0_102 = arith.constant 0 : index
    %c0_103 = arith.constant 0 : index
    %112 = vector.load %arg2[%c5_101, %c0_102, %c0_103] : memref<9x64x64xbf16, #tpu.memory_space<vmem>>, vector<1x64x64xbf16>
    %113 = vector.shape_cast %112 : vector<1x64x64xbf16> to vector<64x64xbf16>
    %cst_104 = arith.constant dense<0.000000e+00> : vector<64x64xf32>
    %114 = tpu.matmul %113, %76, %cst_104 {dimension_numbers = #tpu.dot_dimension_numbers<[1], [0], [0], [1], [0, 0, 1, 1], [], []>} : vector<64x64xbf16>, vector<64x64xbf16>, vector<64x64xf32> -> vector<64x64xf32>
    %115 = arith.truncf %114 : vector<64x64xf32> to vector<64x64xbf16>
    %c5_105 = arith.constant 5 : index
    %c0_106 = arith.constant 0 : index
    %c0_107 = arith.constant 0 : index
    %116 = vector.load %arg6[%c5_105, %c0_106, %c0_107] : memref<9x64x128xbf16, #tpu.memory_space<vmem>>, vector<1x64x128xbf16>
    %117 = vector.shape_cast %116 : vector<1x64x128xbf16> to vector<64x128xbf16>
    %cst_108 = arith.constant dense<0.000000e+00> : vector<64x128xf32>
    %118 = tpu.matmul %115, %117, %cst_108 {dimension_numbers = #tpu.dot_dimension_numbers<[1], [0], [0], [1], [0, 0, 1, 1], [], []>} : vector<64x64xbf16>, vector<64x128xbf16>, vector<64x128xf32> -> vector<64x128xf32>
    %119 = arith.addf %111, %118 : vector<64x128xf32>
    %c6_109 = arith.constant 6 : index
    %c0_110 = arith.constant 0 : index
    %c0_111 = arith.constant 0 : index
    %120 = vector.load %arg2[%c6_109, %c0_110, %c0_111] : memref<9x64x64xbf16, #tpu.memory_space<vmem>>, vector<1x64x64xbf16>
    %121 = vector.shape_cast %120 : vector<1x64x64xbf16> to vector<64x64xbf16>
    %cst_112 = arith.constant dense<0.000000e+00> : vector<64x64xf32>
    %122 = tpu.matmul %121, %76, %cst_112 {dimension_numbers = #tpu.dot_dimension_numbers<[1], [0], [0], [1], [0, 0, 1, 1], [], []>} : vector<64x64xbf16>, vector<64x64xbf16>, vector<64x64xf32> -> vector<64x64xf32>
    %123 = arith.truncf %122 : vector<64x64xf32> to vector<64x64xbf16>
    %c6_113 = arith.constant 6 : index
    %c0_114 = arith.constant 0 : index
    %c0_115 = arith.constant 0 : index
    %124 = vector.load %arg6[%c6_113, %c0_114, %c0_115] : memref<9x64x128xbf16, #tpu.memory_space<vmem>>, vector<1x64x128xbf16>
    %125 = vector.shape_cast %124 : vector<1x64x128xbf16> to vector<64x128xbf16>
    %cst_116 = arith.constant dense<0.000000e+00> : vector<64x128xf32>
    %126 = tpu.matmul %123, %125, %cst_116 {dimension_numbers = #tpu.dot_dimension_numbers<[1], [0], [0], [1], [0, 0, 1, 1], [], []>} : vector<64x64xbf16>, vector<64x128xbf16>, vector<64x128xf32> -> vector<64x128xf32>
    %127 = arith.addf %119, %126 : vector<64x128xf32>
    %c7_117 = arith.constant 7 : index
    %c0_118 = arith.constant 0 : index
    %c0_119 = arith.constant 0 : index
    %128 = vector.load %arg2[%c7_117, %c0_118, %c0_119] : memref<9x64x64xbf16, #tpu.memory_space<vmem>>, vector<1x64x64xbf16>
    %129 = vector.shape_cast %128 : vector<1x64x64xbf16> to vector<64x64xbf16>
    %cst_120 = arith.constant dense<0.000000e+00> : vector<64x64xf32>
    %130 = tpu.matmul %129, %76, %cst_120 {dimension_numbers = #tpu.dot_dimension_numbers<[1], [0], [0], [1], [0, 0, 1, 1], [], []>} : vector<64x64xbf16>, vector<64x64xbf16>, vector<64x64xf32> -> vector<64x64xf32>
    %131 = arith.truncf %130 : vector<64x64xf32> to vector<64x64xbf16>
    %c7_121 = arith.constant 7 : index
    %c0_122 = arith.constant 0 : index
    %c0_123 = arith.constant 0 : index
    %132 = vector.load %arg6[%c7_121, %c0_122, %c0_123] : memref<9x64x128xbf16, #tpu.memory_space<vmem>>, vector<1x64x128xbf16>
    %133 = vector.shape_cast %132 : vector<1x64x128xbf16> to vector<64x128xbf16>
    %cst_124 = arith.constant dense<0.000000e+00> : vector<64x128xf32>
    %134 = tpu.matmul %131, %133, %cst_124 {dimension_numbers = #tpu.dot_dimension_numbers<[1], [0], [0], [1], [0, 0, 1, 1], [], []>} : vector<64x64xbf16>, vector<64x128xbf16>, vector<64x128xf32> -> vector<64x128xf32>
    %135 = arith.addf %127, %134 : vector<64x128xf32>
    %c8_125 = arith.constant 8 : index
    %c0_126 = arith.constant 0 : index
    %c0_127 = arith.constant 0 : index
    %136 = vector.load %arg2[%c8_125, %c0_126, %c0_127] : memref<9x64x64xbf16, #tpu.memory_space<vmem>>, vector<1x64x64xbf16>
    %137 = vector.shape_cast %136 : vector<1x64x64xbf16> to vector<64x64xbf16>
    %cst_128 = arith.constant dense<0.000000e+00> : vector<64x64xf32>
    %138 = tpu.matmul %137, %76, %cst_128 {dimension_numbers = #tpu.dot_dimension_numbers<[1], [0], [0], [1], [0, 0, 1, 1], [], []>} : vector<64x64xbf16>, vector<64x64xbf16>, vector<64x64xf32> -> vector<64x64xf32>
    %139 = arith.truncf %138 : vector<64x64xf32> to vector<64x64xbf16>
    %c8_129 = arith.constant 8 : index
    %c0_130 = arith.constant 0 : index
    %c0_131 = arith.constant 0 : index
    %140 = vector.load %arg6[%c8_129, %c0_130, %c0_131] : memref<9x64x128xbf16, #tpu.memory_space<vmem>>, vector<1x64x128xbf16>
    %141 = vector.shape_cast %140 : vector<1x64x128xbf16> to vector<64x128xbf16>
    %cst_132 = arith.constant dense<0.000000e+00> : vector<64x128xf32>
    %142 = tpu.matmul %139, %141, %cst_132 {dimension_numbers = #tpu.dot_dimension_numbers<[1], [0], [0], [1], [0, 0, 1, 1], [], []>} : vector<64x64xbf16>, vector<64x128xbf16>, vector<64x128xf32> -> vector<64x128xf32>
    %143 = arith.addf %135, %142 : vector<64x128xf32>
    %c0_133 = arith.constant 0 : index
    %c0_134 = arith.constant 0 : index
    %144 = vector.load %arg7[%c0_133, %c0_134] : memref<1x128xf32, #tpu.memory_space<vmem>>, vector<1x128xf32>
    %145 = vector.broadcast %144 : vector<1x128xf32> to vector<64x128xf32>
    %146 = arith.mulf %143, %145 : vector<64x128xf32>
    %c0_135 = arith.constant 0 : index
    %c0_136 = arith.constant 0 : index
    %147 = vector.load %arg8[%c0_135, %c0_136] : memref<1x128xf32, #tpu.memory_space<vmem>>, vector<1x128xf32>
    %148 = vector.broadcast %147 : vector<1x128xf32> to vector<64x128xf32>
    %149 = arith.addf %146, %148 : vector<64x128xf32>
    %cst_137 = arith.constant 0.000000e+00 : f32
    %150 = vector.broadcast %cst_137 : f32 to vector<64x128xf32>
    %151 = arith.maximumf %149, %150 : vector<64x128xf32>
    %152 = arith.truncf %151 : vector<64x128xf32> to vector<64x128xbf16>
    %c4_138 = arith.constant 4 : index
    %c0_139 = arith.constant 0 : index
    %c0_140 = arith.constant 0 : index
    %153 = vector.load %arg9[%c4_138, %c0_139, %c0_140] : memref<9x128x256xbf16, #tpu.memory_space<vmem>>, vector<1x128x256xbf16>
    %154 = vector.shape_cast %153 : vector<1x128x256xbf16> to vector<128x256xbf16>
    %cst_141 = arith.constant dense<0.000000e+00> : vector<64x256xf32>
    %155 = tpu.matmul %152, %154, %cst_141 {dimension_numbers = #tpu.dot_dimension_numbers<[1], [0], [0], [1], [0, 0, 1, 1], [], []>} : vector<64x128xbf16>, vector<128x256xbf16>, vector<64x256xf32> -> vector<64x256xf32>
    %c0_142 = arith.constant 0 : index
    %c0_143 = arith.constant 0 : index
    %c0_144 = arith.constant 0 : index
    %156 = vector.load %arg2[%c0_142, %c0_143, %c0_144] : memref<9x64x64xbf16, #tpu.memory_space<vmem>>, vector<1x64x64xbf16>
    %157 = vector.shape_cast %156 : vector<1x64x64xbf16> to vector<64x64xbf16>
    %cst_145 = arith.constant dense<0.000000e+00> : vector<64x128xf32>
    %158 = tpu.matmul %157, %152, %cst_145 {dimension_numbers = #tpu.dot_dimension_numbers<[1], [0], [0], [1], [0, 0, 1, 1], [], []>} : vector<64x64xbf16>, vector<64x128xbf16>, vector<64x128xf32> -> vector<64x128xf32>
    %159 = arith.truncf %158 : vector<64x128xf32> to vector<64x128xbf16>
    %c0_146 = arith.constant 0 : index
    %c0_147 = arith.constant 0 : index
    %c0_148 = arith.constant 0 : index
    %160 = vector.load %arg9[%c0_146, %c0_147, %c0_148] : memref<9x128x256xbf16, #tpu.memory_space<vmem>>, vector<1x128x256xbf16>
    %161 = vector.shape_cast %160 : vector<1x128x256xbf16> to vector<128x256xbf16>
    %cst_149 = arith.constant dense<0.000000e+00> : vector<64x256xf32>
    %162 = tpu.matmul %159, %161, %cst_149 {dimension_numbers = #tpu.dot_dimension_numbers<[1], [0], [0], [1], [0, 0, 1, 1], [], []>} : vector<64x128xbf16>, vector<128x256xbf16>, vector<64x256xf32> -> vector<64x256xf32>
    %163 = arith.addf %155, %162 : vector<64x256xf32>
    %c1_150 = arith.constant 1 : index
    %c0_151 = arith.constant 0 : index
    %c0_152 = arith.constant 0 : index
    %164 = vector.load %arg2[%c1_150, %c0_151, %c0_152] : memref<9x64x64xbf16, #tpu.memory_space<vmem>>, vector<1x64x64xbf16>
    %165 = vector.shape_cast %164 : vector<1x64x64xbf16> to vector<64x64xbf16>
    %cst_153 = arith.constant dense<0.000000e+00> : vector<64x128xf32>
    %166 = tpu.matmul %165, %152, %cst_153 {dimension_numbers = #tpu.dot_dimension_numbers<[1], [0], [0], [1], [0, 0, 1, 1], [], []>} : vector<64x64xbf16>, vector<64x128xbf16>, vector<64x128xf32> -> vector<64x128xf32>
    %167 = arith.truncf %166 : vector<64x128xf32> to vector<64x128xbf16>
    %c1_154 = arith.constant 1 : index
    %c0_155 = arith.constant 0 : index
    %c0_156 = arith.constant 0 : index
    %168 = vector.load %arg9[%c1_154, %c0_155, %c0_156] : memref<9x128x256xbf16, #tpu.memory_space<vmem>>, vector<1x128x256xbf16>
    %169 = vector.shape_cast %168 : vector<1x128x256xbf16> to vector<128x256xbf16>
    %cst_157 = arith.constant dense<0.000000e+00> : vector<64x256xf32>
    %170 = tpu.matmul %167, %169, %cst_157 {dimension_numbers = #tpu.dot_dimension_numbers<[1], [0], [0], [1], [0, 0, 1, 1], [], []>} : vector<64x128xbf16>, vector<128x256xbf16>, vector<64x256xf32> -> vector<64x256xf32>
    %171 = arith.addf %163, %170 : vector<64x256xf32>
    %c2_158 = arith.constant 2 : index
    %c0_159 = arith.constant 0 : index
    %c0_160 = arith.constant 0 : index
    %172 = vector.load %arg2[%c2_158, %c0_159, %c0_160] : memref<9x64x64xbf16, #tpu.memory_space<vmem>>, vector<1x64x64xbf16>
    %173 = vector.shape_cast %172 : vector<1x64x64xbf16> to vector<64x64xbf16>
    %cst_161 = arith.constant dense<0.000000e+00> : vector<64x128xf32>
    %174 = tpu.matmul %173, %152, %cst_161 {dimension_numbers = #tpu.dot_dimension_numbers<[1], [0], [0], [1], [0, 0, 1, 1], [], []>} : vector<64x64xbf16>, vector<64x128xbf16>, vector<64x128xf32> -> vector<64x128xf32>
    %175 = arith.truncf %174 : vector<64x128xf32> to vector<64x128xbf16>
    %c2_162 = arith.constant 2 : index
    %c0_163 = arith.constant 0 : index
    %c0_164 = arith.constant 0 : index
    %176 = vector.load %arg9[%c2_162, %c0_163, %c0_164] : memref<9x128x256xbf16, #tpu.memory_space<vmem>>, vector<1x128x256xbf16>
    %177 = vector.shape_cast %176 : vector<1x128x256xbf16> to vector<128x256xbf16>
    %cst_165 = arith.constant dense<0.000000e+00> : vector<64x256xf32>
    %178 = tpu.matmul %175, %177, %cst_165 {dimension_numbers = #tpu.dot_dimension_numbers<[1], [0], [0], [1], [0, 0, 1, 1], [], []>} : vector<64x128xbf16>, vector<128x256xbf16>, vector<64x256xf32> -> vector<64x256xf32>
    %179 = arith.addf %171, %178 : vector<64x256xf32>
    %c3_166 = arith.constant 3 : index
    %c0_167 = arith.constant 0 : index
    %c0_168 = arith.constant 0 : index
    %180 = vector.load %arg2[%c3_166, %c0_167, %c0_168] : memref<9x64x64xbf16, #tpu.memory_space<vmem>>, vector<1x64x64xbf16>
    %181 = vector.shape_cast %180 : vector<1x64x64xbf16> to vector<64x64xbf16>
    %cst_169 = arith.constant dense<0.000000e+00> : vector<64x128xf32>
    %182 = tpu.matmul %181, %152, %cst_169 {dimension_numbers = #tpu.dot_dimension_numbers<[1], [0], [0], [1], [0, 0, 1, 1], [], []>} : vector<64x64xbf16>, vector<64x128xbf16>, vector<64x128xf32> -> vector<64x128xf32>
    %183 = arith.truncf %182 : vector<64x128xf32> to vector<64x128xbf16>
    %c3_170 = arith.constant 3 : index
    %c0_171 = arith.constant 0 : index
    %c0_172 = arith.constant 0 : index
    %184 = vector.load %arg9[%c3_170, %c0_171, %c0_172] : memref<9x128x256xbf16, #tpu.memory_space<vmem>>, vector<1x128x256xbf16>
    %185 = vector.shape_cast %184 : vector<1x128x256xbf16> to vector<128x256xbf16>
    %cst_173 = arith.constant dense<0.000000e+00> : vector<64x256xf32>
    %186 = tpu.matmul %183, %185, %cst_173 {dimension_numbers = #tpu.dot_dimension_numbers<[1], [0], [0], [1], [0, 0, 1, 1], [], []>} : vector<64x128xbf16>, vector<128x256xbf16>, vector<64x256xf32> -> vector<64x256xf32>
    %187 = arith.addf %179, %186 : vector<64x256xf32>
    %c5_174 = arith.constant 5 : index
    %c0_175 = arith.constant 0 : index
    %c0_176 = arith.constant 0 : index
    %188 = vector.load %arg2[%c5_174, %c0_175, %c0_176] : memref<9x64x64xbf16, #tpu.memory_space<vmem>>, vector<1x64x64xbf16>
    %189 = vector.shape_cast %188 : vector<1x64x64xbf16> to vector<64x64xbf16>
    %cst_177 = arith.constant dense<0.000000e+00> : vector<64x128xf32>
    %190 = tpu.matmul %189, %152, %cst_177 {dimension_numbers = #tpu.dot_dimension_numbers<[1], [0], [0], [1], [0, 0, 1, 1], [], []>} : vector<64x64xbf16>, vector<64x128xbf16>, vector<64x128xf32> -> vector<64x128xf32>
    %191 = arith.truncf %190 : vector<64x128xf32> to vector<64x128xbf16>
    %c5_178 = arith.constant 5 : index
    %c0_179 = arith.constant 0 : index
    %c0_180 = arith.constant 0 : index
    %192 = vector.load %arg9[%c5_178, %c0_179, %c0_180] : memref<9x128x256xbf16, #tpu.memory_space<vmem>>, vector<1x128x256xbf16>
    %193 = vector.shape_cast %192 : vector<1x128x256xbf16> to vector<128x256xbf16>
    %cst_181 = arith.constant dense<0.000000e+00> : vector<64x256xf32>
    %194 = tpu.matmul %191, %193, %cst_181 {dimension_numbers = #tpu.dot_dimension_numbers<[1], [0], [0], [1], [0, 0, 1, 1], [], []>} : vector<64x128xbf16>, vector<128x256xbf16>, vector<64x256xf32> -> vector<64x256xf32>
    %195 = arith.addf %187, %194 : vector<64x256xf32>
    %c6_182 = arith.constant 6 : index
    %c0_183 = arith.constant 0 : index
    %c0_184 = arith.constant 0 : index
    %196 = vector.load %arg2[%c6_182, %c0_183, %c0_184] : memref<9x64x64xbf16, #tpu.memory_space<vmem>>, vector<1x64x64xbf16>
    %197 = vector.shape_cast %196 : vector<1x64x64xbf16> to vector<64x64xbf16>
    %cst_185 = arith.constant dense<0.000000e+00> : vector<64x128xf32>
    %198 = tpu.matmul %197, %152, %cst_185 {dimension_numbers = #tpu.dot_dimension_numbers<[1], [0], [0], [1], [0, 0, 1, 1], [], []>} : vector<64x64xbf16>, vector<64x128xbf16>, vector<64x128xf32> -> vector<64x128xf32>
    %199 = arith.truncf %198 : vector<64x128xf32> to vector<64x128xbf16>
    %c6_186 = arith.constant 6 : index
    %c0_187 = arith.constant 0 : index
    %c0_188 = arith.constant 0 : index
    %200 = vector.load %arg9[%c6_186, %c0_187, %c0_188] : memref<9x128x256xbf16, #tpu.memory_space<vmem>>, vector<1x128x256xbf16>
    %201 = vector.shape_cast %200 : vector<1x128x256xbf16> to vector<128x256xbf16>
    %cst_189 = arith.constant dense<0.000000e+00> : vector<64x256xf32>
    %202 = tpu.matmul %199, %201, %cst_189 {dimension_numbers = #tpu.dot_dimension_numbers<[1], [0], [0], [1], [0, 0, 1, 1], [], []>} : vector<64x128xbf16>, vector<128x256xbf16>, vector<64x256xf32> -> vector<64x256xf32>
    %203 = arith.addf %195, %202 : vector<64x256xf32>
    %c7_190 = arith.constant 7 : index
    %c0_191 = arith.constant 0 : index
    %c0_192 = arith.constant 0 : index
    %204 = vector.load %arg2[%c7_190, %c0_191, %c0_192] : memref<9x64x64xbf16, #tpu.memory_space<vmem>>, vector<1x64x64xbf16>
    %205 = vector.shape_cast %204 : vector<1x64x64xbf16> to vector<64x64xbf16>
    %cst_193 = arith.constant dense<0.000000e+00> : vector<64x128xf32>
    %206 = tpu.matmul %205, %152, %cst_193 {dimension_numbers = #tpu.dot_dimension_numbers<[1], [0], [0], [1], [0, 0, 1, 1], [], []>} : vector<64x64xbf16>, vector<64x128xbf16>, vector<64x128xf32> -> vector<64x128xf32>
    %207 = arith.truncf %206 : vector<64x128xf32> to vector<64x128xbf16>
    %c7_194 = arith.constant 7 : index
    %c0_195 = arith.constant 0 : index
    %c0_196 = arith.constant 0 : index
    %208 = vector.load %arg9[%c7_194, %c0_195, %c0_196] : memref<9x128x256xbf16, #tpu.memory_space<vmem>>, vector<1x128x256xbf16>
    %209 = vector.shape_cast %208 : vector<1x128x256xbf16> to vector<128x256xbf16>
    %cst_197 = arith.constant dense<0.000000e+00> : vector<64x256xf32>
    %210 = tpu.matmul %207, %209, %cst_197 {dimension_numbers = #tpu.dot_dimension_numbers<[1], [0], [0], [1], [0, 0, 1, 1], [], []>} : vector<64x128xbf16>, vector<128x256xbf16>, vector<64x256xf32> -> vector<64x256xf32>
    %211 = arith.addf %203, %210 : vector<64x256xf32>
    %c8_198 = arith.constant 8 : index
    %c0_199 = arith.constant 0 : index
    %c0_200 = arith.constant 0 : index
    %212 = vector.load %arg2[%c8_198, %c0_199, %c0_200] : memref<9x64x64xbf16, #tpu.memory_space<vmem>>, vector<1x64x64xbf16>
    %213 = vector.shape_cast %212 : vector<1x64x64xbf16> to vector<64x64xbf16>
    %cst_201 = arith.constant dense<0.000000e+00> : vector<64x128xf32>
    %214 = tpu.matmul %213, %152, %cst_201 {dimension_numbers = #tpu.dot_dimension_numbers<[1], [0], [0], [1], [0, 0, 1, 1], [], []>} : vector<64x64xbf16>, vector<64x128xbf16>, vector<64x128xf32> -> vector<64x128xf32>
    %215 = arith.truncf %214 : vector<64x128xf32> to vector<64x128xbf16>
    %c8_202 = arith.constant 8 : index
    %c0_203 = arith.constant 0 : index
    %c0_204 = arith.constant 0 : index
    %216 = vector.load %arg9[%c8_202, %c0_203, %c0_204] : memref<9x128x256xbf16, #tpu.memory_space<vmem>>, vector<1x128x256xbf16>
    %217 = vector.shape_cast %216 : vector<1x128x256xbf16> to vector<128x256xbf16>
    %cst_205 = arith.constant dense<0.000000e+00> : vector<64x256xf32>
    %218 = tpu.matmul %215, %217, %cst_205 {dimension_numbers = #tpu.dot_dimension_numbers<[1], [0], [0], [1], [0, 0, 1, 1], [], []>} : vector<64x128xbf16>, vector<128x256xbf16>, vector<64x256xf32> -> vector<64x256xf32>
    %219 = arith.addf %211, %218 : vector<64x256xf32>
    %c0_206 = arith.constant 0 : index
    %c0_207 = arith.constant 0 : index
    %220 = vector.load %arg10[%c0_206, %c0_207] : memref<1x256xf32, #tpu.memory_space<vmem>>, vector<1x256xf32>
    %221 = vector.broadcast %220 : vector<1x256xf32> to vector<64x256xf32>
    %222 = arith.mulf %219, %221 : vector<64x256xf32>
    %c0_208 = arith.constant 0 : index
    %c0_209 = arith.constant 0 : index
    %223 = vector.load %arg11[%c0_208, %c0_209] : memref<1x256xf32, #tpu.memory_space<vmem>>, vector<1x256xf32>
    %224 = vector.broadcast %223 : vector<1x256xf32> to vector<64x256xf32>
    %225 = arith.addf %222, %224 : vector<64x256xf32>
    %cst_210 = arith.constant 0.000000e+00 : f32
    %226 = vector.broadcast %cst_210 : f32 to vector<64x256xf32>
    %227 = arith.maximumf %225, %226 : vector<64x256xf32>
    %228 = arith.truncf %227 : vector<64x256xf32> to vector<64x256xbf16>
    %c0_211 = arith.constant 0 : index
    %c0_212 = arith.constant 0 : index
    %229 = vector.load %arg12[%c0_211, %c0_212] : memref<256x32xbf16, #tpu.memory_space<vmem>>, vector<256x32xbf16>
    %cst_213 = arith.constant dense<0.000000e+00> : vector<64x32xf32>
    %230 = tpu.matmul %228, %229, %cst_213 {dimension_numbers = #tpu.dot_dimension_numbers<[1], [0], [0], [1], [0, 0, 1, 1], [], []>} : vector<64x256xbf16>, vector<256x32xbf16>, vector<64x32xf32> -> vector<64x32xf32>
    %c0_214 = arith.constant 0 : index
    %c0_215 = arith.constant 0 : index
    %231 = vector.load %arg13[%c0_214, %c0_215] : memref<1x32xf32, #tpu.memory_space<vmem>>, vector<1x32xf32>
    %232 = vector.broadcast %231 : vector<1x32xf32> to vector<64x32xf32>
    %233 = arith.mulf %230, %232 : vector<64x32xf32>
    %c0_216 = arith.constant 0 : index
    %c0_217 = arith.constant 0 : index
    %234 = vector.load %arg14[%c0_216, %c0_217] : memref<1x32xf32, #tpu.memory_space<vmem>>, vector<1x32xf32>
    %235 = vector.broadcast %234 : vector<1x32xf32> to vector<64x32xf32>
    %236 = arith.addf %233, %235 : vector<64x32xf32>
    %cst_218 = arith.constant 0.000000e+00 : f32
    %237 = vector.broadcast %cst_218 : f32 to vector<64x32xf32>
    %238 = arith.maximumf %236, %237 : vector<64x32xf32>
    %239 = arith.truncf %238 : vector<64x32xf32> to vector<64x32xbf16>
    %c0_219 = arith.constant 0 : index
    %c0_220 = arith.constant 0 : index
    %240 = vector.load %arg15[%c0_219, %c0_220] : memref<64x32xbf16, #tpu.memory_space<vmem>>, vector<64x32xbf16>
    tpu.vector_store %arg15[%c0_219, %c0_220], %239 {strides = array<i32>} : memref<64x32xbf16, #tpu.memory_space<vmem>>, vector<64x32xbf16>,
    return
  }
  func.func @transform_0(%arg0: i32) -> (i32, i32) {
    %c0_i32 = arith.constant 0 : i32
    %c0_i32_0 = arith.constant 0 : i32
    return %arg0, %c0_i32 : i32, i32
  }
  func.func @transform_1(%arg0: i32) -> (i32, i32, i32) {
    %c0_i32 = arith.constant 0 : i32
    %c0_i32_0 = arith.constant 0 : i32
    %c0_i32_1 = arith.constant 0 : i32
    %c0_i32_2 = arith.constant 0 : i32
    return %c0_i32, %c0_i32_0, %c0_i32_1 : i32, i32, i32
  }
  func.func @transform_2(%arg0: i32) -> (i32, i32, i32) {
    %c0_i32 = arith.constant 0 : i32
    %c0_i32_0 = arith.constant 0 : i32
    %c0_i32_1 = arith.constant 0 : i32
    %c0_i32_2 = arith.constant 0 : i32
    return %c0_i32, %c0_i32_0, %c0_i32_1 : i32, i32, i32
  }
  func.func @transform_3(%arg0: i32) -> (i32, i32) {
    %c0_i32 = arith.constant 0 : i32
    %c0_i32_0 = arith.constant 0 : i32
    %c0_i32_1 = arith.constant 0 : i32
    return %c0_i32, %c0_i32_0 : i32, i32
  }
  func.func @transform_4(%arg0: i32) -> (i32, i32) {
    %c0_i32 = arith.constant 0 : i32
    %c0_i32_0 = arith.constant 0 : i32
    %c0_i32_1 = arith.constant 0 : i32
    return %c0_i32, %c0_i32_0 : i32, i32
  }
  func.func @transform_5(%arg0: i32) -> (i32, i32, i32) {
    %c0_i32 = arith.constant 0 : i32
    %c0_i32_0 = arith.constant 0 : i32
    %c0_i32_1 = arith.constant 0 : i32
    %c0_i32_2 = arith.constant 0 : i32
    return %c0_i32, %c0_i32_0, %c0_i32_1 : i32, i32, i32
  }
  func.func @transform_6(%arg0: i32) -> (i32, i32) {
    %c0_i32 = arith.constant 0 : i32
    %c0_i32_0 = arith.constant 0 : i32
    %c0_i32_1 = arith.constant 0 : i32
    return %c0_i32, %c0_i32_0 : i32, i32
  }
  func.func @transform_7(%arg0: i32) -> (i32, i32) {
    %c0_i32 = arith.constant 0 : i32
    %c0_i32_0 = arith.constant 0 : i32
    %c0_i32_1 = arith.constant 0 : i32
    return %c0_i32, %c0_i32_0 : i32, i32
  }
  func.func @transform_8(%arg0: i32) -> (i32, i32, i32) {
    %c0_i32 = arith.constant 0 : i32
    %c0_i32_0 = arith.constant 0 : i32
    %c0_i32_1 = arith.constant 0 : i32
    %c0_i32_2 = arith.constant 0 : i32
    return %c0_i32, %c0_i32_0, %c0_i32_1 : i32, i32, i32
  }
  func.func @transform_9(%arg0: i32) -> (i32, i32) {
    %c0_i32 = arith.constant 0 : i32
    %c0_i32_0 = arith.constant 0 : i32
    %c0_i32_1 = arith.constant 0 : i32
    return %c0_i32, %c0_i32_0 : i32, i32
  }
  func.func @transform_10(%arg0: i32) -> (i32, i32) {
    %c0_i32 = arith.constant 0 : i32
    %c0_i32_0 = arith.constant 0 : i32
    %c0_i32_1 = arith.constant 0 : i32
    return %c0_i32, %c0_i32_0 : i32, i32
  }
  func.func @transform_11(%arg0: i32) -> (i32, i32) {
    %c0_i32 = arith.constant 0 : i32
    %c0_i32_0 = arith.constant 0 : i32
    %c0_i32_1 = arith.constant 0 : i32
    return %c0_i32, %c0_i32_0 : i32, i32
  }
  func.func @transform_12(%arg0: i32) -> (i32, i32) {
    %c0_i32 = arith.constant 0 : i32
    %c0_i32_0 = arith.constant 0 : i32
    %c0_i32_1 = arith.constant 0 : i32
    return %c0_i32, %c0_i32_0 : i32, i32
  }
  func.func @transform_13(%arg0: i32) -> (i32, i32) {
    %c0_i32 = arith.constant 0 : i32
    %c0_i32_0 = arith.constant 0 : i32
    %c0_i32_1 = arith.constant 0 : i32
    return %c0_i32, %c0_i32_0 : i32, i32
  }
  func.func @transform_14(%arg0: i32) -> (i32, i32) {
    %c0_i32 = arith.constant 0 : i32
    %c0_i32_0 = arith.constant 0 : i32
    return %arg0, %c0_i32 : i32, i32
  }
}

module attributes {stable_mosaic.version = 11 : i64} {
  func.func @fc_softmax_kernel(%arg0: i32, %arg1: memref<8x2048xbf16, #tpu.memory_space<vmem>>, %arg2: memref<2048x1024xbf16, #tpu.memory_space<vmem>>, %arg3: memref<1x1024xf32, #tpu.memory_space<vmem>>, %arg4: memref<4x8x1024xf32, #tpu.memory_space<vmem>>) attributes {dimension_semantics = [#tpu.dimension_semantics<arbitrary>], iteration_bounds = array<i64: 4>, scalar_prefetch = 0 : i64, scratch_operands = 0 : i64, tpu.core_type = #tpu.core_type<tc>, window_params = [{pipeline_mode = #tpu.pipeline_mode<synchronous>, transform_indices = @transform_0, window_bounds = array<i64: 8, 2048>}, {transform_indices = @transform_1, window_bounds = array<i64: 2048, 1024>}, {transform_indices = @transform_2, window_bounds = array<i64: 1, 1024>}, {pipeline_mode = #tpu.pipeline_mode<synchronous>, transform_indices = @transform_3, window_bounds = array<i64: 4, 8, 1024>}]} {
    %c0 = arith.constant 0 : index
    %c0_0 = arith.constant 0 : index
    %0 = vector.load %arg1[%c0, %c0_0] : memref<8x2048xbf16, #tpu.memory_space<vmem>>, vector<8x2048xbf16>
    %c0_1 = arith.constant 0 : index
    %c0_2 = arith.constant 0 : index
    %1 = vector.load %arg2[%c0_1, %c0_2] : memref<2048x1024xbf16, #tpu.memory_space<vmem>>, vector<2048x1024xbf16>
    %cst = arith.constant dense<0.000000e+00> : vector<8x1024xf32>
    %2 = tpu.matmul %0, %1, %cst {dimension_numbers = #tpu.dot_dimension_numbers<[1], [0], [0], [1], [0, 0, 1, 1], [], []>} : vector<8x2048xbf16>, vector<2048x1024xbf16>, vector<8x1024xf32> -> vector<8x1024xf32>
    %c0_3 = arith.constant 0 : index
    %c0_4 = arith.constant 0 : index
    %3 = vector.load %arg3[%c0_3, %c0_4] : memref<1x1024xf32, #tpu.memory_space<vmem>>, vector<1x1024xf32>
    %4 = vector.broadcast %3 : vector<1x1024xf32> to vector<8x1024xf32>
    %5 = arith.addf %2, %4 : vector<8x1024xf32>
    %6 = arith.index_cast %arg0 : i32 to index
    %c0_5 = arith.constant 0 : index
    %c0_6 = arith.constant 0 : index
    %7 = vector.load %arg4[%6, %c0_5, %c0_6] : memref<4x8x1024xf32, #tpu.memory_space<vmem>>, vector<1x8x1024xf32>
    %8 = vector.shape_cast %7 : vector<1x8x1024xf32> to vector<8x1024xf32>
    %9 = vector.shape_cast %5 : vector<8x1024xf32> to vector<1x8x1024xf32>
    tpu.vector_store %arg4[%6, %c0_5, %c0_6], %9 {strides = array<i32>} : memref<4x8x1024xf32, #tpu.memory_space<vmem>>, vector<1x8x1024xf32>,
    %c3_i32 = arith.constant 3 : i32
    %10 = arith.cmpi eq, %arg0, %c3_i32 : i32
    %11 = arith.extui %10 : i1 to i32
    %c0_i32 = arith.constant 0 : i32
    %12 = arith.cmpi ne, %11, %c0_i32 : i32
    scf.if %12 {
      %c0_7 = arith.constant 0 : index
      %c0_8 = arith.constant 0 : index
      %c0_9 = arith.constant 0 : index
      %13 = vector.load %arg4[%c0_7, %c0_8, %c0_9] : memref<4x8x1024xf32, #tpu.memory_space<vmem>>, vector<4x8x1024xf32>
      %cst_10 = arith.constant dense<0xFF800000> : vector<4x8xf32>
      %14 = vector.multi_reduction <maximumf>, %13, %cst_10 [2] : vector<4x8x1024xf32> to vector<4x8xf32>
      %15 = vector.shape_cast %14 : vector<4x8xf32> to vector<4x8x1xf32>
      %cst_11 = arith.constant dense<0xFF800000> : vector<8x1xf32>
      %16 = vector.multi_reduction <maximumf>, %15, %cst_11 [0] : vector<4x8x1xf32> to vector<8x1xf32>
      %17 = vector.shape_cast %16 : vector<8x1xf32> to vector<1x8x1xf32>
      %18 = vector.broadcast %17 : vector<1x8x1xf32> to vector<4x8x1024xf32>
      %19 = arith.subf %13, %18 : vector<4x8x1024xf32>
      %20 = math.exp %19 : vector<4x8x1024xf32>
      %cst_12 = arith.constant dense<0.000000e+00> : vector<4x8xf32>
      %21 = vector.multi_reduction <add>, %20, %cst_12 [2] : vector<4x8x1024xf32> to vector<4x8xf32>
      %22 = vector.shape_cast %21 : vector<4x8xf32> to vector<4x8x1xf32>
      %cst_13 = arith.constant dense<0.000000e+00> : vector<8x1xf32>
      %23 = vector.multi_reduction <add>, %22, %cst_13 [0] : vector<4x8x1xf32> to vector<8x1xf32>
      %24 = vector.shape_cast %23 : vector<8x1xf32> to vector<1x8x1xf32>
      %cst_14 = arith.constant 1.000000e+00 : f32
      %25 = vector.broadcast %cst_14 : f32 to vector<1x8x1xf32>
      %26 = arith.divf %25, %24 : vector<1x8x1xf32>
      %27 = vector.broadcast %26 : vector<1x8x1xf32> to vector<4x8x1024xf32>
      %28 = arith.mulf %20, %27 : vector<4x8x1024xf32>
      %c0_15 = arith.constant 0 : index
      %c0_16 = arith.constant 0 : index
      %c0_17 = arith.constant 0 : index
      %29 = vector.load %arg4[%c0_15, %c0_16, %c0_17] : memref<4x8x1024xf32, #tpu.memory_space<vmem>>, vector<4x8x1024xf32>
      tpu.vector_store %arg4[%c0_15, %c0_16, %c0_17], %28 {strides = array<i32>} : memref<4x8x1024xf32, #tpu.memory_space<vmem>>, vector<4x8x1024xf32>,
    } else {
    }
    return
  }
  func.func @transform_0(%arg0: i32) -> (i32, i32) {
    %c0_i32 = arith.constant 0 : i32
    %c0_i32_0 = arith.constant 0 : i32
    %c0_i32_1 = arith.constant 0 : i32
    return %c0_i32, %c0_i32_0 : i32, i32
  }
  func.func @transform_1(%arg0: i32) -> (i32, i32) {
    %c0_i32 = arith.constant 0 : i32
    %c0_i32_0 = arith.constant 0 : i32
    return %c0_i32, %arg0 : i32, i32
  }
  func.func @transform_2(%arg0: i32) -> (i32, i32) {
    %c0_i32 = arith.constant 0 : i32
    %c0_i32_0 = arith.constant 0 : i32
    return %c0_i32, %arg0 : i32, i32
  }
  func.func @transform_3(%arg0: i32) -> (i32, i32, i32) {
    %c0_i32 = arith.constant 0 : i32
    %c0_i32_0 = arith.constant 0 : i32
    %c0_i32_1 = arith.constant 0 : i32
    %c0_i32_2 = arith.constant 0 : i32
    return %c0_i32, %c0_i32_0, %c0_i32_1 : i32, i32, i32
  }
}

</mosaic_0001>

<bundles_post_ra>
// kernel: chess_policy_forward.2
= control target key start
LH: loop header
LB: loop body
LE: loop exit
PB: predicated region body
PF: predicated region fallthrough
CT: control target
= control target key end

     0   :  { %s10765_s0 = inlined_call_operand.vmem [shape: bf16[128,32], index: 0, kind: input, shape index: {}]   ;;  %s10766_s1 = inlined_call_operand.hbm [shape: bf16[9,64,64], index: 1, kind: input, shape index: {}]   ;;  %s10767_s2 = inlined_call_operand.hbm [shape: bf16[9,32,64], index: 2, kind: input, shape index: {}]   ;;  %s10768_s3 = inlined_call_operand.hbm [shape: f32[1,64], index: 3, kind: input, shape index: {}]   ;;  %s10769_s4 = inlined_call_operand.hbm [shape: f32[1,64], index: 4, kind: input, shape index: {}]   ;;  %s10770_s5 = inlined_call_operand.hbm [shape: bf16[9,64,128], index: 5, kind: input, shape index: {}]   ;;  %s10771_s6 = inlined_call_operand.hbm [shape: f32[1,128], index: 6, kind: input, shape index: {}]   ;;  %s10772_s7 = inlined_call_operand.hbm [shape: f32[1,128], index: 7, kind: input, shape index: {}]   ;;  %s10773_s8 = inlined_call_operand.hbm [shape: bf16[9,128,256], index: 8, kind: input, shape index: {}]   ;;  %s10774_s9 = inlined_call_operand.hbm [shape: f32[1,256], index: 9, kind: input, shape index: {}]   ;;  %s10775_s10 = inlined_call_operand.hbm [shape: f32[1,256], index: 10, kind: input, shape index: {}]   ;;  %s10776_s11 = inlined_call_operand.vmem [shape: bf16[256,32], index: 11, kind: input, shape index: {}]   ;;  %s10777_s12 = inlined_call_operand.hbm [shape: f32[1,32], index: 12, kind: input, shape index: {}]   ;;  %s10778_s13 = inlined_call_operand.hbm [shape: f32[1,32], index: 13, kind: input, shape index: {}]   ;;  %s10779_s14 = inlined_call_operand.vmem [shape: bf16[128,32], index: 14, kind: output, shape index: {}]  }
   0x1   :  { %10790 = sst [smem:[#allocation29_spill]] %s10765_s0 }
   0x2   :  { %10791 = sst [smem:[#allocation30_spill]] %s10767_s2 }
   0x3   :  { %10792 = sst [smem:[#allocation31_spill]] %s10776_s11 }
   0x4   :  { %10793 = sst [smem:[#allocation32_spill]] %s10779_s14 }
   0x5   :  { %19 = vsyncpa [#allocation3], 0 }
   0x6   :  { %20 = vsyncpa [#allocation5], 0 }
   0x7   :  { %21 = vsyncpa [#allocation8], 0 }
   0x8   :  { %22 = vsyncpa [#allocation11], 0 }
   0x9   :  { %23 = vsyncpa [#allocation14], 0 }
   0xa   :  { %24 = vsyncpa [#allocation17], 0 }
   0xb   :  { %25 = vsyncpa [#allocation20], 0  ;;  %s9525_s29 = smov 0  }
   0xc LB: > { %10794 = sst [smem:[#allocation28_spill]] %s9431_s29  ;;  %s10780_s30 = sadd.s32 4294967295, %s9431_s29   ;;  %s9431_s29 = sphi %s9525_s29, %s31_s29  }
   0xd   : > { %p6846_p0 = scmp.ge.s32.totalorder %s9431_s29, 1  ;;  %p361_p1 = scmp.lt.s32.totalorder %s9431_s29, 3 }
   0xe   : > { %p9535_p2 = scmp.eq.s32.totalorder %s10780_s30, 0  ;;  %s9433_s17 = smov [#allocation4]  }
   0xf   : > { %p9539_p3 = pnand %p6846_p0, %p361_p1  ;;  %s386_s18 = sshll.u32 %s9433_s17, 4  ;;  %s9543_s18 = int_to_ptr.vmem [resolvable:$true] %s386_s18 }
  0x10   : > { %s10795_s15 = scalar_select %p9535_p2, 1, 0 }
  0x11   : > { %s10796_s16 = scalar_select %p9539_p3, 1, 0 }
  0x12   : > { %p8617_p4 = pneg %p9539_p3  ;;  %s9434_s19 = smov [#allocation7]  }
  0x13   : > { %s411_s20 = sshll.u32 %s9434_s19, 4  ;;  %s9435_s22 = smov [#allocation10]   ;;  %s9547_s20 = int_to_ptr.vmem [resolvable:$true] %s411_s20 }
  0x14   : > { %p9551_p5 = pnand %p9535_p2, %p8617_p4  ;;  %s435_s23 = sshll.u32 %s9435_s22, 4  ;;  %s9555_s23 = int_to_ptr.vmem [resolvable:$true] %s435_s23 }
  0x15   : > { %s9436_s24 = smov [#allocation13]   ;;  %s10798_s2 = sld [smem:[#allocation30_spill]] }
  0x16   : > { %s9557_s25 = sshll.u32 %s9436_s24, 4  ;;  %p9567_p7 = pneg %p9551_p5  ;;  %s457_s25 = int_to_ptr.vmem [resolvable:$true] %s9557_s25 }
  0x1b   : > { %s9061_s28 = scalar_lea.hbm %s10798_s2, 2304 }
  0x1c   : > { %p9062_p6 = scmp.ne.s32.totalorder %s10798_s2, %s9061_s28  ;;  %p9068_p10 = scmp.lt.u32.totalorder %s9061_s28, %s10798_s2 }
  0x1e   : > { %p9064_p8 = pnand %p9567_p7, %p9062_p6 }
  0x20   : > { %p9065_p9 = pneg %p9064_p8 }
  0x22   : > { %p9070_p11 = pnand %p9068_p10, %p9065_p9 }
  0x24   : > { %9073 = shalt.err (!%p9070_p11)
}
  0x25   : > { %s9074_s26 = scalar_lea.vmem %s9543_s18, 2304  ;;  %p9082_p1 = scmp.lt.s32.totalorder %s9543_s18, %s9543_s18 }
  0x26   : > { %p9075_p12 = scmp.ne.s32.totalorder %s9543_s18, %s9074_s26  ;;  %p9083_p4 = scmp.lt.s32.totalorder %s9074_s26, %s9074_s26 }
  0x28   : > { %p9077_p13 = pnand %p9075_p12, %p9567_p7  ;;  %p9084_p6 = por %p9083_p4, %p9082_p1 }
  0x2a   : > { %p9078_p0 = pneg %p9077_p13 }
  0x2c   : > { %p9085_p8 = pnand %p9084_p6, %p9078_p0 }
  0x2e   : > { %9088 = shalt.err (!%p9085_p8)
}
  0x2f   : > { %s10786_s27 = smov 64   ;;  %s10788_s28 = smov 4  }
  0x30   : > { %8623 = dma.hbm_to_vmem [thread:$0]  (!%p9551_p5), %s10798_s2, 2304, %s9543_s18, [#allocation5], %s10786_s27, %s10786_s27, %s10788_s28  }
  0x31   : > { %s9089_s26 = scalar_lea.hbm %s10769_s4, 16 }
  0x32   : > { %p9090_p9 = scmp.ne.s32.totalorder %s10769_s4, %s9089_s26  ;;  %p9096_p12 = scmp.lt.u32.totalorder %s9089_s26, %s10769_s4 }
  0x34   : > { %p9092_p10 = pnand %p9090_p9, %p9567_p7 }
  0x36   : > { %p9093_p11 = pneg %p9092_p10 }
  0x38   : > { %p9098_p13 = pnand %p9096_p12, %p9093_p11 }
  0x3a   : > { %9101 = shalt.err (!%p9098_p13)
}
  0x3b   : > { %s9102_s18 = scalar_lea.vmem %s9547_s20, 16  ;;  %s9109_s11 = scalar_lea.vmem %s9547_s20, 32 }
  0x3c   : > { %p9103_p0 = scmp.ne.s32.totalorder %s9547_s20, %s9102_s18  ;;  %p9110_p6 = scmp.lt.s32.totalorder %s9547_s20, %s9547_s20 }
  0x3d   : > { %p9111_p8 = scmp.lt.s32.totalorder %s9109_s11, %s9102_s18 }
  0x3e   : > { %p9105_p1 = pnand %p9103_p0, %p9567_p7 }
  0x3f   : > { %p9112_p9 = por %p9111_p8, %p9110_p6 }
  0x40   : > { %p9106_p4 = pneg %p9105_p1 }
  0x42   : > { %p9113_p10 = pnand %p9112_p9, %p9106_p4 }
  0x44   : > { %9116 = shalt.err (!%p9113_p10)
}
  0x45   : > { %8629 = dma.hbm_to_vmem [thread:$0]  (!%p9551_p5), %s10769_s4, 16, %s9547_s20, [#allocation8]  }
  0x46   : > { %s9117_s19 = scalar_lea.hbm %s10771_s6, 16 }
  0x47   : > { %p9118_p11 = scmp.ne.s32.totalorder %s10771_s6, %s9117_s19  ;;  %p9124_p0 = scmp.lt.u32.totalorder %s9117_s19, %s10771_s6 }
  0x49   : > { %p9120_p12 = pnand %p9118_p11, %p9567_p7 }
  0x4b   : > { %p9121_p13 = pneg %p9120_p12 }
  0x4d   : > { %p9126_p1 = pnand %p9124_p0, %p9121_p13 }
  0x4f   : > { %9129 = shalt.err (!%p9126_p1)
}
  0x50   : > { %s9130_s20 = scalar_lea.vmem %s9555_s23, 16  ;;  %s9137_s11 = scalar_lea.vmem %s9555_s23, 32 }
  0x51   : > { %p9131_p4 = scmp.ne.s32.totalorder %s9555_s23, %s9130_s20  ;;  %p9138_p9 = scmp.lt.s32.totalorder %s9555_s23, %s9555_s23 }
  0x52   : > { %p9139_p10 = scmp.lt.s32.totalorder %s9137_s11, %s9130_s20 }
  0x53   : > { %p9133_p6 = pnand %p9131_p4, %p9567_p7 }
  0x54   : > { %p9140_p11 = por %p9139_p10, %p9138_p9 }
  0x55   : > { %p9134_p8 = pneg %p9133_p6 }
  0x57   : > { %p9141_p12 = pnand %p9140_p11, %p9134_p8 }
  0x59   : > { %9144 = shalt.err (!%p9141_p12)
}
  0x5a   : > { %8635 = dma.hbm_to_vmem [thread:$0]  (!%p9551_p5), %s10771_s6, 16, %s9555_s23, [#allocation11]  }
  0x5b   : > { %s9145_s19 = scalar_lea.hbm %s10773_s8, 18432 }
  0x5c   : > { %p9146_p13 = scmp.ne.s32.totalorder %s10773_s8, %s9145_s19  ;;  %p9152_p4 = scmp.lt.u32.totalorder %s9145_s19, %s10773_s8 }
  0x5e   : > { %p9148_p0 = pnand %p9146_p13, %p9567_p7 }
  0x60   : > { %p9149_p1 = pneg %p9148_p0 }
  0x62   : > { %p9154_p6 = pnand %p9152_p4, %p9149_p1 }
  0x64   : > { %9157 = shalt.err (!%p9154_p6)
}
  0x65   : > { %s9158_s20 = scalar_lea.vmem %s457_s25, 18432  ;;  %p9166_p11 = scmp.lt.s32.totalorder %s457_s25, %s457_s25 }
  0x66   : > { %p9159_p8 = scmp.ne.s32.totalorder %s457_s25, %s9158_s20  ;;  %p9167_p12 = scmp.lt.s32.totalorder %s9158_s20, %s9158_s20 }
  0x68   : > { %p9161_p9 = pnand %p9159_p8, %p9567_p7  ;;  %p9168_p2 = por %p9167_p12, %p9166_p11 }
  0x6a   : > { %p9162_p10 = pneg %p9161_p9 }
  0x6c   : > { %p9169_p3 = pnand %p9168_p2, %p9162_p10 }
  0x6e   : > { %9172 = shalt.err (!%p9169_p3)
}
  0x6f   : > { %s9439_s23 = smov 128   ;;  %s9440_s11 = smov 8  }
  0x70   : > { %8641 = dma.hbm_to_vmem [thread:$0]  (!%p9551_p5), %s10773_s8, 18432, %s457_s25, [#allocation14], %s9439_s23, %s9439_s23, %s9440_s11  }
  0x71   : > { %s9441_s29 = smov [#allocation16]   ;;  %s9442_s19 = smov [#allocation2]  }
  0x72   : > { %s481_s17 = sshll.u32 %s9441_s29, 4  ;;  %s373_s22 = sshll.u32 %s9442_s19, 4  ;;  %s482_s17 = int_to_ptr.vmem [resolvable:$true] %s481_s17  ;;  %s374_s22 = int_to_ptr.vmem [resolvable:$true] %s373_s22 }
  0x73   : > { %s9173_s18 = scalar_lea.hbm %s10775_s10, 32 }
  0x74   : > { %p9174_p2 = scmp.ne.s32.totalorder %s10775_s10, %s9173_s18  ;;  %p9180_p0 = scmp.lt.u32.totalorder %s9173_s18, %s10775_s10 }
  0x76   : > { %p9176_p3 = pnand %p9174_p2, %p9567_p7 }
  0x78   : > { %p9177_p13 = pneg %p9176_p3 }
  0x7a   : > { %p9182_p1 = pnand %p9180_p0, %p9177_p13 }
  0x7c   : > { %9185 = shalt.err (!%p9182_p1)
}
  0x7d   : > { %s9186_s25 = scalar_lea.vmem %s482_s17, 32  ;;  %p9194_p9 = scmp.lt.s32.totalorder %s482_s17, %s482_s17 }
  0x7e   : > { %p9187_p4 = scmp.ne.s32.totalorder %s482_s17, %s9186_s25  ;;  %p9195_p10 = scmp.lt.s32.totalorder %s9186_s25, %s9186_s25 }
  0x80   : > { %p9189_p6 = pnand %p9187_p4, %p9567_p7  ;;  %p9196_p11 = por %p9195_p10, %p9194_p9 }
  0x82   : > { %p9190_p8 = pneg %p9189_p6 }
  0x84   : > { %p9197_p12 = pnand %p9196_p11, %p9190_p8 }
  0x86   : > { %9200 = shalt.err (!%p9197_p12)
}
  0x87   : > { %8647 = dma.hbm_to_vmem [thread:$0]  (!%p9551_p5), %s10775_s10, 32, %s482_s17, [#allocation17]  }
  0x88   : > { %s9201_s11 = scalar_lea.hbm %s10766_s1, 4608 }
  0x89   : > { %p9202_p2 = scmp.ne.s32.totalorder %s10766_s1, %s9201_s11  ;;  %p9208_p0 = scmp.lt.u32.totalorder %s9201_s11, %s10766_s1 }
  0x8b   : > { %p9204_p3 = pnand %p9202_p2, %p9567_p7 }
  0x8d   : > { %p9205_p13 = pneg %p9204_p3 }
  0x8f   : > { %p9210_p1 = pnand %p9208_p0, %p9205_p13 }
  0x91   : > { %9213 = shalt.err (!%p9210_p1)
}
  0x92   : > { %s9214_s24 = scalar_lea.vmem %s374_s22, 4608  ;;  %p9222_p9 = scmp.lt.s32.totalorder %s374_s22, %s374_s22 }
  0x93   : > { %p9215_p4 = scmp.ne.s32.totalorder %s374_s22, %s9214_s24  ;;  %p9223_p10 = scmp.lt.s32.totalorder %s9214_s24, %s9214_s24 }
  0x95   : > { %p9217_p6 = pnand %p9215_p4, %p9567_p7  ;;  %p9224_p11 = por %p9223_p10, %p9222_p9 }
  0x97   : > { %p9218_p8 = pneg %p9217_p6 }
  0x99   : > { %p9225_p12 = pnand %p9224_p11, %p9218_p8 }
  0x9b   : > { %9228 = shalt.err (!%p9225_p12)
}
  0x9c   : > { %s10800_s17 = smov 4   ;;  %s10801_s26 = smov 64  }
  0x9d   : > { %8620 = dma.hbm_to_vmem [thread:$0]  (!%p9551_p5), %s10766_s1, 4608, %s374_s22, [#allocation3], %s10801_s26, %s10801_s26, %s10800_s17  }
  0x9e   : > { %s9443_s25 = smov [#allocation6]   ;;  %s9444_s23 = smov [#allocation9]  }
  0x9f   : > { %s400_s27 = sshll.u32 %s9443_s25, 4  ;;  %s421_s2 = sshll.u32 %s9444_s23, 4  ;;  %s401_s27 = int_to_ptr.vmem [resolvable:$true] %s400_s27  ;;  %s422_s2 = int_to_ptr.vmem [resolvable:$true] %s421_s2 }
  0xa0   : > { %s9229_s0 = scalar_lea.hbm %s10768_s3, 16 }
  0xa1   : > { %p9230_p2 = scmp.ne.s32.totalorder %s10768_s3, %s9229_s0  ;;  %p9236_p0 = scmp.lt.u32.totalorder %s9229_s0, %s10768_s3 }
  0xa3   : > { %p9232_p3 = pnand %p9230_p2, %p9567_p7 }
  0xa5   : > { %p9233_p13 = pneg %p9232_p3 }
  0xa7   : > { %p9238_p1 = pnand %p9236_p0, %p9233_p13 }
  0xa9   : > { %9241 = shalt.err (!%p9238_p1)
}
  0xaa   : > { %s9242_s22 = scalar_lea.vmem %s401_s27, 16  ;;  %s9249_s18 = scalar_lea.vmem %s401_s27, 32 }
  0xab   : > { %p9243_p4 = scmp.ne.s32.totalorder %s401_s27, %s9242_s22  ;;  %p9250_p9 = scmp.lt.s32.totalorder %s401_s27, %s401_s27 }
  0xac   : > { %p9251_p10 = scmp.lt.s32.totalorder %s9249_s18, %s9242_s22 }
  0xad   : > { %p9245_p6 = pnand %p9243_p4, %p9567_p7 }
  0xae   : > { %p9252_p11 = por %p9251_p10, %p9250_p9 }
  0xaf   : > { %p9246_p8 = pneg %p9245_p6 }
  0xb1   : > { %p9253_p12 = pnand %p9252_p11, %p9246_p8 }
  0xb3   : > { %9256 = shalt.err (!%p9253_p12)
}
  0xb4   : > { %8626 = dma.hbm_to_vmem [thread:$0]  (!%p9551_p5), %s10768_s3, 16, %s401_s27, [#allocation5]  }
  0xb5   : > { %s9257_s11 = scalar_lea.hbm %s10770_s5, 4608 }
  0xb6   : > { %p9258_p2 = scmp.ne.s32.totalorder %s10770_s5, %s9257_s11  ;;  %p9264_p0 = scmp.lt.u32.totalorder %s9257_s11, %s10770_s5 }
  0xb8   : > { %p9260_p3 = pnand %p9258_p2, %p9567_p7 }
  0xba   : > { %p9261_p13 = pneg %p9260_p3 }
  0xbc   : > { %p9266_p1 = pnand %p9264_p0, %p9261_p13 }
  0xbe   : > { %9269 = shalt.err (!%p9266_p1)
}
  0xbf   : > { %s9270_s24 = scalar_lea.vmem %s422_s2, 4608  ;;  %p9278_p9 = scmp.lt.s32.totalorder %s422_s2, %s422_s2 }
  0xc0   : > { %p9271_p4 = scmp.ne.s32.totalorder %s422_s2, %s9270_s24  ;;  %p9279_p10 = scmp.lt.s32.totalorder %s9270_s24, %s9270_s24 }
  0xc2   : > { %p9273_p6 = pnand %p9271_p4, %p9567_p7  ;;  %p9280_p11 = por %p9279_p10, %p9278_p9 }
  0xc4   : > { %p9274_p8 = pneg %p9273_p6 }
  0xc6   : > { %p9281_p12 = pnand %p9280_p11, %p9274_p8 }
  0xc8   : > { %9284 = shalt.err (!%p9281_p12)
}
  0xc9   : > { %8632 = dma.hbm_to_vmem [thread:$0]  (!%p9551_p5), %s10770_s5, 4608, %s422_s2, [#allocation8], %s10801_s26, %s10801_s26, %s10800_s17  }
  0xca   : > { %s9445_s18 = smov [#allocation12]   ;;  %s9446_s25 = smov [#allocation15]  }
  0xcb   : > { %s446_s20 = sshll.u32 %s9445_s18, 4  ;;  %s470_s23 = sshll.u32 %s9446_s25, 4  ;;  %s447_s20 = int_to_ptr.vmem [resolvable:$true] %s446_s20  ;;  %s471_s23 = int_to_ptr.vmem [resolvable:$true] %s470_s23 }
  0xcc   : > { %s9285_s0 = scalar_lea.hbm %s10772_s7, 16 }
  0xcd   : > { %p9286_p2 = scmp.ne.s32.totalorder %s10772_s7, %s9285_s0  ;;  %p9292_p0 = scmp.lt.u32.totalorder %s9285_s0, %s10772_s7 }
  0xcf   : > { %p9288_p3 = pnand %p9286_p2, %p9567_p7 }
  0xd1   : > { %p9289_p13 = pneg %p9288_p3 }
  0xd3   : > { %p9294_p1 = pnand %p9292_p0, %p9289_p13 }
  0xd5   : > { %9297 = shalt.err (!%p9294_p1)
}
  0xd6   : > { %s9298_s17 = scalar_lea.vmem %s447_s20, 16  ;;  %s9305_s26 = scalar_lea.vmem %s447_s20, 32 }
  0xd7   : > { %p9299_p4 = scmp.ne.s32.totalorder %s447_s20, %s9298_s17  ;;  %p9306_p9 = scmp.lt.s32.totalorder %s447_s20, %s447_s20 }
  0xd8   : > { %p9307_p10 = scmp.lt.s32.totalorder %s9305_s26, %s9298_s17 }
  0xd9   : > { %p9301_p6 = pnand %p9299_p4, %p9567_p7 }
  0xda   : > { %p9308_p11 = por %p9307_p10, %p9306_p9 }
  0xdb   : > { %p9302_p8 = pneg %p9301_p6 }
  0xdd   : > { %p9309_p12 = pnand %p9308_p11, %p9302_p8 }
  0xdf   : > { %9312 = shalt.err (!%p9309_p12)
}
  0xe0   : > { %8638 = dma.hbm_to_vmem [thread:$0]  (!%p9551_p5), %s10772_s7, 16, %s447_s20, [#allocation11]  }
  0xe1   : > { %s9313_s25 = scalar_lea.hbm %s10774_s9, 32 }
  0xe2   : > { %p9314_p2 = scmp.ne.s32.totalorder %s10774_s9, %s9313_s25  ;;  %p9320_p0 = scmp.lt.u32.totalorder %s9313_s25, %s10774_s9 }
  0xe4   : > { %p9316_p3 = pnand %p9314_p2, %p9567_p7 }
  0xe6   : > { %p9317_p13 = pneg %p9316_p3 }
  0xe8   : > { %p9322_p1 = pnand %p9320_p0, %p9317_p13 }
  0xea   : > { %9325 = shalt.err (!%p9322_p1)
}
  0xeb   : > { %s9326_s29 = scalar_lea.vmem %s471_s23, 32  ;;  %p9334_p9 = scmp.lt.s32.totalorder %s471_s23, %s471_s23 }
  0xec   : > { %p9327_p4 = scmp.ne.s32.totalorder %s471_s23, %s9326_s29  ;;  %p9335_p10 = scmp.lt.s32.totalorder %s9326_s29, %s9326_s29 }
  0xee   : > { %p9329_p6 = pnand %p9327_p4, %p9567_p7  ;;  %p9336_p11 = por %p9335_p10, %p9334_p9 }
  0xf0   : > { %p9330_p8 = pneg %p9329_p6 }
  0xf2   : > { %p9337_p12 = pnand %p9336_p11, %p9330_p8 }
  0xf4   : > { %9340 = shalt.err (!%p9337_p12)
}
  0xf5   : > { %8644 = dma.hbm_to_vmem [thread:$0]  (!%p9551_p5), %s10774_s9, 32, %s471_s23, [#allocation14]  }
  0xf6   : > { %s9447_s24 = smov [#allocation18]   ;;  %s9448_s26 = smov [#allocation19]  }
  0xf7   : > { %s495_s17 = sshll.u32 %s9447_s24, 4  ;;  %s506_s2 = sshll.u32 %s9448_s26, 4  ;;  %s496_s17 = int_to_ptr.vmem [resolvable:$true] %s495_s17  ;;  %s507_s2 = int_to_ptr.vmem [resolvable:$true] %s506_s2 }
  0xf8   : > { %s9341_s18 = scalar_lea.hbm %s10777_s12, 16 }
  0xf9   : > { %p9342_p2 = scmp.ne.s32.totalorder %s10777_s12, %s9341_s18  ;;  %p9348_p0 = scmp.lt.u32.totalorder %s9341_s18, %s10777_s12 }
  0xfb   : > { %p9344_p3 = pnand %p9342_p2, %p9567_p7 }
  0xfd   : > { %p9345_p13 = pneg %p9344_p3 }
  0xff   : > { %p9350_p1 = pnand %p9348_p0, %p9345_p13 }
 0x101   : > { %9353 = shalt.err (!%p9350_p1)
}
 0x102   : > { %s9354_s23 = scalar_lea.vmem %s496_s17, 16  ;;  %s9361_s14 = scalar_lea.vmem %s496_s17, 32 }
 0x103   : > { %p9355_p4 = scmp.ne.s32.totalorder %s496_s17, %s9354_s23  ;;  %p9362_p9 = scmp.lt.s32.totalorder %s496_s17, %s496_s17 }
 0x104   : > { %p9363_p10 = scmp.lt.s32.totalorder %s9361_s14, %s9354_s23 }
 0x105   : > { %p9357_p6 = pnand %p9355_p4, %p9567_p7 }
 0x106   : > { %p9364_p11 = por %p9363_p10, %p9362_p9 }
 0x107   : > { %p9358_p8 = pneg %p9357_p6 }
 0x109   : > { %p9365_p12 = pnand %p9364_p11, %p9358_p8 }
 0x10b   : > { %9368 = shalt.err (!%p9365_p12)
}
 0x10c   : > { %8650 = dma.hbm_to_vmem [thread:$0]  (!%p9551_p5), %s10777_s12, 16, %s496_s17, [#allocation17]  }
 0x10d   : > { %s9369_s26 = scalar_lea.hbm %s10778_s13, 16 }
 0x10e   : > { %p9370_p2 = scmp.ne.s32.totalorder %s10778_s13, %s9369_s26  ;;  %p9376_p0 = scmp.lt.u32.totalorder %s9369_s26, %s10778_s13 }
 0x110   : > { %p9372_p3 = pnand %p9370_p2, %p9567_p7 }
 0x112   : > { %p9373_p13 = pneg %p9372_p3 }
 0x114   : > { %p9378_p1 = pnand %p9376_p0, %p9373_p13 }
 0x116   : > { %9381 = shalt.err (!%p9378_p1)
}
 0x117   : > { %s9382_s28 = scalar_lea.vmem %s507_s2, 16  ;;  %s9389_s17 = scalar_lea.vmem %s507_s2, 32 }
 0x118   : > { %p9383_p4 = scmp.ne.s32.totalorder %s507_s2, %s9382_s28  ;;  %p9390_p9 = scmp.lt.s32.totalorder %s507_s2, %s507_s2 }
 0x119   : > { %p9391_p10 = scmp.lt.s32.totalorder %s9389_s17, %s9382_s28 }
 0x11a   : > { %p9385_p6 = pnand %p9383_p4, %p9567_p7 }
 0x11b   : > { %p9392_p11 = por %p9391_p10, %p9390_p9 }
 0x11c   : > { %p9386_p8 = pneg %p9385_p6 }
 0x11e   : > { %p9393_p12 = pnand %p9392_p11, %p9386_p8 }
 0x120   : > { %9396 = shalt.err (!%p9393_p12)
}
 0x121   : > { %8653 = dma.hbm_to_vmem [thread:$0]  (!%p9551_p5), %s10778_s13, 16, %s507_s2, [#allocation20]  }
 0x122   : > { %p10802_p2 = scmp.ne.s32.totalorder %s10796_s16, 0 }
 0x123   : > { %p10803_p3 = scmp.ne.s32.totalorder (!%p10802_p2), %s10795_s15, 0 }
 0x124   : > { %528 = sbr.rel (%p10802_p2) target bundleno = 2678 (0xa76), region = 76 }
 0x12b   : > { %9402 = dma.done.wait (%p10803_p3), [#allocation3], 4608  }
 0x12c   : > { %9404 = vsyncadd (%p10803_p3), [#allocation3], 4294962688 }
 0x12d   : > { %9406 = dma.done.wait (%p10803_p3), [#allocation5], 2320  }
 0x12e   : > { %9408 = vsyncadd (%p10803_p3), [#allocation5], 4294964976 }
 0x12f   : > { %9410 = dma.done.wait (%p10803_p3), [#allocation8], 4624  }
 0x130   : > { %9412 = vsyncadd (%p10803_p3), [#allocation8], 4294962672 }
 0x131   : > { %9414 = dma.done.wait (%p10803_p3), [#allocation11], 32  }
 0x132   : > { %9416 = vsyncadd (%p10803_p3), [#allocation11], 4294967264 }
 0x133   : > { %9418 = dma.done.wait (%p10803_p3), [#allocation14], 18464  }
 0x134   : > { %9420 = vsyncadd (%p10803_p3), [#allocation14], 4294948832 }
 0x135   : > { %9422 = dma.done.wait (%p10803_p3), [#allocation17], 48  }
 0x136   : > { %9424 = vsyncadd (%p10803_p3), [#allocation17], 4294967248 }
 0x137   : > { %9426 = dma.done.wait (%p10803_p3), [#allocation20], 16  }
 0x138   : > { %9428 = vsyncadd (%p10803_p3), [#allocation20], 4294967280  ;;  %s10804_s30 = sld [smem:[#allocation28_spill]]  ;;  %s10806_s29 = sld [smem:[#allocation29_spill]]  ;;  %vm696_vm0 = vcmask 523264   ;;  %v9862_v3 = vld [vmem:[#allocation2] sm:$0xff]  }
 0x139   : > { %7685 = vmatprep.mubr.msk.bf16.mxu0 %vm696_vm0, %v9862_v3  ;;  %v8708_v5 = vld [vmem:[#allocation2 + $0x8] sm:$0xff]   ;;  %v8709_v6 = vld [vmem:[#allocation2 + $0x10] sm:$0xff]   ;;  %v8710_v7 = vld [vmem:[#allocation2 + $0x18] sm:$0xff]   ;;  %vm794_vm1 = vcmask 261120   ;;  %s10807_s24 = sld [smem:[#allocation31_spill]]  ;;  %s10814_s15 = sld [smem:[#allocation32_spill]] }
 0x13a   : > { %v8711_v8 = vld [vmem:[#allocation2 + $0x20] sm:$0xff]   ;;  %v8712_v9 = vld [vmem:[#allocation2 + $0x28] sm:$0xff]   ;;  %v8713_v10 = vld [vmem:[#allocation2 + $0x30] sm:$0xff]   ;;  %vm6662_vm2 = vcmask 257024  }
 0x13b   : > { %v8714_v11 = vld [vmem:[#allocation2 + $0x38] sm:$0xff]   ;;  %v8739_v12 = vld [vmem:[#allocation4] sm:$0xff]   ;;  %v8716_v14 = vld [vmem:[#allocation2 + $0x48] sm:$0xff]  }
 0x13c   : > { %v8715_v13 = vld [vmem:[#allocation2 + $0x40] sm:$0xff]   ;;  %7693 = vmatprep.subr.bf16.mxu1 %v8739_v12  ;;  %v8717_v15 = vld [vmem:[#allocation2 + $0x50] sm:$0xff]   ;;  %v8718_v16 = vld [vmem:[#allocation2 + $0x58] sm:$0xff]  }
 0x13d   : > { %7694 = vmatpush3.bf16.msra.mxu1 %v8739_v12  ;;  %v8719_v17 = vld [vmem:[#allocation2 + $0x60] sm:$0xff]   ;;  %v8720_v18 = vld [vmem:[#allocation2 + $0x68] sm:$0xff]   ;;  %v8721_v19 = vld [vmem:[#allocation2 + $0x70] sm:$0xff]  }
 0x13e   : > { %s10805_s16 = sadd.s32 4294967295, %s10804_s30   ;;  %v8722_v20 = vld [vmem:[#allocation2 + $0x78] sm:$0xff]   ;;  %v8723_v21 = vld [vmem:[#allocation2 + $0xa0] sm:$0xff]   ;;  %v9921_v22 = vld [vmem:[#allocation2 + $0xa8] sm:$0xff]  }
 0x13f   : > { %s6873_s21 = sshll.u32 %s10805_s16, 3  ;;  %v9923_v23 = vld [vmem:[#allocation2 + $0xb0] sm:$0xff]   ;;  %v9933_v24 = vld [vmem:[#allocation2 + $0xb8] sm:$0xff]   ;;  %v9935_v25 = vld [vmem:[#allocation2 + $0xc0] sm:$0xff]  }
 0x140   : > { %p619_p5 = scmp.lt.s32.totalorder %s6873_s21, 15  ;;  %v9945_v26 = vld [vmem:[#allocation2 + $0xc8] sm:$0xff]   ;;  %v9947_v27 = vld [vmem:[#allocation2 + $0xd0] sm:$0xff]   ;;  %v9957_v28 = vld [vmem:[#allocation2 + $0xd8] sm:$0xff]  }
 0x141   : > { %v9959_v29 = vld [vmem:[#allocation2 + $0xe0] sm:$0xff]   ;;  %v8740_v30 = vld [vmem:[#allocation4 + $0x8] sm:$0xff]   ;;  %v9971_v33 = vld [vmem:[#allocation2 + $0xf0] sm:$0xff]  }
 0x142   : > { %s10817_s21 = smov (!%p619_p5, %s6873_s21), 15  ;;  %7695 = vmatprep.subr.bf16.mxu1 %v8740_v30  ;;  %v9969_v31 = vld [vmem:[#allocation2 + $0xe8] sm:$0xff]   ;;  %v8741_v32 = vld [vmem:[#allocation4 + $0x40] sm:$0xff]   ;;  %v9981_v34 = vld [vmem:[#allocation2 + $0xf8] sm:$0xff]  }
 0x143   : > { %s6874_s2 = sshll.u32 %s10817_s21, 2  ;;  %7696 = vmatpush3.bf16.msra.mxu1 %v8740_v30  ;;  %v9983_v35 = vld [vmem:[#allocation2 + $0x100] sm:$0xff]   ;;  %v9993_v36 = vld [vmem:[#allocation2 + $0x108] sm:$0xff]   ;;  %v9995_v37 = vld [vmem:[#allocation2 + $0x110] sm:$0xff]  }
 0x144   : > { %s9848_s20 = scalar_lea.vmem %s10806_s29, %s6874_s2  ;;  %7705 = vmatprep.subr.bf16.mxu1 %v8741_v32  ;;  %v10002_v38 = vld [vmem:[#allocation2 + $0x118] sm:$0xff]   ;;  %v8742_v45 = vld [vmem:[#allocation4 + $0x48] sm:$0xff]   ;;  %v8743_v48 = vld [vmem:[#allocation4 + $0x10] sm:$0xff]   ;;  %s10744_s19 = scalar_lea.vmem %s10814_s15, %s6874_s2 }
 0x145   : > { %v9851_v0 = vld [vmem:[%s9848_s20] sm:$0xff]   ;;  %v9854_v1 = vld [vmem:[%s9848_s20 + $0x8] sm:$0xff]   ;;  %v9859_v2 = vld [vmem:[%s9848_s20 + $0x10] sm:$0xff]  }
 0x146   : > { %7677 = vmatprep.subr.bf16.mxu0 %v9851_v0  ;;  %v9869_v4 = vld [vmem:[%s9848_s20 + $0x18] sm:$0xff]   ;;  %v9025_v53 = vld [vmem:[%s9848_s20] sm:$0xff]   ;;  %v9026_v61 = vld [vmem:[%s9848_s20 + $0x8] sm:$0xff]  }
 0x147   : > { %7678 = vmatpush3.bf16.msra.mxu0 %v9851_v0  ;;  %v8744_v60 = vld [vmem:[#allocation4 + $0x18] sm:$0xff]   ;;  %v9027_v62 = vld [vmem:[%s9848_s20 + $0x10] sm:$0xff]  }
 0x148   : > { %7679 = vmatprep.subr.bf16.mxu0 %v9854_v1 }
 0x14b   : > { %7680 = vmatpush3.bf16.msra.mxu0 %v9854_v1 }
 0x14c   : > { %7681 = vmatprep.subr.bf16.mxu0 %v9859_v2 }
 0x14f   : > { %7682 = vmatpush3.bf16.msra.mxu0 %v9859_v2 }
 0x150   : > { %7683 = vmatprep.subr.bf16.mxu0 %v9869_v4 }
 0x153   : > { %7684 = vmatpush3.bf16.msra.mxu0 %v9869_v4 }
 0x154   : > { %7717 = vmatprep.subr.bf16.mxu0 %v9851_v0 }
 0x156   : > { %7686 = vmatmul.mubr.msk.bf16.vlgmr.msra.gmra.mrb[0].mxu0 %vm696_vm0, %v8708_v5 }
 0x157   : > { %7689 = vmatprep.mubr.msk.bf16.mxu0 %vm696_vm0, %v8709_v6  ;;  %7718 = vmatpush3.bf16.msra.mxu0 %v9851_v0  ;;  %v9028_v6 = vld [vmem:[%s9848_s20 + $0x18] sm:$0xff]  }
 0x158   : > { %7719 = vmatprep.subr.bf16.mxu0 %v9854_v1 }
 0x15b   : > { %7720 = vmatpush3.bf16.msra.mxu0 %v9854_v1 }
 0x15c   : > { %7721 = vmatprep.subr.bf16.mxu0 %v9859_v2 }
 0x15e   : > { %7690 = vmatmul.mubr.msk.bf16.gmra.mrb[4].mxu0 %vm696_vm0, %v8710_v7 }
 0x15f   : > { %7722 = vmatpush3.bf16.msra.mxu0 %v9859_v2  ;;  %7725 = vmatprep.mubr.msk.bf16.mxu0 %vm696_vm0, %v8711_v8 }
 0x160   : > { %7723 = vmatprep.subr.bf16.mxu0 %v9869_v4 }
 0x163   : > { %7724 = vmatpush3.bf16.msra.mxu0 %v9869_v4 }
 0x164   : > { %7745 = vmatprep.subr.bf16.mxu0 %v9851_v0 }
 0x166   : > { %7726 = vmatmul.mubr.msk.bf16.vlgmr.msra.gmra.mrb[8].mxu0 %vm696_vm0, %v8712_v9 }
 0x167   : > { %7746 = vmatpush3.bf16.msra.mxu0 %v9851_v0  ;;  %7729 = vmatprep.mubr.msk.bf16.mxu0 %vm696_vm0, %v8713_v10 }
 0x168   : > { %7747 = vmatprep.subr.bf16.mxu0 %v9854_v1 }
 0x16b   : > { %7748 = vmatpush3.bf16.msra.mxu0 %v9854_v1 }
 0x16c   : > { %7749 = vmatprep.subr.bf16.mxu0 %v9859_v2 }
 0x16e   : > { %7730 = vmatmul.mubr.msk.bf16.gmra.mrb[12].mxu0 %vm696_vm0, %v8714_v11 }
 0x16f   : > { %7750 = vmatpush3.bf16.msra.mxu0 %v9859_v2  ;;  %7753 = vmatprep.mubr.msk.bf16.mxu0 %vm696_vm0, %v8715_v13  ;;  %v8746_v13 = vld [vmem:[#allocation4 + $0x28] sm:$0xff]  }
 0x170   : > { %7751 = vmatprep.subr.bf16.mxu0 %v9869_v4 }
 0x173   : > { %7752 = vmatpush3.bf16.msra.mxu0 %v9869_v4 }
 0x174   : > { %7773 = vmatprep.subr.bf16.mxu0 %v9851_v0 }
 0x176   : > { %7754 = vmatmul.mubr.msk.bf16.vlgmr.msra.gmra.mrb[16].mxu0 %vm696_vm0, %v8716_v14 }
 0x177   : > { %7774 = vmatpush3.bf16.msra.mxu0 %v9851_v0  ;;  %7757 = vmatprep.mubr.msk.bf16.mxu0 %vm696_vm0, %v8717_v15 }
 0x178   : > { %7775 = vmatprep.subr.bf16.mxu0 %v9854_v1 }
 0x17b   : > { %7776 = vmatpush3.bf16.msra.mxu0 %v9854_v1 }
 0x17c   : > { %7777 = vmatprep.subr.bf16.mxu0 %v9859_v2 }
 0x17e   : > { %7758 = vmatmul.mubr.msk.bf16.gmra.mrb[20].mxu0 %vm696_vm0, %v8718_v16  ;;  %v8747_v16 = vld [vmem:[#allocation4 + $0x30] sm:$0xff]  }
 0x17f   : > { %7778 = vmatpush3.bf16.msra.mxu0 %v9859_v2  ;;  %7781 = vmatprep.mubr.msk.bf16.mxu0 %vm696_vm0, %v8719_v17 }
 0x180   : > { %7779 = vmatprep.subr.bf16.mxu0 %v9869_v4 }
 0x183   : > { %7780 = vmatpush3.bf16.msra.mxu0 %v9869_v4 }
 0x184   : > { %7801 = vmatprep.subr.bf16.mxu0 %v9851_v0 }
 0x186   : > { %7782 = vmatmul.mubr.msk.bf16.vlgmr.msra.gmra.mrb[24].mxu0 %vm696_vm0, %v8720_v18 }
 0x187   : > { %7802 = vmatpush3.bf16.msra.mxu0 %v9851_v0  ;;  %7785 = vmatprep.mubr.msk.bf16.mxu0 %vm696_vm0, %v8721_v19 }
 0x188   : > { %7803 = vmatprep.subr.bf16.mxu0 %v9854_v1 }
 0x18b   : > { %7804 = vmatpush3.bf16.msra.mxu0 %v9854_v1 }
 0x18c   : > { %7805 = vmatprep.subr.bf16.mxu0 %v9859_v2 }
 0x18e   : > { %7786 = vmatmul.mubr.msk.bf16.gmra.mrb[28].mxu0 %vm696_vm0, %v8722_v20 }
 0x18f   : > { %7806 = vmatpush3.bf16.msra.mxu0 %v9859_v2  ;;  %7809 = vmatprep.mubr.msk.bf16.mxu0 %vm696_vm0, %v8723_v21 }
 0x190   : > { %7807 = vmatprep.subr.bf16.mxu0 %v9869_v4 }
 0x193   : > { %7808 = vmatpush3.bf16.msra.mxu0 %v9869_v4 }
 0x194   : > { %7829 = vmatprep.subr.bf16.mxu0 %v9851_v0 }
 0x196   : > { %7810 = vmatmul.mubr.msk.bf16.vlgmr.msra.gmra.mrb[32].mxu0 %vm696_vm0, %v9921_v22 }
 0x197   : > { %7830 = vmatpush3.bf16.msra.mxu0 %v9851_v0  ;;  %7813 = vmatprep.mubr.msk.bf16.mxu0 %vm696_vm0, %v9923_v23 }
 0x198   : > { %7831 = vmatprep.subr.bf16.mxu0 %v9854_v1 }
 0x19b   : > { %7832 = vmatpush3.bf16.msra.mxu0 %v9854_v1 }
 0x19c   : > { %7833 = vmatprep.subr.bf16.mxu0 %v9859_v2 }
 0x19e   : > { %7814 = vmatmul.mubr.msk.bf16.gmra.mrb[36].mxu0 %vm696_vm0, %v9933_v24 }
 0x19f   : > { %7834 = vmatpush3.bf16.msra.mxu0 %v9859_v2  ;;  %7837 = vmatprep.mubr.msk.bf16.mxu0 %vm696_vm0, %v9935_v25 }
 0x1a0   : > { %7835 = vmatprep.subr.bf16.mxu0 %v9869_v4 }
 0x1a3   : > { %7836 = vmatpush3.bf16.msra.mxu0 %v9869_v4 }
 0x1a4   : > { %7857 = vmatprep.subr.bf16.mxu0 %v9851_v0 }
 0x1a6   : > { %7838 = vmatmul.mubr.msk.bf16.vlgmr.msra.gmra.mrb[40].mxu0 %vm696_vm0, %v9945_v26 }
 0x1a7   : > { %7858 = vmatpush3.bf16.msra.mxu0 %v9851_v0  ;;  %7841 = vmatprep.mubr.msk.bf16.mxu0 %vm696_vm0, %v9947_v27 }
 0x1a8   : > { %7859 = vmatprep.subr.bf16.mxu0 %v9854_v1 }
 0x1ab   : > { %7860 = vmatpush3.bf16.msra.mxu0 %v9854_v1 }
 0x1ac   : > { %7861 = vmatprep.subr.bf16.mxu0 %v9859_v2 }
 0x1ae   : > { %7842 = vmatmul.mubr.msk.bf16.gmra.mrb[44].mxu0 %vm696_vm0, %v9957_v28 }
 0x1af   : > { %7862 = vmatpush3.bf16.msra.mxu0 %v9859_v2  ;;  %7865 = vmatprep.mubr.msk.bf16.mxu0 %vm696_vm0, %v9959_v29 }
 0x1b0   : > { %7863 = vmatprep.subr.bf16.mxu0 %v9869_v4 }
 0x1b3   : > { %7864 = vmatpush3.bf16.msra.mxu0 %v9869_v4 }
 0x1b4   : > { %7885 = vmatprep.subr.bf16.mxu0 %v9851_v0 }
 0x1b6   : > { %7866 = vmatmul.mubr.msk.bf16.vlgmr.msra.gmra.mrb[48].mxu0 %vm696_vm0, %v9969_v31 }
 0x1b7   : > { %7886 = vmatpush3.bf16.msra.mxu0 %v9851_v0  ;;  %7869 = vmatprep.mubr.msk.bf16.mxu0 %vm696_vm0, %v9971_v33 }
 0x1b8   : > { %7887 = vmatprep.subr.bf16.mxu0 %v9854_v1 }
 0x1bb   : > { %7888 = vmatpush3.bf16.msra.mxu0 %v9854_v1  ;;  %v8745_v1 = vld [vmem:[#allocation4 + $0x20] sm:$0xff]  }
 0x1bc   : > { %7889 = vmatprep.subr.bf16.mxu0 %v9859_v2 }
 0x1be   : > { %7870 = vmatmul.mubr.msk.bf16.gmra.mrb[52].mxu0 %vm696_vm0, %v9981_v34 }
 0x1bf   : > { %7890 = vmatpush3.bf16.msra.mxu0 %v9859_v2  ;;  %7893 = vmatprep.mubr.msk.bf16.mxu0 %vm696_vm0, %v9983_v35 }
 0x1c0   : > { %7891 = vmatprep.subr.bf16.mxu0 %v9869_v4 }
 0x1c3   : > { %7892 = vmatpush3.bf16.msra.mxu0 %v9869_v4 }
 0x1c6   : > { %7894 = vmatmul.mubr.msk.bf16.vlgmr.msra.gmra.mrb[56].mxu0 %vm696_vm0, %v9993_v36 }
 0x1c7   : > { %7897 = vmatprep.mubr.msk.bf16.mxu0 %vm696_vm0, %v9995_v37 }
 0x1ce   : > { %7898 = vmatmul.mubr.msk.bf16.gmra.mrb[60].mxu0 %vm696_vm0, %v10002_v38 }
 0x1cf   : > { %7921 = vmatprep.mubr.msk.bf16.mxu0 %vm696_vm0, %v9862_v3 }
 0x229   : > { %v7687_v39 = vpop.f32.mrb[0].mxu0 }
 0x22a   : > { %v743_v40 = vpop.f32.mrb[1].mxu0 }
 0x22b   : > { %v7688_v41 = vpop.f32.mrb[2].mxu0 }
 0x22c   : > { %v775_v42 = vpack.c.bf16 %v7688_v41, %v7687_v39  ;;  %v746_v43 = vpop.f32.mrb[3].mxu0 }
 0x22d   : > { %v774_v44 = vpack.c.bf16 %v746_v43, %v743_v40 }
 0x22f   : > { %7697 = vmatprep.mubr.msk.bf16.mxu1 %vm794_vm1, %v774_v44 }
 0x230   : > { %7698 = vmatmul.mubr.msk.bf16.vlgmr.msra.gmra.mrb[0].mxu1 %vm794_vm1, %v775_v42  ;;  %v8748_v42 = vld [vmem:[#allocation4 + $0x38] sm:$0xff]  }
 0x231   : > { %v7691_v46 = vpop.f32.mrb[4].mxu0  ;;  %7706 = vmatpush3.bf16.msra.mxu1 %v8741_v32 }
 0x232   : > { %v759_v47 = vpop.f32.mrb[5].mxu0  ;;  %7707 = vmatprep.subr.bf16.mxu1 %v8742_v45 }
 0x233   : > { %v7692_v49 = vpop.f32.mrb[6].mxu0 }
 0x234   : > { %v777_v50 = vpack.c.bf16 %v7692_v49, %v7691_v46  ;;  %v762_v51 = vpop.f32.mrb[7].mxu0 }
 0x235   : > { %v776_v52 = vpack.c.bf16 %v762_v51, %v759_v47  ;;  %7708 = vmatpush3.bf16.msra.mxu1 %v8742_v45  ;;  %v8749_v45 = vld [vmem:[#allocation4 + $0x50] sm:$0xff]  }
 0x236   : > { %7733 = vmatprep.subr.bf16.mxu1 %v8743_v48 }
 0x237   : > { %7701 = vmatprep.mubr.msk.bf16.mxu1 %vm794_vm1, %v776_v52 }
 0x238   : > { %7702 = vmatmul.mubr.msk.bf16.gmra.mrb[4].mxu1 %vm794_vm1, %v777_v50 }
 0x239   : > { %7709 = vmatprep.mubr.msk.bf16.mxu1 %vm794_vm1, %v9025_v53  ;;  %v7727_v54 = vpop.f32.mrb[8].mxu0 }
 0x23a   : > { %v1036_v55 = vpop.f32.mrb[9].mxu0 }
 0x23b   : > { %v7728_v56 = vpop.f32.mrb[10].mxu0 }
 0x23c   : > { %v1068_v57 = vpack.c.bf16 %v7728_v56, %v7727_v54  ;;  %v1039_v58 = vpop.f32.mrb[11].mxu0  ;;  %v8750_v56 = vld [vmem:[#allocation4 + $0x58] sm:$0xff]  }
 0x23d   : > { %v1067_v59 = vpack.c.bf16 %v1039_v58, %v1036_v55 }
 0x240   : > { %7710 = vmatmul.mubr.msk.bf16.vlgmr.msra.gmra.mrb[0].mxu1 %vm794_vm1, %v9026_v61 }
 0x241   : > { %7734 = vmatpush3.bf16.msra.mxu1 %v8743_v48  ;;  %7713 = vmatprep.mubr.msk.bf16.mxu1 %vm794_vm1, %v9027_v62  ;;  %v7731_v63 = vpop.f32.mrb[12].mxu0 }
 0x242   : > { %7735 = vmatprep.subr.bf16.mxu1 %v8744_v60  ;;  %v1052_v0 = vpop.f32.mrb[13].mxu0 }
 0x243   : > { %v7732_v2 = vpop.f32.mrb[14].mxu0 }
 0x244   : > { %v1070_v3 = vpack.c.bf16 %v7732_v2, %v7731_v63  ;;  %v1055_v4 = vpop.f32.mrb[15].mxu0 }
 0x245   : > { %7736 = vmatpush3.bf16.msra.mxu1 %v8744_v60  ;;  %v1069_v5 = vpack.c.bf16 %v1055_v4, %v1052_v0 }
 0x246   : > { %7761 = vmatprep.subr.bf16.mxu1 %v8745_v1 }
 0x248   : > { %7714 = vmatmul.mubr.msk.bf16.gmra.mrb[4].mxu1 %vm794_vm1, %v9028_v6  ;;  %v8752_v6 = vld [vmem:[#allocation4 + $0x68] sm:$0xff]  }
 0x249   : > { %7737 = vmatprep.mubr.msk.bf16.mxu1 %vm794_vm1, %v1067_v59  ;;  %v7755_v7 = vpop.f32.mrb[16].mxu0  ;;  %v8751_v59 = vld [vmem:[#allocation4 + $0x60] sm:$0xff]  }
 0x24a   : > { %v1248_v8 = vpop.f32.mrb[17].mxu0 }
 0x24b   : > { %v7756_v9 = vpop.f32.mrb[18].mxu0 }
 0x24c   : > { %v1280_v10 = vpack.c.bf16 %v7756_v9, %v7755_v7  ;;  %v1251_v11 = vpop.f32.mrb[19].mxu0  ;;  %v8753_v9 = vld [vmem:[#allocation4 + $0x70] sm:$0xff]  }
 0x24d   : > { %v1279_v12 = vpack.c.bf16 %v1251_v11, %v1248_v8 }
 0x250   : > { %7738 = vmatmul.mubr.msk.bf16.vlgmr.msra.gmra.mrb[0].mxu1 %vm794_vm1, %v1068_v57 }
 0x251   : > { %7762 = vmatpush3.bf16.msra.mxu1 %v8745_v1  ;;  %7741 = vmatprep.mubr.msk.bf16.mxu1 %vm794_vm1, %v1069_v5  ;;  %v7759_v14 = vpop.f32.mrb[20].mxu0 }
 0x252   : > { %7763 = vmatprep.subr.bf16.mxu1 %v8746_v13  ;;  %v1264_v15 = vpop.f32.mrb[21].mxu0 }
 0x253   : > { %v7760_v17 = vpop.f32.mrb[22].mxu0 }
 0x254   : > { %v1282_v18 = vpack.c.bf16 %v7760_v17, %v7759_v14  ;;  %v1267_v19 = vpop.f32.mrb[23].mxu0 }
 0x255   : > { %7764 = vmatpush3.bf16.msra.mxu1 %v8746_v13  ;;  %v1281_v20 = vpack.c.bf16 %v1267_v19, %v1264_v15 }
 0x256   : > { %7789 = vmatprep.subr.bf16.mxu1 %v8747_v16 }
 0x258   : > { %7742 = vmatmul.mubr.msk.bf16.gmra.mrb[4].mxu1 %vm794_vm1, %v1070_v3 }
 0x259   : > { %7765 = vmatprep.mubr.msk.bf16.mxu1 %vm794_vm1, %v1279_v12  ;;  %v7783_v21 = vpop.f32.mrb[24].mxu0 }
 0x25a   : > { %v1460_v30 = vpop.f32.mrb[25].mxu0 }
 0x25b   : > { %v7784_v32 = vpop.f32.mrb[26].mxu0 }
 0x25c   : > { %v1492_v39 = vpack.c.bf16 %v7784_v32, %v7783_v21  ;;  %v1463_v40 = vpop.f32.mrb[27].mxu0  ;;  %v8755_v32 = vld [vmem:[#allocation4 + $0x80] sm:$0xff]  }
 0x25d   : > { %v1491_v41 = vpack.c.bf16 %v1463_v40, %v1460_v30 }
 0x260   : > { %7766 = vmatmul.mubr.msk.bf16.vlgmr.msra.gmra.mrb[0].mxu1 %vm794_vm1, %v1280_v10 }
 0x261   : > { %7790 = vmatpush3.bf16.msra.mxu1 %v8747_v16  ;;  %7769 = vmatprep.mubr.msk.bf16.mxu1 %vm794_vm1, %v1281_v20  ;;  %v7787_v43 = vpop.f32.mrb[28].mxu0  ;;  %v8754_v20 = vld [vmem:[#allocation4 + $0x78] sm:$0xff]  }
 0x262   : > { %7791 = vmatprep.subr.bf16.mxu1 %v8748_v42  ;;  %v1476_v44 = vpop.f32.mrb[29].mxu0 }
 0x263   : > { %v7788_v46 = vpop.f32.mrb[30].mxu0 }
 0x264   : > { %v1494_v47 = vpack.c.bf16 %v7788_v46, %v7787_v43  ;;  %v1479_v48 = vpop.f32.mrb[31].mxu0 }
 0x265   : > { %7792 = vmatpush3.bf16.msra.mxu1 %v8748_v42  ;;  %v1493_v49 = vpack.c.bf16 %v1479_v48, %v1476_v44 }
 0x266   : > { %7817 = vmatprep.subr.bf16.mxu1 %v8749_v45 }
 0x268   : > { %7770 = vmatmul.mubr.msk.bf16.gmra.mrb[4].mxu1 %vm794_vm1, %v1282_v18 }
 0x269   : > { %7793 = vmatprep.mubr.msk.bf16.mxu1 %vm794_vm1, %v1491_v41  ;;  %v7811_v50 = vpop.f32.mrb[32].mxu0 }
 0x26a   : > { %v1672_v51 = vpop.f32.mrb[33].mxu0 }
 0x26b   : > { %v7812_v52 = vpop.f32.mrb[34].mxu0 }
 0x26c   : > { %v1704_v53 = vpack.c.bf16 %v7812_v52, %v7811_v50  ;;  %v1675_v54 = vpop.f32.mrb[35].mxu0 }
 0x26d   : > { %v1703_v55 = vpack.c.bf16 %v1675_v54, %v1672_v51 }
 0x270   : > { %7794 = vmatmul.mubr.msk.bf16.vlgmr.msra.gmra.mrb[0].mxu1 %vm794_vm1, %v1492_v39 }
 0x271   : > { %7818 = vmatpush3.bf16.msra.mxu1 %v8749_v45  ;;  %7797 = vmatprep.mubr.msk.bf16.mxu1 %vm794_vm1, %v1493_v49  ;;  %v7815_v57 = vpop.f32.mrb[36].mxu0  ;;  %v8756_v49 = vld [vmem:[#allocation4 + $0x88] sm:$0xff]  }
 0x272   : > { %7819 = vmatprep.subr.bf16.mxu1 %v8750_v56  ;;  %v1688_v58 = vpop.f32.mrb[37].mxu0 }
 0x273   : > { %v7816_v60 = vpop.f32.mrb[38].mxu0 }
 0x274   : > { %v1706_v61 = vpack.c.bf16 %v7816_v60, %v7815_v57  ;;  %v1691_v62 = vpop.f32.mrb[39].mxu0 }
 0x275   : > { %7820 = vmatpush3.bf16.msra.mxu1 %v8750_v56  ;;  %v1705_v63 = vpack.c.bf16 %v1691_v62, %v1688_v58  ;;  %v6999_v56 = vld [vmem:[#allocation6] ss:$0 sm:$0xff]  ;;  %v7000_v58 = vld [vmem:[#allocation7] ss:$0 sm:$0xff] }
 0x276   : > { %7845 = vmatprep.subr.bf16.mxu1 %v8751_v59 }
 0x278   : > { %7798 = vmatmul.mubr.msk.bf16.gmra.mrb[4].mxu1 %vm794_vm1, %v1494_v47 }
 0x279   : > { %7821 = vmatprep.mubr.msk.bf16.mxu1 %vm794_vm1, %v1703_v55  ;;  %v7839_v0 = vpop.f32.mrb[40].mxu0 }
 0x27a   : > { %v1884_v1 = vpop.f32.mrb[41].mxu0 }
 0x27b   : > { %v7840_v2 = vpop.f32.mrb[42].mxu0 }
 0x27c   : > { %v1916_v3 = vpack.c.bf16 %v7840_v2, %v7839_v0  ;;  %v1887_v4 = vpop.f32.mrb[43].mxu0 }
 0x27d   : > { %v1915_v5 = vpack.c.bf16 %v1887_v4, %v1884_v1 }
 0x280   : > { %7822 = vmatmul.mubr.msk.bf16.vlgmr.msra.gmra.mrb[0].mxu1 %vm794_vm1, %v1704_v53 }
 0x281   : > { %7846 = vmatpush3.bf16.msra.mxu1 %v8751_v59  ;;  %7825 = vmatprep.mubr.msk.bf16.mxu1 %vm794_vm1, %v1705_v63  ;;  %v7843_v7 = vpop.f32.mrb[44].mxu0 }
 0x282   : > { %7847 = vmatprep.subr.bf16.mxu1 %v8752_v6  ;;  %v1900_v8 = vpop.f32.mrb[45].mxu0 }
 0x283   : > { %v7844_v10 = vpop.f32.mrb[46].mxu0 }
 0x284   : > { %v1918_v11 = vpack.c.bf16 %v7844_v10, %v7843_v7  ;;  %v1903_v12 = vpop.f32.mrb[47].mxu0 }
 0x285   : > { %7848 = vmatpush3.bf16.msra.mxu1 %v8752_v6  ;;  %v1917_v13 = vpack.c.bf16 %v1903_v12, %v1900_v8 }
 0x286   : > { %7873 = vmatprep.subr.bf16.mxu1 %v8753_v9 }
 0x288   : > { %7826 = vmatmul.mubr.msk.bf16.gmra.mrb[4].mxu1 %vm794_vm1, %v1706_v61 }
 0x289   : > { %7849 = vmatprep.mubr.msk.bf16.mxu1 %vm794_vm1, %v1915_v5  ;;  %v7867_v14 = vpop.f32.mrb[48].mxu0 }
 0x28a   : > { %v2096_v15 = vpop.f32.mrb[49].mxu0 }
 0x28b   : > { %v7868_v16 = vpop.f32.mrb[50].mxu0 }
 0x28c   : > { %v2128_v17 = vpack.c.bf16 %v7868_v16, %v7867_v14  ;;  %v2099_v18 = vpop.f32.mrb[51].mxu0 }
 0x28d   : > { %v2127_v19 = vpack.c.bf16 %v2099_v18, %v2096_v15 }
 0x290   : > { %7850 = vmatmul.mubr.msk.bf16.vlgmr.msra.gmra.mrb[0].mxu1 %vm794_vm1, %v1916_v3 }
 0x291   : > { %7874 = vmatpush3.bf16.msra.mxu1 %v8753_v9  ;;  %7853 = vmatprep.mubr.msk.bf16.mxu1 %vm794_vm1, %v1917_v13  ;;  %v7871_v21 = vpop.f32.mrb[52].mxu0 }
 0x292   : > { %7875 = vmatprep.subr.bf16.mxu1 %v8754_v20  ;;  %v2112_v30 = vpop.f32.mrb[53].mxu0 }
 0x293   : > { %v7872_v39 = vpop.f32.mrb[54].mxu0 }
 0x294   : > { %v2130_v40 = vpack.c.bf16 %v7872_v39, %v7871_v21  ;;  %v2115_v41 = vpop.f32.mrb[55].mxu0 }
 0x295   : > { %7876 = vmatpush3.bf16.msra.mxu1 %v8754_v20  ;;  %v2129_v42 = vpack.c.bf16 %v2115_v41, %v2112_v30 }
 0x296   : > { %7901 = vmatprep.subr.bf16.mxu1 %v8755_v32 }
 0x298   : > { %7854 = vmatmul.mubr.msk.bf16.gmra.mrb[4].mxu1 %vm794_vm1, %v1918_v11 }
 0x299   : > { %7877 = vmatprep.mubr.msk.bf16.mxu1 %vm794_vm1, %v2127_v19  ;;  %v7895_v43 = vpop.f32.mrb[56].mxu0 }
 0x29a   : > { %v2308_v44 = vpop.f32.mrb[57].mxu0 }
 0x29b   : > { %v7896_v45 = vpop.f32.mrb[58].mxu0 }
 0x29c   : > { %v2340_v46 = vpack.c.bf16 %v7896_v45, %v7895_v43  ;;  %v2311_v47 = vpop.f32.mrb[59].mxu0  ;;  %v8757_v45 = vld [vmem:[#allocation9] sm:$0xff]  }
 0x29d   : > { %v2339_v48 = vpack.c.bf16 %v2311_v47, %v2308_v44  ;;  %v8759_v47 = vld [vmem:[#allocation9 + $0x10] sm:$0xff]  }
 0x2a0   : > { %7878 = vmatmul.mubr.msk.bf16.vlgmr.msra.gmra.mrb[0].mxu1 %vm794_vm1, %v2128_v17 }
 0x2a1   : > { %7902 = vmatpush3.bf16.msra.mxu1 %v8755_v32  ;;  %7881 = vmatprep.mubr.msk.bf16.mxu1 %vm794_vm1, %v2129_v42  ;;  %v7899_v50 = vpop.f32.mrb[60].mxu0 }
 0x2a2   : > { %7903 = vmatprep.subr.bf16.mxu1 %v8756_v49  ;;  %v2324_v51 = vpop.f32.mrb[61].mxu0 }
 0x2a3   : > { %v7900_v52 = vpop.f32.mrb[62].mxu0 }
 0x2a4   : > { %v2342_v53 = vpack.c.bf16 %v7900_v52, %v7899_v50  ;;  %v2327_v54 = vpop.f32.mrb[63].mxu0  ;;  %v10077_v50 = vld [vmem:[#allocation2 + $0x18] sm:$0xff]   ;;  %v10089_v52 = vld [vmem:[#allocation2 + $0x28] sm:$0xff]  }
 0x2a5   : > { %7904 = vmatpush3.bf16.msra.mxu1 %v8756_v49  ;;  %v2341_v55 = vpack.c.bf16 %v2327_v54, %v2324_v51  ;;  %v10070_v49 = vld [vmem:[#allocation2 + $0x10] sm:$0xff]   ;;  %v10082_v51 = vld [vmem:[#allocation2 + $0x20] sm:$0xff]   ;;  %v10101_v54 = vld [vmem:[#allocation2 + $0x38] sm:$0xff]  }
 0x2a6   : > { %7929 = vmatprep.subr.bf16.mxu1 %v8757_v45 }
 0x2a8   : > { %7882 = vmatmul.mubr.msk.bf16.gmra.mrb[4].mxu1 %vm794_vm1, %v2130_v40 }
 0x2a9   : > { %7905 = vmatprep.mubr.msk.bf16.mxu1 %vm794_vm1, %v2339_v48  ;;  %v10065_v48 = vld [vmem:[#allocation2 + $0x8] sm:$0xff]  }
 0x2b0   : > { %7906 = vmatmul.mubr.msk.bf16.vlgmr.msra.gmra.mrb[0].mxu1 %vm794_vm1, %v2340_v46  ;;  %v8758_v46 = vld [vmem:[#allocation9 + $0x8] sm:$0xff]  }
 0x2b1   : > { %7909 = vmatprep.mubr.msk.bf16.mxu1 %vm794_vm1, %v2341_v55  ;;  %7930 = vmatpush3.bf16.msra.mxu1 %v8757_v45  ;;  %v10106_v55 = vld [vmem:[#allocation2 + $0x40] sm:$0xff]  }
 0x2b2   : > { %7931 = vmatprep.subr.bf16.mxu1 %v8758_v46 }
 0x2b5   : > { %7932 = vmatpush3.bf16.msra.mxu1 %v8758_v46 }
 0x2b6   : > { %7933 = vmatprep.subr.bf16.mxu1 %v8759_v47 }
 0x2b8   : > { %7910 = vmatmul.mubr.msk.bf16.gmra.mrb[4].mxu1 %vm794_vm1, %v2342_v53  ;;  %v10094_v53 = vld [vmem:[#allocation2 + $0x30] sm:$0xff]  }
 0x2b9   : > { %7934 = vmatpush3.bf16.msra.mxu1 %v8759_v47 }
 0x383   : > { %v7907_v57 = vpop.f32.mrb[0].mxu1 }
 0x384   : > { %v2454_v59 = vmul.f32 %v7907_v57, %v6999_v56  ;;  %v2406_v60 = vpop.f32.mrb[1].mxu1  ;;  %v10118_v57 = vld [vmem:[#allocation2 + $0x50] sm:$0xff]  }
 0x385   : > { %v2452_v61 = vmul.f32 %v6999_v56, %v2406_v60  ;;  %v7908_v62 = vpop.f32.mrb[2].mxu1  ;;  %v10137_v60 = vld [vmem:[#allocation2 + $0x68] sm:$0xff]  }
 0x386   : > { %v2469_v63 = vadd.f32 %v7000_v58, %v2454_v59  ;;  %v2455_v0 = vmul.f32 %v7908_v62, %v6999_v56  ;;  %v2409_v1 = vpop.f32.mrb[3].mxu1  ;;  %v10130_v59 = vld [vmem:[#allocation2 + $0x60] sm:$0xff]   ;;  %v10149_v62 = vld [vmem:[#allocation2 + $0x78] sm:$0xff]  }
 0x387   : > { %v2467_v2 = vadd.f32 %v7000_v58, %v2452_v61  ;;  %v2453_v3 = vmul.f32 %v6999_v56, %v2409_v1  ;;  %v10142_v61 = vld [vmem:[#allocation2 + $0x70] sm:$0xff]  }
 0x388   : > { %v2470_v4 = vadd.f32 %v7000_v58, %v2455_v0  ;;  %v2477_v6 = vmax.f32 %v2469_v63, 0.0  ;;  %v10154_v63 = vld [vmem:[#allocation2 + $0xa0] sm:$0xff]  }
 0x389   : > { %v2468_v5 = vadd.f32 %v7000_v58, %v2453_v3  ;;  %v2475_v8 = vmax.f32 %v2467_v2, 0.0  ;;  %v8764_v2 = vld [vmem:[#allocation9 + $0x98] sm:$0xff]  }
 0x38a   : > { %v2478_v7 = vmax.f32 %v2470_v4, 0.0  ;;  %v8765_v4 = vld [vmem:[#allocation9 + $0x20] sm:$0xff]  }
 0x38b   : > { %v2476_v9 = vmax.f32 %v2468_v5, 0.0  ;;  %v7911_v10 = vpop.f32.mrb[4].mxu1 }
 0x38c   : > { %v10048_v11 = vpack.c.bf16 %v2478_v7, %v2477_v6  ;;  %v2458_v12 = vmul.f32 %v7911_v10, %v6999_v56  ;;  %v2422_v13 = vpop.f32.mrb[5].mxu1  ;;  %v8766_v10 = vld [vmem:[#allocation9 + $0x28] sm:$0xff]  }
 0x38d   : > { %v10050_v14 = vpack.c.bf16 %v2476_v9, %v2475_v8  ;;  %v2456_v15 = vmul.f32 %v6999_v56, %v2422_v13  ;;  %v7912_v16 = vpop.f32.mrb[6].mxu1  ;;  %v8767_v13 = vld [vmem:[#allocation9 + $0x30] sm:$0xff]  }
 0x38e   : > { %v2473_v17 = vadd.f32 %v7000_v58, %v2458_v12  ;;  %v2459_v18 = vmul.f32 %v7912_v16, %v6999_v56  ;;  %v2425_v19 = vpop.f32.mrb[7].mxu1 }
 0x38f   : > { %v2471_v20 = vadd.f32 %v7000_v58, %v2456_v15  ;;  %v2457_v21 = vmul.f32 %v6999_v56, %v2425_v19  ;;  %7913 = vmatprep.subr.bf16.mxu0 %v10050_v14  ;;  %v10113_v56 = vld [vmem:[#allocation2 + $0x48] sm:$0xff]  }
 0x390   : > { %v2474_v30 = vadd.f32 %v7000_v58, %v2459_v18  ;;  %7914 = vmatpush3.bf16.msra.mxu0 %v10050_v14  ;;  %v2481_v39 = vmax.f32 %v2473_v17, 0.0  ;;  %v8768_v19 = vld [vmem:[#allocation9 + $0x38] sm:$0xff]  }
 0x391   : > { %v2472_v32 = vadd.f32 %v7000_v58, %v2457_v21  ;;  %7915 = vmatprep.subr.bf16.mxu0 %v10048_v11  ;;  %v2479_v41 = vmax.f32 %v2471_v20, 0.0  ;;  %v10125_v58 = vld [vmem:[#allocation2 + $0x58] sm:$0xff]  }
 0x392   : > { %v2482_v40 = vmax.f32 %v2474_v30, 0.0  ;;  %v8769_v20 = vld [vmem:[#allocation9 + $0x40] sm:$0xff]  }
 0x393   : > { %v2480_v42 = vmax.f32 %v2472_v32, 0.0 }
 0x394   : > { %v10055_v43 = vpack.c.bf16 %v2482_v40, %v2481_v39  ;;  %7916 = vmatpush3.bf16.msra.mxu0 %v10048_v11 }
 0x395   : > { %v10058_v44 = vpack.c.bf16 %v2480_v42, %v2479_v41  ;;  %v8770_v41 = vld [vmem:[#allocation9 + $0x48] sm:$0xff]  }
 0x397   : > { %7917 = vmatprep.subr.bf16.mxu0 %v10058_v44 }
 0x398   : > { %7918 = vmatpush3.bf16.msra.mxu0 %v10058_v44 }
 0x399   : > { %7919 = vmatprep.subr.bf16.mxu0 %v10055_v43 }
 0x39c   : > { %7920 = vmatpush3.bf16.msra.mxu0 %v10055_v43 }
 0x39d   : > { %7961 = vmatprep.subr.bf16.mxu0 %v10050_v14 }
 0x39f   : > { %7922 = vmatmul.mubr.msk.bf16.vlgmr.msra.gmra.mrb[64].mxu0 %vm696_vm0, %v10065_v48 }
 0x3a0   : > { %7962 = vmatpush3.bf16.msra.mxu0 %v10050_v14  ;;  %7925 = vmatprep.mubr.msk.bf16.mxu0 %vm696_vm0, %v10070_v49 }
 0x3a1   : > { %7963 = vmatprep.subr.bf16.mxu0 %v10048_v11 }
 0x3a4   : > { %7964 = vmatpush3.bf16.msra.mxu0 %v10048_v11 }
 0x3a5   : > { %7965 = vmatprep.subr.bf16.mxu0 %v10058_v44 }
 0x3a7   : > { %7926 = vmatmul.mubr.msk.bf16.gmra.mrb[68].mxu0 %vm696_vm0, %v10077_v50 }
 0x3a8   : > { %7966 = vmatpush3.bf16.msra.mxu0 %v10058_v44  ;;  %7969 = vmatprep.mubr.msk.bf16.mxu0 %vm696_vm0, %v10082_v51 }
 0x3a9   : > { %7967 = vmatprep.subr.bf16.mxu0 %v10055_v43 }
 0x3ac   : > { %7968 = vmatpush3.bf16.msra.mxu0 %v10055_v43 }
 0x3ad   : > { %7993 = vmatprep.subr.bf16.mxu0 %v10050_v14 }
 0x3af   : > { %7970 = vmatmul.mubr.msk.bf16.vlgmr.msra.gmra.mrb[72].mxu0 %vm696_vm0, %v10089_v52 }
 0x3b0   : > { %7994 = vmatpush3.bf16.msra.mxu0 %v10050_v14  ;;  %7973 = vmatprep.mubr.msk.bf16.mxu0 %vm696_vm0, %v10094_v53 }
 0x3b1   : > { %7995 = vmatprep.subr.bf16.mxu0 %v10048_v11 }
 0x3b4   : > { %7996 = vmatpush3.bf16.msra.mxu0 %v10048_v11 }
 0x3b5   : > { %7997 = vmatprep.subr.bf16.mxu0 %v10058_v44 }
 0x3b7   : > { %7974 = vmatmul.mubr.msk.bf16.gmra.mrb[76].mxu0 %vm696_vm0, %v10101_v54 }
 0x3b8   : > { %7998 = vmatpush3.bf16.msra.mxu0 %v10058_v44  ;;  %8001 = vmatprep.mubr.msk.bf16.mxu0 %vm696_vm0, %v10106_v55 }
 0x3b9   : > { %7999 = vmatprep.subr.bf16.mxu0 %v10055_v43 }
 0x3bc   : > { %8000 = vmatpush3.bf16.msra.mxu0 %v10055_v43 }
 0x3bd   : > { %8025 = vmatprep.subr.bf16.mxu0 %v10050_v14 }
 0x3bf   : > { %8002 = vmatmul.mubr.msk.bf16.vlgmr.msra.gmra.mrb[80].mxu0 %vm696_vm0, %v10113_v56 }
 0x3c0   : > { %8026 = vmatpush3.bf16.msra.mxu0 %v10050_v14  ;;  %8005 = vmatprep.mubr.msk.bf16.mxu0 %vm696_vm0, %v10118_v57 }
 0x3c1   : > { %8027 = vmatprep.subr.bf16.mxu0 %v10048_v11 }
 0x3c4   : > { %8028 = vmatpush3.bf16.msra.mxu0 %v10048_v11 }
 0x3c5   : > { %8029 = vmatprep.subr.bf16.mxu0 %v10058_v44 }
 0x3c7   : > { %8006 = vmatmul.mubr.msk.bf16.gmra.mrb[84].mxu0 %vm696_vm0, %v10125_v58 }
 0x3c8   : > { %8030 = vmatpush3.bf16.msra.mxu0 %v10058_v44  ;;  %8033 = vmatprep.mubr.msk.bf16.mxu0 %vm696_vm0, %v10130_v59 }
 0x3c9   : > { %8031 = vmatprep.subr.bf16.mxu0 %v10055_v43 }
 0x3cc   : > { %8032 = vmatpush3.bf16.msra.mxu0 %v10055_v43 }
 0x3cd   : > { %8057 = vmatprep.subr.bf16.mxu0 %v10050_v14 }
 0x3cf   : > { %8034 = vmatmul.mubr.msk.bf16.vlgmr.msra.gmra.mrb[88].mxu0 %vm696_vm0, %v10137_v60 }
 0x3d0   : > { %8058 = vmatpush3.bf16.msra.mxu0 %v10050_v14  ;;  %8037 = vmatprep.mubr.msk.bf16.mxu0 %vm696_vm0, %v10142_v61 }
 0x3d1   : > { %8059 = vmatprep.subr.bf16.mxu0 %v10048_v11 }
 0x3d4   : > { %8060 = vmatpush3.bf16.msra.mxu0 %v10048_v11 }
 0x3d5   : > { %8061 = vmatprep.subr.bf16.mxu0 %v10058_v44 }
 0x3d7   : > { %8038 = vmatmul.mubr.msk.bf16.gmra.mrb[92].mxu0 %vm696_vm0, %v10149_v62 }
 0x3d8   : > { %8062 = vmatpush3.bf16.msra.mxu0 %v10058_v44  ;;  %8065 = vmatprep.mubr.msk.bf16.mxu0 %vm696_vm0, %v10154_v63 }
 0x3d9   : > { %8063 = vmatprep.subr.bf16.mxu0 %v10055_v43 }
 0x3dc   : > { %8064 = vmatpush3.bf16.msra.mxu0 %v10055_v43 }
 0x3dd   : > { %8089 = vmatprep.subr.bf16.mxu0 %v10050_v14 }
 0x3df   : > { %8066 = vmatmul.mubr.msk.bf16.vlgmr.msra.gmra.mrb[96].mxu0 %vm696_vm0, %v9921_v22  ;;  %v8760_v22 = vld [vmem:[#allocation9 + $0x18] sm:$0xff]  }
 0x3e0   : > { %8090 = vmatpush3.bf16.msra.mxu0 %v10050_v14  ;;  %8069 = vmatprep.mubr.msk.bf16.mxu0 %vm696_vm0, %v9923_v23  ;;  %v8761_v23 = vld [vmem:[#allocation9 + $0x80] sm:$0xff]  }
 0x3e1   : > { %8091 = vmatprep.subr.bf16.mxu0 %v10048_v11  ;;  %7935 = vmatprep.subr.bf16.mxu1 %v8760_v22 }
 0x3e2   : > { %7936 = vmatpush3.bf16.msra.mxu1 %v8760_v22 }
 0x3e3   : > { %7945 = vmatprep.subr.bf16.mxu1 %v8761_v23 }
 0x3e4   : > { %8092 = vmatpush3.bf16.msra.mxu0 %v10048_v11 }
 0x3e5   : > { %8093 = vmatprep.subr.bf16.mxu0 %v10058_v44 }
 0x3e7   : > { %8070 = vmatmul.mubr.msk.bf16.gmra.mrb[100].mxu0 %vm696_vm0, %v9933_v24  ;;  %v9045_v24 = vld [vmem:[#allocation2] sm:$0xff]  }
 0x3e8   : > { %8094 = vmatpush3.bf16.msra.mxu0 %v10058_v44  ;;  %8097 = vmatprep.mubr.msk.bf16.mxu0 %vm696_vm0, %v9935_v25 }
 0x3e9   : > { %8095 = vmatprep.subr.bf16.mxu0 %v10055_v43 }
 0x3ec   : > { %8096 = vmatpush3.bf16.msra.mxu0 %v10055_v43 }
 0x3ed   : > { %8121 = vmatprep.subr.bf16.mxu0 %v10050_v14 }
 0x3ef   : > { %8098 = vmatmul.mubr.msk.bf16.vlgmr.msra.gmra.mrb[104].mxu0 %vm696_vm0, %v9945_v26 }
 0x3f0   : > { %8122 = vmatpush3.bf16.msra.mxu0 %v10050_v14  ;;  %8101 = vmatprep.mubr.msk.bf16.mxu0 %vm696_vm0, %v9947_v27 }
 0x3f1   : > { %8123 = vmatprep.subr.bf16.mxu0 %v10048_v11 }
 0x3f4   : > { %8124 = vmatpush3.bf16.msra.mxu0 %v10048_v11 }
 0x3f5   : > { %8125 = vmatprep.subr.bf16.mxu0 %v10058_v44 }
 0x3f7   : > { %8102 = vmatmul.mubr.msk.bf16.gmra.mrb[108].mxu0 %vm696_vm0, %v9957_v28 }
 0x3f8   : > { %8126 = vmatpush3.bf16.msra.mxu0 %v10058_v44  ;;  %8129 = vmatprep.mubr.msk.bf16.mxu0 %vm696_vm0, %v9959_v29 }
 0x3f9   : > { %8127 = vmatprep.subr.bf16.mxu0 %v10055_v43 }
 0x3fc   : > { %8128 = vmatpush3.bf16.msra.mxu0 %v10055_v43 }
 0x3fd   : > { %8153 = vmatprep.subr.bf16.mxu0 %v10050_v14 }
 0x3ff   : > { %8130 = vmatmul.mubr.msk.bf16.vlgmr.msra.gmra.mrb[112].mxu0 %vm696_vm0, %v9969_v31 }
 0x400   : > { %8154 = vmatpush3.bf16.msra.mxu0 %v10050_v14  ;;  %8133 = vmatprep.mubr.msk.bf16.mxu0 %vm696_vm0, %v9971_v33  ;;  %v8762_v33 = vld [vmem:[#allocation9 + $0x88] sm:$0xff]  }
 0x401   : > { %8155 = vmatprep.subr.bf16.mxu0 %v10048_v11 }
 0x404   : > { %8156 = vmatpush3.bf16.msra.mxu0 %v10048_v11 }
 0x405   : > { %8157 = vmatprep.subr.bf16.mxu0 %v10058_v44 }
 0x407   : > { %8134 = vmatmul.mubr.msk.bf16.gmra.mrb[116].mxu0 %vm696_vm0, %v9981_v34 }
 0x408   : > { %8158 = vmatpush3.bf16.msra.mxu0 %v10058_v44  ;;  %8161 = vmatprep.mubr.msk.bf16.mxu0 %vm696_vm0, %v9983_v35 }
 0x409   : > { %8159 = vmatprep.subr.bf16.mxu0 %v10055_v43 }
 0x40c   : > { %8160 = vmatpush3.bf16.msra.mxu0 %v10055_v43 }
 0x40f   : > { %8162 = vmatmul.mubr.msk.bf16.vlgmr.msra.gmra.mrb[120].mxu0 %vm696_vm0, %v9993_v36  ;;  %v8763_v36 = vld [vmem:[#allocation9 + $0x90] sm:$0xff]  }
 0x410   : > { %8165 = vmatprep.mubr.msk.bf16.mxu0 %vm696_vm0, %v9995_v37 }
 0x417   : > { %8166 = vmatmul.mubr.msk.bf16.gmra.mrb[124].mxu0 %vm696_vm0, %v10002_v38 }
 0x418   : > { %8193 = vmatprep.mubr.msk.bf16.mxu0 %vm696_vm0, %v9045_v24 }
 0x472   : > { %v7923_v25 = vpop.f32.mrb[64].mxu0 }
 0x473   : > { %v2530_v26 = vpop.f32.mrb[65].mxu0 }
 0x474   : > { %v7924_v27 = vpop.f32.mrb[66].mxu0 }
 0x475   : > { %v2562_v28 = vpack.c.bf16 %v7924_v27, %v7923_v25  ;;  %v2533_v29 = vpop.f32.mrb[67].mxu0  ;;  %v8773_v25 = vld [vmem:[#allocation9 + $0x60] sm:$0xff]  }
 0x476   : > { %v2561_v31 = vpack.c.bf16 %v2533_v29, %v2530_v26 }
 0x478   : > { %7937 = vmatprep.mubr.msk.bf16.mxu1 %vm696_vm0, %v2561_v31 }
 0x479   : > { %7938 = vmatmul.mubr.msk.bf16.vlgmr.msra.gmra.mrb[8].mxu1 %vm696_vm0, %v2562_v28 }
 0x47a   : > { %v7927_v34 = vpop.f32.mrb[68].mxu0  ;;  %7946 = vmatpush3.bf16.msra.mxu1 %v8761_v23  ;;  %v8772_v23 = vld [vmem:[#allocation9 + $0x58] sm:$0xff]  }
 0x47b   : > { %v2546_v35 = vpop.f32.mrb[69].mxu0  ;;  %7947 = vmatprep.subr.bf16.mxu1 %v8762_v33 }
 0x47c   : > { %v7928_v37 = vpop.f32.mrb[70].mxu0 }
 0x47d   : > { %v2564_v38 = vpack.c.bf16 %v7928_v37, %v7927_v34  ;;  %v2549_v0 = vpop.f32.mrb[71].mxu0 }
 0x47e   : > { %v2563_v1 = vpack.c.bf16 %v2549_v0, %v2546_v35  ;;  %7948 = vmatpush3.bf16.msra.mxu1 %v8762_v33  ;;  %v8774_v33 = vld [vmem:[#allocation9 + $0x68] sm:$0xff]   ;;  %v8775_v35 = vld [vmem:[#allocation9 + $0x70] sm:$0xff]  }
 0x47f   : > { %7949 = vmatprep.subr.bf16.mxu1 %v8763_v36 }
 0x480   : > { %7941 = vmatprep.mubr.msk.bf16.mxu1 %vm696_vm0, %v2563_v1 }
 0x481   : > { %7942 = vmatmul.mubr.msk.bf16.gmra.mrb[12].mxu1 %vm696_vm0, %v2564_v38 }
 0x482   : > { %7950 = vmatpush3.bf16.msra.mxu1 %v8763_v36  ;;  %7953 = vmatprep.mubr.msk.bf16.mxu1 %vm696_vm0, %v10050_v14  ;;  %v7971_v3 = vpop.f32.mrb[72].mxu0 }
 0x483   : > { %7951 = vmatprep.subr.bf16.mxu1 %v8764_v2  ;;  %v2809_v5 = vpop.f32.mrb[73].mxu0 }
 0x484   : > { %v7972_v6 = vpop.f32.mrb[74].mxu0 }
 0x485   : > { %v2841_v7 = vpack.c.bf16 %v7972_v6, %v7971_v3  ;;  %v2812_v8 = vpop.f32.mrb[75].mxu0 }
 0x486   : > { %7952 = vmatpush3.bf16.msra.mxu1 %v8764_v2  ;;  %v2840_v9 = vpack.c.bf16 %v2812_v8, %v2809_v5  ;;  %v8776_v2 = vld [vmem:[#allocation9 + $0x78] sm:$0xff]  }
 0x487   : > { %7977 = vmatprep.subr.bf16.mxu1 %v8765_v4 }
 0x489   : > { %7954 = vmatmul.mubr.msk.bf16.vlgmr.msra.gmra.mrb[8].mxu1 %vm696_vm0, %v10048_v11 }
 0x48a   : > { %7957 = vmatprep.mubr.msk.bf16.mxu1 %vm696_vm0, %v10058_v44  ;;  %7978 = vmatpush3.bf16.msra.mxu1 %v8765_v4  ;;  %v7975_v12 = vpop.f32.mrb[76].mxu0  ;;  %v8777_v4 = vld [vmem:[#allocation9 + $0xa0] sm:$0xff]  }
 0x48b   : > { %7979 = vmatprep.subr.bf16.mxu1 %v8766_v10  ;;  %v2825_v14 = vpop.f32.mrb[77].mxu0 }
 0x48c   : > { %v7976_v15 = vpop.f32.mrb[78].mxu0 }
 0x48d   : > { %v2843_v16 = vpack.c.bf16 %v7976_v15, %v7975_v12  ;;  %v2828_v17 = vpop.f32.mrb[79].mxu0 }
 0x48e   : > { %7980 = vmatpush3.bf16.msra.mxu1 %v8766_v10  ;;  %v2842_v18 = vpack.c.bf16 %v2828_v17, %v2825_v14  ;;  %v8778_v10 = vld [vmem:[#allocation9 + $0xa8] sm:$0xff]  }
 0x48f   : > { %7981 = vmatprep.subr.bf16.mxu1 %v8767_v13 }
 0x491   : > { %7958 = vmatmul.mubr.msk.bf16.gmra.mrb[12].mxu1 %vm696_vm0, %v10055_v43  ;;  %v8771_v43 = vld [vmem:[#allocation9 + $0x50] sm:$0xff]  }
 0x492   : > { %7982 = vmatpush3.bf16.msra.mxu1 %v8767_v13  ;;  %7985 = vmatprep.mubr.msk.bf16.mxu1 %vm696_vm0, %v2840_v9  ;;  %v8003_v11 = vpop.f32.mrb[80].mxu0  ;;  %v8779_v13 = vld [vmem:[#allocation9 + $0xb0] sm:$0xff]  }
 0x493   : > { %7983 = vmatprep.subr.bf16.mxu1 %v8768_v19  ;;  %v2996_v21 = vpop.f32.mrb[81].mxu0 }
 0x494   : > { %v8004_v30 = vpop.f32.mrb[82].mxu0 }
 0x495   : > { %v3028_v32 = vpack.c.bf16 %v8004_v30, %v8003_v11  ;;  %v2999_v39 = vpop.f32.mrb[83].mxu0 }
 0x496   : > { %7984 = vmatpush3.bf16.msra.mxu1 %v8768_v19  ;;  %v3027_v40 = vpack.c.bf16 %v2999_v39, %v2996_v21  ;;  %v8780_v19 = vld [vmem:[#allocation9 + $0xb8] sm:$0xff]  }
 0x497   : > { %8009 = vmatprep.subr.bf16.mxu1 %v8769_v20 }
 0x499   : > { %7986 = vmatmul.mubr.msk.bf16.vlgmr.msra.gmra.mrb[8].mxu1 %vm696_vm0, %v2841_v7 }
 0x49a   : > { %8010 = vmatpush3.bf16.msra.mxu1 %v8769_v20  ;;  %7989 = vmatprep.mubr.msk.bf16.mxu1 %vm696_vm0, %v2842_v18  ;;  %v8007_v42 = vpop.f32.mrb[84].mxu0  ;;  %v8781_v20 = vld [vmem:[#allocation9 + $0xc0] sm:$0xff]  }
 0x49b   : > { %8011 = vmatprep.subr.bf16.mxu1 %v8770_v41  ;;  %v3012_v44 = vpop.f32.mrb[85].mxu0 }
 0x49c   : > { %v8008_v45 = vpop.f32.mrb[86].mxu0 }
 0x49d   : > { %v3030_v46 = vpack.c.bf16 %v8008_v45, %v8007_v42  ;;  %v3015_v47 = vpop.f32.mrb[87].mxu0 }
 0x49e   : > { %8012 = vmatpush3.bf16.msra.mxu1 %v8770_v41  ;;  %v3029_v22 = vpack.c.bf16 %v3015_v47, %v3012_v44  ;;  %v8782_v41 = vld [vmem:[#allocation9 + $0xc8] sm:$0xff]  }
 0x49f   : > { %8013 = vmatprep.subr.bf16.mxu1 %v8771_v43 }
 0x4a1   : > { %7990 = vmatmul.mubr.msk.bf16.gmra.mrb[12].mxu1 %vm696_vm0, %v2843_v16 }
 0x4a2   : > { %8014 = vmatpush3.bf16.msra.mxu1 %v8771_v43  ;;  %8017 = vmatprep.mubr.msk.bf16.mxu1 %vm696_vm0, %v3027_v40  ;;  %v8035_v24 = vpop.f32.mrb[88].mxu0  ;;  %v8783_v43 = vld [vmem:[#allocation9 + $0xd0] sm:$0xff]  }
 0x4a3   : > { %8015 = vmatprep.subr.bf16.mxu1 %v8772_v23  ;;  %v3183_v26 = vpop.f32.mrb[89].mxu0 }
 0x4a4   : > { %v8036_v27 = vpop.f32.mrb[90].mxu0 }
 0x4a5   : > { %v3215_v28 = vpack.c.bf16 %v8036_v27, %v8035_v24  ;;  %v3186_v29 = vpop.f32.mrb[91].mxu0 }
 0x4a6   : > { %8016 = vmatpush3.bf16.msra.mxu1 %v8772_v23  ;;  %v3214_v31 = vpack.c.bf16 %v3186_v29, %v3183_v26  ;;  %v8784_v23 = vld [vmem:[#allocation9 + $0xd8] sm:$0xff]  }
 0x4a7   : > { %8041 = vmatprep.subr.bf16.mxu1 %v8773_v25 }
 0x4a9   : > { %8018 = vmatmul.mubr.msk.bf16.vlgmr.msra.gmra.mrb[8].mxu1 %vm696_vm0, %v3028_v32 }
 0x4aa   : > { %8042 = vmatpush3.bf16.msra.mxu1 %v8773_v25  ;;  %8021 = vmatprep.mubr.msk.bf16.mxu1 %vm696_vm0, %v3029_v22  ;;  %v8039_v34 = vpop.f32.mrb[92].mxu0  ;;  %v8785_v25 = vld [vmem:[#allocation9 + $0xe0] sm:$0xff]  }
 0x4ab   : > { %8043 = vmatprep.subr.bf16.mxu1 %v8774_v33  ;;  %v3199_v36 = vpop.f32.mrb[93].mxu0 }
 0x4ac   : > { %v8040_v37 = vpop.f32.mrb[94].mxu0 }
 0x4ad   : > { %v3217_v38 = vpack.c.bf16 %v8040_v37, %v8039_v34  ;;  %v3202_v0 = vpop.f32.mrb[95].mxu0 }
 0x4ae   : > { %8044 = vmatpush3.bf16.msra.mxu1 %v8774_v33  ;;  %v3216_v1 = vpack.c.bf16 %v3202_v0, %v3199_v36  ;;  %v8786_v33 = vld [vmem:[#allocation9 + $0xe8] sm:$0xff]  }
 0x4af   : > { %8045 = vmatprep.subr.bf16.mxu1 %v8775_v35 }
 0x4b1   : > { %8022 = vmatmul.mubr.msk.bf16.gmra.mrb[12].mxu1 %vm696_vm0, %v3030_v46 }
 0x4b2   : > { %8046 = vmatpush3.bf16.msra.mxu1 %v8775_v35  ;;  %8049 = vmatprep.mubr.msk.bf16.mxu1 %vm696_vm0, %v3214_v31  ;;  %v8067_v3 = vpop.f32.mrb[96].mxu0  ;;  %v8787_v35 = vld [vmem:[#allocation9 + $0xf0] sm:$0xff]  }
 0x4b3   : > { %8047 = vmatprep.subr.bf16.mxu1 %v8776_v2  ;;  %v3370_v5 = vpop.f32.mrb[97].mxu0 }
 0x4b4   : > { %v8068_v6 = vpop.f32.mrb[98].mxu0 }
 0x4b5   : > { %v3402_v7 = vpack.c.bf16 %v8068_v6, %v8067_v3  ;;  %v3373_v8 = vpop.f32.mrb[99].mxu0 }
 0x4b6   : > { %8048 = vmatpush3.bf16.msra.mxu1 %v8776_v2  ;;  %v3401_v9 = vpack.c.bf16 %v3373_v8, %v3370_v5  ;;  %v8788_v2 = vld [vmem:[#allocation9 + $0xf8] sm:$0xff]  }
 0x4b7   : > { %8073 = vmatprep.subr.bf16.mxu1 %v8777_v4 }
 0x4b9   : > { %8050 = vmatmul.mubr.msk.bf16.vlgmr.msra.gmra.mrb[8].mxu1 %vm696_vm0, %v3215_v28 }
 0x4ba   : > { %8074 = vmatpush3.bf16.msra.mxu1 %v8777_v4  ;;  %8053 = vmatprep.mubr.msk.bf16.mxu1 %vm696_vm0, %v3216_v1  ;;  %v8071_v12 = vpop.f32.mrb[100].mxu0  ;;  %v8789_v4 = vld [vmem:[#allocation9 + $0x100] sm:$0xff]  }
 0x4bb   : > { %8075 = vmatprep.subr.bf16.mxu1 %v8778_v10  ;;  %v3386_v14 = vpop.f32.mrb[101].mxu0 }
 0x4bc   : > { %v8072_v15 = vpop.f32.mrb[102].mxu0 }
 0x4bd   : > { %v3404_v16 = vpack.c.bf16 %v8072_v15, %v8071_v12  ;;  %v3389_v17 = vpop.f32.mrb[103].mxu0 }
 0x4be   : > { %8076 = vmatpush3.bf16.msra.mxu1 %v8778_v10  ;;  %v3403_v18 = vpack.c.bf16 %v3389_v17, %v3386_v14  ;;  %v8790_v10 = vld [vmem:[#allocation9 + $0x108] sm:$0xff]  }
 0x4bf   : > { %8077 = vmatprep.subr.bf16.mxu1 %v8779_v13 }
 0x4c1   : > { %8054 = vmatmul.mubr.msk.bf16.gmra.mrb[12].mxu1 %vm696_vm0, %v3217_v38 }
 0x4c2   : > { %8078 = vmatpush3.bf16.msra.mxu1 %v8779_v13  ;;  %8081 = vmatprep.mubr.msk.bf16.mxu1 %vm696_vm0, %v3401_v9  ;;  %v8099_v11 = vpop.f32.mrb[104].mxu0  ;;  %v8791_v13 = vld [vmem:[#allocation9 + $0x110] sm:$0xff]  }
 0x4c3   : > { %8079 = vmatprep.subr.bf16.mxu1 %v8780_v19  ;;  %v3557_v21 = vpop.f32.mrb[105].mxu0 }
 0x4c4   : > { %v8100_v30 = vpop.f32.mrb[106].mxu0 }
 0x4c5   : > { %v3589_v32 = vpack.c.bf16 %v8100_v30, %v8099_v11  ;;  %v3560_v39 = vpop.f32.mrb[107].mxu0  ;;  %v8793_v11 = vld [vmem:[#allocation13] ss:$8 sps:$4 sm:$0xff]   ;;  %v8796_v30 = vld [vmem:[#allocation13 + $0x10] ss:$8 sps:$4 sm:$0xff]  }
 0x4c6   : > { %8080 = vmatpush3.bf16.msra.mxu1 %v8780_v19  ;;  %v3588_v40 = vpack.c.bf16 %v3560_v39, %v3557_v21  ;;  %v8792_v19 = vld [vmem:[#allocation9 + $0x118] sm:$0xff]   ;;  %v8799_v39 = vld [vmem:[#allocation13 + $0x20] ss:$8 sps:$4 sm:$0xff]  }
 0x4c7   : > { %8105 = vmatprep.subr.bf16.mxu1 %v8781_v20  ;;  %v8798_v21 = vld [vmem:[#allocation13 + $0x14] ss:$8 sps:$4 sm:$0xff]  }
 0x4c9   : > { %8082 = vmatmul.mubr.msk.bf16.vlgmr.msra.gmra.mrb[8].mxu1 %vm696_vm0, %v3402_v7 }
 0x4ca   : > { %8106 = vmatpush3.bf16.msra.mxu1 %v8781_v20  ;;  %8085 = vmatprep.mubr.msk.bf16.mxu1 %vm696_vm0, %v3403_v18  ;;  %v8103_v42 = vpop.f32.mrb[108].mxu0  ;;  %v8795_v20 = vld [vmem:[#allocation13 + $0x4] ss:$8 sps:$4 sm:$0xff]  }
 0x4cb   : > { %8107 = vmatprep.subr.bf16.mxu1 %v8782_v41  ;;  %v3573_v44 = vpop.f32.mrb[109].mxu0 }
 0x4cc   : > { %v8104_v45 = vpop.f32.mrb[110].mxu0 }
 0x4cd   : > { %v3591_v46 = vpack.c.bf16 %v8104_v45, %v8103_v42  ;;  %v3576_v47 = vpop.f32.mrb[111].mxu0  ;;  %v8807_v42 = vld [vmem:[#allocation13 + $0x44] ss:$8 sps:$4 sm:$0xff]   ;;  %v8808_v45 = vld [vmem:[#allocation13 + $0x50] ss:$8 sps:$4 sm:$0xff]  }
 0x4ce   : > { %8108 = vmatpush3.bf16.msra.mxu1 %v8782_v41  ;;  %v3590_v22 = vpack.c.bf16 %v3576_v47, %v3573_v44  ;;  %v8802_v41 = vld [vmem:[#allocation13 + $0x30] ss:$8 sps:$4 sm:$0xff]   ;;  %v8810_v44 = vld [vmem:[#allocation13 + $0x54] ss:$8 sps:$4 sm:$0xff]   ;;  %v8811_v47 = vld [vmem:[#allocation13 + $0x60] ss:$8 sps:$4 sm:$0xff]  }
 0x4cf   : > { %8109 = vmatprep.subr.bf16.mxu1 %v8783_v43 }
 0x4d1   : > { %8086 = vmatmul.mubr.msk.bf16.gmra.mrb[12].mxu1 %vm696_vm0, %v3404_v16 }
 0x4d2   : > { %8110 = vmatpush3.bf16.msra.mxu1 %v8783_v43  ;;  %8113 = vmatprep.mubr.msk.bf16.mxu1 %vm696_vm0, %v3588_v40  ;;  %v8131_v24 = vpop.f32.mrb[112].mxu0  ;;  %v8804_v40 = vld [vmem:[#allocation13 + $0x34] ss:$8 sps:$4 sm:$0xff]   ;;  %v8805_v43 = vld [vmem:[#allocation13 + $0x40] ss:$8 sps:$4 sm:$0xff]  }
 0x4d3   : > { %8111 = vmatprep.subr.bf16.mxu1 %v8784_v23  ;;  %v3744_v26 = vpop.f32.mrb[113].mxu0 }
 0x4d4   : > { %v8132_v27 = vpop.f32.mrb[114].mxu0 }
 0x4d5   : > { %v3776_v28 = vpack.c.bf16 %v8132_v27, %v8131_v24  ;;  %v3747_v29 = vpop.f32.mrb[115].mxu0  ;;  %v7106_v24 = vld [vmem:[#allocation12] ss:$0 sm:$0xff] }
 0x4d6   : > { %8112 = vmatpush3.bf16.msra.mxu1 %v8784_v23  ;;  %v3775_v31 = vpack.c.bf16 %v3747_v29, %v3744_v26 }
 0x4d7   : > { %8137 = vmatprep.subr.bf16.mxu1 %v8785_v25 }
 0x4d9   : > { %8114 = vmatmul.mubr.msk.bf16.vlgmr.msra.gmra.mrb[8].mxu1 %vm696_vm0, %v3589_v32  ;;  %v8801_v32 = vld [vmem:[#allocation13 + $0x24] ss:$8 sps:$4 sm:$0xff]  }
 0x4da   : > { %8138 = vmatpush3.bf16.msra.mxu1 %v8785_v25  ;;  %8117 = vmatprep.mubr.msk.bf16.mxu1 %vm696_vm0, %v3590_v22  ;;  %v8135_v34 = vpop.f32.mrb[116].mxu0  ;;  %v7105_v22 = vld [vmem:[#allocation10] ss:$0 sm:$0xff] }
 0x4db   : > { %8139 = vmatprep.subr.bf16.mxu1 %v8786_v33  ;;  %v3760_v36 = vpop.f32.mrb[117].mxu0 }
 0x4dc   : > { %v8136_v37 = vpop.f32.mrb[118].mxu0 }
 0x4dd   : > { %v3778_v38 = vpack.c.bf16 %v8136_v37, %v8135_v34  ;;  %v3763_v0 = vpop.f32.mrb[119].mxu0 }
 0x4de   : > { %8140 = vmatpush3.bf16.msra.mxu1 %v8786_v33  ;;  %v3777_v1 = vpack.c.bf16 %v3763_v0, %v3760_v36 }
 0x4df   : > { %8141 = vmatprep.subr.bf16.mxu1 %v8787_v35 }
 0x4e1   : > { %8118 = vmatmul.mubr.msk.bf16.gmra.mrb[12].mxu1 %vm696_vm0, %v3591_v46  ;;  %v8813_v46 = vld [vmem:[#allocation13 + $0x64] ss:$8 sps:$4 sm:$0xff]  }
 0x4e2   : > { %8142 = vmatpush3.bf16.msra.mxu1 %v8787_v35  ;;  %8145 = vmatprep.mubr.msk.bf16.mxu1 %vm696_vm0, %v3775_v31  ;;  %v8163_v3 = vpop.f32.mrb[120].mxu0 }
 0x4e3   : > { %8143 = vmatprep.subr.bf16.mxu1 %v8788_v2  ;;  %v3931_v5 = vpop.f32.mrb[121].mxu0 }
 0x4e4   : > { %v8164_v6 = vpop.f32.mrb[122].mxu0 }
 0x4e5   : > { %v3963_v7 = vpack.c.bf16 %v8164_v6, %v8163_v3  ;;  %v3934_v8 = vpop.f32.mrb[123].mxu0 }
 0x4e6   : > { %8144 = vmatpush3.bf16.msra.mxu1 %v8788_v2  ;;  %v3962_v9 = vpack.c.bf16 %v3934_v8, %v3931_v5 }
 0x4e7   : > { %8169 = vmatprep.subr.bf16.mxu1 %v8789_v4 }
 0x4e9   : > { %8146 = vmatmul.mubr.msk.bf16.vlgmr.msra.gmra.mrb[8].mxu1 %vm696_vm0, %v3776_v28 }
 0x4ea   : > { %8170 = vmatpush3.bf16.msra.mxu1 %v8789_v4  ;;  %8149 = vmatprep.mubr.msk.bf16.mxu1 %vm696_vm0, %v3777_v1  ;;  %v8167_v12 = vpop.f32.mrb[124].mxu0 }
 0x4eb   : > { %8171 = vmatprep.subr.bf16.mxu1 %v8790_v10  ;;  %v3947_v14 = vpop.f32.mrb[125].mxu0 }
 0x4ec   : > { %v8168_v15 = vpop.f32.mrb[126].mxu0 }
 0x4ed   : > { %v3965_v16 = vpack.c.bf16 %v8168_v15, %v8167_v12  ;;  %v3950_v17 = vpop.f32.mrb[127].mxu0 }
 0x4ee   : > { %8172 = vmatpush3.bf16.msra.mxu1 %v8790_v10  ;;  %v3964_v18 = vpack.c.bf16 %v3950_v17, %v3947_v14 }
 0x4ef   : > { %8173 = vmatprep.subr.bf16.mxu1 %v8791_v13 }
 0x4f1   : > { %8150 = vmatmul.mubr.msk.bf16.gmra.mrb[12].mxu1 %vm696_vm0, %v3778_v38 }
 0x4f2   : > { %8174 = vmatpush3.bf16.msra.mxu1 %v8791_v13  ;;  %8177 = vmatprep.mubr.msk.bf16.mxu1 %vm696_vm0, %v3962_v9 }
 0x4f3   : > { %8175 = vmatprep.subr.bf16.mxu1 %v8792_v19 }
 0x4f6   : > { %8176 = vmatpush3.bf16.msra.mxu1 %v8792_v19 }
 0x4f7   : > { %4308 = vmatprep.subr.bf16.mxu1 %v8795_v20 }
 0x4f9   : > { %8178 = vmatmul.mubr.msk.bf16.vlgmr.msra.gmra.mrb[8].mxu1 %vm696_vm0, %v3963_v7 }
 0x4fa   : > { %8181 = vmatprep.mubr.msk.bf16.mxu1 %vm696_vm0, %v3964_v18  ;;  %4309 = vmatpush1.bf16.msra.mxu1 %v8793_v11 }
 0x4fb   : > { %4310 = vmatprep.subr.bf16.mxu1 %v8798_v21 }
 0x4fe   : > { %4311 = vmatpush1.bf16.msra.mxu1 %v8796_v30 }
 0x4ff   : > { %4312 = vmatprep.subr.bf16.mxu1 %v8801_v32  ;;  %v8816_v32 = vld [vmem:[#allocation13 + $0x74] ss:$8 sps:$4 sm:$0xff]  }
 0x501   : > { %8182 = vmatmul.mubr.msk.bf16.gmra.mrb[12].mxu1 %vm696_vm0, %v3965_v16 }
 0x502   : > { %4313 = vmatpush1.bf16.msra.mxu1 %v8799_v39  ;;  %v8814_v39 = vld [vmem:[#allocation13 + $0x70] ss:$8 sps:$4 sm:$0xff]  }
 0x503   : > { %4314 = vmatprep.subr.bf16.mxu1 %v8804_v40  ;;  %v8819_v40 = vld [vmem:[#allocation13 + $0x204] ss:$8 sps:$4 sm:$0xff]  }
 0x506   : > { %4315 = vmatpush1.bf16.msra.mxu1 %v8802_v41  ;;  %v9449_v41 = vmov 0  }
 0x507   : > { %4316 = vmatprep.subr.bf16.mxu1 %v8807_v42  ;;  %4340 = vmatprep.mubr.bf16.mxu1 %v9449_v41 }
 0x50a   : > { %4317 = vmatpush1.bf16.msra.mxu1 %v8805_v43 }
 0x50b   : > { %4318 = vmatprep.subr.bf16.mxu1 %v8810_v44 }
 0x50e   : > { %4319 = vmatpush1.bf16.msra.mxu1 %v8808_v45 }
 0x50f   : > { %4320 = vmatprep.subr.bf16.mxu1 %v8813_v46 }
 0x512   : > { %4321 = vmatpush1.bf16.msra.mxu1 %v8811_v47  ;;  %v8822_v47 = vld [vmem:[#allocation13 + $0x214] ss:$8 sps:$4 sm:$0xff]  }
 0x513   : > { %4322 = vmatprep.subr.bf16.mxu1 %v8816_v32  ;;  %v9060_v32 = vld [vmem:[#allocation2 + $0x118] sm:$0xff]  }
 0x516   : > { %4323 = vmatpush1.bf16.msra.mxu1 %v8814_v39 }
 0x517   : > { %4461 = vmatprep.subr.bf16.mxu1 %v8819_v40 }
 0x5cc   : > { %v8179_v23 = vpop.f32.mrb[8].mxu1 }
 0x5cd   : > { %v4093_v25 = vmul.f32 %v8179_v23, %v7105_v22  ;;  %v4045_v26 = vpop.f32.mrb[9].mxu1 }
 0x5ce   : > { %v4091_v27 = vmul.f32 %v7105_v22, %v4045_v26  ;;  %v8180_v28 = vpop.f32.mrb[10].mxu1  ;;  %v8823_v26 = vld [vmem:[#allocation13 + $0x220] ss:$8 sps:$4 sm:$0xff]  }
 0x5cf   : > { %v4108_v29 = vadd.f32 %v7106_v24, %v4093_v25  ;;  %v4094_v31 = vmul.f32 %v8180_v28, %v7105_v22  ;;  %v4048_v33 = vpop.f32.mrb[11].mxu1 }
 0x5d0   : > { %v4106_v34 = vadd.f32 %v7106_v24, %v4091_v27  ;;  %v4092_v35 = vmul.f32 %v7105_v22, %v4048_v33  ;;  %v8826_v33 = vld [vmem:[#allocation13 + $0x230] ss:$8 sps:$4 sm:$0xff]  }
 0x5d1   : > { %v4109_v36 = vadd.f32 %v7106_v24, %v4094_v31  ;;  %v4116_v38 = vmax.f32 %v4108_v29, 0.0  ;;  %v8828_v31 = vld [vmem:[#allocation13 + $0x234] ss:$8 sps:$4 sm:$0xff]  }
 0x5d2   : > { %v4107_v37 = vadd.f32 %v7106_v24, %v4092_v35  ;;  %v4114_v1 = vmax.f32 %v4106_v34, 0.0  ;;  %v8831_v34 = vld [vmem:[#allocation13 + $0x244] ss:$8 sps:$4 sm:$0xff]   ;;  %v8829_v35 = vld [vmem:[#allocation13 + $0x240] ss:$8 sps:$4 sm:$0xff]  }
 0x5d3   : > { %v4117_v0 = vmax.f32 %v4109_v36, 0.0  ;;  %v8834_v36 = vld [vmem:[#allocation13 + $0x254] ss:$8 sps:$4 sm:$0xff]  }
 0x5d4   : > { %v4115_v2 = vmax.f32 %v4107_v37, 0.0  ;;  %v8183_v3 = vpop.f32.mrb[12].mxu1  ;;  %v8832_v37 = vld [vmem:[#allocation13 + $0x250] ss:$8 sps:$4 sm:$0xff]  }
 0x5d5   : > { %v10255_v4 = vpack.c.bf16 %v4117_v0, %v4116_v38  ;;  %v4097_v5 = vmul.f32 %v8183_v3, %v7105_v22  ;;  %v4061_v6 = vpop.f32.mrb[13].mxu1  ;;  %v8837_v38 = vld [vmem:[#allocation13 + $0x264] ss:$8 sps:$4 sm:$0xff]   ;;  %v8835_v0 = vld [vmem:[#allocation13 + $0x260] ss:$8 sps:$4 sm:$0xff]  }
 0x5d6   : > { %v10257_v7 = vpack.c.bf16 %v4115_v2, %v4114_v1  ;;  %v4095_v8 = vmul.f32 %v7105_v22, %v4061_v6  ;;  %v8184_v9 = vpop.f32.mrb[14].mxu1  ;;  %v8840_v1 = vld [vmem:[#allocation13 + $0x274] ss:$8 sps:$4 sm:$0xff]   ;;  %v8838_v2 = vld [vmem:[#allocation13 + $0x270] ss:$8 sps:$4 sm:$0xff]  }
 0x5d7   : > { %v4112_v10 = vadd.f32 %v7106_v24, %v4097_v5  ;;  %v4098_v12 = vmul.f32 %v8184_v9, %v7105_v22  ;;  %v4064_v13 = vpop.f32.mrb[15].mxu1  ;;  %v8850_v3 = vld [vmem:[#allocation13 + $0xb0] ss:$8 sps:$4 sm:$0xff]   ;;  %v8855_v5 = vld [vmem:[#allocation13 + $0xc4] ss:$8 sps:$4 sm:$0xff]  }
 0x5d8   : > { %v4110_v14 = vadd.f32 %v7106_v24, %v4095_v8  ;;  %v4096_v15 = vmul.f32 %v7105_v22, %v4064_v13  ;;  %8185 = vmatprep.subr.bf16.mxu0 %v10257_v7  ;;  %v8825_v22 = vld [vmem:[#allocation13 + $0x224] ss:$8 sps:$4 sm:$0xff]   ;;  %v8853_v6 = vld [vmem:[#allocation13 + $0xc0] ss:$8 sps:$4 sm:$0xff]  }
 0x5d9   : > { %v4113_v16 = vadd.f32 %v7106_v24, %v4098_v12  ;;  %8186 = vmatpush3.bf16.msra.mxu0 %v10257_v7  ;;  %v4120_v18 = vmax.f32 %v4112_v10, 0.0  ;;  %v9052_v8 = vld [vmem:[#allocation2 + $0xd8] sm:$0xff]   ;;  %v9053_v9 = vld [vmem:[#allocation2 + $0xe0] sm:$0xff]   ;;  %v8858_v10 = vld [vmem:[#allocation13 + $0xd4] ss:$8 sps:$4 sm:$0xff]  }
 0x5da   : > { %v4111_v17 = vadd.f32 %v7106_v24, %v4096_v15  ;;  %8187 = vmatprep.subr.bf16.mxu0 %v10255_v4  ;;  %v4118_v11 = vmax.f32 %v4110_v14, 0.0  ;;  %v8856_v12 = vld [vmem:[#allocation13 + $0xd0] ss:$8 sps:$4 sm:$0xff]   ;;  %v8861_v13 = vld [vmem:[#allocation13 + $0xe4] ss:$8 sps:$4 sm:$0xff]  }
 0x5db   : > { %v4121_v19 = vmax.f32 %v4113_v16, 0.0  ;;  %v8859_v14 = vld [vmem:[#allocation13 + $0xe0] ss:$8 sps:$4 sm:$0xff]   ;;  %v9054_v15 = vld [vmem:[#allocation2 + $0xe8] sm:$0xff]   ;;  %v9055_v16 = vld [vmem:[#allocation2 + $0xf0] sm:$0xff]  }
 0x5dc   : > { %v4119_v20 = vmax.f32 %v4111_v17, 0.0  ;;  %v8864_v17 = vld [vmem:[#allocation13 + $0xf4] ss:$8 sps:$4 sm:$0xff]  }
 0x5dd   : > { %v10262_v21 = vpack.c.bf16 %v4121_v19, %v4120_v18  ;;  %8188 = vmatpush3.bf16.msra.mxu0 %v10255_v4  ;;  %v8862_v18 = vld [vmem:[#allocation13 + $0xf0] ss:$8 sps:$4 sm:$0xff]   ;;  %v9056_v19 = vld [vmem:[#allocation2 + $0xf8] sm:$0xff]  }
 0x5de   : > { %v10265_v30 = vpack.c.bf16 %v4119_v20, %v4118_v11  ;;  %v8867_v11 = vld [vmem:[#allocation13 + $0x104] ss:$8 sps:$4 sm:$0xff]   ;;  %v9059_v20 = vld [vmem:[#allocation2 + $0x110] sm:$0xff]  }
 0x5e0   : > { %8189 = vmatprep.subr.bf16.mxu0 %v10265_v30 }
 0x5e1   : > { %8190 = vmatpush3.bf16.msra.mxu0 %v10265_v30 }
 0x5e2   : > { %8191 = vmatprep.subr.bf16.mxu0 %v10262_v21 }
 0x5e5   : > { %8192 = vmatpush3.bf16.msra.mxu0 %v10262_v21 }
 0x5e8   : > { %8194 = vmatmul.mubr.msk.bf16.vlgmr.msra.gmra.mrb[128].mxu0 %vm696_vm0, %v10065_v48 }
 0x5e9   : > { %8197 = vmatprep.mubr.msk.bf16.mxu0 %vm696_vm0, %v10070_v49  ;;  %v8817_v49 = vld [vmem:[#allocation13 + $0x200] ss:$8 sps:$4 sm:$0xff]  }
 0x5f0   : > { %8198 = vmatmul.mubr.msk.bf16.gmra.mrb[132].mxu0 %vm696_vm0, %v10077_v50  ;;  %v8820_v50 = vld [vmem:[#allocation13 + $0x210] ss:$8 sps:$4 sm:$0xff]  }
 0x5f1   : > { %4732 = vmatprep.mubr.bf16.mxu0 %v9449_v41 }
 0x6bb   : > { %v8195_v42 = vpop.f32.mrb[128].mxu0 }
 0x6bc   : > { %v4177_v43 = vpop.f32.mrb[129].mxu0 }
 0x6bd   : > { %v8196_v48 = vpop.f32.mrb[130].mxu0 }
 0x6be   : > { %v4209_v44 = vpack.c.bf16 %v8196_v48, %v8195_v42  ;;  %v4180_v45 = vpop.f32.mrb[131].mxu0 }
 0x6bf   : > { %v4208_v46 = vpack.c.bf16 %v4180_v45, %v4177_v43 }
 0x6c1   : > { %4341 = vmatmul.mubr.bf16.vlgmr.msra.gmra.mrb[16].mxu1 %v4208_v46 }
 0x6c2   : > { %4462 = vmatpush1.bf16.msra.mxu1 %v8817_v49  ;;  %4350 = vmatprep.mubr.bf16.mxu1 %v9449_v41 }
 0x6c3   : > { %4463 = vmatprep.subr.bf16.mxu1 %v8822_v47  ;;  %v8199_v23 = vpop.f32.mrb[132].mxu0 }
 0x6c4   : > { %v4193_v24 = vpop.f32.mrb[133].mxu0 }
 0x6c5   : > { %v8200_v25 = vpop.f32.mrb[134].mxu0 }
 0x6c6   : > { %4464 = vmatpush1.bf16.msra.mxu1 %v8820_v50  ;;  %v4211_v27 = vpack.c.bf16 %v8200_v25, %v8199_v23  ;;  %v4196_v28 = vpop.f32.mrb[135].mxu0 }
 0x6c7   : > { %4465 = vmatprep.subr.bf16.mxu1 %v8825_v22  ;;  %v4210_v29 = vpack.c.bf16 %v4196_v28, %v4193_v24 }
 0x6c9   : > { %4351 = vmatmul.mubr.bf16.gmra.mrb[20].mxu1 %v4209_v44 }
 0x6ca   : > { %4466 = vmatpush1.bf16.msra.mxu1 %v8823_v26  ;;  %4360 = vmatprep.mubr.bf16.mxu1 %v9449_v41 }
 0x6cb   : > { %4467 = vmatprep.subr.bf16.mxu1 %v8828_v31  ;;  %v8865_v31 = vld [vmem:[#allocation13 + $0x100] ss:$8 sps:$4 sm:$0xff]  }
 0x6ce   : > { %4468 = vmatpush1.bf16.msra.mxu1 %v8826_v33 }
 0x6cf   : > { %4469 = vmatprep.subr.bf16.mxu1 %v8831_v34  ;;  %v8870_v34 = vld [vmem:[#allocation13 + $0x114] ss:$8 sps:$4 sm:$0xff]  }
 0x6d1   : > { %4361 = vmatmul.mubr.bf16.gmra.mrb[24].mxu1 %v4210_v29 }
 0x6d2   : > { %4470 = vmatpush1.bf16.msra.mxu1 %v8829_v35  ;;  %4370 = vmatprep.mubr.bf16.mxu1 %v9449_v41  ;;  %v8868_v35 = vld [vmem:[#allocation13 + $0x110] ss:$8 sps:$4 sm:$0xff]  }
 0x6d3   : > { %4471 = vmatprep.subr.bf16.mxu1 %v8834_v36 }
 0x6d6   : > { %4472 = vmatpush1.bf16.msra.mxu1 %v8832_v37  ;;  %v8873_v37 = vld [vmem:[#allocation13 + $0x124] ss:$8 sps:$4 sm:$0xff]  }
 0x6d7   : > { %4473 = vmatprep.subr.bf16.mxu1 %v8837_v38 }
 0x6d9   : > { %4371 = vmatmul.mubr.bf16.gmra.mrb[28].mxu1 %v4211_v27 }
 0x6da   : > { %4474 = vmatpush1.bf16.msra.mxu1 %v8835_v0  ;;  %4493 = vmatprep.mubr.bf16.mxu1 %v9449_v41 }
 0x6db   : > { %4475 = vmatprep.subr.bf16.mxu1 %v8840_v1  ;;  %v8871_v1 = vld [vmem:[#allocation13 + $0x120] ss:$8 sps:$4 sm:$0xff]  }
 0x6de   : > { %4476 = vmatpush1.bf16.msra.mxu1 %v8838_v2 }
 0x6df   : > { %8201 = vmatprep.subr.bf16.mxu1 %v10257_v7 }
 0x6e1   : > { %4494 = vmatmul.mubr.bf16.vlgmr.msra.gmra.mrb[16].mxu1 %v10257_v7 }
 0x6e2   : > { %8202 = vmatpush3.bf16.msra.mxu1 %v10257_v7  ;;  %4503 = vmatprep.mubr.bf16.mxu1 %v9449_v41 }
 0x6e3   : > { %8203 = vmatprep.subr.bf16.mxu1 %v10255_v4 }
 0x6e6   : > { %8204 = vmatpush3.bf16.msra.mxu1 %v10255_v4 }
 0x6e7   : > { %8205 = vmatprep.subr.bf16.mxu1 %v10265_v30 }
 0x6e9   : > { %4504 = vmatmul.mubr.bf16.gmra.mrb[20].mxu1 %v10255_v4 }
 0x6ea   : > { %8206 = vmatpush3.bf16.msra.mxu1 %v10265_v30  ;;  %4513 = vmatprep.mubr.bf16.mxu1 %v9449_v41 }
 0x6eb   : > { %8207 = vmatprep.subr.bf16.mxu1 %v10262_v21 }
 0x6ee   : > { %8208 = vmatpush3.bf16.msra.mxu1 %v10262_v21 }
 0x6ef   : > { %8217 = vmatprep.subr.bf16.mxu1 %v10257_v7 }
 0x6f1   : > { %4514 = vmatmul.mubr.bf16.gmra.mrb[24].mxu1 %v10265_v30 }
 0x6f2   : > { %4523 = vmatprep.mubr.bf16.mxu1 %v9449_v41 }
 0x6f9   : > { %4524 = vmatmul.mubr.bf16.gmra.mrb[28].mxu1 %v10262_v21 }
 0x6fa   : > { %8209 = vmatprep.mubr.msk.bf16.mxu1 %vm696_vm0, %v10082_v51  ;;  %v9046_v51 = vld [vmem:[#allocation2 + $0xa8] sm:$0xff]  }
 0x701   : > { %8210 = vmatmul.mubr.msk.bf16.vlgmr.msra.gmra.mrb[32].mxu1 %vm696_vm0, %v10089_v52  ;;  %v9047_v52 = vld [vmem:[#allocation2 + $0xb0] sm:$0xff]  }
 0x702   : > { %8218 = vmatpush3.bf16.msra.mxu1 %v10257_v7  ;;  %8213 = vmatprep.mubr.msk.bf16.mxu1 %vm696_vm0, %v10094_v53  ;;  %v8841_v53 = vld [vmem:[#allocation13 + $0x80] ss:$8 sps:$4 sm:$0xff]  }
 0x703   : > { %8219 = vmatprep.subr.bf16.mxu1 %v10255_v4 }
 0x706   : > { %8220 = vmatpush3.bf16.msra.mxu1 %v10255_v4 }
 0x707   : > { %8221 = vmatprep.subr.bf16.mxu1 %v10265_v30 }
 0x709   : > { %8214 = vmatmul.mubr.msk.bf16.gmra.mrb[36].mxu1 %vm696_vm0, %v10101_v54  ;;  %v8843_v54 = vld [vmem:[#allocation13 + $0x84] ss:$8 sps:$4 sm:$0xff]  }
 0x70a   : > { %8222 = vmatpush3.bf16.msra.mxu1 %v10265_v30  ;;  %8225 = vmatprep.mubr.msk.bf16.mxu1 %vm696_vm0, %v10106_v55  ;;  %v9048_v55 = vld [vmem:[#allocation2 + $0xb8] sm:$0xff]  }
 0x70b   : > { %8223 = vmatprep.subr.bf16.mxu1 %v10262_v21  ;;  %4700 = vmatprep.subr.bf16.mxu0 %v8843_v54  ;;  %v8874_v54 = vld [vmem:[#allocation13 + $0x130] ss:$8 sps:$4 sm:$0xff]  }
 0x70c   : > { %4701 = vmatpush1.bf16.msra.mxu0 %v8841_v53  ;;  %v8876_v53 = vld [vmem:[#allocation13 + $0x134] ss:$8 sps:$4 sm:$0xff]  }
 0x70e   : > { %8224 = vmatpush3.bf16.msra.mxu1 %v10262_v21 }
 0x70f   : > { %8233 = vmatprep.subr.bf16.mxu1 %v10257_v7 }
 0x711   : > { %8226 = vmatmul.mubr.msk.bf16.vlgmr.msra.gmra.mrb[40].mxu1 %vm696_vm0, %v10113_v56  ;;  %v9049_v56 = vld [vmem:[#allocation2 + $0xc0] sm:$0xff]  }
 0x712   : > { %8234 = vmatpush3.bf16.msra.mxu1 %v10257_v7  ;;  %8229 = vmatprep.mubr.msk.bf16.mxu1 %vm696_vm0, %v10118_v57  ;;  %v8846_v57 = vld [vmem:[#allocation13 + $0x94] ss:$8 sps:$4 sm:$0xff]  }
 0x713   : > { %8235 = vmatprep.subr.bf16.mxu1 %v10255_v4  ;;  %4702 = vmatprep.subr.bf16.mxu0 %v8846_v57 }
 0x716   : > { %8236 = vmatpush3.bf16.msra.mxu1 %v10255_v4 }
 0x717   : > { %8237 = vmatprep.subr.bf16.mxu1 %v10265_v30 }
 0x719   : > { %8230 = vmatmul.mubr.msk.bf16.gmra.mrb[44].mxu1 %vm696_vm0, %v10125_v58  ;;  %v8844_v58 = vld [vmem:[#allocation13 + $0x90] ss:$8 sps:$4 sm:$0xff]  }
 0x71a   : > { %8238 = vmatpush3.bf16.msra.mxu1 %v10265_v30  ;;  %8241 = vmatprep.mubr.msk.bf16.mxu1 %vm696_vm0, %v10130_v59  ;;  %v8849_v59 = vld [vmem:[#allocation13 + $0xa4] ss:$8 sps:$4 sm:$0xff]  }
 0x71b   : > { %8239 = vmatprep.subr.bf16.mxu1 %v10262_v21  ;;  %4703 = vmatpush1.bf16.msra.mxu0 %v8844_v58 }
 0x71c   : > { %4704 = vmatprep.subr.bf16.mxu0 %v8849_v59  ;;  %v8877_v59 = vld [vmem:[#allocation13 + $0x140] ss:$8 sps:$4 sm:$0xff]  }
 0x71e   : > { %8240 = vmatpush3.bf16.msra.mxu1 %v10262_v21 }
 0x71f   : > { %8249 = vmatprep.subr.bf16.mxu1 %v10257_v7 }
 0x721   : > { %8242 = vmatmul.mubr.msk.bf16.vlgmr.msra.gmra.mrb[48].mxu1 %vm696_vm0, %v10137_v60  ;;  %v8847_v60 = vld [vmem:[#allocation13 + $0xa0] ss:$8 sps:$4 sm:$0xff]  }
 0x722   : > { %8250 = vmatpush3.bf16.msra.mxu1 %v10257_v7  ;;  %8245 = vmatprep.mubr.msk.bf16.mxu1 %vm696_vm0, %v10142_v61  ;;  %v9050_v61 = vld [vmem:[#allocation2 + $0xc8] sm:$0xff]  }
 0x723   : > { %8251 = vmatprep.subr.bf16.mxu1 %v10255_v4  ;;  %4705 = vmatpush1.bf16.msra.mxu0 %v8847_v60 }
 0x726   : > { %8252 = vmatpush3.bf16.msra.mxu1 %v10255_v4 }
 0x727   : > { %8253 = vmatprep.subr.bf16.mxu1 %v10265_v30 }
 0x729   : > { %8246 = vmatmul.mubr.msk.bf16.gmra.mrb[52].mxu1 %vm696_vm0, %v10149_v62  ;;  %v9051_v62 = vld [vmem:[#allocation2 + $0xd0] sm:$0xff]  }
 0x72a   : > { %8254 = vmatpush3.bf16.msra.mxu1 %v10265_v30  ;;  %8257 = vmatprep.mubr.msk.bf16.mxu1 %vm696_vm0, %v10154_v63  ;;  %v8852_v63 = vld [vmem:[#allocation13 + $0xb4] ss:$8 sps:$4 sm:$0xff]  }
 0x72b   : > { %8255 = vmatprep.subr.bf16.mxu1 %v10262_v21  ;;  %4706 = vmatprep.subr.bf16.mxu0 %v8852_v63 }
 0x72c   : > { %4707 = vmatpush1.bf16.msra.mxu0 %v8850_v3  ;;  %v8880_v3 = vld [vmem:[#allocation13 + $0x150] ss:$8 sps:$4 sm:$0xff]  }
 0x72d   : > { %4708 = vmatprep.subr.bf16.mxu0 %v8855_v5  ;;  %v8885_v5 = vld [vmem:[#allocation13 + $0x164] ss:$8 sps:$4 sm:$0xff]  }
 0x72e   : > { %8256 = vmatpush3.bf16.msra.mxu1 %v10262_v21 }
 0x72f   : > { %8265 = vmatprep.subr.bf16.mxu1 %v10257_v7 }
 0x730   : > { %4709 = vmatpush1.bf16.msra.mxu0 %v8853_v6 }
 0x731   : > { %8258 = vmatmul.mubr.msk.bf16.vlgmr.msra.gmra.mrb[56].mxu1 %vm696_vm0, %v9046_v51  ;;  %4710 = vmatprep.subr.bf16.mxu0 %v8858_v10  ;;  %v8883_v10 = vld [vmem:[#allocation13 + $0x160] ss:$8 sps:$4 sm:$0xff]  }
 0x732   : > { %8266 = vmatpush3.bf16.msra.mxu1 %v10257_v7  ;;  %8261 = vmatprep.mubr.msk.bf16.mxu1 %vm696_vm0, %v9047_v52 }
 0x733   : > { %8267 = vmatprep.subr.bf16.mxu1 %v10255_v4 }
 0x734   : > { %4711 = vmatpush1.bf16.msra.mxu0 %v8856_v12 }
 0x735   : > { %4712 = vmatprep.subr.bf16.mxu0 %v8861_v13 }
 0x736   : > { %8268 = vmatpush3.bf16.msra.mxu1 %v10255_v4 }
 0x737   : > { %8269 = vmatprep.subr.bf16.mxu1 %v10265_v30 }
 0x738   : > { %4713 = vmatpush1.bf16.msra.mxu0 %v8859_v14  ;;  %v8888_v14 = vld [vmem:[#allocation13 + $0x174] ss:$8 sps:$4 sm:$0xff]  }
 0x739   : > { %8262 = vmatmul.mubr.msk.bf16.gmra.mrb[60].mxu1 %vm696_vm0, %v9048_v55  ;;  %4714 = vmatprep.subr.bf16.mxu0 %v8864_v17  ;;  %v8879_v55 = vld [vmem:[#allocation13 + $0x144] ss:$8 sps:$4 sm:$0xff]  }
 0x73a   : > { %8270 = vmatpush3.bf16.msra.mxu1 %v10265_v30  ;;  %8273 = vmatprep.mubr.msk.bf16.mxu1 %vm696_vm0, %v9049_v56  ;;  %v8891_v17 = vld [vmem:[#allocation13 + $0x184] ss:$8 sps:$4 sm:$0xff]  }
 0x73b   : > { %8271 = vmatprep.subr.bf16.mxu1 %v10262_v21 }
 0x73c   : > { %4715 = vmatpush1.bf16.msra.mxu0 %v8862_v18 }
 0x73d   : > { %4955 = vmatprep.subr.bf16.mxu0 %v8867_v11 }
 0x73e   : > { %8272 = vmatpush3.bf16.msra.mxu1 %v10262_v21 }
 0x73f   : > { %8281 = vmatprep.subr.bf16.mxu1 %v10257_v7 }
 0x741   : > { %8274 = vmatmul.mubr.msk.bf16.vlgmr.msra.gmra.mrb[64].mxu1 %vm696_vm0, %v9050_v61 }
 0x742   : > { %8282 = vmatpush3.bf16.msra.mxu1 %v10257_v7  ;;  %8277 = vmatprep.mubr.msk.bf16.mxu1 %vm696_vm0, %v9051_v62  ;;  %v8882_v62 = vld [vmem:[#allocation13 + $0x154] ss:$8 sps:$4 sm:$0xff]  }
 0x743   : > { %8283 = vmatprep.subr.bf16.mxu1 %v10255_v4 }
 0x746   : > { %8284 = vmatpush3.bf16.msra.mxu1 %v10255_v4 }
 0x747   : > { %8285 = vmatprep.subr.bf16.mxu1 %v10265_v30 }
 0x749   : > { %8278 = vmatmul.mubr.msk.bf16.gmra.mrb[68].mxu1 %vm696_vm0, %v9052_v8 }
 0x74a   : > { %8286 = vmatpush3.bf16.msra.mxu1 %v10265_v30  ;;  %8289 = vmatprep.mubr.msk.bf16.mxu1 %vm696_vm0, %v9053_v9 }
 0x74b   : > { %8287 = vmatprep.subr.bf16.mxu1 %v10262_v21 }
 0x74e   : > { %8288 = vmatpush3.bf16.msra.mxu1 %v10262_v21 }
 0x74f   : > { %8297 = vmatprep.subr.bf16.mxu1 %v10257_v7 }
 0x751   : > { %8290 = vmatmul.mubr.msk.bf16.vlgmr.msra.gmra.mrb[72].mxu1 %vm696_vm0, %v9054_v15 }
 0x752   : > { %8298 = vmatpush3.bf16.msra.mxu1 %v10257_v7  ;;  %8293 = vmatprep.mubr.msk.bf16.mxu1 %vm696_vm0, %v9055_v16  ;;  %v9057_v7 = vld [vmem:[#allocation2 + $0x100] sm:$0xff]   ;;  %v8886_v16 = vld [vmem:[#allocation13 + $0x170] ss:$8 sps:$4 sm:$0xff]  }
 0x753   : > { %8299 = vmatprep.subr.bf16.mxu1 %v10255_v4 }
 0x756   : > { %8300 = vmatpush3.bf16.msra.mxu1 %v10255_v4  ;;  %v9058_v4 = vld [vmem:[#allocation2 + $0x108] sm:$0xff]  }
 0x757   : > { %8301 = vmatprep.subr.bf16.mxu1 %v10265_v30 }
 0x759   : > { %8294 = vmatmul.mubr.msk.bf16.gmra.mrb[76].mxu1 %vm696_vm0, %v9056_v19 }
 0x75a   : > { %8302 = vmatpush3.bf16.msra.mxu1 %v10265_v30  ;;  %8305 = vmatprep.mubr.msk.bf16.mxu1 %vm696_vm0, %v9057_v7  ;;  %v8889_v7 = vld [vmem:[#allocation13 + $0x180] ss:$8 sps:$4 sm:$0xff]  }
 0x75b   : > { %8303 = vmatprep.subr.bf16.mxu1 %v10262_v21 }
 0x75e   : > { %8304 = vmatpush3.bf16.msra.mxu1 %v10262_v21 }
 0x761   : > { %8306 = vmatmul.mubr.msk.bf16.vlgmr.msra.gmra.mrb[80].mxu1 %vm696_vm0, %v9058_v4 }
 0x762   : > { %8309 = vmatprep.mubr.msk.bf16.mxu1 %vm696_vm0, %v9059_v20 }
 0x769   : > { %8310 = vmatmul.mubr.msk.bf16.gmra.mrb[84].mxu1 %vm696_vm0, %v9060_v32  ;;  %v8894_v32 = vld [vmem:[#allocation13 + $0x194] ss:$8 sps:$4 sm:$0xff]  }
 0x7b4   : > { %v10387_v39 = vpop.f32.mrb[16].mxu1 }
 0x7b5   : > { %v10389_v30 = vpop.f32.mrb[17].mxu1 }
 0x7b6   : > { %v10391_v40 = vpop.f32.mrb[18].mxu1 }
 0x7b7   : > { %v10393_v42 = vpop.f32.mrb[19].mxu1 }
 0x7bc   : > { %v10395_v43 = vpop.f32.mrb[20].mxu1 }
 0x7bd   : > { %v10397_v21 = vpop.f32.mrb[21].mxu1 }
 0x7be   : > { %v10399_v48 = vpop.f32.mrb[22].mxu1 }
 0x7bf   : > { %v10401_v44 = vpop.f32.mrb[23].mxu1 }
 0x7c4   : > { %v10403_v45 = vpop.f32.mrb[24].mxu1 }
 0x7c5   : > { %v10405_v49 = vpop.f32.mrb[25].mxu1 }
 0x7c6   : > { %v10407_v46 = vpop.f32.mrb[26].mxu1 }
 0x7c7   : > { %v10409_v47 = vpop.f32.mrb[27].mxu1 }
 0x7cc   : > { %v10411_v50 = vpop.f32.mrb[28].mxu1 }
 0x7cd   : > { %v10413_v22 = vpop.f32.mrb[29].mxu1 }
 0x7ce   : > { %v10415_v23 = vpop.f32.mrb[30].mxu1 }
 0x7cf   : > { %v10417_v24 = vpop.f32.mrb[31].mxu1 }
 0x7d4   : > { %v8211_v25 = vpop.f32.mrb[32].mxu1 }
 0x7d5   : > { %v4568_v26 = vpop.f32.mrb[33].mxu1 }
 0x7d6   : > { %v8212_v27 = vpop.f32.mrb[34].mxu1 }
 0x7d7   : > { %v4600_v28 = vpack.c.bf16 %v8212_v27, %v8211_v25  ;;  %v4571_v29 = vpop.f32.mrb[35].mxu1  ;;  %v8897_v27 = vld [vmem:[#allocation13 + $0x1a4] ss:$8 sps:$4 sm:$0xff]  }
 0x7d8   : > { %v4599_v33 = vpack.c.bf16 %v4571_v29, %v4568_v26  ;;  %v8892_v26 = vld [vmem:[#allocation13 + $0x190] ss:$8 sps:$4 sm:$0xff]  }
 0x7da   : > { %4733 = vmatmul.mubr.bf16.vlgmr.msra.gmra.mrb[136].mxu0 %v4599_v33  ;;  %v8895_v33 = vld [vmem:[#allocation13 + $0x1a0] ss:$8 sps:$4 sm:$0xff]  }
 0x7db   : > { %4956 = vmatpush1.bf16.msra.mxu0 %v8865_v31  ;;  %4742 = vmatprep.mubr.bf16.mxu0 %v9449_v41 }
 0x7dc   : > { %4957 = vmatprep.subr.bf16.mxu0 %v8870_v34  ;;  %v8215_v36 = vpop.f32.mrb[36].mxu1 }
 0x7dd   : > { %v4584_v38 = vpop.f32.mrb[37].mxu1 }
 0x7de   : > { %v8216_v0 = vpop.f32.mrb[38].mxu1 }
 0x7df   : > { %4958 = vmatpush1.bf16.msra.mxu0 %v8868_v35  ;;  %v4602_v2 = vpack.c.bf16 %v8216_v0, %v8215_v36  ;;  %v4587_v51 = vpop.f32.mrb[39].mxu1  ;;  %v8900_v36 = vld [vmem:[#allocation13 + $0x1b4] ss:$8 sps:$4 sm:$0xff]   ;;  %v8903_v0 = vld [vmem:[#allocation13 + $0x1c4] ss:$8 sps:$4 sm:$0xff]  }
 0x7e0   : > { %4959 = vmatprep.subr.bf16.mxu0 %v8873_v37  ;;  %v4601_v52 = vpack.c.bf16 %v4587_v51, %v4584_v38  ;;  %v8898_v38 = vld [vmem:[#allocation13 + $0x1b0] ss:$8 sps:$4 sm:$0xff]  }
 0x7e2   : > { %4743 = vmatmul.mubr.bf16.gmra.mrb[140].mxu0 %v4600_v28 }
 0x7e3   : > { %4960 = vmatpush1.bf16.msra.mxu0 %v8871_v1  ;;  %4752 = vmatprep.mubr.bf16.mxu0 %v9449_v41 }
 0x7e4   : > { %4961 = vmatprep.subr.bf16.mxu0 %v8876_v53  ;;  %v8227_v56 = vpop.f32.mrb[40].mxu1 }
 0x7e5   : > { %v4823_v57 = vpop.f32.mrb[41].mxu1 }
 0x7e6   : > { %v8228_v58 = vpop.f32.mrb[42].mxu1 }
 0x7e7   : > { %4962 = vmatpush1.bf16.msra.mxu0 %v8874_v54  ;;  %v4855_v60 = vpack.c.bf16 %v8228_v58, %v8227_v56  ;;  %v4826_v61 = vpop.f32.mrb[43].mxu1  ;;  %v8909_v58 = vld [vmem:[#allocation13 + $0x1e4] ss:$8 sps:$4 sm:$0xff]  }
 0x7e8   : > { %4963 = vmatprep.subr.bf16.mxu0 %v8879_v55  ;;  %v4854_v63 = vpack.c.bf16 %v4826_v61, %v4823_v57  ;;  %v8906_v55 = vld [vmem:[#allocation13 + $0x1d4] ss:$8 sps:$4 sm:$0xff]   ;;  %v8904_v57 = vld [vmem:[#allocation13 + $0x1d0] ss:$8 sps:$4 sm:$0xff]  }
 0x7ea   : > { %4753 = vmatmul.mubr.bf16.gmra.mrb[144].mxu0 %v4601_v52  ;;  %v8901_v52 = vld [vmem:[#allocation13 + $0x1c0] ss:$8 sps:$4 sm:$0xff]  }
 0x7eb   : > { %4964 = vmatpush1.bf16.msra.mxu0 %v8877_v59  ;;  %4762 = vmatprep.mubr.bf16.mxu0 %v9449_v41 }
 0x7ec   : > { %4965 = vmatprep.subr.bf16.mxu0 %v8882_v62  ;;  %v10422_v6 = vpop.f32.mrb[44].mxu1  ;;  %v8907_v62 = vld [vmem:[#allocation13 + $0x1e0] ss:$8 sps:$4 sm:$0xff]  }
 0x7ed   : > { %v4839_v8 = vpop.f32.mrb[45].mxu1 }
 0x7ee   : > { %v10424_v9 = vpop.f32.mrb[46].mxu1 }
 0x7ef   : > { %4966 = vmatpush1.bf16.msra.mxu0 %v8880_v3  ;;  %v4857_v12 = vpack.c.bf16 %v10424_v9, %v10422_v6  ;;  %v4842_v13 = vpop.f32.mrb[47].mxu1  ;;  %v8918_v6 = vld [vmem:[#allocation13 + $0x294] ss:$8 sps:$4 sm:$0xff]  }
 0x7f0   : > { %4967 = vmatprep.subr.bf16.mxu0 %v8885_v5  ;;  %v4856_v15 = vpack.c.bf16 %v4842_v13, %v4839_v8  ;;  %v8912_v5 = vld [vmem:[#allocation13 + $0x1f4] ss:$8 sps:$4 sm:$0xff]   ;;  %v8915_v13 = vld [vmem:[#allocation13 + $0x284] ss:$8 sps:$4 sm:$0xff]  }
 0x7f2   : > { %4763 = vmatmul.mubr.bf16.gmra.mrb[148].mxu0 %v4602_v2 }
 0x7f3   : > { %4968 = vmatpush1.bf16.msra.mxu0 %v8883_v10  ;;  %4987 = vmatprep.mubr.bf16.mxu0 %v9449_v41  ;;  %v8910_v10 = vld [vmem:[#allocation13 + $0x1f0] ss:$8 sps:$4 sm:$0xff]  }
 0x7f4   : > { %4969 = vmatprep.subr.bf16.mxu0 %v8888_v14  ;;  %v10429_v18 = vpop.f32.mrb[48].mxu1 }
 0x7f5   : > { %v10431_v19 = vpop.f32.mrb[49].mxu1 }
 0x7f6   : > { %v10433_v11 = vpop.f32.mrb[50].mxu1 }
 0x7f7   : > { %4970 = vmatpush1.bf16.msra.mxu0 %v8886_v16  ;;  %v5110_v4 = vpack.c.bf16 %v10433_v11, %v10429_v18  ;;  %v10437_v20 = vpop.f32.mrb[51].mxu1  ;;  %v8930_v18 = vld [vmem:[#allocation13 + $0x2d4] ss:$8 sps:$4 sm:$0xff]  }
 0x7f8   : > { %5210 = vmatprep.subr.bf16.mxu0 %v8891_v17  ;;  %v5109_v25 = vpack.c.bf16 %v10437_v20, %v10431_v19  ;;  %v8913_v17 = vld [vmem:[#allocation13 + $0x280] ss:$8 sps:$4 sm:$0xff]   ;;  %v8924_v19 = vld [vmem:[#allocation13 + $0x2b4] ss:$8 sps:$4 sm:$0xff]  }
 0x7fa   : > { %4988 = vmatmul.mubr.bf16.vlgmr.msra.gmra.mrb[136].mxu0 %v4854_v63 }
 0x7fb   : > { %5211 = vmatpush1.bf16.msra.mxu0 %v8889_v7  ;;  %4997 = vmatprep.mubr.bf16.mxu0 %v9449_v41 }
 0x7fc   : > { %5212 = vmatprep.subr.bf16.mxu0 %v8894_v32  ;;  %v10442_v28 = vpop.f32.mrb[52].mxu1 }
 0x7fd   : > { %v10444_v29 = vpop.f32.mrb[53].mxu1 }
 0x7fe   : > { %v10446_v31 = vpop.f32.mrb[54].mxu1 }
 0x7ff   : > { %5213 = vmatpush1.bf16.msra.mxu0 %v8892_v26  ;;  %v5112_v34 = vpack.c.bf16 %v10446_v31, %v10442_v28  ;;  %v10450_v35 = vpop.f32.mrb[55].mxu1  ;;  %v8921_v26 = vld [vmem:[#allocation13 + $0x2a4] ss:$8 sps:$4 sm:$0xff]  }
 0x800   : > { %5214 = vmatprep.subr.bf16.mxu0 %v8897_v27  ;;  %v5111_v37 = vpack.c.bf16 %v10450_v35, %v10444_v29  ;;  %v8936_v29 = vld [vmem:[#allocation13 + $0x2f4] ss:$8 sps:$4 sm:$0xff]  }
 0x802   : > { %4998 = vmatmul.mubr.bf16.gmra.mrb[140].mxu0 %v4855_v60 }
 0x803   : > { %5215 = vmatpush1.bf16.msra.mxu0 %v8895_v33  ;;  %5007 = vmatprep.mubr.bf16.mxu0 %v9449_v41 }
 0x804   : > { %5216 = vmatprep.subr.bf16.mxu0 %v8900_v36  ;;  %v10455_v1 = vpop.f32.mrb[56].mxu1 }
 0x805   : > { %v10457_v2 = vpop.f32.mrb[57].mxu1 }
 0x806   : > { %v10459_v51 = vpop.f32.mrb[58].mxu1 }
 0x807   : > { %5217 = vmatpush1.bf16.msra.mxu0 %v8898_v38  ;;  %v5365_v53 = vpack.c.bf16 %v10459_v51, %v10455_v1  ;;  %v10463_v54 = vpop.f32.mrb[59].mxu1  ;;  %v8919_v38 = vld [vmem:[#allocation13 + $0x2a0] ss:$8 sps:$4 sm:$0xff]   ;;  %v8957_v1 = vld [vmem:[#allocation13 + $0x364] ss:$8 sps:$4 sm:$0xff]  }
 0x808   : > { %5218 = vmatprep.subr.bf16.mxu0 %v8903_v0  ;;  %v5364_v56 = vpack.c.bf16 %v10463_v54, %v10457_v2  ;;  %v9016_v2 = vld [vmem:[%s10807_s24 + $0x18] sm:$0xff]  }
 0x809   : > { %v8955_v51 = vld [vmem:[#allocation13 + $0x360] ss:$8 sps:$4 sm:$0xff]  }
 0x80a   : > { %5008 = vmatmul.mubr.bf16.gmra.mrb[144].mxu0 %v4856_v15 }
 0x80b   : > { %5219 = vmatpush1.bf16.msra.mxu0 %v8901_v52  ;;  %5017 = vmatprep.mubr.bf16.mxu0 %v9449_v41 }
 0x80c   : > { %5220 = vmatprep.subr.bf16.mxu0 %v8906_v55  ;;  %v10468_v59 = vpop.f32.mrb[60].mxu1  ;;  %v8927_v55 = vld [vmem:[#allocation13 + $0x2c4] ss:$8 sps:$4 sm:$0xff]  }
 0x80d   : > { %v10470_v60 = vpop.f32.mrb[61].mxu1 }
 0x80e   : > { %v10472_v61 = vpop.f32.mrb[62].mxu1 }
 0x80f   : > { %5221 = vmatpush1.bf16.msra.mxu0 %v8904_v57  ;;  %v5367_v63 = vpack.c.bf16 %v10472_v61, %v10468_v59  ;;  %v10476_v3 = vpop.f32.mrb[63].mxu1  ;;  %v8969_v59 = vld [vmem:[#allocation13 + $0x3a4] ss:$8 sps:$4 sm:$0xff]   ;;  %v8967_v61 = vld [vmem:[#allocation13 + $0x3a0] ss:$8 sps:$4 sm:$0xff]  }
 0x810   : > { %5222 = vmatprep.subr.bf16.mxu0 %v8909_v58  ;;  %v5366_v8 = vpack.c.bf16 %v10476_v3, %v10470_v60  ;;  %v8963_v60 = vld [vmem:[#allocation13 + $0x384] ss:$8 sps:$4 sm:$0xff]   ;;  %v8961_v3 = vld [vmem:[#allocation13 + $0x380] ss:$8 sps:$4 sm:$0xff]  }
 0x812   : > { %5018 = vmatmul.mubr.bf16.gmra.mrb[148].mxu0 %v4857_v12  ;;  %v8916_v12 = vld [vmem:[#allocation13 + $0x290] ss:$8 sps:$4 sm:$0xff]  }
 0x813   : > { %5223 = vmatpush1.bf16.msra.mxu0 %v8907_v62  ;;  %5242 = vmatprep.mubr.bf16.mxu0 %v9449_v41 }
 0x814   : > { %5224 = vmatprep.subr.bf16.mxu0 %v8912_v5  ;;  %v10484_v14 = vpop.f32.mrb[64].mxu1  ;;  %v8925_v5 = vld [vmem:[#allocation13 + $0x2c0] ss:$8 sps:$4 sm:$0xff]  }
 0x815   : > { %v10486_v15 = vpop.f32.mrb[65].mxu1 }
 0x816   : > { %v10488_v16 = vpop.f32.mrb[66].mxu1 }
 0x817   : > { %5225 = vmatpush1.bf16.msra.mxu0 %v8910_v10  ;;  %v5620_v7 = vpack.c.bf16 %v10488_v16, %v10484_v14  ;;  %v10492_v32 = vpop.f32.mrb[67].mxu1  ;;  %v8981_v14 = vld [vmem:[#allocation13 + $0x3e4] ss:$8 sps:$4 sm:$0xff]   ;;  %v8979_v16 = vld [vmem:[#allocation13 + $0x3e0] ss:$8 sps:$4 sm:$0xff]  }
 0x818   : > { %5465 = vmatprep.subr.bf16.mxu0 %v8915_v13  ;;  %v5619_v9 = vpack.c.bf16 %v10492_v32, %v10486_v15  ;;  %v8975_v15 = vld [vmem:[#allocation13 + $0x3c4] ss:$8 sps:$4 sm:$0xff]   ;;  %v8973_v32 = vld [vmem:[#allocation13 + $0x3c0] ss:$8 sps:$4 sm:$0xff]  }
 0x81a   : > { %5243 = vmatmul.mubr.bf16.vlgmr.msra.gmra.mrb[136].mxu0 %v5109_v25  ;;  %v8922_v25 = vld [vmem:[#allocation13 + $0x2b0] ss:$8 sps:$4 sm:$0xff]  }
 0x81b   : > { %5466 = vmatpush1.bf16.msra.mxu0 %v8913_v17  ;;  %5252 = vmatprep.mubr.bf16.mxu0 %v9449_v41  ;;  %v8933_v17 = vld [vmem:[#allocation13 + $0x2e4] ss:$8 sps:$4 sm:$0xff]  }
 0x81c   : > { %5467 = vmatprep.subr.bf16.mxu0 %v8918_v6  ;;  %v10500_v27 = vpop.f32.mrb[68].mxu1 }
 0x81d   : > { %v10502_v33 = vpop.f32.mrb[69].mxu1 }
 0x81e   : > { %v10504_v36 = vpop.f32.mrb[70].mxu1 }
 0x81f   : > { %5468 = vmatpush1.bf16.msra.mxu0 %v8916_v12  ;;  %v5622_v0 = vpack.c.bf16 %v10504_v36, %v10500_v27  ;;  %v10508_v52 = vpop.f32.mrb[71].mxu1  ;;  %v8993_v27 = vld [vmem:[#allocation13 + $0x424] ss:$8 sps:$4 sm:$0xff]   ;;  %v8991_v36 = vld [vmem:[#allocation13 + $0x420] ss:$8 sps:$4 sm:$0xff]  }
 0x820   : > { %5469 = vmatprep.subr.bf16.mxu0 %v8921_v26  ;;  %v5621_v20 = vpack.c.bf16 %v10508_v52, %v10502_v33  ;;  %v8987_v33 = vld [vmem:[#allocation13 + $0x404] ss:$8 sps:$4 sm:$0xff]   ;;  %v8985_v52 = vld [vmem:[#allocation13 + $0x400] ss:$8 sps:$4 sm:$0xff]  }
 0x822   : > { %5253 = vmatmul.mubr.bf16.gmra.mrb[140].mxu0 %v5110_v4  ;;  %v8928_v4 = vld [vmem:[#allocation13 + $0x2d0] ss:$8 sps:$4 sm:$0xff]  }
 0x823   : > { %5470 = vmatpush1.bf16.msra.mxu0 %v8919_v38  ;;  %5262 = vmatprep.mubr.bf16.mxu0 %v9449_v41  ;;  %v8931_v38 = vld [vmem:[#allocation13 + $0x2e0] ss:$8 sps:$4 sm:$0xff]  }
 0x824   : > { %5471 = vmatprep.subr.bf16.mxu0 %v8924_v19  ;;  %v10516_v57 = vpop.f32.mrb[72].mxu1  ;;  %v8945_v19 = vld [vmem:[#allocation13 + $0x324] ss:$8 sps:$4 sm:$0xff]  }
 0x825   : > { %v10518_v58 = vpop.f32.mrb[73].mxu1 }
 0x826   : > { %v10520_v62 = vpop.f32.mrb[74].mxu1 }
 0x827   : > { %5472 = vmatpush1.bf16.msra.mxu0 %v8922_v25  ;;  %v10524_v13 = vpop.f32.mrb[75].mxu1 }
 0x828   : > { %5473 = vmatprep.subr.bf16.mxu0 %v8927_v55  ;;  %v5874_v11 = vpack.c.bf16 %v10524_v13, %v10518_v58  ;;  %v9010_v55 = vld [vmem:[%s10807_s24] sm:$0xff]  }
 0x829   : > { %v8999_v58 = vld [vmem:[#allocation13 + $0x444] ss:$8 sps:$4 sm:$0xff]   ;;  %v8997_v13 = vld [vmem:[#allocation13 + $0x440] ss:$8 sps:$4 sm:$0xff]  }
 0x82a   : > { %5263 = vmatmul.mubr.bf16.gmra.mrb[144].mxu0 %v5111_v37  ;;  %v9009_v37 = vld [vmem:[%s10807_s24 + $0x40] sm:$0xff]  }
 0x82b   : > { %5474 = vmatpush1.bf16.msra.mxu0 %v8925_v5  ;;  %5272 = vmatprep.mubr.bf16.mxu0 %v9449_v41  ;;  %v9011_v5 = vld [vmem:[%s10807_s24 + $0x48] sm:$0xff]  }
 0x82c   : > { %5475 = vmatprep.subr.bf16.mxu0 %v8930_v18  ;;  %v10532_v6 = vpop.f32.mrb[76].mxu1  ;;  %v8934_v18 = vld [vmem:[#allocation13 + $0x2f0] ss:$8 sps:$4 sm:$0xff]   ;;  %7637 = vmatprep.subr.bf16.mxu1 %v9009_v37 }
 0x82d   : > { %v10534_v12 = vpop.f32.mrb[77].mxu1  ;;  %7638 = vmatpush3.bf16.msra.mxu1 %v9010_v55  ;;  %v8942_v55 = vld [vmem:[#allocation13 + $0x314] ss:$8 sps:$4 sm:$0xff]  }
 0x82e   : > { %v10536_v26 = vpop.f32.mrb[78].mxu1  ;;  %7639 = vmatprep.subr.bf16.mxu1 %v9011_v5  ;;  %v9014_v5 = vld [vmem:[%s10807_s24 + $0x10] sm:$0xff]  }
 0x82f   : > { %5476 = vmatpush1.bf16.msra.mxu0 %v8928_v4  ;;  %v10540_v25 = vpop.f32.mrb[79].mxu1  ;;  %v8939_v4 = vld [vmem:[#allocation13 + $0x304] ss:$8 sps:$4 sm:$0xff]  }
 0x830   : > { %5477 = vmatprep.subr.bf16.mxu0 %v8933_v17 }
 0x832   : > { %5273 = vmatmul.mubr.bf16.gmra.mrb[148].mxu0 %v5112_v34  ;;  %v9012_v34 = vld [vmem:[%s10807_s24 + $0x8] sm:$0xff]  }
 0x833   : > { %5478 = vmatpush1.bf16.msra.mxu0 %v8931_v38  ;;  %5497 = vmatprep.mubr.bf16.mxu0 %v9449_v41  ;;  %v9013_v38 = vld [vmem:[%s10807_s24 + $0x50] sm:$0xff]  }
 0x834   : > { %5479 = vmatprep.subr.bf16.mxu0 %v8936_v29  ;;  %v10557_v28 = vpop.f32.mrb[80].mxu1  ;;  %v8937_v29 = vld [vmem:[#allocation13 + $0x300] ss:$8 sps:$4 sm:$0xff]   ;;  %7640 = vmatpush3.bf16.msra.mxu1 %v9012_v34 }
 0x835   : > { %v10559_v31 = vpop.f32.mrb[81].mxu1  ;;  %7641 = vmatprep.subr.bf16.mxu1 %v9013_v38  ;;  %v8943_v38 = vld [vmem:[#allocation13 + $0x320] ss:$8 sps:$4 sm:$0xff]  }
 0x836   : > { %v10564_v17 = vpop.f32.mrb[82].mxu1 }
 0x837   : > { %5480 = vmatpush1.bf16.msra.mxu0 %v8934_v18  ;;  %v10571_v37 = vpop.f32.mrb[83].mxu1  ;;  %v9015_v18 = vld [vmem:[%s10807_s24 + $0x58] sm:$0xff]  }
 0x838   : > { %5720 = vmatprep.subr.bf16.mxu0 %v8939_v4  ;;  %v8940_v4 = vld [vmem:[#allocation13 + $0x310] ss:$8 sps:$4 sm:$0xff]   ;;  %7642 = vmatpush3.bf16.msra.mxu1 %v9014_v5  ;;  %v8948_v5 = vld [vmem:[#allocation13 + $0x334] ss:$8 sps:$4 sm:$0xff]  }
 0x839   : > { %7643 = vmatprep.subr.bf16.mxu1 %v9015_v18  ;;  %v8946_v18 = vld [vmem:[#allocation13 + $0x330] ss:$8 sps:$4 sm:$0xff]  }
 0x83a   : > { %5498 = vmatmul.mubr.bf16.vlgmr.msra.gmra.mrb[136].mxu0 %v5364_v56  ;;  %v9017_v56 = vld [vmem:[%s10807_s24 + $0x60] sm:$0xff]  }
 0x83b   : > { %5721 = vmatpush1.bf16.msra.mxu0 %v8937_v29  ;;  %5507 = vmatprep.mubr.bf16.mxu0 %v9449_v41  ;;  %v8949_v29 = vld [vmem:[#allocation13 + $0x340] ss:$8 sps:$4 sm:$0xff]  }
 0x83c   : > { %5722 = vmatprep.subr.bf16.mxu0 %v8942_v55  ;;  %v10585_v34 = vpop.f32.mrb[84].mxu1  ;;  %7644 = vmatpush3.bf16.msra.mxu1 %v9016_v2  ;;  %v8952_v2 = vld [vmem:[#allocation13 + $0x350] ss:$8 sps:$4 sm:$0xff]  }
 0x83d   : > { %v10587_v35 = vpop.f32.mrb[85].mxu1  ;;  %7645 = vmatprep.subr.bf16.mxu1 %v9017_v56  ;;  %v8958_v56 = vld [vmem:[#allocation13 + $0x370] ss:$8 sps:$4 sm:$0xff]  }
 0x83e   : > { %v10592_v54 = vpop.f32.mrb[86].mxu1 }
 0x83f   : > { %5723 = vmatpush1.bf16.msra.mxu0 %v8940_v4  ;;  %v10599_v55 = vpop.f32.mrb[87].mxu1  ;;  %v8951_v4 = vld [vmem:[#allocation13 + $0x344] ss:$8 sps:$4 sm:$0xff]  }
 0x840   : > { %5724 = vmatprep.subr.bf16.mxu0 %v8945_v19  ;;  %v6131_v10 = vpack.c.bf16 %v10599_v55, %v10587_v35  ;;  %v8954_v19 = vld [vmem:[#allocation13 + $0x354] ss:$8 sps:$4 sm:$0xff]   ;;  %v6319_v55 = vld [vmem:[#allocation15] sm:$0x3] }
 0x841   : > { %v9020_v35 = vld [vmem:[%s10807_s24 + $0x28] sm:$0xff]  }
 0x842   : > { %5508 = vmatmul.mubr.bf16.gmra.mrb[140].mxu0 %v5365_v53  ;;  %v8960_v53 = vld [vmem:[#allocation13 + $0x374] ss:$8 sps:$4 sm:$0xff]  }
 0x843   : > { %5725 = vmatpush1.bf16.msra.mxu0 %v8943_v38  ;;  %5517 = vmatprep.mubr.bf16.mxu0 %v9449_v41  ;;  %v8964_v38 = vld [vmem:[#allocation13 + $0x390] ss:$8 sps:$4 sm:$0xff]  }
 0x844   : > { %5726 = vmatprep.subr.bf16.mxu0 %v8948_v5  ;;  %v8976_v5 = vld [vmem:[#allocation13 + $0x3d0] ss:$8 sps:$4 sm:$0xff]  }
 0x847   : > { %5727 = vmatpush1.bf16.msra.mxu0 %v8946_v18  ;;  %v8982_v18 = vld [vmem:[#allocation13 + $0x3f0] ss:$8 sps:$4 sm:$0xff]  }
 0x848   : > { %5728 = vmatprep.subr.bf16.mxu0 %v8951_v4  ;;  %v8988_v4 = vld [vmem:[#allocation13 + $0x410] ss:$8 sps:$4 sm:$0xff]  }
 0x84a   : > { %5518 = vmatmul.mubr.bf16.gmra.mrb[144].mxu0 %v5366_v8  ;;  %v8966_v8 = vld [vmem:[#allocation13 + $0x394] ss:$8 sps:$4 sm:$0xff]  }
 0x84b   : > { %5729 = vmatpush1.bf16.msra.mxu0 %v8949_v29  ;;  %5527 = vmatprep.mubr.bf16.mxu0 %v9449_v41  ;;  %v8970_v29 = vld [vmem:[#allocation13 + $0x3b0] ss:$8 sps:$4 sm:$0xff]  }
 0x84c   : > { %5730 = vmatprep.subr.bf16.mxu0 %v8954_v19  ;;  %v10808_v19 = vpack.c.bf16 %v10520_v62, %v10516_v57  ;;  %v9005_v57 = vld [vmem:[#allocation13 + $0x464] ss:$8 sps:$4 sm:$0xff]   ;;  %v9003_v62 = vld [vmem:[#allocation13 + $0x460] ss:$8 sps:$4 sm:$0xff]  }
 0x84f   : > { %5731 = vmatpush1.bf16.msra.mxu0 %v8952_v2  ;;  %v8994_v2 = vld [vmem:[#allocation13 + $0x430] ss:$8 sps:$4 sm:$0xff]  }
 0x850   : > { %5732 = vmatprep.subr.bf16.mxu0 %v8957_v1  ;;  %v10809_v1 = vpack.c.bf16 %v10540_v25, %v10534_v12  ;;  %v10811_v12 = vpack.c.bf16 %v10571_v37, %v10559_v31  ;;  %v10812_v25 = vpack.c.bf16 %v10564_v17, %v10557_v28  ;;  %v9019_v28 = vld [vmem:[%s10807_s24 + $0x68] sm:$0xff]   ;;  %v9023_v31 = vld [vmem:[%s10807_s24 + $0x78] sm:$0xff]   ;;  %v6321_v37 = vlaneseq }
 0x851   : > { %v9024_v17 = vld [vmem:[%s10807_s24 + $0x38] sm:$0xff]  }
 0x852   : > { %5528 = vmatmul.mubr.bf16.gmra.mrb[148].mxu0 %v5367_v63  ;;  %v8972_v63 = vld [vmem:[#allocation13 + $0x3b4] ss:$8 sps:$4 sm:$0xff]  }
 0x853   : > { %5733 = vmatpush1.bf16.msra.mxu0 %v8955_v51  ;;  %5752 = vmatprep.mubr.bf16.mxu0 %v9449_v41  ;;  %v9000_v51 = vld [vmem:[#allocation13 + $0x450] ss:$8 sps:$4 sm:$0xff]  }
 0x854   : > { %5734 = vmatprep.subr.bf16.mxu0 %v8960_v53  ;;  %v9008_v53 = vld [vmem:[#allocation13 + $0x474] ss:$8 sps:$4 sm:$0xff]  }
 0x857   : > { %5735 = vmatpush1.bf16.msra.mxu0 %v8958_v56  ;;  %v10810_v56 = vpack.c.bf16 %v10536_v26, %v10532_v6  ;;  %v10813_v6 = vpack.c.bf16 %v10592_v54, %v10585_v34  ;;  %v9018_v26 = vld [vmem:[%s10807_s24 + $0x20] sm:$0xff]   ;;  %v6322_v34 = vshrl.u32 %v6321_v37, 7 }
 0x858   : > { %5975 = vmatprep.subr.bf16.mxu0 %v8963_v60  ;;  %v9006_v60 = vld [vmem:[#allocation13 + $0x470] ss:$8 sps:$4 sm:$0xff]   ;;  %7646 = vmatpush3.bf16.msra.mxu1 %v9018_v26 }
 0x859   : > { %7647 = vmatprep.subr.bf16.mxu1 %v9019_v28  ;;  %v6323_v54 = vsub.s32 0, %v6322_v34 }
 0x85a   : > { %5753 = vmatmul.mubr.bf16.vlgmr.msra.gmra.mrb[136].mxu0 %v5619_v9  ;;  %v8978_v9 = vld [vmem:[#allocation13 + $0x3d4] ss:$8 sps:$4 sm:$0xff]  }
 0x85b   : > { %5976 = vmatpush1.bf16.msra.mxu0 %v8961_v3  ;;  %5762 = vmatprep.mubr.bf16.mxu0 %v9449_v41  ;;  %v6327_v3 = vsub.s32 1, %v6322_v34 }
 0x85c   : > { %5977 = vmatprep.subr.bf16.mxu0 %v8966_v8  ;;  %7648 = vmatpush3.bf16.msra.mxu1 %v9020_v35  ;;  %v6347_v8 = vld [vmem:[#allocation16] sm:$0x3] }
 0x85f   : > { %5978 = vmatpush1.bf16.msra.mxu0 %v8964_v38  ;;  %v10683_v38 = vrot.slane %v6319_v55, %v6323_v54 }
 0x860   : > { %5979 = vmatprep.subr.bf16.mxu0 %v8969_v59 }
 0x862   : > { %5763 = vmatmul.mubr.bf16.gmra.mrb[140].mxu0 %v5620_v7  ;;  %v8984_v7 = vld [vmem:[#allocation13 + $0x3f4] ss:$8 sps:$4 sm:$0xff]  }
 0x863   : > { %5980 = vmatpush1.bf16.msra.mxu0 %v8967_v61  ;;  %5772 = vmatprep.mubr.bf16.mxu0 %v9449_v41  ;;  %v10685_v61 = vrot.slane %v6319_v55, %v6327_v3 }
 0x864   : > { %5981 = vmatprep.subr.bf16.mxu0 %v8972_v63 }
 0x867   : > { %5982 = vmatpush1.bf16.msra.mxu0 %v8970_v29  ;;  %v10688_v29 = vrot.slane %v6347_v8, %v6323_v54 }
 0x868   : > { %5983 = vmatprep.subr.bf16.mxu0 %v8975_v15 }
 0x86a   : > { %5773 = vmatmul.mubr.bf16.gmra.mrb[144].mxu0 %v5621_v20  ;;  %v8990_v20 = vld [vmem:[#allocation13 + $0x414] ss:$8 sps:$4 sm:$0xff]  }
 0x86b   : > { %5984 = vmatpush1.bf16.msra.mxu0 %v8973_v32  ;;  %5782 = vmatprep.mubr.bf16.mxu0 %v9449_v41 }
 0x86c   : > { %5985 = vmatprep.subr.bf16.mxu0 %v8978_v9  ;;  %v10691_v9 = vrot.slane %v6347_v8, %v6327_v3 }
 0x86f   : > { %5986 = vmatpush1.bf16.msra.mxu0 %v8976_v5 }
 0x870   : > { %5987 = vmatprep.subr.bf16.mxu0 %v8981_v14 }
 0x872   : > { %5783 = vmatmul.mubr.bf16.gmra.mrb[148].mxu0 %v5622_v0  ;;  %v8996_v0 = vld [vmem:[#allocation13 + $0x434] ss:$8 sps:$4 sm:$0xff]  }
 0x873   : > { %5988 = vmatpush1.bf16.msra.mxu0 %v8979_v16  ;;  %6007 = vmatprep.mubr.bf16.mxu0 %v9449_v41 }
 0x874   : > { %5989 = vmatprep.subr.bf16.mxu0 %v8984_v7 }
 0x877   : > { %5990 = vmatpush1.bf16.msra.mxu0 %v8982_v18 }
 0x878   : > { %6230 = vmatprep.subr.bf16.mxu0 %v8987_v33 }
 0x87a   : > { %6008 = vmatmul.mubr.bf16.vlgmr.msra.gmra.mrb[136].mxu0 %v5874_v11  ;;  %v9002_v11 = vld [vmem:[#allocation13 + $0x454] ss:$8 sps:$4 sm:$0xff]  }
 0x87b   : > { %6231 = vmatpush1.bf16.msra.mxu0 %v8985_v52  ;;  %6017 = vmatprep.mubr.bf16.mxu0 %v9449_v41 }
 0x87c   : > { %6232 = vmatprep.subr.bf16.mxu0 %v8990_v20 }
 0x87f   : > { %6233 = vmatpush1.bf16.msra.mxu0 %v8988_v4 }
 0x880   : > { %6234 = vmatprep.subr.bf16.mxu0 %v8993_v27 }
 0x882   : > { %6018 = vmatmul.mubr.bf16.gmra.mrb[140].mxu0 %v10808_v19 }
 0x883   : > { %6235 = vmatpush1.bf16.msra.mxu0 %v8991_v36  ;;  %6027 = vmatprep.mubr.bf16.mxu0 %v9449_v41 }
 0x884   : > { %6236 = vmatprep.subr.bf16.mxu0 %v8996_v0 }
 0x887   : > { %6237 = vmatpush1.bf16.msra.mxu0 %v8994_v2 }
 0x888   : > { %6238 = vmatprep.subr.bf16.mxu0 %v8999_v58 }
 0x88a   : > { %6028 = vmatmul.mubr.bf16.gmra.mrb[144].mxu0 %v10809_v1 }
 0x88b   : > { %6239 = vmatpush1.bf16.msra.mxu0 %v8997_v13  ;;  %6037 = vmatprep.mubr.bf16.mxu0 %v9449_v41 }
 0x88c   : > { %6240 = vmatprep.subr.bf16.mxu0 %v9002_v11 }
 0x88f   : > { %6241 = vmatpush1.bf16.msra.mxu0 %v9000_v51 }
 0x890   : > { %6242 = vmatprep.subr.bf16.mxu0 %v9005_v57 }
 0x892   : > { %6038 = vmatmul.mubr.bf16.gmra.mrb[148].mxu0 %v10810_v56 }
 0x893   : > { %6243 = vmatpush1.bf16.msra.mxu0 %v9003_v62  ;;  %6262 = vmatprep.mubr.bf16.mxu0 %v9449_v41 }
 0x894   : > { %6244 = vmatprep.subr.bf16.mxu0 %v9008_v53 }
 0x897   : > { %6245 = vmatpush1.bf16.msra.mxu0 %v9006_v60 }
 0x89a   : > { %6263 = vmatmul.mubr.bf16.vlgmr.msra.gmra.mrb[136].mxu0 %v10811_v12 }
 0x89b   : > { %6272 = vmatprep.mubr.bf16.mxu0 %v9449_v41 }
 0x8a2   : > { %6273 = vmatmul.mubr.bf16.gmra.mrb[140].mxu0 %v10812_v25 }
 0x8a3   : > { %6282 = vmatprep.mubr.bf16.mxu0 %v9449_v41 }
 0x8aa   : > { %6283 = vmatmul.mubr.bf16.gmra.mrb[144].mxu0 %v6131_v10  ;;  %v9022_v10 = vld [vmem:[%s10807_s24 + $0x30] sm:$0xff]  }
 0x8ab   : > { %6292 = vmatprep.mubr.bf16.mxu0 %v9449_v41  ;;  %v9021_v41 = vld [vmem:[%s10807_s24 + $0x70] sm:$0xff]  }
 0x8ac   : > { %7649 = vmatprep.subr.bf16.mxu1 %v9021_v41 }
 0x8ad   : > { %7650 = vmatpush3.bf16.msra.mxu1 %v9022_v10 }
 0x8ae   : > { %7651 = vmatprep.subr.bf16.mxu1 %v9023_v31 }
 0x8b1   : > { %7652 = vmatpush3.bf16.msra.mxu1 %v9024_v17 }
 0x8b2   : > { %6293 = vmatmul.mubr.bf16.gmra.mrb[148].mxu0 %v10813_v6 }
 0x96d   : > { %v6264_v59 = vpop.f32.mrb[136].mxu0 }
 0x96e   : > { %v8313_v63 = vadd.f32 %v6264_v59, %v10387_v39  ;;  %v6266_v15 = vpop.f32.mrb[137].mxu0 }
 0x96f   : > { %v8314_v32 = vadd.f32 %v6266_v15, %v10389_v30  ;;  %v6268_v5 = vpop.f32.mrb[138].mxu0 }
 0x970   : > { %v6331_v14 = vmul.f32 %v8313_v63, %v10683_v38  ;;  %v8315_v16 = vadd.f32 %v6268_v5, %v10391_v40  ;;  %v6270_v7 = vpop.f32.mrb[139].mxu0 }
 0x971   : > { %v6332_v18 = vmul.f32 %v8314_v32, %v10685_v61  ;;  %v8316_v33 = vadd.f32 %v6270_v7, %v10393_v42 }
 0x972   : > { %v6359_v52 = vadd.f32 %v10688_v29, %v6331_v14  ;;  %v6333_v39 = vmul.f32 %v8315_v16, %v10683_v38 }
 0x973   : > { %v6360_v20 = vadd.f32 %v10691_v9, %v6332_v18  ;;  %v6334_v30 = vmul.f32 %v8316_v33, %v10685_v61 }
 0x974   : > { %v6361_v4 = vadd.f32 %v10688_v29, %v6333_v39  ;;  %v6375_v0 = vmax.f32 %v6359_v52, 0.0 }
 0x975   : > { %v6362_v27 = vadd.f32 %v10691_v9, %v6334_v30  ;;  %v6274_v36 = vpop.f32.mrb[140].mxu0  ;;  %v6376_v58 = vmax.f32 %v6360_v20, 0.0 }
 0x976   : > { %v6377_v40 = vmax.f32 %v6361_v4, 0.0  ;;  %v8317_v19 = vadd.f32 %v6274_v36, %v10395_v43  ;;  %v6276_v2 = vpop.f32.mrb[141].mxu0 }
 0x977   : > { %v6378_v42 = vmax.f32 %v6362_v27, 0.0  ;;  %v8318_v13 = vadd.f32 %v6276_v2, %v10397_v21  ;;  %v6278_v11 = vpop.f32.mrb[142].mxu0 }
 0x978   : > { %v6391_v1 = vpack.c.bf16 %v6377_v40, %v6375_v0  ;;  %v6335_v51 = vmul.f32 %v8317_v19, %v10683_v38  ;;  %v8319_v57 = vadd.f32 %v6278_v11, %v10399_v48  ;;  %v6280_v62 = vpop.f32.mrb[143].mxu0 }
 0x979   : > { %v6336_v53 = vmul.f32 %v8318_v13, %v10685_v61  ;;  %v8320_v56 = vadd.f32 %v6280_v62, %v10401_v44  ;;  %v6392_v60 = vpack.c.bf16 %v6378_v42, %v6376_v58 }
 0x97a   : > { %v6363_v12 = vadd.f32 %v10688_v29, %v6335_v51  ;;  %v6337_v43 = vmul.f32 %v8319_v57, %v10683_v38 }
 0x97b   : > { %v6364_v25 = vadd.f32 %v10691_v9, %v6336_v53  ;;  %v6338_v21 = vmul.f32 %v8320_v56, %v10685_v61  ;;  %6559 = vmatprep.mubr.bf16.mxu1 %v6392_v60  ;;  %v7299_v53 = vld [vmem:[#allocation18] ss:$0 sm:$0xff]  ;;  %v7300_v60 = vld [vmem:[#allocation19] ss:$0 sm:$0xff] }
 0x97c   : > { %v6365_v6 = vadd.f32 %v10688_v29, %v6337_v43  ;;  %6560 = vmatmul.mubr.bf16.vlgmr.msra.gmra.mrb[88].mxu1 %v6391_v1  ;;  %v6379_v28 = vmax.f32 %v6363_v12, 0.0 }
 0x97d   : > { %v6366_v48 = vadd.f32 %v10691_v9, %v6338_v21  ;;  %v6284_v26 = vpop.f32.mrb[144].mxu0  ;;  %v6380_v10 = vmax.f32 %v6364_v25, 0.0 }
 0x97e   : > { %v6381_v35 = vmax.f32 %v6365_v6, 0.0  ;;  %v8321_v44 = vadd.f32 %v6284_v26, %v10403_v45  ;;  %v6286_v41 = vpop.f32.mrb[145].mxu0 }
 0x97f   : > { %v6382_v31 = vmax.f32 %v6366_v48, 0.0  ;;  %v8322_v17 = vadd.f32 %v6286_v41, %v10405_v49  ;;  %v6288_v37 = vpop.f32.mrb[146].mxu0 }
 0x980   : > { %v6339_v34 = vmul.f32 %v8321_v44, %v10683_v38  ;;  %v8323_v54 = vadd.f32 %v6288_v37, %v10407_v46  ;;  %v6290_v55 = vpop.f32.mrb[147].mxu0  ;;  %v6393_v3 = vpack.c.bf16 %v6381_v35, %v6379_v28 }
 0x981   : > { %v6340_v8 = vmul.f32 %v8322_v17, %v10685_v61  ;;  %v8324_v59 = vadd.f32 %v6290_v55, %v10409_v47  ;;  %v6394_v63 = vpack.c.bf16 %v6382_v31, %v6380_v10 }
 0x982   : > { %v6367_v15 = vadd.f32 %v10688_v29, %v6339_v34  ;;  %v6341_v45 = vmul.f32 %v8323_v54, %v10683_v38 }
 0x983   : > { %v6368_v32 = vadd.f32 %v10691_v9, %v6340_v8  ;;  %v6342_v49 = vmul.f32 %v8324_v59, %v10685_v61  ;;  %6567 = vmatprep.mubr.bf16.mxu1 %v6394_v63 }
 0x984   : > { %v6369_v5 = vadd.f32 %v10688_v29, %v6341_v45  ;;  %6568 = vmatmul.mubr.bf16.gmra.mrb[92].mxu1 %v6393_v3  ;;  %v6383_v16 = vmax.f32 %v6367_v15, 0.0 }
 0x985   : > { %v6370_v46 = vadd.f32 %v10691_v9, %v6342_v49  ;;  %v6294_v14 = vpop.f32.mrb[148].mxu0  ;;  %v6384_v33 = vmax.f32 %v6368_v32, 0.0 }
 0x986   : > { %v6385_v7 = vmax.f32 %v6369_v5, 0.0  ;;  %v8325_v47 = vadd.f32 %v6294_v14, %v10411_v50  ;;  %v6296_v18 = vpop.f32.mrb[149].mxu0 }
 0x987   : > { %v6386_v52 = vmax.f32 %v6370_v46, 0.0  ;;  %v8326_v39 = vadd.f32 %v6296_v18, %v10413_v22  ;;  %v6298_v20 = vpop.f32.mrb[150].mxu0 }
 0x988   : > { %v6343_v30 = vmul.f32 %v8325_v47, %v10683_v38  ;;  %v8327_v4 = vadd.f32 %v6298_v20, %v10415_v23  ;;  %v6300_v27 = vpop.f32.mrb[151].mxu0  ;;  %v6395_v36 = vpack.c.bf16 %v6385_v7, %v6383_v16 }
 0x989   : > { %v6344_v0 = vmul.f32 %v8326_v39, %v10685_v61  ;;  %v8328_v40 = vadd.f32 %v6300_v27, %v10417_v24  ;;  %v6396_v19 = vpack.c.bf16 %v6386_v52, %v6384_v33 }
 0x98a   : > { %v6371_v2 = vadd.f32 %v10688_v29, %v6343_v30  ;;  %v6345_v50 = vmul.f32 %v8327_v4, %v10683_v38 }
 0x98b   : > { %v6372_v58 = vadd.f32 %v10691_v9, %v6344_v0  ;;  %v6346_v22 = vmul.f32 %v8328_v40, %v10685_v61  ;;  %6575 = vmatprep.mubr.bf16.mxu1 %v6396_v19 }
 0x98c   : > { %v6373_v42 = vadd.f32 %v10688_v29, %v6345_v50  ;;  %6576 = vmatmul.mubr.bf16.gmra.mrb[96].mxu1 %v6395_v36  ;;  %v6387_v13 = vmax.f32 %v6371_v2, 0.0 }
 0x98d   : > { %v6374_v23 = vadd.f32 %v10691_v9, %v6346_v22  ;;  %v6388_v1 = vmax.f32 %v6372_v58, 0.0 }
 0x98e   : > { %v6389_v11 = vmax.f32 %v6373_v42, 0.0 }
 0x98f   : > { %v6390_v51 = vmax.f32 %v6374_v23, 0.0 }
 0x990   : > { %v6397_v24 = vpack.c.bf16 %v6389_v11, %v6387_v13 }
 0x991   : > { %v6398_v57 = vpack.c.bf16 %v6390_v51, %v6388_v1 }
 0x993   : > { %6583 = vmatprep.mubr.bf16.mxu1 %v6398_v57 }
 0x994   : > { %6584 = vmatmul.mubr.bf16.gmra.mrb[100].mxu1 %v6397_v24 }
 0xa4f   : > { %v7653_v38 = vpop.f32.mrb[88].mxu1 }
 0xa50   : > { %v7654_v62 = vpop.f32.mrb[89].mxu1 }
 0xa51   : > { %v7655_v56 = vadd.f32 %v7654_v62, %v7653_v38  ;;  %v7656_v61 = vpop.f32.mrb[90].mxu1 }
 0xa52   : > { %v7657_v12 = vpop.f32.mrb[91].mxu1 }
 0xa53   : > { %v6599_v29 = vmul.f32 %v7655_v56, %v7299_v53  ;;  %v7658_v43 = vadd.f32 %v7657_v12, %v7656_v61 }
 0xa55   : > { %v6614_v25 = vadd.f32 %v7300_v60, %v6599_v29  ;;  %v6600_v9 = vmul.f32 %v7658_v43, %v7299_v53 }
 0xa57   : > { %v6622_v21 = vmax.f32 %v6614_v25, 0.0  ;;  %v6615_v6 = vadd.f32 %v7300_v60, %v6600_v9  ;;  %v7659_v48 = vpop.f32.mrb[92].mxu1 }
 0xa58   : > { %v7660_v26 = vpop.f32.mrb[93].mxu1 }
 0xa59   : > { %v7311_v28 = vpack.c.bf16 %v6622_v21, %v6622_v21  ;;  %v6623_v35 = vmax.f32 %v6615_v6, 0.0  ;;  %v7661_v44 = vadd.f32 %v7660_v26, %v7659_v48  ;;  %v7662_v41 = vpop.f32.mrb[94].mxu1 }
 0xa5a   : > { %v7663_v10 = vpop.f32.mrb[95].mxu1 }
 0xa5b   : > { %6663 = vst.msk [vmem:[%s10744_s19] sm:$0xf] %vm6662_vm2, %v7311_v28  ;;  %v7312_v31 = vpack.c.bf16 %v6623_v35, %v6623_v35  ;;  %v6601_v17 = vmul.f32 %v7661_v44, %v7299_v53  ;;  %v7664_v37 = vadd.f32 %v7663_v10, %v7662_v41 }
 0xa5d   : > { %6664 = vst.msk [vmem:[%s10744_s19 + $0x4] sm:$0xf] %vm6662_vm2, %v7312_v31  ;;  %v6616_v34 = vadd.f32 %v7300_v60, %v6601_v17  ;;  %v6602_v54 = vmul.f32 %v7664_v37, %v7299_v53 }
 0xa5f   : > { %v6624_v55 = vmax.f32 %v6616_v34, 0.0  ;;  %v6617_v3 = vadd.f32 %v7300_v60, %v6602_v54  ;;  %v7665_v8 = vpop.f32.mrb[96].mxu1 }
 0xa60   : > { %v7666_v59 = vpop.f32.mrb[97].mxu1 }
 0xa61   : > { %v7313_v63 = vpack.c.bf16 %v6624_v55, %v6624_v55  ;;  %v6625_v15 = vmax.f32 %v6617_v3, 0.0  ;;  %v7667_v45 = vadd.f32 %v7666_v59, %v7665_v8  ;;  %v7668_v32 = vpop.f32.mrb[98].mxu1 }
 0xa62   : > { %v7669_v49 = vpop.f32.mrb[99].mxu1 }
 0xa63   : > { %6665 = vst.msk [vmem:[%s10744_s19 + $0x8] sm:$0xf] %vm6662_vm2, %v7313_v63  ;;  %v7314_v5 = vpack.c.bf16 %v6625_v15, %v6625_v15  ;;  %v6603_v46 = vmul.f32 %v7667_v45, %v7299_v53  ;;  %v7670_v14 = vadd.f32 %v7669_v49, %v7668_v32 }
 0xa65   : > { %6666 = vst.msk [vmem:[%s10744_s19 + $0xc] sm:$0xf] %vm6662_vm2, %v7314_v5  ;;  %v6618_v16 = vadd.f32 %v7300_v60, %v6603_v46  ;;  %v6604_v7 = vmul.f32 %v7670_v14, %v7299_v53 }
 0xa67   : > { %v6626_v47 = vmax.f32 %v6618_v16, 0.0  ;;  %v6619_v18 = vadd.f32 %v7300_v60, %v6604_v7  ;;  %v7671_v33 = vpop.f32.mrb[100].mxu1 }
 0xa68   : > { %v7672_v52 = vpop.f32.mrb[101].mxu1 }
 0xa69   : > { %v7315_v39 = vpack.c.bf16 %v6626_v47, %v6626_v47  ;;  %v6627_v20 = vmax.f32 %v6619_v18, 0.0  ;;  %v7673_v30 = vadd.f32 %v7672_v52, %v7671_v33  ;;  %v7674_v4 = vpop.f32.mrb[102].mxu1 }
 0xa6a   : > { %v7675_v27 = vpop.f32.mrb[103].mxu1 }
 0xa6b   : > { %6667 = vst.msk [vmem:[%s10744_s19 + $0x10] sm:$0xf] %vm6662_vm2, %v7315_v39  ;;  %v7316_v36 = vpack.c.bf16 %v6627_v20, %v6627_v20  ;;  %v6605_v0 = vmul.f32 %v7673_v30, %v7299_v53  ;;  %v7676_v40 = vadd.f32 %v7675_v27, %v7674_v4 }
 0xa6d   : > { %6668 = vst.msk [vmem:[%s10744_s19 + $0x14] sm:$0xf] %vm6662_vm2, %v7316_v36  ;;  %v6620_v19 = vadd.f32 %v7300_v60, %v6605_v0  ;;  %v6606_v2 = vmul.f32 %v7676_v40, %v7299_v53 }
 0xa6f   : > { %v6628_v50 = vmax.f32 %v6620_v19, 0.0  ;;  %v6621_v58 = vadd.f32 %v7300_v60, %v6606_v2 }
 0xa71   : > { %v7317_v22 = vpack.c.bf16 %v6628_v50, %v6628_v50  ;;  %v6629_v42 = vmax.f32 %v6621_v58, 0.0 }
 0xa73   : > { %6669 = vst.msk [vmem:[%s10744_s19 + $0x18] sm:$0xf] %vm6662_vm2, %v7317_v22  ;;  %v7318_v23 = vpack.c.bf16 %v6629_v42, %v6629_v42 }
 0xa75   : > { %6670 = vst.msk [vmem:[%s10744_s19 + $0x1c] sm:$0xf] %vm6662_vm2, %v7318_v23 }
 0xa76 PF: > { %s10815_s21 = sld [smem:[#allocation28_spill]] }
 0xa7c   : > { %s31_s29 = sadd.s32 1, %s10815_s21  }
 0xa7d   : > { %p28_p7 = scmp.ge.s32.totalorder %s31_s29, 4  }
 0xa7f   :  { %30 = sbr.rel (!%p28_p7) target bundleno = 12 (0xc), region = 186 }
 0xa86   :  { %6693 = vsyncpa [#allocation3], 1 }
 0xa87   :  { %6695 = vsyncpa [#allocation3 + $0x1], 1 }
 0xa88   :  { %6696 = vsyncpa [#allocation5], 1 }
 0xa89   :  { %6697 = vsyncpa [#allocation8], 1 }
 0xa8a   :  { %6698 = vsyncpa [#allocation11], 1 }
 0xa8b   :  { %6699 = vsyncpa [#allocation14], 1 }
 0xa8c   :  { %6700 = vsyncpa [#allocation17], 1 }
 0xa8d   :  { %6701 = vsyncpa [#allocation20], 1 }

// kernel: chess_policy_forward.3
= control target key start
LH: loop header
LB: loop body
LE: loop exit
PB: predicated region body
PF: predicated region fallthrough
CT: control target
= control target key end

     0   :  { %8 = vsyncpa [#allocation3], 0  ;;  %s11366_s0 = inlined_call_operand.vmem [shape: bf16[8,2048], index: 0, kind: input, shape index: {}]   ;;  %s11367_s1 = inlined_call_operand.hbm [shape: bf16[2048,4096], index: 1, kind: input, shape index: {}]   ;;  %s11368_s2 = inlined_call_operand.hbm [shape: f32[1,4096], index: 2, kind: input, shape index: {}]   ;;  %s11369_s3 = inlined_call_operand.vmem [shape: f32[4,8,1024], index: 3, kind: output, shape index: {}]  }
   0x1   :  { %10 = vsyncpa [#allocation3 + $0x1], 0 }
   0x2   :  { %11 = vsyncpa [#allocation5], 0 }
   0x3   :  { %13 = vsyncpa [#allocation5 + $0x1], 0  ;;  %s9564_s12 = smov 0   ;;  %s9566_s13 = smov 0  }
   0x4   :  { %s9568_s14 = smov 0   ;;  %s9570_s15 = smov 0  }
   0x5 LB: > { %s9583_s16 = sadd.s32 4294967295, %s9537_s15   ;;  %s9586_s17 = sadd.s32 1, %s9537_s15   ;;  %s9537_s15 = sphi %s9570_s15, %s11379_s15   ;;  %s9533_s14 = sphi %s9568_s14, %s11378_s14   ;;  %s9529_s13 = sphi %s9566_s13, %s11377_s13   ;;  %s9525_s12 = sphi %s9564_s12, %s11376_s12  }
   0x6   : > { %s44_s18 = ssub.s32 %s9537_s15, %s9586_s17  ;;  %s47_s19 = sadd.s32 1, %s9533_s14 }
   0x7   : > { %p45_p0 = scmp.eq.s32.totalorder %s44_s18, 0  ;;  %p54_p1 = scmp.ne.s32.totalorder %s9533_s14, %s9529_s13 }
   0x8   : > { %p55_p2 = scmp.eq.s32.totalorder %s9537_s15, 0  ;;  %p60_p3 = scmp.ne.s32.totalorder %s9529_s13, %s9525_s12 }
   0x9   : > { %s9596_s20 = scalar_select %p45_p0, %s9533_s14, %s47_s19  }
   0xa   : > { %p56_p4 = por %p55_p2, %p54_p1  ;;  %p61_p5 = scmp.eq.s32.totalorder %s9583_s16, 0 }
   0xb   : > { %p9320_p6 = scmp.lt.s32.totalorder %s9537_s15, 4  ;;  %s9605_s22 = sand.u32 1, %s9533_s14  }
   0xc   : > { %p9600_p7 = por %p61_p5, %p60_p3  ;;  %s8132_s23 = sshll.u32 %s9605_s22, 13 }
   0xd   : > { %s9186_s24 = sshll.u32 %s9537_s15, 9  ;;  %s138_s28 = scalar_lea.vmem [#allocation2], %s8132_s23 }
   0xe   : > { %s11371_s21 = scalar_select %p9600_p7, 1, 0 }
   0xf   : > { %s9612_s27 = scalar_lea.hbm %s11367_s1, %s9186_s24  ;;  %s145_s29 = sshll.u32 %s138_s28, 4  ;;  %s9614_s29 = int_to_ptr.vmem [resolvable:$true] %s145_s29 }
  0x10   : > { %p9616_p8 = pnand %p9320_p6, %p56_p4  ;;  %s135_s4 = scalar_lea.sflag [#allocation3], %s9605_s22 }
  0x11   : > { %s9439_s5 = scalar_lea.hbm %s9612_s27, 131072  ;;  %s9444_s8 = scalar_lea.hbm %s11367_s1, 524288 }
  0x12   : > { %p9440_p9 = scmp.ne.s32.totalorder %s9612_s27, %s9439_s5  ;;  %p9441_p10 = pneg %p9616_p8 }
  0x13   : > { %p9445_p13 = scmp.lt.u32.totalorder %s9612_s27, %s11367_s1  ;;  %p9446_p0 = scmp.lt.u32.totalorder %s9444_s8, %s9439_s5 }
  0x14   : > { %p9442_p11 = pnand %p9441_p10, %p9440_p9  ;;  %p9448_p2 = scmp.lt.u32.totalorder %s9439_s5, %s9612_s27 }
  0x15   : > { %p9447_p1 = por %p9446_p0, %p9445_p13 }
  0x16   : > { %p9443_p12 = pneg %p9442_p11 }
  0x17   : > { %p9449_p3 = por %p9448_p2, %p9447_p1 }
  0x19   : > { %p9450_p4 = pnand %p9449_p3, %p9443_p12 }
  0x1b   : > { %9453 = shalt.err (!%p9450_p4)
}
  0x1c   : > { %s9454_s11 = scalar_lea.vmem %s9614_s29, 131072  ;;  %s9539_s12 = smov [#allocation2]  }
  0x1d   : > { %p9455_p5 = scmp.ne.s32.totalorder %s9614_s29, %s9454_s11  ;;  %s9459_s18 = sshll.u32 %s9539_s12, 4  ;;  %s9460_s18 = int_to_ptr.vmem [resolvable:$false] %s9459_s18 }
  0x1e   : > { %s9461_s19 = scalar_lea.vmem %s9460_s18, 262144  ;;  %p9462_p11 = scmp.lt.s32.totalorder %s9614_s29, %s9460_s18 }
  0x1f   : > { %p9457_p6 = pnand %p9455_p5, %p9441_p10  ;;  %p9463_p13 = scmp.lt.s32.totalorder %s9461_s19, %s9454_s11 }
  0x21   : > { %p9458_p9 = pneg %p9457_p6  ;;  %p9464_p0 = por %p9463_p13, %p9462_p11 }
  0x23   : > { %p9465_p1 = pnand %p9464_p0, %p9458_p9 }
  0x25   : > { %9468 = shalt.err (!%p9465_p1)
}
  0x26   : > { %s9540_s23 = smov 2048   ;;  %s9541_s24 = smov 512  }
  0x27   : > { %s9542_s25 = smov 32   ;;  %p8138_p12 = scmp.ge.s32.totalorder %s9537_s15, 1 }
  0x28   : > { %9316 = dma.hbm_to_vmem [thread:$0]  (!%p9616_p8), %s9612_s27, 131072, %s9614_s29, %s135_s4, %s9540_s23, %s9541_s24, %s9542_s25  }
  0x29   : > { %p172_p2 = scmp.lt.s32.totalorder %s9537_s15, 5  ;;  %s8135_s26 = sshll.u32 %s9605_s22, 3 }
  0x2a   : > { %s9187_s5 = sshll.u32 %s9537_s15, 7  ;;  %s159_s6 = scalar_lea.vmem [#allocation4], %s8135_s26 }
  0x2b   : > { %p9651_p3 = pnand %p8138_p12, %p172_p2  ;;  %s167_s7 = sshll.u32 %s159_s6, 4  ;;  %s168_s7 = int_to_ptr.vmem [resolvable:$true] %s167_s7 }
  0x2c   : > { %s9659_s10 = scalar_lea.hbm %s11368_s2, %s9187_s5  ;;  %s156_s27 = scalar_lea.sflag [#allocation5], %s9605_s22 }
  0x2d   : > { %s11373_s28 = scalar_select %p9651_p3, 1, 0 }
  0x2e   : > { %s9469_s29 = scalar_lea.hbm %s9659_s10, 128  ;;  %s9474_s11 = scalar_lea.hbm %s11368_s2, 512 }
  0x2f   : > { %p9470_p4 = scmp.ne.s32.totalorder %s9659_s10, %s9469_s29  ;;  %p9475_p9 = scmp.lt.u32.totalorder %s9659_s10, %s11368_s2 }
  0x30   : > { %p9476_p11 = scmp.lt.u32.totalorder %s9474_s11, %s9469_s29  ;;  %p9478_p0 = scmp.lt.u32.totalorder %s9469_s29, %s9659_s10 }
  0x31   : > { %p9472_p5 = pnand %p9470_p4, %p9441_p10 }
  0x32   : > { %p9477_p13 = por %p9476_p11, %p9475_p9 }
  0x33   : > { %p9473_p6 = pneg %p9472_p5 }
  0x34   : > { %p9479_p1 = por %p9478_p0, %p9477_p13 }
  0x36   : > { %p9480_p12 = pnand %p9479_p1, %p9473_p6 }
  0x38   : > { %9483 = shalt.err (!%p9480_p12)
}
  0x39   : > { %s9484_s22 = scalar_lea.vmem %s168_s7, 128  ;;  %s9543_s19 = smov [#allocation4]  }
  0x3a   : > { %p9485_p2 = scmp.ne.s32.totalorder %s168_s7, %s9484_s22  ;;  %s9489_s23 = sshll.u32 %s9543_s19, 4  ;;  %s9490_s23 = int_to_ptr.vmem [resolvable:$false] %s9489_s23 }
  0x3b   : > { %s9491_s24 = scalar_lea.vmem %s9490_s23, 256  ;;  %p9492_p7 = scmp.lt.s32.totalorder %s168_s7, %s9490_s23 }
  0x3c   : > { %p9487_p4 = pnand %p9485_p2, %p9441_p10  ;;  %p9493_p3 = scmp.lt.s32.totalorder %s9491_s24, %s9484_s22 }
  0x3e   : > { %p9488_p5 = pneg %p9487_p4  ;;  %p9494_p9 = por %p9493_p3, %p9492_p7 }
  0x40   : > { %p9495_p11 = pnand %p9494_p9, %p9488_p5 }
  0x42   : > { %9498 = shalt.err (!%p9495_p11)
}
  0x43   : > { %9319 = dma.hbm_to_vmem [thread:$0]  (!%p9616_p8), %s9659_s10, 128, %s168_s7, %s156_s27  }
  0x44   : > { %p11374_p6 = scmp.ne.s32.totalorder %s11373_s28, 0 }
  0x45   : > { %s178_s25 = sand.u32 (!%p11374_p6), 1, %s9529_s13   ;;  %p11375_p10 = scmp.ne.s32.totalorder (!%p11374_p6), %s11371_s21, 0 }
  0x46   : > { %176 = sbr.rel (%p11374_p6) target bundleno = 1723 (0x6bb), region = 32  ;;  %s8139_s26 = sshll.u32 (!%p11374_p6), %s178_s25, 13 }
  0x47   : > { %s179_s5 = scalar_lea.sflag (!%p11374_p6), [#allocation3], %s178_s25  ;;  %s9684_s6 = scalar_lea.vmem (!%p11374_p6), [#allocation2], %s8139_s26 }
  0x4d   : > { %9516 = dma.done.wait (%p11375_p10), %s179_s5, 131072  }
  0x4e   : > { %9518 = vsyncadd (%p11375_p10), %s179_s5, 4294836224  ;;  %s8140_s8 = sshll.u32 %s178_s25, 3  ;;  %s188_s30 = scalar_lea.sflag [#allocation5], %s178_s25 }
  0x4f   : > { %s9690_s9 = scalar_lea.vmem [#allocation4], %s8140_s8 }
  0x50   : > { %9520 = dma.done.wait (%p11375_p10), %s188_s30, 128  }
  0x51   : > { %9522 = vsyncadd (%p11375_p10), %s188_s30, 4294967168  ;;  %v224_v0 = vld [vmem:[%s9684_s6] sm:$0xff]  ;;  %v225_v2 = vld [vmem:[%s9684_s6 + $0x8] sm:$0xff]  ;;  %s9188_s26 = sshll.u32 %s9583_s16, 6  ;;  %p9183_p7 = scmp.ne.s32.totalorder %s9583_s16, 3 }
  0x52   : > { %v228_v1 = vld [vmem:[%s9684_s6 + $0x20] sm:$0xff]  ;;  %v229_v4 = vld [vmem:[%s9684_s6 + $0x28] sm:$0xff]  ;;  %s10589_s30 = scalar_lea.vmem %s11369_s3, %s9188_s26 }
  0x53   : > { %v8158_v3 = vcombine.high %v224_v0, %v228_v1  ;;  %v8157_v5 = vcombine.low %v224_v0, %v228_v1  ;;  %v232_v6 = vld [vmem:[%s9684_s6 + $0x40] sm:$0xff]  ;;  %v8160_v8 = vcombine.high %v225_v2, %v229_v4  ;;  %v8159_v9 = vcombine.low %v225_v2, %v229_v4  ;;  %v233_v11 = vld [vmem:[%s9684_s6 + $0x48] sm:$0xff] }
  0x54   : > { %v236_v7 = vld [vmem:[%s9684_s6 + $0x60] sm:$0xff]  ;;  %v237_v12 = vld [vmem:[%s9684_s6 + $0x68] sm:$0xff] }
  0x55   : > { %v8166_v10 = vcombine.high %v232_v6, %v236_v7  ;;  %v240_v13 = vld [vmem:[%s9684_s6 + $0x80] sm:$0xff]  ;;  %6466 = vmatprep.subr.bf16.mxu0 %v8158_v3  ;;  %v8168_v14 = vcombine.high %v233_v11, %v237_v12  ;;  %v241_v16 = vld [vmem:[%s9684_s6 + $0x88] sm:$0xff]  ;;  %6794 = vmatprep.subr.bf16.mxu1 %v8160_v8  ;;  %v8165_v18 = vcombine.low %v232_v6, %v236_v7 }
  0x56   : > { %v244_v15 = vld [vmem:[%s9684_s6 + $0xa0] sm:$0xff]  ;;  %v245_v17 = vld [vmem:[%s9684_s6 + $0xa8] sm:$0xff]  ;;  %6467 = vmatpush1.bf16.msra.mxu0 %v8157_v5  ;;  %6795 = vmatpush1.bf16.msra.mxu1 %v8159_v9  ;;  %v8167_v19 = vcombine.low %v233_v11, %v237_v12 }
  0x57   : > { %6468 = vmatprep.subr.bf16.mxu0 %v8166_v10  ;;  %v8174_v20 = vcombine.high %v240_v13, %v244_v15  ;;  %6796 = vmatprep.subr.bf16.mxu1 %v8168_v14  ;;  %v8176_v21 = vcombine.high %v241_v16, %v245_v17  ;;  %v248_v22 = vld [vmem:[%s9684_s6 + $0xc0] sm:$0xff]  ;;  %v249_v24 = vld [vmem:[%s9684_s6 + $0xc8] sm:$0xff]  ;;  %v8173_v26 = vcombine.low %v240_v13, %v244_v15 }
  0x58   : > { %v252_v23 = vld [vmem:[%s9684_s6 + $0xe0] sm:$0xff]  ;;  %v253_v25 = vld [vmem:[%s9684_s6 + $0xe8] sm:$0xff]  ;;  %v8175_v27 = vcombine.low %v241_v16, %v245_v17 }
  0x59   : > { %v8182_v28 = vcombine.high %v248_v22, %v252_v23  ;;  %v8184_v29 = vcombine.high %v249_v24, %v253_v25  ;;  %v256_v30 = vld [vmem:[%s9684_s6 + $0x100] sm:$0xff]  ;;  %v257_v32 = vld [vmem:[%s9684_s6 + $0x108] sm:$0xff]  ;;  %v8181_v34 = vcombine.low %v248_v22, %v252_v23  ;;  %v8183_v35 = vcombine.low %v249_v24, %v253_v25 }
  0x5a   : > { %6469 = vmatpush1.bf16.msra.mxu0 %v8165_v18  ;;  %6797 = vmatpush1.bf16.msra.mxu1 %v8167_v19  ;;  %v260_v31 = vld [vmem:[%s9684_s6 + $0x120] sm:$0xff]  ;;  %v261_v33 = vld [vmem:[%s9684_s6 + $0x128] sm:$0xff] }
  0x5b   : > { %6470 = vmatprep.subr.bf16.mxu0 %v8174_v20  ;;  %6798 = vmatprep.subr.bf16.mxu1 %v8176_v21  ;;  %v8190_v36 = vcombine.high %v256_v30, %v260_v31  ;;  %v8192_v37 = vcombine.high %v257_v32, %v261_v33  ;;  %v264_v38 = vld [vmem:[%s9684_s6 + $0x140] sm:$0xff]  ;;  %v265_v40 = vld [vmem:[%s9684_s6 + $0x148] sm:$0xff]  ;;  %v8189_v42 = vcombine.low %v256_v30, %v260_v31 }
  0x5c   : > { %v268_v39 = vld [vmem:[%s9684_s6 + $0x160] sm:$0xff]  ;;  %v269_v41 = vld [vmem:[%s9684_s6 + $0x168] sm:$0xff]  ;;  %v8191_v43 = vcombine.low %v257_v32, %v261_v33 }
  0x5d   : > { %v8198_v44 = vcombine.high %v264_v38, %v268_v39  ;;  %v8200_v45 = vcombine.high %v265_v40, %v269_v41  ;;  %v272_v46 = vld [vmem:[%s9684_s6 + $0x180] sm:$0xff]  ;;  %v273_v48 = vld [vmem:[%s9684_s6 + $0x188] sm:$0xff]  ;;  %v8197_v50 = vcombine.low %v264_v38, %v268_v39  ;;  %v8199_v51 = vcombine.low %v265_v40, %v269_v41 }
  0x5e   : > { %6471 = vmatpush1.bf16.msra.mxu0 %v8173_v26  ;;  %6799 = vmatpush1.bf16.msra.mxu1 %v8175_v27  ;;  %v276_v47 = vld [vmem:[%s9684_s6 + $0x1a0] sm:$0xff]  ;;  %v277_v49 = vld [vmem:[%s9684_s6 + $0x1a8] sm:$0xff] }
  0x5f   : > { %6472 = vmatprep.subr.bf16.mxu0 %v8182_v28  ;;  %6800 = vmatprep.subr.bf16.mxu1 %v8184_v29  ;;  %v8206_v52 = vcombine.high %v272_v46, %v276_v47  ;;  %v9727_v53 = vld [vmem:[%s11366_s0] sm:$0xff]  ;;  %v8208_v54 = vcombine.high %v273_v48, %v277_v49  ;;  %v281_v58 = vld [vmem:[%s9684_s6 + $0x1c8] sm:$0xff]  ;;  %v8205_v60 = vcombine.low %v272_v46, %v276_v47 }
  0x60   : > { %v280_v55 = vld [vmem:[%s9684_s6 + $0x1c0] sm:$0xff]  ;;  %v9733_v57 = vcombine.high %v9727_v53, %v9727_v53  ;;  %v285_v59 = vld [vmem:[%s9684_s6 + $0x1e8] sm:$0xff]  ;;  %v8207_v61 = vcombine.low %v273_v48, %v277_v49 }
  0x61   : > { %v284_v56 = vld [vmem:[%s9684_s6 + $0x1e0] sm:$0xff]  ;;  %v8216_v63 = vcombine.high %v281_v58, %v285_v59  ;;  %v289_v2 = vld [vmem:[%s9684_s6 + $0x208] sm:$0xff]  ;;  %v8215_v5 = vcombine.low %v281_v58, %v285_v59 }
  0x62   : > { %6473 = vmatpush1.bf16.msra.mxu0 %v8181_v34  ;;  %6801 = vmatpush1.bf16.msra.mxu1 %v8183_v35  ;;  %v8214_v62 = vcombine.high %v280_v55, %v284_v56  ;;  %v288_v0 = vld [vmem:[%s9684_s6 + $0x200] sm:$0xff]  ;;  %v293_v3 = vld [vmem:[%s9684_s6 + $0x228] sm:$0xff]  ;;  %v8213_v4 = vcombine.low %v280_v55, %v284_v56 }
  0x63   : > { %6474 = vmatprep.subr.bf16.mxu0 %v8190_v36  ;;  %6802 = vmatprep.subr.bf16.mxu1 %v8192_v37  ;;  %v292_v1 = vld [vmem:[%s9684_s6 + $0x220] sm:$0xff]  ;;  %v8224_v7 = vcombine.high %v289_v2, %v293_v3  ;;  %v297_v10 = vld [vmem:[%s9684_s6 + $0x248] sm:$0xff]  ;;  %v8223_v13 = vcombine.low %v289_v2, %v293_v3 }
  0x64   : > { %6498 = vmatprep.mubr.bf16.mxu0 %v9733_v57  ;;  %6826 = vmatprep.mubr.bf16.mxu1 %v9733_v57  ;;  %v8222_v6 = vcombine.high %v288_v0, %v292_v1  ;;  %v296_v8 = vld [vmem:[%s9684_s6 + $0x240] sm:$0xff]  ;;  %v301_v11 = vld [vmem:[%s9684_s6 + $0x268] sm:$0xff]  ;;  %v8221_v12 = vcombine.low %v288_v0, %v292_v1 }
  0x65   : > { %v300_v9 = vld [vmem:[%s9684_s6 + $0x260] sm:$0xff]  ;;  %v8232_v15 = vcombine.high %v297_v10, %v301_v11  ;;  %v305_v18 = vld [vmem:[%s9684_s6 + $0x288] sm:$0xff]  ;;  %v8231_v21 = vcombine.low %v297_v10, %v301_v11 }
  0x66   : > { %6475 = vmatpush1.bf16.msra.mxu0 %v8189_v42  ;;  %6803 = vmatpush1.bf16.msra.mxu1 %v8191_v43  ;;  %v8230_v14 = vcombine.high %v296_v8, %v300_v9  ;;  %v304_v16 = vld [vmem:[%s9684_s6 + $0x280] sm:$0xff]  ;;  %v309_v19 = vld [vmem:[%s9684_s6 + $0x2a8] sm:$0xff]  ;;  %v8229_v20 = vcombine.low %v296_v8, %v300_v9 }
  0x67   : > { %6476 = vmatprep.subr.bf16.mxu0 %v8198_v44  ;;  %6804 = vmatprep.subr.bf16.mxu1 %v8200_v45  ;;  %v308_v17 = vld [vmem:[%s9684_s6 + $0x2a0] sm:$0xff]  ;;  %v8240_v23 = vcombine.high %v305_v18, %v309_v19  ;;  %v313_v26 = vld [vmem:[%s9684_s6 + $0x2c8] sm:$0xff]  ;;  %v8239_v29 = vcombine.low %v305_v18, %v309_v19 }
  0x68   : > { %v8238_v22 = vcombine.high %v304_v16, %v308_v17  ;;  %v312_v24 = vld [vmem:[%s9684_s6 + $0x2c0] sm:$0xff]  ;;  %v317_v27 = vld [vmem:[%s9684_s6 + $0x2e8] sm:$0xff]  ;;  %v8237_v28 = vcombine.low %v304_v16, %v308_v17 }
  0x69   : > { %v316_v25 = vld [vmem:[%s9684_s6 + $0x2e0] sm:$0xff]  ;;  %v8248_v31 = vcombine.high %v313_v26, %v317_v27  ;;  %v321_v34 = vld [vmem:[%s9684_s6 + $0x308] sm:$0xff]  ;;  %v8247_v37 = vcombine.low %v313_v26, %v317_v27 }
  0x6a   : > { %6477 = vmatpush1.bf16.msra.mxu0 %v8197_v50  ;;  %6805 = vmatpush1.bf16.msra.mxu1 %v8199_v51  ;;  %v8246_v30 = vcombine.high %v312_v24, %v316_v25  ;;  %v320_v32 = vld [vmem:[%s9684_s6 + $0x300] sm:$0xff]  ;;  %v325_v35 = vld [vmem:[%s9684_s6 + $0x328] sm:$0xff]  ;;  %v8245_v36 = vcombine.low %v312_v24, %v316_v25 }
  0x6b   : > { %6478 = vmatprep.subr.bf16.mxu0 %v8206_v52  ;;  %6806 = vmatprep.subr.bf16.mxu1 %v8208_v54  ;;  %v324_v33 = vld [vmem:[%s9684_s6 + $0x320] sm:$0xff]  ;;  %v8256_v39 = vcombine.high %v321_v34, %v325_v35  ;;  %v329_v42 = vld [vmem:[%s9684_s6 + $0x348] sm:$0xff]  ;;  %v8255_v45 = vcombine.low %v321_v34, %v325_v35 }
  0x6c   : > { %v8254_v38 = vcombine.high %v320_v32, %v324_v33  ;;  %v328_v40 = vld [vmem:[%s9684_s6 + $0x340] sm:$0xff]  ;;  %v333_v43 = vld [vmem:[%s9684_s6 + $0x368] sm:$0xff]  ;;  %v8253_v44 = vcombine.low %v320_v32, %v324_v33 }
  0x6d   : > { %v332_v41 = vld [vmem:[%s9684_s6 + $0x360] sm:$0xff]  ;;  %v8264_v47 = vcombine.high %v329_v42, %v333_v43  ;;  %v337_v50 = vld [vmem:[%s9684_s6 + $0x388] sm:$0xff]  ;;  %v8263_v54 = vcombine.low %v329_v42, %v333_v43 }
  0x6e   : > { %6479 = vmatpush1.bf16.msra.mxu0 %v8205_v60  ;;  %6807 = vmatpush1.bf16.msra.mxu1 %v8207_v61  ;;  %v8262_v46 = vcombine.high %v328_v40, %v332_v41  ;;  %v336_v48 = vld [vmem:[%s9684_s6 + $0x380] sm:$0xff]  ;;  %v341_v51 = vld [vmem:[%s9684_s6 + $0x3a8] sm:$0xff]  ;;  %v8261_v52 = vcombine.low %v328_v40, %v332_v41 }
  0x6f   : > { %6480 = vmatprep.subr.bf16.mxu0 %v8214_v62  ;;  %6808 = vmatprep.subr.bf16.mxu1 %v8216_v63  ;;  %v340_v49 = vld [vmem:[%s9684_s6 + $0x3a0] sm:$0xff]  ;;  %v8272_v56 = vcombine.high %v337_v50, %v341_v51  ;;  %v345_v60 = vld [vmem:[%s9684_s6 + $0x3c8] sm:$0xff]  ;;  %v8271_v63 = vcombine.low %v337_v50, %v341_v51 }
  0x70   : > { %v8270_v55 = vcombine.high %v336_v48, %v340_v49  ;;  %v344_v58 = vld [vmem:[%s9684_s6 + $0x3c0] sm:$0xff]  ;;  %v349_v61 = vld [vmem:[%s9684_s6 + $0x3e8] sm:$0xff]  ;;  %v8269_v62 = vcombine.low %v336_v48, %v340_v49 }
  0x71   : > { %v348_v59 = vld [vmem:[%s9684_s6 + $0x3e0] sm:$0xff]  ;;  %v8280_v1 = vcombine.high %v345_v60, %v349_v61 }
  0x72   : > { %6481 = vmatpush1.bf16.msra.mxu0 %v8213_v4  ;;  %6809 = vmatpush1.bf16.msra.mxu1 %v8215_v5  ;;  %v8278_v0 = vcombine.high %v344_v58, %v348_v59  ;;  %v352_v2 = vld [vmem:[%s9684_s6 + $0x400] sm:$0xff]  ;;  %v353_v4 = vld [vmem:[%s9684_s6 + $0x408] sm:$0xff] }
  0x73   : > { %6482 = vmatprep.subr.bf16.mxu0 %v8222_v6  ;;  %6810 = vmatprep.subr.bf16.mxu1 %v8224_v7  ;;  %v356_v3 = vld [vmem:[%s9684_s6 + $0x420] sm:$0xff]  ;;  %v357_v5 = vld [vmem:[%s9684_s6 + $0x428] sm:$0xff]  ;;  %v8277_v6 = vcombine.low %v344_v58, %v348_v59  ;;  %v8279_v7 = vcombine.low %v345_v60, %v349_v61 }
  0x74   : > { %v8286_v8 = vcombine.high %v352_v2, %v356_v3  ;;  %v8288_v9 = vcombine.high %v353_v4, %v357_v5  ;;  %v360_v10 = vld [vmem:[%s9684_s6 + $0x440] sm:$0xff]  ;;  %v8285_v16 = vcombine.low %v352_v2, %v356_v3  ;;  %v8287_v17 = vcombine.low %v353_v4, %v357_v5 }
  0x75   : > { %v364_v11 = vld [vmem:[%s9684_s6 + $0x460] sm:$0xff] }
  0x76   : > { %6483 = vmatpush1.bf16.msra.mxu0 %v8221_v12  ;;  %6811 = vmatpush1.bf16.msra.mxu1 %v8223_v13  ;;  %v9779_v12 = vcombine.low %v9727_v53, %v9727_v53  ;;  %v361_v13 = vld [vmem:[%s9684_s6 + $0x448] sm:$0xff]  ;;  %v8294_v18 = vcombine.high %v360_v10, %v364_v11  ;;  %v368_v53 = vld [vmem:[%s9684_s6 + $0x480] sm:$0xff]  ;;  %v8293_v24 = vcombine.low %v360_v10, %v364_v11 }
  0x77   : > { %6484 = vmatprep.subr.bf16.mxu0 %v8230_v14  ;;  %6812 = vmatprep.subr.bf16.mxu1 %v8232_v15  ;;  %v365_v14 = vld [vmem:[%s9684_s6 + $0x468] sm:$0xff] }
  0x78   : > { %v9786_v15 = vld [vmem:[%s11366_s0 + $0x8] sm:$0xff]  ;;  %v8296_v19 = vcombine.high %v361_v13, %v365_v14  ;;  %v8295_v25 = vcombine.low %v361_v13, %v365_v14 }
  0x7a   : > { %6485 = vmatpush1.bf16.msra.mxu0 %v8229_v20  ;;  %6813 = vmatpush1.bf16.msra.mxu1 %v8231_v21  ;;  %v372_v20 = vld [vmem:[%s9684_s6 + $0x4a0] sm:$0xff]  ;;  %v9792_v21 = vcombine.high %v9786_v15, %v9786_v15 }
  0x7b   : > { %6486 = vmatprep.subr.bf16.mxu0 %v8238_v22  ;;  %6814 = vmatprep.subr.bf16.mxu1 %v8240_v23  ;;  %v369_v22 = vld [vmem:[%s9684_s6 + $0x488] sm:$0xff]  ;;  %v8302_v26 = vcombine.high %v368_v53, %v372_v20  ;;  %v8301_v32 = vcombine.low %v368_v53, %v372_v20 }
  0x7c   : > { %v373_v23 = vld [vmem:[%s9684_s6 + $0x4a8] sm:$0xff] }
  0x7d   : > { %v8304_v27 = vcombine.high %v369_v22, %v373_v23  ;;  %v8303_v33 = vcombine.low %v369_v22, %v373_v23 }
  0x7e   : > { %6487 = vmatpush1.bf16.msra.mxu0 %v8237_v28  ;;  %6815 = vmatpush1.bf16.msra.mxu1 %v8239_v29  ;;  %v376_v28 = vld [vmem:[%s9684_s6 + $0x4c0] sm:$0xff] }
  0x7f   : > { %6488 = vmatprep.subr.bf16.mxu0 %v8246_v30  ;;  %6816 = vmatprep.subr.bf16.mxu1 %v8248_v31  ;;  %v380_v29 = vld [vmem:[%s9684_s6 + $0x4e0] sm:$0xff]  ;;  %v377_v30 = vld [vmem:[%s9684_s6 + $0x4c8] sm:$0xff] }
  0x80   : > { %v381_v31 = vld [vmem:[%s9684_s6 + $0x4e8] sm:$0xff]  ;;  %v8310_v34 = vcombine.high %v376_v28, %v380_v29  ;;  %v8309_v40 = vcombine.low %v376_v28, %v380_v29 }
  0x81   : > { %v8312_v35 = vcombine.high %v377_v30, %v381_v31  ;;  %v8311_v41 = vcombine.low %v377_v30, %v381_v31 }
  0x82   : > { %6489 = vmatpush1.bf16.msra.mxu0 %v8245_v36  ;;  %6817 = vmatpush1.bf16.msra.mxu1 %v8247_v37  ;;  %v384_v36 = vld [vmem:[%s9684_s6 + $0x500] sm:$0xff] }
  0x83   : > { %6490 = vmatprep.subr.bf16.mxu0 %v8254_v38  ;;  %6818 = vmatprep.subr.bf16.mxu1 %v8256_v39  ;;  %v388_v37 = vld [vmem:[%s9684_s6 + $0x520] sm:$0xff]  ;;  %v385_v38 = vld [vmem:[%s9684_s6 + $0x508] sm:$0xff] }
  0x84   : > { %v389_v39 = vld [vmem:[%s9684_s6 + $0x528] sm:$0xff]  ;;  %v8318_v42 = vcombine.high %v384_v36, %v388_v37  ;;  %v8317_v48 = vcombine.low %v384_v36, %v388_v37 }
  0x85   : > { %v8320_v43 = vcombine.high %v385_v38, %v389_v39  ;;  %v8319_v49 = vcombine.low %v385_v38, %v389_v39 }
  0x86   : > { %6491 = vmatpush1.bf16.msra.mxu0 %v8253_v44  ;;  %6819 = vmatpush1.bf16.msra.mxu1 %v8255_v45  ;;  %v392_v44 = vld [vmem:[%s9684_s6 + $0x540] sm:$0xff] }
  0x87   : > { %6492 = vmatprep.subr.bf16.mxu0 %v8262_v46  ;;  %6820 = vmatprep.subr.bf16.mxu1 %v8264_v47  ;;  %v396_v45 = vld [vmem:[%s9684_s6 + $0x560] sm:$0xff]  ;;  %v393_v46 = vld [vmem:[%s9684_s6 + $0x548] sm:$0xff] }
  0x88   : > { %v397_v47 = vld [vmem:[%s9684_s6 + $0x568] sm:$0xff]  ;;  %v8326_v50 = vcombine.high %v392_v44, %v396_v45  ;;  %v8325_v58 = vcombine.low %v392_v44, %v396_v45 }
  0x89   : > { %v8328_v51 = vcombine.high %v393_v46, %v397_v47  ;;  %v8327_v59 = vcombine.low %v393_v46, %v397_v47 }
  0x8a   : > { %6493 = vmatpush1.bf16.msra.mxu0 %v8261_v52  ;;  %6821 = vmatpush1.bf16.msra.mxu1 %v8263_v54  ;;  %v400_v52 = vld [vmem:[%s9684_s6 + $0x580] sm:$0xff] }
  0x8b   : > { %6494 = vmatprep.subr.bf16.mxu0 %v8270_v55  ;;  %6822 = vmatprep.subr.bf16.mxu1 %v8272_v56  ;;  %v404_v54 = vld [vmem:[%s9684_s6 + $0x5a0] sm:$0xff]  ;;  %v401_v55 = vld [vmem:[%s9684_s6 + $0x588] sm:$0xff] }
  0x8c   : > { %v405_v56 = vld [vmem:[%s9684_s6 + $0x5a8] sm:$0xff]  ;;  %v8334_v60 = vcombine.high %v400_v52, %v404_v54  ;;  %v8333_v2 = vcombine.low %v400_v52, %v404_v54 }
  0x8d   : > { %v8336_v61 = vcombine.high %v401_v55, %v405_v56  ;;  %v8335_v3 = vcombine.low %v401_v55, %v405_v56 }
  0x8e   : > { %6495 = vmatpush1.bf16.msra.mxu0 %v8269_v62  ;;  %6823 = vmatpush1.bf16.msra.mxu1 %v8271_v63  ;;  %v408_v62 = vld [vmem:[%s9684_s6 + $0x5c0] sm:$0xff] }
  0x8f   : > { %6496 = vmatprep.subr.bf16.mxu0 %v8278_v0  ;;  %6824 = vmatprep.subr.bf16.mxu1 %v8280_v1  ;;  %v412_v63 = vld [vmem:[%s9684_s6 + $0x5e0] sm:$0xff]  ;;  %v409_v0 = vld [vmem:[%s9684_s6 + $0x5c8] sm:$0xff] }
  0x90   : > { %v413_v1 = vld [vmem:[%s9684_s6 + $0x5e8] sm:$0xff]  ;;  %v8342_v4 = vcombine.high %v408_v62, %v412_v63  ;;  %v8341_v10 = vcombine.low %v408_v62, %v412_v63 }
  0x91   : > { %v8344_v5 = vcombine.high %v409_v0, %v413_v1  ;;  %v8343_v11 = vcombine.low %v409_v0, %v413_v1 }
  0x92   : > { %6497 = vmatpush1.bf16.msra.mxu0 %v8277_v6  ;;  %6825 = vmatpush1.bf16.msra.mxu1 %v8279_v7  ;;  %v416_v6 = vld [vmem:[%s9684_s6 + $0x600] sm:$0xff] }
  0x93   : > { %6507 = vmatprep.subr.bf16.mxu0 %v8286_v8  ;;  %6835 = vmatprep.subr.bf16.mxu1 %v8288_v9  ;;  %v420_v7 = vld [vmem:[%s9684_s6 + $0x620] sm:$0xff]  ;;  %v417_v8 = vld [vmem:[%s9684_s6 + $0x608] sm:$0xff] }
  0x94   : > { %v421_v9 = vld [vmem:[%s9684_s6 + $0x628] sm:$0xff]  ;;  %v8350_v13 = vcombine.high %v416_v6, %v420_v7  ;;  %v8349_v53 = vcombine.low %v416_v6, %v420_v7 }
  0x95   : > { %6499 = vmatmul.mubr.bf16.vlgmr.msra.gmra.mrb[0].mxu0 %v9779_v12  ;;  %6827 = vmatmul.mubr.bf16.vlgmr.msra.gmra.mrb[0].mxu1 %v9779_v12  ;;  %v8352_v14 = vcombine.high %v417_v8, %v421_v9  ;;  %v8351_v20 = vcombine.low %v417_v8, %v421_v9 }
  0x96   : > { %6508 = vmatpush1.bf16.msra.mxu0 %v8285_v16  ;;  %6836 = vmatpush1.bf16.msra.mxu1 %v8287_v17  ;;  %v424_v16 = vld [vmem:[%s9684_s6 + $0x640] sm:$0xff] }
  0x97   : > { %6509 = vmatprep.subr.bf16.mxu0 %v8294_v18  ;;  %6837 = vmatprep.subr.bf16.mxu1 %v8296_v19  ;;  %v428_v17 = vld [vmem:[%s9684_s6 + $0x660] sm:$0xff]  ;;  %v425_v18 = vld [vmem:[%s9684_s6 + $0x648] sm:$0xff] }
  0x98   : > { %6539 = vmatprep.mubr.bf16.mxu0 %v9792_v21  ;;  %6867 = vmatprep.mubr.bf16.mxu1 %v9792_v21  ;;  %v429_v19 = vld [vmem:[%s9684_s6 + $0x668] sm:$0xff]  ;;  %v8358_v22 = vcombine.high %v424_v16, %v428_v17  ;;  %v8357_v28 = vcombine.low %v424_v16, %v428_v17 }
  0x99   : > { %v8360_v23 = vcombine.high %v425_v18, %v429_v19  ;;  %v8359_v29 = vcombine.low %v425_v18, %v429_v19 }
  0x9a   : > { %6510 = vmatpush1.bf16.msra.mxu0 %v8293_v24  ;;  %6838 = vmatpush1.bf16.msra.mxu1 %v8295_v25  ;;  %v432_v24 = vld [vmem:[%s9684_s6 + $0x680] sm:$0xff] }
  0x9b   : > { %6511 = vmatprep.subr.bf16.mxu0 %v8302_v26  ;;  %6839 = vmatprep.subr.bf16.mxu1 %v8304_v27  ;;  %v436_v25 = vld [vmem:[%s9684_s6 + $0x6a0] sm:$0xff]  ;;  %v433_v26 = vld [vmem:[%s9684_s6 + $0x688] sm:$0xff] }
  0x9c   : > { %v437_v27 = vld [vmem:[%s9684_s6 + $0x6a8] sm:$0xff]  ;;  %v8366_v30 = vcombine.high %v432_v24, %v436_v25  ;;  %v8365_v36 = vcombine.low %v432_v24, %v436_v25  ;;  %v9867_v25 = vld [vmem:[%s11366_s0 + $0x10] sm:$0xff] }
  0x9d   : > { %v8368_v31 = vcombine.high %v433_v26, %v437_v27  ;;  %v8367_v37 = vcombine.low %v433_v26, %v437_v27  ;;  %v493_v24 = vld [vmem:[%s9684_s6 + $0x868] sm:$0xff] }
  0x9e   : > { %6512 = vmatpush1.bf16.msra.mxu0 %v8301_v32  ;;  %6840 = vmatpush1.bf16.msra.mxu1 %v8303_v33  ;;  %v440_v32 = vld [vmem:[%s9684_s6 + $0x6c0] sm:$0xff] }
  0x9f   : > { %6513 = vmatprep.subr.bf16.mxu0 %v8310_v34  ;;  %6841 = vmatprep.subr.bf16.mxu1 %v8312_v35  ;;  %v444_v33 = vld [vmem:[%s9684_s6 + $0x6e0] sm:$0xff]  ;;  %v441_v34 = vld [vmem:[%s9684_s6 + $0x6c8] sm:$0xff] }
  0xa0   : > { %v445_v35 = vld [vmem:[%s9684_s6 + $0x6e8] sm:$0xff]  ;;  %v8374_v38 = vcombine.high %v440_v32, %v444_v33  ;;  %v8373_v44 = vcombine.low %v440_v32, %v444_v33 }
  0xa1   : > { %v8376_v39 = vcombine.high %v441_v34, %v445_v35  ;;  %v8375_v45 = vcombine.low %v441_v34, %v445_v35  ;;  %v497_v32 = vld [vmem:[%s9684_s6 + $0x888] sm:$0xff] }
  0xa2   : > { %6514 = vmatpush1.bf16.msra.mxu0 %v8309_v40  ;;  %6842 = vmatpush1.bf16.msra.mxu1 %v8311_v41  ;;  %v448_v40 = vld [vmem:[%s9684_s6 + $0x700] sm:$0xff]  ;;  %v501_v33 = vld [vmem:[%s9684_s6 + $0x8a8] sm:$0xff] }
  0xa3   : > { %6515 = vmatprep.subr.bf16.mxu0 %v8318_v42  ;;  %6843 = vmatprep.subr.bf16.mxu1 %v8320_v43  ;;  %v452_v41 = vld [vmem:[%s9684_s6 + $0x720] sm:$0xff]  ;;  %v449_v42 = vld [vmem:[%s9684_s6 + $0x708] sm:$0xff] }
  0xa4   : > { %v453_v43 = vld [vmem:[%s9684_s6 + $0x728] sm:$0xff]  ;;  %v8382_v46 = vcombine.high %v448_v40, %v452_v41  ;;  %v8381_v52 = vcombine.low %v448_v40, %v452_v41 }
  0xa5   : > { %v8384_v47 = vcombine.high %v449_v42, %v453_v43  ;;  %v8383_v54 = vcombine.low %v449_v42, %v453_v43  ;;  %v505_v40 = vld [vmem:[%s9684_s6 + $0x8c8] sm:$0xff]  ;;  %v8431_v43 = vcombine.low %v497_v32, %v501_v33 }
  0xa6   : > { %6516 = vmatpush1.bf16.msra.mxu0 %v8317_v48  ;;  %6844 = vmatpush1.bf16.msra.mxu1 %v8319_v49  ;;  %v456_v48 = vld [vmem:[%s9684_s6 + $0x740] sm:$0xff]  ;;  %v509_v41 = vld [vmem:[%s9684_s6 + $0x8e8] sm:$0xff] }
  0xa7   : > { %6517 = vmatprep.subr.bf16.mxu0 %v8326_v50  ;;  %6845 = vmatprep.subr.bf16.mxu1 %v8328_v51  ;;  %v460_v49 = vld [vmem:[%s9684_s6 + $0x760] sm:$0xff]  ;;  %v457_v50 = vld [vmem:[%s9684_s6 + $0x748] sm:$0xff] }
  0xa8   : > { %v461_v51 = vld [vmem:[%s9684_s6 + $0x768] sm:$0xff]  ;;  %v8390_v55 = vcombine.high %v456_v48, %v460_v49  ;;  %v8389_v62 = vcombine.low %v456_v48, %v460_v49 }
  0xa9   : > { %v8392_v56 = vcombine.high %v457_v50, %v461_v51  ;;  %v8391_v63 = vcombine.low %v457_v50, %v461_v51  ;;  %v513_v48 = vld [vmem:[%s9684_s6 + $0x908] sm:$0xff]  ;;  %v8439_v51 = vcombine.low %v505_v40, %v509_v41 }
  0xaa   : > { %6518 = vmatpush1.bf16.msra.mxu0 %v8325_v58  ;;  %6846 = vmatpush1.bf16.msra.mxu1 %v8327_v59  ;;  %v464_v58 = vld [vmem:[%s9684_s6 + $0x780] sm:$0xff]  ;;  %v517_v49 = vld [vmem:[%s9684_s6 + $0x928] sm:$0xff] }
  0xab   : > { %6519 = vmatprep.subr.bf16.mxu0 %v8334_v60  ;;  %6847 = vmatprep.subr.bf16.mxu1 %v8336_v61  ;;  %v468_v59 = vld [vmem:[%s9684_s6 + $0x7a0] sm:$0xff]  ;;  %v465_v60 = vld [vmem:[%s9684_s6 + $0x788] sm:$0xff] }
  0xac   : > { %v469_v61 = vld [vmem:[%s9684_s6 + $0x7a8] sm:$0xff]  ;;  %v8398_v0 = vcombine.high %v464_v58, %v468_v59  ;;  %v8397_v6 = vcombine.low %v464_v58, %v468_v59 }
  0xad   : > { %v8400_v1 = vcombine.high %v465_v60, %v469_v61  ;;  %v8399_v7 = vcombine.low %v465_v60, %v469_v61  ;;  %v521_v58 = vld [vmem:[%s9684_s6 + $0x948] sm:$0xff]  ;;  %v8447_v61 = vcombine.low %v513_v48, %v517_v49 }
  0xae   : > { %6520 = vmatpush1.bf16.msra.mxu0 %v8333_v2  ;;  %6848 = vmatpush1.bf16.msra.mxu1 %v8335_v3  ;;  %v472_v2 = vld [vmem:[%s9684_s6 + $0x7c0] sm:$0xff]  ;;  %v525_v59 = vld [vmem:[%s9684_s6 + $0x968] sm:$0xff] }
  0xaf   : > { %6521 = vmatprep.subr.bf16.mxu0 %v8342_v4  ;;  %6849 = vmatprep.subr.bf16.mxu1 %v8344_v5  ;;  %v476_v3 = vld [vmem:[%s9684_s6 + $0x7e0] sm:$0xff]  ;;  %v473_v4 = vld [vmem:[%s9684_s6 + $0x7c8] sm:$0xff] }
  0xb0   : > { %v477_v5 = vld [vmem:[%s9684_s6 + $0x7e8] sm:$0xff]  ;;  %v8406_v8 = vcombine.high %v472_v2, %v476_v3  ;;  %v8405_v16 = vcombine.low %v472_v2, %v476_v3 }
  0xb1   : > { %v8408_v9 = vcombine.high %v473_v4, %v477_v5  ;;  %v8407_v17 = vcombine.low %v473_v4, %v477_v5  ;;  %v529_v2 = vld [vmem:[%s9684_s6 + $0x988] sm:$0xff]  ;;  %v8455_v5 = vcombine.low %v521_v58, %v525_v59 }
  0xb2   : > { %6522 = vmatpush1.bf16.msra.mxu0 %v8341_v10  ;;  %6850 = vmatpush1.bf16.msra.mxu1 %v8343_v11  ;;  %v480_v10 = vld [vmem:[%s9684_s6 + $0x800] sm:$0xff]  ;;  %v533_v3 = vld [vmem:[%s9684_s6 + $0x9a8] sm:$0xff] }
  0xb3   : > { %6523 = vmatprep.subr.bf16.mxu0 %v8350_v13  ;;  %6851 = vmatprep.subr.bf16.mxu1 %v8352_v14  ;;  %v484_v11 = vld [vmem:[%s9684_s6 + $0x820] sm:$0xff]  ;;  %v481_v13 = vld [vmem:[%s9684_s6 + $0x808] sm:$0xff] }
  0xb4   : > { %v485_v14 = vld [vmem:[%s9684_s6 + $0x828] sm:$0xff]  ;;  %v8414_v18 = vcombine.high %v480_v10, %v484_v11  ;;  %v8413_v26 = vcombine.low %v480_v10, %v484_v11 }
  0xb5   : > { %v8416_v19 = vcombine.high %v481_v13, %v485_v14  ;;  %v8415_v27 = vcombine.low %v481_v13, %v485_v14  ;;  %v537_v10 = vld [vmem:[%s9684_s6 + $0x9c8] sm:$0xff]  ;;  %v8463_v14 = vcombine.low %v529_v2, %v533_v3 }
  0xb6   : > { %6524 = vmatpush1.bf16.msra.mxu0 %v8349_v53  ;;  %6852 = vmatpush1.bf16.msra.mxu1 %v8351_v20  ;;  %v488_v53 = vld [vmem:[%s9684_s6 + $0x840] sm:$0xff]  ;;  %v541_v11 = vld [vmem:[%s9684_s6 + $0x9e8] sm:$0xff] }
  0xb7   : > { %6525 = vmatprep.subr.bf16.mxu0 %v8358_v22  ;;  %6853 = vmatprep.subr.bf16.mxu1 %v8360_v23  ;;  %v492_v20 = vld [vmem:[%s9684_s6 + $0x860] sm:$0xff]  ;;  %v9860_v22 = vcombine.low %v9786_v15, %v9786_v15  ;;  %v489_v23 = vld [vmem:[%s9684_s6 + $0x848] sm:$0xff] }
  0xb8   : > { %v496_v15 = vld [vmem:[%s9684_s6 + $0x880] sm:$0xff]  ;;  %v8421_v34 = vcombine.low %v488_v53, %v492_v20  ;;  %v8423_v35 = vcombine.low %v489_v23, %v493_v24 }
  0xba   : > { %6526 = vmatpush1.bf16.msra.mxu0 %v8357_v28  ;;  %6854 = vmatpush1.bf16.msra.mxu1 %v8359_v29  ;;  %v8422_v28 = vcombine.high %v488_v53, %v492_v20  ;;  %v8424_v29 = vcombine.high %v489_v23, %v493_v24  ;;  %v545_v53 = vld [vmem:[%s9684_s6 + $0xa08] sm:$0xff]  ;;  %v8471_v24 = vcombine.low %v537_v10, %v541_v11 }
  0xbb   : > { %6527 = vmatprep.subr.bf16.mxu0 %v8366_v30  ;;  %6855 = vmatprep.subr.bf16.mxu1 %v8368_v31  ;;  %v500_v30 = vld [vmem:[%s9684_s6 + $0x8a0] sm:$0xff]  ;;  %v9873_v31 = vcombine.high %v9867_v25, %v9867_v25  ;;  %v549_v20 = vld [vmem:[%s9684_s6 + $0xa28] sm:$0xff] }
  0xbc   : > { %v8429_v42 = vcombine.low %v496_v15, %v500_v30 }
  0xbe   : > { %6528 = vmatpush1.bf16.msra.mxu0 %v8365_v36  ;;  %6856 = vmatpush1.bf16.msra.mxu1 %v8367_v37  ;;  %v8430_v36 = vcombine.high %v496_v15, %v500_v30  ;;  %v8432_v37 = vcombine.high %v497_v32, %v501_v33  ;;  %v553_v15 = vld [vmem:[%s9684_s6 + $0xa48] sm:$0xff]  ;;  %v8479_v33 = vcombine.low %v545_v53, %v549_v20 }
  0xbf   : > { %6529 = vmatprep.subr.bf16.mxu0 %v8374_v38  ;;  %6857 = vmatprep.subr.bf16.mxu1 %v8376_v39  ;;  %v504_v38 = vld [vmem:[%s9684_s6 + $0x8c0] sm:$0xff]  ;;  %v557_v30 = vld [vmem:[%s9684_s6 + $0xa68] sm:$0xff] }
  0xc0   : > { %v508_v39 = vld [vmem:[%s9684_s6 + $0x8e0] sm:$0xff] }
  0xc1   : > { %v8437_v50 = vcombine.low %v504_v38, %v508_v39 }
  0xc2   : > { %6530 = vmatpush1.bf16.msra.mxu0 %v8373_v44  ;;  %6858 = vmatpush1.bf16.msra.mxu1 %v8375_v45  ;;  %v8438_v44 = vcombine.high %v504_v38, %v508_v39  ;;  %v8440_v45 = vcombine.high %v505_v40, %v509_v41  ;;  %v561_v38 = vld [vmem:[%s9684_s6 + $0xa88] sm:$0xff]  ;;  %v8487_v41 = vcombine.low %v553_v15, %v557_v30 }
  0xc3   : > { %6531 = vmatprep.subr.bf16.mxu0 %v8382_v46  ;;  %6859 = vmatprep.subr.bf16.mxu1 %v8384_v47  ;;  %v512_v46 = vld [vmem:[%s9684_s6 + $0x900] sm:$0xff]  ;;  %v565_v39 = vld [vmem:[%s9684_s6 + $0xaa8] sm:$0xff] }
  0xc4   : > { %v516_v47 = vld [vmem:[%s9684_s6 + $0x920] sm:$0xff] }
  0xc5   : > { %v8445_v60 = vcombine.low %v512_v46, %v516_v47 }
  0xc6   : > { %6532 = vmatpush1.bf16.msra.mxu0 %v8381_v52  ;;  %6860 = vmatpush1.bf16.msra.mxu1 %v8383_v54  ;;  %v8446_v52 = vcombine.high %v512_v46, %v516_v47  ;;  %v8448_v54 = vcombine.high %v513_v48, %v517_v49  ;;  %v569_v46 = vld [vmem:[%s9684_s6 + $0xac8] sm:$0xff]  ;;  %v8495_v49 = vcombine.low %v561_v38, %v565_v39 }
  0xc7   : > { %6533 = vmatprep.subr.bf16.mxu0 %v8390_v55  ;;  %6861 = vmatprep.subr.bf16.mxu1 %v8392_v56  ;;  %v520_v55 = vld [vmem:[%s9684_s6 + $0x940] sm:$0xff]  ;;  %v573_v47 = vld [vmem:[%s9684_s6 + $0xae8] sm:$0xff] }
  0xc8   : > { %v524_v56 = vld [vmem:[%s9684_s6 + $0x960] sm:$0xff] }
  0xc9   : > { %v8453_v4 = vcombine.low %v520_v55, %v524_v56 }
  0xca   : > { %6534 = vmatpush1.bf16.msra.mxu0 %v8389_v62  ;;  %6862 = vmatpush1.bf16.msra.mxu1 %v8391_v63  ;;  %v8454_v62 = vcombine.high %v520_v55, %v524_v56  ;;  %v8456_v63 = vcombine.high %v521_v58, %v525_v59  ;;  %v577_v55 = vld [vmem:[%s9684_s6 + $0xb08] sm:$0xff]  ;;  %v8503_v59 = vcombine.low %v569_v46, %v573_v47 }
  0xcb   : > { %6535 = vmatprep.subr.bf16.mxu0 %v8398_v0  ;;  %6863 = vmatprep.subr.bf16.mxu1 %v8400_v1  ;;  %v528_v0 = vld [vmem:[%s9684_s6 + $0x980] sm:$0xff]  ;;  %v581_v56 = vld [vmem:[%s9684_s6 + $0xb28] sm:$0xff] }
  0xcc   : > { %v532_v1 = vld [vmem:[%s9684_s6 + $0x9a0] sm:$0xff] }
  0xcd   : > { %v8461_v13 = vcombine.low %v528_v0, %v532_v1 }
  0xce   : > { %6536 = vmatpush1.bf16.msra.mxu0 %v8397_v6  ;;  %6864 = vmatpush1.bf16.msra.mxu1 %v8399_v7  ;;  %v8462_v6 = vcombine.high %v528_v0, %v532_v1  ;;  %v8464_v7 = vcombine.high %v529_v2, %v533_v3  ;;  %v585_v0 = vld [vmem:[%s9684_s6 + $0xb48] sm:$0xff]  ;;  %v8511_v3 = vcombine.low %v577_v55, %v581_v56 }
  0xcf   : > { %6537 = vmatprep.subr.bf16.mxu0 %v8406_v8  ;;  %6865 = vmatprep.subr.bf16.mxu1 %v8408_v9  ;;  %v536_v8 = vld [vmem:[%s9684_s6 + $0x9c0] sm:$0xff]  ;;  %v589_v1 = vld [vmem:[%s9684_s6 + $0xb68] sm:$0xff] }
  0xd0   : > { %v540_v9 = vld [vmem:[%s9684_s6 + $0x9e0] sm:$0xff] }
  0xd1   : > { %v8469_v23 = vcombine.low %v536_v8, %v540_v9 }
  0xd2   : > { %6538 = vmatpush1.bf16.msra.mxu0 %v8405_v16  ;;  %6866 = vmatpush1.bf16.msra.mxu1 %v8407_v17  ;;  %v8470_v16 = vcombine.high %v536_v8, %v540_v9  ;;  %v8472_v17 = vcombine.high %v537_v10, %v541_v11  ;;  %v593_v8 = vld [vmem:[%s9684_s6 + $0xb88] sm:$0xff]  ;;  %v8519_v11 = vcombine.low %v585_v0, %v589_v1 }
  0xd3   : > { %6548 = vmatprep.subr.bf16.mxu0 %v8414_v18  ;;  %6876 = vmatprep.subr.bf16.mxu1 %v8416_v19  ;;  %v544_v18 = vld [vmem:[%s9684_s6 + $0xa00] sm:$0xff]  ;;  %v597_v9 = vld [vmem:[%s9684_s6 + $0xba8] sm:$0xff] }
  0xd4   : > { %v548_v19 = vld [vmem:[%s9684_s6 + $0xa20] sm:$0xff] }
  0xd5   : > { %6540 = vmatmul.mubr.bf16.vlgmr.msra.gmra.mrb[0].mxu0 %v9860_v22  ;;  %6868 = vmatmul.mubr.bf16.vlgmr.msra.gmra.mrb[0].mxu1 %v9860_v22  ;;  %v8477_v32 = vcombine.low %v544_v18, %v548_v19 }
  0xd6   : > { %6549 = vmatpush1.bf16.msra.mxu0 %v8413_v26  ;;  %6877 = vmatpush1.bf16.msra.mxu1 %v8415_v27  ;;  %v8478_v26 = vcombine.high %v544_v18, %v548_v19  ;;  %v8480_v27 = vcombine.high %v545_v53, %v549_v20  ;;  %v601_v18 = vld [vmem:[%s9684_s6 + $0xbc8] sm:$0xff]  ;;  %v8527_v20 = vcombine.low %v593_v8, %v597_v9 }
  0xd7   : > { %6550 = vmatprep.subr.bf16.mxu0 %v8422_v28  ;;  %6878 = vmatprep.subr.bf16.mxu1 %v8424_v29  ;;  %v552_v28 = vld [vmem:[%s9684_s6 + $0xa40] sm:$0xff]  ;;  %v605_v19 = vld [vmem:[%s9684_s6 + $0xbe8] sm:$0xff] }
  0xd8   : > { %6580 = vmatprep.mubr.bf16.mxu0 %v9873_v31  ;;  %6908 = vmatprep.mubr.bf16.mxu1 %v9873_v31  ;;  %v556_v29 = vld [vmem:[%s9684_s6 + $0xa60] sm:$0xff] }
  0xd9   : > { %v8485_v40 = vcombine.low %v552_v28, %v556_v29 }
  0xda   : > { %6551 = vmatpush1.bf16.msra.mxu0 %v8421_v34  ;;  %6879 = vmatpush1.bf16.msra.mxu1 %v8423_v35  ;;  %v8486_v34 = vcombine.high %v552_v28, %v556_v29  ;;  %v8488_v35 = vcombine.high %v553_v15, %v557_v30  ;;  %v609_v28 = vld [vmem:[%s9684_s6 + $0xc08] sm:$0xff]  ;;  %v8535_v30 = vcombine.low %v601_v18, %v605_v19 }
  0xdb   : > { %6552 = vmatprep.subr.bf16.mxu0 %v8430_v36  ;;  %6880 = vmatprep.subr.bf16.mxu1 %v8432_v37  ;;  %v560_v36 = vld [vmem:[%s9684_s6 + $0xa80] sm:$0xff]  ;;  %v613_v29 = vld [vmem:[%s9684_s6 + $0xc28] sm:$0xff] }
  0xdc   : > { %v564_v37 = vld [vmem:[%s9684_s6 + $0xaa0] sm:$0xff] }
  0xdd   : > { %v8493_v48 = vcombine.low %v560_v36, %v564_v37 }
  0xde   : > { %6553 = vmatpush1.bf16.msra.mxu0 %v8429_v42  ;;  %6881 = vmatpush1.bf16.msra.mxu1 %v8431_v43  ;;  %v8494_v42 = vcombine.high %v560_v36, %v564_v37  ;;  %v8496_v43 = vcombine.high %v561_v38, %v565_v39  ;;  %v9941_v36 = vcombine.low %v9867_v25, %v9867_v25  ;;  %v617_v37 = vld [vmem:[%s9684_s6 + $0xc48] sm:$0xff]  ;;  %v9948_v39 = vld [vmem:[%s11366_s0 + $0x18] sm:$0xff]  ;;  %v624_v25 = vld [vmem:[%s9684_s6 + $0xc80] sm:$0xff] }
  0xdf   : > { %6554 = vmatprep.subr.bf16.mxu0 %v8438_v44  ;;  %6882 = vmatprep.subr.bf16.mxu1 %v8440_v45  ;;  %v568_v44 = vld [vmem:[%s9684_s6 + $0xac0] sm:$0xff]  ;;  %v621_v38 = vld [vmem:[%s9684_s6 + $0xc68] sm:$0xff] }
  0xe0   : > { %v572_v45 = vld [vmem:[%s9684_s6 + $0xae0] sm:$0xff] }
  0xe1   : > { %v8501_v58 = vcombine.low %v568_v44, %v572_v45 }
  0xe2   : > { %6555 = vmatpush1.bf16.msra.mxu0 %v8437_v50  ;;  %6883 = vmatpush1.bf16.msra.mxu1 %v8439_v51  ;;  %v8502_v50 = vcombine.high %v568_v44, %v572_v45  ;;  %v8504_v51 = vcombine.high %v569_v46, %v573_v47  ;;  %v628_v44 = vld [vmem:[%s9684_s6 + $0xca0] sm:$0xff]  ;;  %v9954_v45 = vcombine.high %v9948_v39, %v9948_v39  ;;  %v625_v46 = vld [vmem:[%s9684_s6 + $0xc88] sm:$0xff] }
  0xe3   : > { %6556 = vmatprep.subr.bf16.mxu0 %v8446_v52  ;;  %6884 = vmatprep.subr.bf16.mxu1 %v8448_v54  ;;  %v576_v52 = vld [vmem:[%s9684_s6 + $0xb00] sm:$0xff]  ;;  %v629_v47 = vld [vmem:[%s9684_s6 + $0xca8] sm:$0xff] }
  0xe4   : > { %v580_v54 = vld [vmem:[%s9684_s6 + $0xb20] sm:$0xff] }
  0xe5   : > { %v8509_v2 = vcombine.low %v576_v52, %v580_v54 }
  0xe6   : > { %6557 = vmatpush1.bf16.msra.mxu0 %v8445_v60  ;;  %6885 = vmatpush1.bf16.msra.mxu1 %v8447_v61  ;;  %v8510_v60 = vcombine.high %v576_v52, %v580_v54  ;;  %v8512_v61 = vcombine.high %v577_v55, %v581_v56  ;;  %v632_v52 = vld [vmem:[%s9684_s6 + $0xcc0] sm:$0xff]  ;;  %v633_v55 = vld [vmem:[%s9684_s6 + $0xcc8] sm:$0xff] }
  0xe7   : > { %6558 = vmatprep.subr.bf16.mxu0 %v8454_v62  ;;  %6886 = vmatprep.subr.bf16.mxu1 %v8456_v63  ;;  %v584_v62 = vld [vmem:[%s9684_s6 + $0xb40] sm:$0xff]  ;;  %v637_v56 = vld [vmem:[%s9684_s6 + $0xce8] sm:$0xff] }
  0xe8   : > { %v588_v63 = vld [vmem:[%s9684_s6 + $0xb60] sm:$0xff] }
  0xe9   : > { %v8517_v10 = vcombine.low %v584_v62, %v588_v63  ;;  %v636_v54 = vld [vmem:[%s9684_s6 + $0xce0] sm:$0xff] }
  0xea   : > { %6559 = vmatpush1.bf16.msra.mxu0 %v8453_v4  ;;  %6887 = vmatpush1.bf16.msra.mxu1 %v8455_v5  ;;  %v8518_v4 = vcombine.high %v584_v62, %v588_v63  ;;  %v8520_v5 = vcombine.high %v585_v0, %v589_v1  ;;  %v640_v62 = vld [vmem:[%s9684_s6 + $0xd00] sm:$0xff]  ;;  %v641_v0 = vld [vmem:[%s9684_s6 + $0xd08] sm:$0xff] }
  0xeb   : > { %6560 = vmatprep.subr.bf16.mxu0 %v8462_v6  ;;  %6888 = vmatprep.subr.bf16.mxu1 %v8464_v7  ;;  %v592_v6 = vld [vmem:[%s9684_s6 + $0xb80] sm:$0xff]  ;;  %v645_v1 = vld [vmem:[%s9684_s6 + $0xd28] sm:$0xff] }
  0xec   : > { %v596_v7 = vld [vmem:[%s9684_s6 + $0xba0] sm:$0xff] }
  0xed   : > { %v8525_v53 = vcombine.low %v592_v6, %v596_v7  ;;  %v644_v63 = vld [vmem:[%s9684_s6 + $0xd20] sm:$0xff] }
  0xee   : > { %6561 = vmatpush1.bf16.msra.mxu0 %v8461_v13  ;;  %6889 = vmatpush1.bf16.msra.mxu1 %v8463_v14  ;;  %v8526_v13 = vcombine.high %v592_v6, %v596_v7  ;;  %v8528_v14 = vcombine.high %v593_v8, %v597_v9  ;;  %v648_v6 = vld [vmem:[%s9684_s6 + $0xd40] sm:$0xff]  ;;  %v649_v8 = vld [vmem:[%s9684_s6 + $0xd48] sm:$0xff] }
  0xef   : > { %6562 = vmatprep.subr.bf16.mxu0 %v8470_v16  ;;  %6890 = vmatprep.subr.bf16.mxu1 %v8472_v17  ;;  %v600_v16 = vld [vmem:[%s9684_s6 + $0xbc0] sm:$0xff]  ;;  %v653_v9 = vld [vmem:[%s9684_s6 + $0xd68] sm:$0xff] }
  0xf0   : > { %v604_v17 = vld [vmem:[%s9684_s6 + $0xbe0] sm:$0xff] }
  0xf1   : > { %v8533_v15 = vcombine.low %v600_v16, %v604_v17  ;;  %v652_v7 = vld [vmem:[%s9684_s6 + $0xd60] sm:$0xff] }
  0xf2   : > { %6563 = vmatpush1.bf16.msra.mxu0 %v8469_v23  ;;  %6891 = vmatpush1.bf16.msra.mxu1 %v8471_v24  ;;  %v8534_v23 = vcombine.high %v600_v16, %v604_v17  ;;  %v8536_v24 = vcombine.high %v601_v18, %v605_v19  ;;  %v656_v16 = vld [vmem:[%s9684_s6 + $0xd80] sm:$0xff]  ;;  %v657_v18 = vld [vmem:[%s9684_s6 + $0xd88] sm:$0xff] }
  0xf3   : > { %6564 = vmatprep.subr.bf16.mxu0 %v8478_v26  ;;  %6892 = vmatprep.subr.bf16.mxu1 %v8480_v27  ;;  %v608_v26 = vld [vmem:[%s9684_s6 + $0xc00] sm:$0xff]  ;;  %v661_v19 = vld [vmem:[%s9684_s6 + $0xda8] sm:$0xff] }
  0xf4   : > { %v612_v27 = vld [vmem:[%s9684_s6 + $0xc20] sm:$0xff] }
  0xf5   : > { %v660_v17 = vld [vmem:[%s9684_s6 + $0xda0] sm:$0xff] }
  0xf6   : > { %6565 = vmatpush1.bf16.msra.mxu0 %v8477_v32  ;;  %6893 = vmatpush1.bf16.msra.mxu1 %v8479_v33  ;;  %v8542_v32 = vcombine.high %v608_v26, %v612_v27  ;;  %v8544_v33 = vcombine.high %v609_v28, %v613_v29 }
  0xf7   : > { %6566 = vmatprep.subr.bf16.mxu0 %v8486_v34  ;;  %6894 = vmatprep.subr.bf16.mxu1 %v8488_v35  ;;  %v616_v34 = vld [vmem:[%s9684_s6 + $0xc40] sm:$0xff] }
  0xf8   : > { %v620_v35 = vld [vmem:[%s9684_s6 + $0xc60] sm:$0xff] }
  0xfa   : > { %6567 = vmatpush1.bf16.msra.mxu0 %v8485_v40  ;;  %6895 = vmatpush1.bf16.msra.mxu1 %v8487_v41  ;;  %v8541_v40 = vcombine.low %v608_v26, %v612_v27  ;;  %v8543_v41 = vcombine.low %v609_v28, %v613_v29  ;;  %v664_v26 = vld [vmem:[%s9684_s6 + $0xdc0] sm:$0xff]  ;;  %v665_v28 = vld [vmem:[%s9684_s6 + $0xdc8] sm:$0xff] }
  0xfb   : > { %6568 = vmatprep.subr.bf16.mxu0 %v8494_v42  ;;  %6896 = vmatprep.subr.bf16.mxu1 %v8496_v43  ;;  %v8550_v42 = vcombine.high %v616_v34, %v620_v35  ;;  %v8552_v43 = vcombine.high %v617_v37, %v621_v38  ;;  %v668_v27 = vld [vmem:[%s9684_s6 + $0xde0] sm:$0xff]  ;;  %v669_v29 = vld [vmem:[%s9684_s6 + $0xde8] sm:$0xff] }
  0xfe   : > { %6569 = vmatpush1.bf16.msra.mxu0 %v8493_v48  ;;  %6897 = vmatpush1.bf16.msra.mxu1 %v8495_v49  ;;  %v8549_v48 = vcombine.low %v616_v34, %v620_v35  ;;  %v8551_v49 = vcombine.low %v617_v37, %v621_v38  ;;  %v672_v34 = vld [vmem:[%s9684_s6 + $0xe00] sm:$0xff]  ;;  %v673_v37 = vld [vmem:[%s9684_s6 + $0xe08] sm:$0xff] }
  0xff   : > { %6570 = vmatprep.subr.bf16.mxu0 %v8502_v50  ;;  %6898 = vmatprep.subr.bf16.mxu1 %v8504_v51  ;;  %v8558_v50 = vcombine.high %v624_v25, %v628_v44  ;;  %v8560_v51 = vcombine.high %v625_v46, %v629_v47  ;;  %v676_v35 = vld [vmem:[%s9684_s6 + $0xe20] sm:$0xff]  ;;  %v677_v38 = vld [vmem:[%s9684_s6 + $0xe28] sm:$0xff] }
 0x102   : > { %6571 = vmatpush1.bf16.msra.mxu0 %v8501_v58  ;;  %6899 = vmatpush1.bf16.msra.mxu1 %v8503_v59  ;;  %v8557_v58 = vcombine.low %v624_v25, %v628_v44  ;;  %v8559_v59 = vcombine.low %v625_v46, %v629_v47  ;;  %v680_v25 = vld [vmem:[%s9684_s6 + $0xe40] sm:$0xff]  ;;  %v681_v46 = vld [vmem:[%s9684_s6 + $0xe48] sm:$0xff] }
 0x103   : > { %6572 = vmatprep.subr.bf16.mxu0 %v8510_v60  ;;  %6900 = vmatprep.subr.bf16.mxu1 %v8512_v61  ;;  %v8566_v60 = vcombine.high %v632_v52, %v636_v54  ;;  %v8568_v61 = vcombine.high %v633_v55, %v637_v56  ;;  %v684_v44 = vld [vmem:[%s9684_s6 + $0xe60] sm:$0xff]  ;;  %v685_v47 = vld [vmem:[%s9684_s6 + $0xe68] sm:$0xff] }
 0x106   : > { %6573 = vmatpush1.bf16.msra.mxu0 %v8509_v2  ;;  %6901 = vmatpush1.bf16.msra.mxu1 %v8511_v3  ;;  %v8565_v2 = vcombine.low %v632_v52, %v636_v54  ;;  %v8567_v3 = vcombine.low %v633_v55, %v637_v56  ;;  %v688_v52 = vld [vmem:[%s9684_s6 + $0xe80] sm:$0xff]  ;;  %v689_v55 = vld [vmem:[%s9684_s6 + $0xe88] sm:$0xff] }
 0x107   : > { %6574 = vmatprep.subr.bf16.mxu0 %v8518_v4  ;;  %6902 = vmatprep.subr.bf16.mxu1 %v8520_v5  ;;  %v8574_v4 = vcombine.high %v640_v62, %v644_v63  ;;  %v8576_v5 = vcombine.high %v641_v0, %v645_v1  ;;  %v692_v54 = vld [vmem:[%s9684_s6 + $0xea0] sm:$0xff]  ;;  %v693_v56 = vld [vmem:[%s9684_s6 + $0xea8] sm:$0xff] }
 0x10a   : > { %6575 = vmatpush1.bf16.msra.mxu0 %v8517_v10  ;;  %6903 = vmatpush1.bf16.msra.mxu1 %v8519_v11  ;;  %v8573_v10 = vcombine.low %v640_v62, %v644_v63  ;;  %v8575_v11 = vcombine.low %v641_v0, %v645_v1  ;;  %v696_v62 = vld [vmem:[%s9684_s6 + $0xec0] sm:$0xff]  ;;  %v697_v0 = vld [vmem:[%s9684_s6 + $0xec8] sm:$0xff] }
 0x10b   : > { %6576 = vmatprep.subr.bf16.mxu0 %v8526_v13  ;;  %6904 = vmatprep.subr.bf16.mxu1 %v8528_v14  ;;  %v8582_v13 = vcombine.high %v648_v6, %v652_v7  ;;  %v8584_v14 = vcombine.high %v649_v8, %v653_v9  ;;  %v700_v63 = vld [vmem:[%s9684_s6 + $0xee0] sm:$0xff]  ;;  %v701_v1 = vld [vmem:[%s9684_s6 + $0xee8] sm:$0xff] }
 0x10e   : > { %6577 = vmatpush1.bf16.msra.mxu0 %v8525_v53  ;;  %6905 = vmatpush1.bf16.msra.mxu1 %v8527_v20  ;;  %v8581_v53 = vcombine.low %v648_v6, %v652_v7  ;;  %v8583_v20 = vcombine.low %v649_v8, %v653_v9  ;;  %v704_v6 = vld [vmem:[%s9684_s6 + $0xf00] sm:$0xff]  ;;  %v705_v8 = vld [vmem:[%s9684_s6 + $0xf08] sm:$0xff] }
 0x10f   : > { %6578 = vmatprep.subr.bf16.mxu0 %v8534_v23  ;;  %6906 = vmatprep.subr.bf16.mxu1 %v8536_v24  ;;  %v8590_v23 = vcombine.high %v656_v16, %v660_v17  ;;  %v8592_v24 = vcombine.high %v657_v18, %v661_v19  ;;  %v708_v7 = vld [vmem:[%s9684_s6 + $0xf20] sm:$0xff]  ;;  %v709_v9 = vld [vmem:[%s9684_s6 + $0xf28] sm:$0xff] }
 0x112   : > { %6579 = vmatpush1.bf16.msra.mxu0 %v8533_v15  ;;  %6907 = vmatpush1.bf16.msra.mxu1 %v8535_v30  ;;  %v8589_v15 = vcombine.low %v656_v16, %v660_v17  ;;  %v8591_v30 = vcombine.low %v657_v18, %v661_v19  ;;  %v712_v16 = vld [vmem:[%s9684_s6 + $0xf40] sm:$0xff]  ;;  %v713_v18 = vld [vmem:[%s9684_s6 + $0xf48] sm:$0xff] }
 0x113   : > { %6589 = vmatprep.subr.bf16.mxu0 %v8542_v32  ;;  %6917 = vmatprep.subr.bf16.mxu1 %v8544_v33  ;;  %v8598_v32 = vcombine.high %v664_v26, %v668_v27  ;;  %v8600_v33 = vcombine.high %v665_v28, %v669_v29  ;;  %v716_v17 = vld [vmem:[%s9684_s6 + $0xf60] sm:$0xff]  ;;  %v717_v19 = vld [vmem:[%s9684_s6 + $0xf68] sm:$0xff] }
 0x115   : > { %6581 = vmatmul.mubr.bf16.vlgmr.msra.gmra.mrb[0].mxu0 %v9941_v36  ;;  %6909 = vmatmul.mubr.bf16.vlgmr.msra.gmra.mrb[0].mxu1 %v9941_v36 }
 0x116   : > { %6590 = vmatpush1.bf16.msra.mxu0 %v8541_v40  ;;  %6918 = vmatpush1.bf16.msra.mxu1 %v8543_v41  ;;  %v8597_v40 = vcombine.low %v664_v26, %v668_v27  ;;  %v8599_v41 = vcombine.low %v665_v28, %v669_v29  ;;  %v720_v26 = vld [vmem:[%s9684_s6 + $0xf80] sm:$0xff]  ;;  %v721_v28 = vld [vmem:[%s9684_s6 + $0xf88] sm:$0xff] }
 0x117   : > { %6591 = vmatprep.subr.bf16.mxu0 %v8550_v42  ;;  %6919 = vmatprep.subr.bf16.mxu1 %v8552_v43  ;;  %v8606_v42 = vcombine.high %v672_v34, %v676_v35  ;;  %v8608_v43 = vcombine.high %v673_v37, %v677_v38  ;;  %v724_v27 = vld [vmem:[%s9684_s6 + $0xfa0] sm:$0xff]  ;;  %v725_v29 = vld [vmem:[%s9684_s6 + $0xfa8] sm:$0xff] }
 0x118   : > { %6621 = vmatprep.mubr.bf16.mxu0 %v9954_v45  ;;  %6949 = vmatprep.mubr.bf16.mxu1 %v9954_v45 }
 0x11a   : > { %6592 = vmatpush1.bf16.msra.mxu0 %v8549_v48  ;;  %6920 = vmatpush1.bf16.msra.mxu1 %v8551_v49  ;;  %v8605_v48 = vcombine.low %v672_v34, %v676_v35  ;;  %v8607_v49 = vcombine.low %v673_v37, %v677_v38  ;;  %v728_v34 = vld [vmem:[%s9684_s6 + $0xfc0] sm:$0xff]  ;;  %v729_v37 = vld [vmem:[%s9684_s6 + $0xfc8] sm:$0xff] }
 0x11b   : > { %6593 = vmatprep.subr.bf16.mxu0 %v8558_v50  ;;  %6921 = vmatprep.subr.bf16.mxu1 %v8560_v51  ;;  %v8614_v50 = vcombine.high %v680_v25, %v684_v44  ;;  %v8616_v51 = vcombine.high %v681_v46, %v685_v47  ;;  %v732_v35 = vld [vmem:[%s9684_s6 + $0xfe0] sm:$0xff]  ;;  %v733_v38 = vld [vmem:[%s9684_s6 + $0xfe8] sm:$0xff] }
 0x11e   : > { %6594 = vmatpush1.bf16.msra.mxu0 %v8557_v58  ;;  %6922 = vmatpush1.bf16.msra.mxu1 %v8559_v59  ;;  %v8613_v58 = vcombine.low %v680_v25, %v684_v44  ;;  %v8615_v59 = vcombine.low %v681_v46, %v685_v47  ;;  %v736_v25 = vld [vmem:[%s9684_s6 + $0x1000] sm:$0xff]  ;;  %v737_v46 = vld [vmem:[%s9684_s6 + $0x1008] sm:$0xff] }
 0x11f   : > { %6595 = vmatprep.subr.bf16.mxu0 %v8566_v60  ;;  %6923 = vmatprep.subr.bf16.mxu1 %v8568_v61  ;;  %v8622_v60 = vcombine.high %v688_v52, %v692_v54  ;;  %v8624_v61 = vcombine.high %v689_v55, %v693_v56  ;;  %v740_v44 = vld [vmem:[%s9684_s6 + $0x1020] sm:$0xff]  ;;  %v741_v47 = vld [vmem:[%s9684_s6 + $0x1028] sm:$0xff] }
 0x122   : > { %6596 = vmatpush1.bf16.msra.mxu0 %v8565_v2  ;;  %6924 = vmatpush1.bf16.msra.mxu1 %v8567_v3  ;;  %v8621_v2 = vcombine.low %v688_v52, %v692_v54  ;;  %v8623_v3 = vcombine.low %v689_v55, %v693_v56  ;;  %v744_v52 = vld [vmem:[%s9684_s6 + $0x1040] sm:$0xff]  ;;  %v10022_v55 = vcombine.low %v9948_v39, %v9948_v39  ;;  %v745_v56 = vld [vmem:[%s9684_s6 + $0x1048] sm:$0xff] }
 0x123   : > { %6597 = vmatprep.subr.bf16.mxu0 %v8574_v4  ;;  %6925 = vmatprep.subr.bf16.mxu1 %v8576_v5  ;;  %v8630_v4 = vcombine.high %v696_v62, %v700_v63  ;;  %v8632_v5 = vcombine.high %v697_v0, %v701_v1  ;;  %v748_v54 = vld [vmem:[%s9684_s6 + $0x1060] sm:$0xff] }
 0x124   : > { %v752_v39 = vld [vmem:[%s9684_s6 + $0x1080] sm:$0xff] }
 0x126   : > { %6598 = vmatpush1.bf16.msra.mxu0 %v8573_v10  ;;  %6926 = vmatpush1.bf16.msra.mxu1 %v8575_v11  ;;  %v8629_v10 = vcombine.low %v696_v62, %v700_v63  ;;  %v8631_v11 = vcombine.low %v697_v0, %v701_v1  ;;  %v8678_v62 = vcombine.high %v744_v52, %v748_v54  ;;  %v756_v0 = vld [vmem:[%s9684_s6 + $0x10a0] sm:$0xff] }
 0x127   : > { %6599 = vmatprep.subr.bf16.mxu0 %v8582_v13  ;;  %6927 = vmatprep.subr.bf16.mxu1 %v8584_v14  ;;  %v8638_v13 = vcombine.high %v704_v6, %v708_v7  ;;  %v8640_v14 = vcombine.high %v705_v8, %v709_v9 }
 0x12a   : > { %6600 = vmatpush1.bf16.msra.mxu0 %v8581_v53  ;;  %6928 = vmatpush1.bf16.msra.mxu1 %v8583_v20  ;;  %v8637_v53 = vcombine.low %v704_v6, %v708_v7  ;;  %v8639_v20 = vcombine.low %v705_v8, %v709_v9  ;;  %v8686_v6 = vcombine.high %v752_v39, %v756_v0  ;;  %v760_v8 = vld [vmem:[%s9684_s6 + $0x10c0] sm:$0xff] }
 0x12b   : > { %6601 = vmatprep.subr.bf16.mxu0 %v8590_v23  ;;  %6929 = vmatprep.subr.bf16.mxu1 %v8592_v24  ;;  %v8646_v23 = vcombine.high %v712_v16, %v716_v17  ;;  %v8648_v24 = vcombine.high %v713_v18, %v717_v19  ;;  %v764_v9 = vld [vmem:[%s9684_s6 + $0x10e0] sm:$0xff] }
 0x12e   : > { %6602 = vmatpush1.bf16.msra.mxu0 %v8589_v15  ;;  %6930 = vmatpush1.bf16.msra.mxu1 %v8591_v30  ;;  %v8645_v15 = vcombine.low %v712_v16, %v716_v17  ;;  %v8647_v30 = vcombine.low %v713_v18, %v717_v19  ;;  %v8694_v16 = vcombine.high %v760_v8, %v764_v9  ;;  %v768_v18 = vld [vmem:[%s9684_s6 + $0x1100] sm:$0xff] }
 0x12f   : > { %6603 = vmatprep.subr.bf16.mxu0 %v8598_v32  ;;  %6931 = vmatprep.subr.bf16.mxu1 %v8600_v33  ;;  %v8654_v32 = vcombine.high %v720_v26, %v724_v27  ;;  %v8656_v33 = vcombine.high %v721_v28, %v725_v29  ;;  %v772_v19 = vld [vmem:[%s9684_s6 + $0x1120] sm:$0xff] }
 0x132   : > { %6604 = vmatpush1.bf16.msra.mxu0 %v8597_v40  ;;  %6932 = vmatpush1.bf16.msra.mxu1 %v8599_v41  ;;  %v8653_v40 = vcombine.low %v720_v26, %v724_v27  ;;  %v8655_v41 = vcombine.low %v721_v28, %v725_v29  ;;  %v8702_v26 = vcombine.high %v768_v18, %v772_v19  ;;  %v776_v28 = vld [vmem:[%s9684_s6 + $0x1140] sm:$0xff] }
 0x133   : > { %6605 = vmatprep.subr.bf16.mxu0 %v8606_v42  ;;  %6933 = vmatprep.subr.bf16.mxu1 %v8608_v43  ;;  %v8662_v42 = vcombine.high %v728_v34, %v732_v35  ;;  %v8664_v43 = vcombine.high %v729_v37, %v733_v38  ;;  %v780_v29 = vld [vmem:[%s9684_s6 + $0x1160] sm:$0xff] }
 0x136   : > { %6606 = vmatpush1.bf16.msra.mxu0 %v8605_v48  ;;  %6934 = vmatpush1.bf16.msra.mxu1 %v8607_v49  ;;  %v8661_v48 = vcombine.low %v728_v34, %v732_v35  ;;  %v8663_v49 = vcombine.low %v729_v37, %v733_v38  ;;  %v8710_v34 = vcombine.high %v776_v28, %v780_v29  ;;  %v784_v37 = vld [vmem:[%s9684_s6 + $0x1180] sm:$0xff] }
 0x137   : > { %6607 = vmatprep.subr.bf16.mxu0 %v8614_v50  ;;  %6935 = vmatprep.subr.bf16.mxu1 %v8616_v51  ;;  %v8670_v50 = vcombine.high %v736_v25, %v740_v44  ;;  %v8672_v51 = vcombine.high %v737_v46, %v741_v47  ;;  %v788_v38 = vld [vmem:[%s9684_s6 + $0x11a0] sm:$0xff] }
 0x13a   : > { %6608 = vmatpush1.bf16.msra.mxu0 %v8613_v58  ;;  %6936 = vmatpush1.bf16.msra.mxu1 %v8615_v59  ;;  %v749_v58 = vld [vmem:[%s9684_s6 + $0x1068] sm:$0xff]  ;;  %v10029_v59 = vld [vmem:[%s11366_s0 + $0x20] sm:$0xff] }
 0x13b   : > { %6609 = vmatprep.subr.bf16.mxu0 %v8622_v60  ;;  %6937 = vmatprep.subr.bf16.mxu1 %v8624_v61  ;;  %v8669_v60 = vcombine.low %v736_v25, %v740_v44  ;;  %v8671_v61 = vcombine.low %v737_v46, %v741_v47  ;;  %v8680_v63 = vcombine.high %v745_v56, %v749_v58  ;;  %v792_v46 = vld [vmem:[%s9684_s6 + $0x11c0] sm:$0xff] }
 0x13c   : > { %v10035_v1 = vcombine.high %v10029_v59, %v10029_v59  ;;  %v8718_v25 = vcombine.high %v784_v37, %v788_v38  ;;  %v796_v47 = vld [vmem:[%s9684_s6 + $0x11e0] sm:$0xff] }
 0x13e   : > { %6610 = vmatpush1.bf16.msra.mxu0 %v8621_v2  ;;  %6938 = vmatpush1.bf16.msra.mxu1 %v8623_v3  ;;  %v753_v2 = vld [vmem:[%s9684_s6 + $0x1088] sm:$0xff] }
 0x13f   : > { %6611 = vmatprep.subr.bf16.mxu0 %v8630_v4  ;;  %6939 = vmatprep.subr.bf16.mxu1 %v8632_v5  ;;  %v757_v3 = vld [vmem:[%s9684_s6 + $0x10a8] sm:$0xff]  ;;  %v8677_v4 = vcombine.low %v744_v52, %v748_v54  ;;  %v8679_v5 = vcombine.low %v745_v56, %v749_v58  ;;  %v8726_v52 = vcombine.high %v792_v46, %v796_v47  ;;  %v800_v56 = vld [vmem:[%s9684_s6 + $0x1200] sm:$0xff] }
 0x140   : > { %v8688_v7 = vcombine.high %v753_v2, %v757_v3  ;;  %v804_v58 = vld [vmem:[%s9684_s6 + $0x1220] sm:$0xff] }
 0x142   : > { %6612 = vmatpush1.bf16.msra.mxu0 %v8629_v10  ;;  %6940 = vmatpush1.bf16.msra.mxu1 %v8631_v11  ;;  %v761_v10 = vld [vmem:[%s9684_s6 + $0x10c8] sm:$0xff] }
 0x143   : > { %6613 = vmatprep.subr.bf16.mxu0 %v8638_v13  ;;  %6941 = vmatprep.subr.bf16.mxu1 %v8640_v14  ;;  %v765_v11 = vld [vmem:[%s9684_s6 + $0x10e8] sm:$0xff]  ;;  %v8685_v13 = vcombine.low %v752_v39, %v756_v0  ;;  %v8687_v14 = vcombine.low %v753_v2, %v757_v3  ;;  %v8734_v39 = vcombine.high %v800_v56, %v804_v58  ;;  %v808_v2 = vld [vmem:[%s9684_s6 + $0x1240] sm:$0xff] }
 0x144   : > { %v8696_v17 = vcombine.high %v761_v10, %v765_v11  ;;  %v812_v3 = vld [vmem:[%s9684_s6 + $0x1260] sm:$0xff] }
 0x146   : > { %6614 = vmatpush1.bf16.msra.mxu0 %v8637_v53  ;;  %6942 = vmatpush1.bf16.msra.mxu1 %v8639_v20  ;;  %v769_v53 = vld [vmem:[%s9684_s6 + $0x1108] sm:$0xff] }
 0x147   : > { %6615 = vmatprep.subr.bf16.mxu0 %v8646_v23  ;;  %6943 = vmatprep.subr.bf16.mxu1 %v8648_v24  ;;  %v773_v20 = vld [vmem:[%s9684_s6 + $0x1128] sm:$0xff]  ;;  %v8693_v23 = vcombine.low %v760_v8, %v764_v9  ;;  %v8695_v24 = vcombine.low %v761_v10, %v765_v11  ;;  %v8742_v8 = vcombine.high %v808_v2, %v812_v3  ;;  %v816_v10 = vld [vmem:[%s9684_s6 + $0x1280] sm:$0xff] }
 0x148   : > { %v8704_v27 = vcombine.high %v769_v53, %v773_v20  ;;  %v820_v11 = vld [vmem:[%s9684_s6 + $0x12a0] sm:$0xff] }
 0x14a   : > { %6616 = vmatpush1.bf16.msra.mxu0 %v8645_v15  ;;  %6944 = vmatpush1.bf16.msra.mxu1 %v8647_v30  ;;  %v777_v15 = vld [vmem:[%s9684_s6 + $0x1148] sm:$0xff] }
 0x14b   : > { %6617 = vmatprep.subr.bf16.mxu0 %v8654_v32  ;;  %6945 = vmatprep.subr.bf16.mxu1 %v8656_v33  ;;  %v781_v30 = vld [vmem:[%s9684_s6 + $0x1168] sm:$0xff]  ;;  %v8701_v32 = vcombine.low %v768_v18, %v772_v19  ;;  %v8703_v33 = vcombine.low %v769_v53, %v773_v20  ;;  %v8750_v18 = vcombine.high %v816_v10, %v820_v11  ;;  %v824_v53 = vld [vmem:[%s9684_s6 + $0x12c0] sm:$0xff] }
 0x14c   : > { %v8712_v35 = vcombine.high %v777_v15, %v781_v30  ;;  %v828_v20 = vld [vmem:[%s9684_s6 + $0x12e0] sm:$0xff] }
 0x14e   : > { %6618 = vmatpush1.bf16.msra.mxu0 %v8653_v40  ;;  %6946 = vmatpush1.bf16.msra.mxu1 %v8655_v41  ;;  %v785_v40 = vld [vmem:[%s9684_s6 + $0x1188] sm:$0xff] }
 0x14f   : > { %6619 = vmatprep.subr.bf16.mxu0 %v8662_v42  ;;  %6947 = vmatprep.subr.bf16.mxu1 %v8664_v43  ;;  %v789_v41 = vld [vmem:[%s9684_s6 + $0x11a8] sm:$0xff]  ;;  %v8709_v42 = vcombine.low %v776_v28, %v780_v29  ;;  %v8711_v43 = vcombine.low %v777_v15, %v781_v30  ;;  %v8758_v28 = vcombine.high %v824_v53, %v828_v20  ;;  %v832_v15 = vld [vmem:[%s9684_s6 + $0x1300] sm:$0xff] }
 0x150   : > { %v8720_v44 = vcombine.high %v785_v40, %v789_v41  ;;  %v836_v30 = vld [vmem:[%s9684_s6 + $0x1320] sm:$0xff] }
 0x152   : > { %6620 = vmatpush1.bf16.msra.mxu0 %v8661_v48  ;;  %6948 = vmatpush1.bf16.msra.mxu1 %v8663_v49  ;;  %v793_v48 = vld [vmem:[%s9684_s6 + $0x11c8] sm:$0xff] }
 0x153   : > { %6630 = vmatprep.subr.bf16.mxu0 %v8670_v50  ;;  %6958 = vmatprep.subr.bf16.mxu1 %v8672_v51  ;;  %v797_v49 = vld [vmem:[%s9684_s6 + $0x11e8] sm:$0xff]  ;;  %v8717_v50 = vcombine.low %v784_v37, %v788_v38  ;;  %v8719_v51 = vcombine.low %v785_v40, %v789_v41  ;;  %v8766_v37 = vcombine.high %v832_v15, %v836_v30  ;;  %v840_v40 = vld [vmem:[%s9684_s6 + $0x1340] sm:$0xff] }
 0x154   : > { %v8728_v54 = vcombine.high %v793_v48, %v797_v49  ;;  %v844_v41 = vld [vmem:[%s9684_s6 + $0x1360] sm:$0xff] }
 0x155   : > { %6622 = vmatmul.mubr.bf16.vlgmr.msra.gmra.mrb[0].mxu0 %v10022_v55  ;;  %6950 = vmatmul.mubr.bf16.vlgmr.msra.gmra.mrb[0].mxu1 %v10022_v55 }
 0x156   : > { %6631 = vmatpush1.bf16.msra.mxu0 %v8669_v60  ;;  %6959 = vmatpush1.bf16.msra.mxu1 %v8671_v61  ;;  %v801_v60 = vld [vmem:[%s9684_s6 + $0x1208] sm:$0xff] }
 0x157   : > { %6632 = vmatprep.subr.bf16.mxu0 %v8678_v62  ;;  %6960 = vmatprep.subr.bf16.mxu1 %v8680_v63  ;;  %v805_v61 = vld [vmem:[%s9684_s6 + $0x1228] sm:$0xff]  ;;  %v8725_v62 = vcombine.low %v792_v46, %v796_v47  ;;  %v8727_v63 = vcombine.low %v793_v48, %v797_v49  ;;  %v8774_v46 = vcombine.high %v840_v40, %v844_v41  ;;  %v848_v48 = vld [vmem:[%s9684_s6 + $0x1380] sm:$0xff] }
 0x158   : > { %6662 = vmatprep.mubr.bf16.mxu0 %v10035_v1  ;;  %6990 = vmatprep.mubr.bf16.mxu1 %v10035_v1  ;;  %v8736_v0 = vcombine.high %v801_v60, %v805_v61  ;;  %v852_v49 = vld [vmem:[%s9684_s6 + $0x13a0] sm:$0xff] }
 0x15a   : > { %6633 = vmatpush1.bf16.msra.mxu0 %v8677_v4  ;;  %6961 = vmatpush1.bf16.msra.mxu1 %v8679_v5  ;;  %v809_v4 = vld [vmem:[%s9684_s6 + $0x1248] sm:$0xff] }
 0x15b   : > { %6634 = vmatprep.subr.bf16.mxu0 %v8686_v6  ;;  %6962 = vmatprep.subr.bf16.mxu1 %v8688_v7  ;;  %v813_v5 = vld [vmem:[%s9684_s6 + $0x1268] sm:$0xff]  ;;  %v8733_v6 = vcombine.low %v800_v56, %v804_v58  ;;  %v8735_v7 = vcombine.low %v801_v60, %v805_v61  ;;  %v8782_v56 = vcombine.high %v848_v48, %v852_v49  ;;  %v856_v60 = vld [vmem:[%s9684_s6 + $0x13c0] sm:$0xff] }
 0x15c   : > { %v8744_v9 = vcombine.high %v809_v4, %v813_v5  ;;  %v860_v61 = vld [vmem:[%s9684_s6 + $0x13e0] sm:$0xff] }
 0x15e   : > { %6635 = vmatpush1.bf16.msra.mxu0 %v8685_v13  ;;  %6963 = vmatpush1.bf16.msra.mxu1 %v8687_v14  ;;  %v817_v13 = vld [vmem:[%s9684_s6 + $0x1288] sm:$0xff] }
 0x15f   : > { %6636 = vmatprep.subr.bf16.mxu0 %v8694_v16  ;;  %6964 = vmatprep.subr.bf16.mxu1 %v8696_v17  ;;  %v821_v14 = vld [vmem:[%s9684_s6 + $0x12a8] sm:$0xff]  ;;  %v8741_v16 = vcombine.low %v808_v2, %v812_v3  ;;  %v8743_v17 = vcombine.low %v809_v4, %v813_v5  ;;  %v8790_v2 = vcombine.high %v856_v60, %v860_v61  ;;  %v864_v4 = vld [vmem:[%s9684_s6 + $0x1400] sm:$0xff] }
 0x160   : > { %v8752_v19 = vcombine.high %v817_v13, %v821_v14  ;;  %v868_v5 = vld [vmem:[%s9684_s6 + $0x1420] sm:$0xff] }
 0x162   : > { %6637 = vmatpush1.bf16.msra.mxu0 %v8693_v23  ;;  %6965 = vmatpush1.bf16.msra.mxu1 %v8695_v24  ;;  %v825_v23 = vld [vmem:[%s9684_s6 + $0x12c8] sm:$0xff] }
 0x163   : > { %6638 = vmatprep.subr.bf16.mxu0 %v8702_v26  ;;  %6966 = vmatprep.subr.bf16.mxu1 %v8704_v27  ;;  %v829_v24 = vld [vmem:[%s9684_s6 + $0x12e8] sm:$0xff]  ;;  %v8749_v26 = vcombine.low %v816_v10, %v820_v11  ;;  %v8751_v27 = vcombine.low %v817_v13, %v821_v14  ;;  %v8798_v10 = vcombine.high %v864_v4, %v868_v5  ;;  %v872_v13 = vld [vmem:[%s9684_s6 + $0x1440] sm:$0xff] }
 0x164   : > { %v8760_v29 = vcombine.high %v825_v23, %v829_v24  ;;  %v876_v14 = vld [vmem:[%s9684_s6 + $0x1460] sm:$0xff] }
 0x166   : > { %6639 = vmatpush1.bf16.msra.mxu0 %v8701_v32  ;;  %6967 = vmatpush1.bf16.msra.mxu1 %v8703_v33  ;;  %v833_v32 = vld [vmem:[%s9684_s6 + $0x1308] sm:$0xff] }
 0x167   : > { %6640 = vmatprep.subr.bf16.mxu0 %v8710_v34  ;;  %6968 = vmatprep.subr.bf16.mxu1 %v8712_v35  ;;  %v837_v33 = vld [vmem:[%s9684_s6 + $0x1328] sm:$0xff]  ;;  %v8757_v34 = vcombine.low %v824_v53, %v828_v20  ;;  %v8759_v35 = vcombine.low %v825_v23, %v829_v24  ;;  %v8797_v53 = vcombine.low %v864_v4, %v868_v5 }
 0x168   : > { %v8768_v38 = vcombine.high %v833_v32, %v837_v33  ;;  %v8806_v23 = vcombine.high %v872_v13, %v876_v14 }
 0x16a   : > { %6641 = vmatpush1.bf16.msra.mxu0 %v8709_v42  ;;  %6969 = vmatpush1.bf16.msra.mxu1 %v8711_v43  ;;  %v841_v42 = vld [vmem:[%s9684_s6 + $0x1348] sm:$0xff] }
 0x16b   : > { %6642 = vmatprep.subr.bf16.mxu0 %v8718_v25  ;;  %6970 = vmatprep.subr.bf16.mxu1 %v8720_v44  ;;  %v845_v43 = vld [vmem:[%s9684_s6 + $0x1368] sm:$0xff]  ;;  %v8765_v25 = vcombine.low %v832_v15, %v836_v30  ;;  %v8767_v44 = vcombine.low %v833_v32, %v837_v33  ;;  %v8805_v15 = vcombine.low %v872_v13, %v876_v14 }
 0x16c   : > { %v8776_v47 = vcombine.high %v841_v42, %v845_v43 }
 0x16e   : > { %6643 = vmatpush1.bf16.msra.mxu0 %v8717_v50  ;;  %6971 = vmatpush1.bf16.msra.mxu1 %v8719_v51  ;;  %v849_v50 = vld [vmem:[%s9684_s6 + $0x1388] sm:$0xff] }
 0x16f   : > { %6644 = vmatprep.subr.bf16.mxu0 %v8726_v52  ;;  %6972 = vmatprep.subr.bf16.mxu1 %v8728_v54  ;;  %v853_v51 = vld [vmem:[%s9684_s6 + $0x13a8] sm:$0xff]  ;;  %v8773_v52 = vcombine.low %v840_v40, %v844_v41  ;;  %v8775_v54 = vcombine.low %v841_v42, %v845_v43 }
 0x170   : > { %v8784_v58 = vcombine.high %v849_v50, %v853_v51 }
 0x172   : > { %6645 = vmatpush1.bf16.msra.mxu0 %v8725_v62  ;;  %6973 = vmatpush1.bf16.msra.mxu1 %v8727_v63  ;;  %v857_v62 = vld [vmem:[%s9684_s6 + $0x13c8] sm:$0xff] }
 0x173   : > { %6646 = vmatprep.subr.bf16.mxu0 %v8734_v39  ;;  %6974 = vmatprep.subr.bf16.mxu1 %v8736_v0  ;;  %v861_v63 = vld [vmem:[%s9684_s6 + $0x13e8] sm:$0xff]  ;;  %v8781_v39 = vcombine.low %v848_v48, %v852_v49  ;;  %v8783_v0 = vcombine.low %v849_v50, %v853_v51 }
 0x174   : > { %v8792_v3 = vcombine.high %v857_v62, %v861_v63 }
 0x176   : > { %6647 = vmatpush1.bf16.msra.mxu0 %v8733_v6  ;;  %6975 = vmatpush1.bf16.msra.mxu1 %v8735_v7  ;;  %v865_v6 = vld [vmem:[%s9684_s6 + $0x1408] sm:$0xff] }
 0x177   : > { %6648 = vmatprep.subr.bf16.mxu0 %v8742_v8  ;;  %6976 = vmatprep.subr.bf16.mxu1 %v8744_v9  ;;  %v869_v7 = vld [vmem:[%s9684_s6 + $0x1428] sm:$0xff]  ;;  %v8789_v8 = vcombine.low %v856_v60, %v860_v61  ;;  %v8791_v9 = vcombine.low %v857_v62, %v861_v63 }
 0x178   : > { %v8800_v11 = vcombine.high %v865_v6, %v869_v7  ;;  %v8799_v20 = vcombine.low %v865_v6, %v869_v7 }
 0x17a   : > { %6649 = vmatpush1.bf16.msra.mxu0 %v8741_v16  ;;  %6977 = vmatpush1.bf16.msra.mxu1 %v8743_v17  ;;  %v10103_v16 = vcombine.low %v10029_v59, %v10029_v59  ;;  %v873_v17 = vld [vmem:[%s9684_s6 + $0x1448] sm:$0xff]  ;;  %v880_v59 = vld [vmem:[%s9684_s6 + $0x1480] sm:$0xff] }
 0x17b   : > { %6650 = vmatprep.subr.bf16.mxu0 %v8750_v18  ;;  %6978 = vmatprep.subr.bf16.mxu1 %v8752_v19  ;;  %v877_v18 = vld [vmem:[%s9684_s6 + $0x1468] sm:$0xff] }
 0x17c   : > { %v10110_v19 = vld [vmem:[%s11366_s0 + $0x28] sm:$0xff]  ;;  %v8808_v24 = vcombine.high %v873_v17, %v877_v18  ;;  %v8807_v30 = vcombine.low %v873_v17, %v877_v18 }
 0x17e   : > { %6651 = vmatpush1.bf16.msra.mxu0 %v8749_v26  ;;  %6979 = vmatpush1.bf16.msra.mxu1 %v8751_v27  ;;  %v884_v26 = vld [vmem:[%s9684_s6 + $0x14a0] sm:$0xff]  ;;  %v10116_v27 = vcombine.high %v10110_v19, %v10110_v19 }
 0x17f   : > { %6652 = vmatprep.subr.bf16.mxu0 %v8758_v28  ;;  %6980 = vmatprep.subr.bf16.mxu1 %v8760_v29  ;;  %v881_v28 = vld [vmem:[%s9684_s6 + $0x1488] sm:$0xff]  ;;  %v8814_v32 = vcombine.high %v880_v59, %v884_v26  ;;  %v8813_v40 = vcombine.low %v880_v59, %v884_v26 }
 0x180   : > { %v885_v29 = vld [vmem:[%s9684_s6 + $0x14a8] sm:$0xff] }
 0x181   : > { %v8816_v33 = vcombine.high %v881_v28, %v885_v29  ;;  %v8815_v41 = vcombine.low %v881_v28, %v885_v29 }
 0x182   : > { %6653 = vmatpush1.bf16.msra.mxu0 %v8757_v34  ;;  %6981 = vmatpush1.bf16.msra.mxu1 %v8759_v35  ;;  %v888_v34 = vld [vmem:[%s9684_s6 + $0x14c0] sm:$0xff] }
 0x183   : > { %6654 = vmatprep.subr.bf16.mxu0 %v8766_v37  ;;  %6982 = vmatprep.subr.bf16.mxu1 %v8768_v38  ;;  %v892_v35 = vld [vmem:[%s9684_s6 + $0x14e0] sm:$0xff]  ;;  %v889_v37 = vld [vmem:[%s9684_s6 + $0x14c8] sm:$0xff] }
 0x184   : > { %v893_v38 = vld [vmem:[%s9684_s6 + $0x14e8] sm:$0xff]  ;;  %v8822_v42 = vcombine.high %v888_v34, %v892_v35  ;;  %v8821_v48 = vcombine.low %v888_v34, %v892_v35 }
 0x185   : > { %v8824_v43 = vcombine.high %v889_v37, %v893_v38  ;;  %v8823_v49 = vcombine.low %v889_v37, %v893_v38 }
 0x186   : > { %6655 = vmatpush1.bf16.msra.mxu0 %v8765_v25  ;;  %6983 = vmatpush1.bf16.msra.mxu1 %v8767_v44  ;;  %v896_v25 = vld [vmem:[%s9684_s6 + $0x1500] sm:$0xff] }
 0x187   : > { %6656 = vmatprep.subr.bf16.mxu0 %v8774_v46  ;;  %6984 = vmatprep.subr.bf16.mxu1 %v8776_v47  ;;  %v900_v44 = vld [vmem:[%s9684_s6 + $0x1520] sm:$0xff]  ;;  %v897_v46 = vld [vmem:[%s9684_s6 + $0x1508] sm:$0xff] }
 0x188   : > { %v901_v47 = vld [vmem:[%s9684_s6 + $0x1528] sm:$0xff]  ;;  %v8830_v50 = vcombine.high %v896_v25, %v900_v44  ;;  %v8829_v60 = vcombine.low %v896_v25, %v900_v44 }
 0x189   : > { %v8832_v51 = vcombine.high %v897_v46, %v901_v47  ;;  %v8831_v61 = vcombine.low %v897_v46, %v901_v47 }
 0x18a   : > { %6657 = vmatpush1.bf16.msra.mxu0 %v8773_v52  ;;  %6985 = vmatpush1.bf16.msra.mxu1 %v8775_v54  ;;  %v904_v52 = vld [vmem:[%s9684_s6 + $0x1540] sm:$0xff] }
 0x18b   : > { %6658 = vmatprep.subr.bf16.mxu0 %v8782_v56  ;;  %6986 = vmatprep.subr.bf16.mxu1 %v8784_v58  ;;  %v908_v54 = vld [vmem:[%s9684_s6 + $0x1560] sm:$0xff]  ;;  %v905_v56 = vld [vmem:[%s9684_s6 + $0x1548] sm:$0xff] }
 0x18c   : > { %v909_v58 = vld [vmem:[%s9684_s6 + $0x1568] sm:$0xff]  ;;  %v8838_v62 = vcombine.high %v904_v52, %v908_v54  ;;  %v8837_v4 = vcombine.low %v904_v52, %v908_v54 }
 0x18d   : > { %v8840_v63 = vcombine.high %v905_v56, %v909_v58  ;;  %v8839_v5 = vcombine.low %v905_v56, %v909_v58 }
 0x18e   : > { %6659 = vmatpush1.bf16.msra.mxu0 %v8781_v39  ;;  %6987 = vmatpush1.bf16.msra.mxu1 %v8783_v0  ;;  %v912_v39 = vld [vmem:[%s9684_s6 + $0x1580] sm:$0xff] }
 0x18f   : > { %6660 = vmatprep.subr.bf16.mxu0 %v8790_v2  ;;  %6988 = vmatprep.subr.bf16.mxu1 %v8792_v3  ;;  %v916_v0 = vld [vmem:[%s9684_s6 + $0x15a0] sm:$0xff]  ;;  %v913_v2 = vld [vmem:[%s9684_s6 + $0x1588] sm:$0xff] }
 0x190   : > { %v917_v3 = vld [vmem:[%s9684_s6 + $0x15a8] sm:$0xff]  ;;  %v8846_v6 = vcombine.high %v912_v39, %v916_v0  ;;  %v8845_v13 = vcombine.low %v912_v39, %v916_v0 }
 0x191   : > { %v8848_v7 = vcombine.high %v913_v2, %v917_v3  ;;  %v8847_v14 = vcombine.low %v913_v2, %v917_v3 }
 0x192   : > { %6661 = vmatpush1.bf16.msra.mxu0 %v8789_v8  ;;  %6989 = vmatpush1.bf16.msra.mxu1 %v8791_v9  ;;  %v920_v8 = vld [vmem:[%s9684_s6 + $0x15c0] sm:$0xff] }
 0x193   : > { %6671 = vmatprep.subr.bf16.mxu0 %v8798_v10  ;;  %6999 = vmatprep.subr.bf16.mxu1 %v8800_v11  ;;  %v924_v9 = vld [vmem:[%s9684_s6 + $0x15e0] sm:$0xff]  ;;  %v921_v10 = vld [vmem:[%s9684_s6 + $0x15c8] sm:$0xff] }
 0x194   : > { %v925_v11 = vld [vmem:[%s9684_s6 + $0x15e8] sm:$0xff]  ;;  %v8854_v17 = vcombine.high %v920_v8, %v924_v9  ;;  %v8853_v59 = vcombine.low %v920_v8, %v924_v9 }
 0x195   : > { %6663 = vmatmul.mubr.bf16.vlgmr.msra.gmra.mrb[0].mxu0 %v10103_v16  ;;  %6991 = vmatmul.mubr.bf16.vlgmr.msra.gmra.mrb[0].mxu1 %v10103_v16  ;;  %v8856_v18 = vcombine.high %v921_v10, %v925_v11  ;;  %v8855_v26 = vcombine.low %v921_v10, %v925_v11 }
 0x196   : > { %6672 = vmatpush1.bf16.msra.mxu0 %v8797_v53  ;;  %7000 = vmatpush1.bf16.msra.mxu1 %v8799_v20  ;;  %v928_v53 = vld [vmem:[%s9684_s6 + $0x1600] sm:$0xff] }
 0x197   : > { %6673 = vmatprep.subr.bf16.mxu0 %v8806_v23  ;;  %7001 = vmatprep.subr.bf16.mxu1 %v8808_v24  ;;  %v932_v20 = vld [vmem:[%s9684_s6 + $0x1620] sm:$0xff]  ;;  %v929_v23 = vld [vmem:[%s9684_s6 + $0x1608] sm:$0xff] }
 0x198   : > { %6703 = vmatprep.mubr.bf16.mxu0 %v10116_v27  ;;  %7031 = vmatprep.mubr.bf16.mxu1 %v10116_v27  ;;  %v933_v24 = vld [vmem:[%s9684_s6 + $0x1628] sm:$0xff]  ;;  %v8862_v28 = vcombine.high %v928_v53, %v932_v20  ;;  %v8861_v34 = vcombine.low %v928_v53, %v932_v20 }
 0x199   : > { %v8864_v29 = vcombine.high %v929_v23, %v933_v24  ;;  %v8863_v35 = vcombine.low %v929_v23, %v933_v24 }
 0x19a   : > { %6674 = vmatpush1.bf16.msra.mxu0 %v8805_v15  ;;  %7002 = vmatpush1.bf16.msra.mxu1 %v8807_v30  ;;  %v936_v15 = vld [vmem:[%s9684_s6 + $0x1640] sm:$0xff] }
 0x19b   : > { %6675 = vmatprep.subr.bf16.mxu0 %v8814_v32  ;;  %7003 = vmatprep.subr.bf16.mxu1 %v8816_v33  ;;  %v940_v30 = vld [vmem:[%s9684_s6 + $0x1660] sm:$0xff]  ;;  %v937_v32 = vld [vmem:[%s9684_s6 + $0x1648] sm:$0xff] }
 0x19c   : > { %v941_v33 = vld [vmem:[%s9684_s6 + $0x1668] sm:$0xff]  ;;  %v8870_v37 = vcombine.high %v936_v15, %v940_v30  ;;  %v8869_v25 = vcombine.low %v936_v15, %v940_v30 }
 0x19d   : > { %v8872_v38 = vcombine.high %v937_v32, %v941_v33  ;;  %v8871_v44 = vcombine.low %v937_v32, %v941_v33 }
 0x19e   : > { %6676 = vmatpush1.bf16.msra.mxu0 %v8813_v40  ;;  %7004 = vmatpush1.bf16.msra.mxu1 %v8815_v41  ;;  %v944_v40 = vld [vmem:[%s9684_s6 + $0x1680] sm:$0xff] }
 0x19f   : > { %6677 = vmatprep.subr.bf16.mxu0 %v8822_v42  ;;  %7005 = vmatprep.subr.bf16.mxu1 %v8824_v43  ;;  %v948_v41 = vld [vmem:[%s9684_s6 + $0x16a0] sm:$0xff]  ;;  %v945_v42 = vld [vmem:[%s9684_s6 + $0x1688] sm:$0xff] }
 0x1a0   : > { %v949_v43 = vld [vmem:[%s9684_s6 + $0x16a8] sm:$0xff]  ;;  %v8878_v46 = vcombine.high %v944_v40, %v948_v41  ;;  %v8877_v52 = vcombine.low %v944_v40, %v948_v41 }
 0x1a1   : > { %v8880_v47 = vcombine.high %v945_v42, %v949_v43  ;;  %v8879_v54 = vcombine.low %v945_v42, %v949_v43 }
 0x1a2   : > { %6678 = vmatpush1.bf16.msra.mxu0 %v8821_v48  ;;  %7006 = vmatpush1.bf16.msra.mxu1 %v8823_v49  ;;  %v952_v48 = vld [vmem:[%s9684_s6 + $0x16c0] sm:$0xff] }
 0x1a3   : > { %6679 = vmatprep.subr.bf16.mxu0 %v8830_v50  ;;  %7007 = vmatprep.subr.bf16.mxu1 %v8832_v51  ;;  %v956_v49 = vld [vmem:[%s9684_s6 + $0x16e0] sm:$0xff]  ;;  %v953_v50 = vld [vmem:[%s9684_s6 + $0x16c8] sm:$0xff] }
 0x1a4   : > { %v957_v51 = vld [vmem:[%s9684_s6 + $0x16e8] sm:$0xff]  ;;  %v8886_v56 = vcombine.high %v952_v48, %v956_v49  ;;  %v8885_v39 = vcombine.low %v952_v48, %v956_v49  ;;  %v10191_v49 = vld [vmem:[%s11366_s0 + $0x30] sm:$0xff] }
 0x1a5   : > { %v8888_v58 = vcombine.high %v953_v50, %v957_v51  ;;  %v8887_v0 = vcombine.low %v953_v50, %v957_v51  ;;  %v1005_v48 = vld [vmem:[%s9684_s6 + $0x1868] sm:$0xff] }
 0x1a6   : > { %6680 = vmatpush1.bf16.msra.mxu0 %v8829_v60  ;;  %7008 = vmatpush1.bf16.msra.mxu1 %v8831_v61  ;;  %v960_v60 = vld [vmem:[%s9684_s6 + $0x1700] sm:$0xff] }
 0x1a7   : > { %6681 = vmatprep.subr.bf16.mxu0 %v8838_v62  ;;  %7009 = vmatprep.subr.bf16.mxu1 %v8840_v63  ;;  %v964_v61 = vld [vmem:[%s9684_s6 + $0x1720] sm:$0xff]  ;;  %v961_v62 = vld [vmem:[%s9684_s6 + $0x1708] sm:$0xff] }
 0x1a8   : > { %v965_v63 = vld [vmem:[%s9684_s6 + $0x1728] sm:$0xff]  ;;  %v8894_v2 = vcombine.high %v960_v60, %v964_v61  ;;  %v8893_v8 = vcombine.low %v960_v60, %v964_v61 }
 0x1a9   : > { %v8896_v3 = vcombine.high %v961_v62, %v965_v63  ;;  %v8895_v9 = vcombine.low %v961_v62, %v965_v63  ;;  %v1009_v60 = vld [vmem:[%s9684_s6 + $0x1888] sm:$0xff] }
 0x1aa   : > { %6682 = vmatpush1.bf16.msra.mxu0 %v8837_v4  ;;  %7010 = vmatpush1.bf16.msra.mxu1 %v8839_v5  ;;  %v968_v4 = vld [vmem:[%s9684_s6 + $0x1740] sm:$0xff]  ;;  %v1013_v61 = vld [vmem:[%s9684_s6 + $0x18a8] sm:$0xff] }
 0x1ab   : > { %6683 = vmatprep.subr.bf16.mxu0 %v8846_v6  ;;  %7011 = vmatprep.subr.bf16.mxu1 %v8848_v7  ;;  %v972_v5 = vld [vmem:[%s9684_s6 + $0x1760] sm:$0xff]  ;;  %v969_v6 = vld [vmem:[%s9684_s6 + $0x1748] sm:$0xff] }
 0x1ac   : > { %v973_v7 = vld [vmem:[%s9684_s6 + $0x1768] sm:$0xff]  ;;  %v8902_v10 = vcombine.high %v968_v4, %v972_v5  ;;  %v8901_v53 = vcombine.low %v968_v4, %v972_v5 }
 0x1ad   : > { %v8904_v11 = vcombine.high %v969_v6, %v973_v7  ;;  %v8903_v20 = vcombine.low %v969_v6, %v973_v7  ;;  %v1017_v4 = vld [vmem:[%s9684_s6 + $0x18c8] sm:$0xff]  ;;  %v8943_v7 = vcombine.low %v1009_v60, %v1013_v61 }
 0x1ae   : > { %6684 = vmatpush1.bf16.msra.mxu0 %v8845_v13  ;;  %7012 = vmatpush1.bf16.msra.mxu1 %v8847_v14  ;;  %v976_v13 = vld [vmem:[%s9684_s6 + $0x1780] sm:$0xff]  ;;  %v1021_v5 = vld [vmem:[%s9684_s6 + $0x18e8] sm:$0xff] }
 0x1af   : > { %6685 = vmatprep.subr.bf16.mxu0 %v8854_v17  ;;  %7013 = vmatprep.subr.bf16.mxu1 %v8856_v18  ;;  %v980_v14 = vld [vmem:[%s9684_s6 + $0x17a0] sm:$0xff]  ;;  %v977_v17 = vld [vmem:[%s9684_s6 + $0x1788] sm:$0xff] }
 0x1b0   : > { %v981_v18 = vld [vmem:[%s9684_s6 + $0x17a8] sm:$0xff]  ;;  %v8910_v23 = vcombine.high %v976_v13, %v980_v14  ;;  %v8909_v15 = vcombine.low %v976_v13, %v980_v14 }
 0x1b1   : > { %v8912_v24 = vcombine.high %v977_v17, %v981_v18  ;;  %v8911_v30 = vcombine.low %v977_v17, %v981_v18  ;;  %v1025_v13 = vld [vmem:[%s9684_s6 + $0x1908] sm:$0xff]  ;;  %v8951_v18 = vcombine.low %v1017_v4, %v1021_v5 }
 0x1b2   : > { %6686 = vmatpush1.bf16.msra.mxu0 %v8853_v59  ;;  %7014 = vmatpush1.bf16.msra.mxu1 %v8855_v26  ;;  %v984_v59 = vld [vmem:[%s9684_s6 + $0x17c0] sm:$0xff]  ;;  %v1029_v14 = vld [vmem:[%s9684_s6 + $0x1928] sm:$0xff] }
 0x1b3   : > { %6687 = vmatprep.subr.bf16.mxu0 %v8862_v28  ;;  %7015 = vmatprep.subr.bf16.mxu1 %v8864_v29  ;;  %v988_v26 = vld [vmem:[%s9684_s6 + $0x17e0] sm:$0xff]  ;;  %v985_v28 = vld [vmem:[%s9684_s6 + $0x17c8] sm:$0xff] }
 0x1b4   : > { %v989_v29 = vld [vmem:[%s9684_s6 + $0x17e8] sm:$0xff]  ;;  %v8918_v32 = vcombine.high %v984_v59, %v988_v26  ;;  %v8917_v40 = vcombine.low %v984_v59, %v988_v26 }
 0x1b5   : > { %v8920_v33 = vcombine.high %v985_v28, %v989_v29  ;;  %v8919_v41 = vcombine.low %v985_v28, %v989_v29  ;;  %v1033_v59 = vld [vmem:[%s9684_s6 + $0x1948] sm:$0xff]  ;;  %v8959_v29 = vcombine.low %v1025_v13, %v1029_v14 }
 0x1b6   : > { %6688 = vmatpush1.bf16.msra.mxu0 %v8861_v34  ;;  %7016 = vmatpush1.bf16.msra.mxu1 %v8863_v35  ;;  %v992_v34 = vld [vmem:[%s9684_s6 + $0x1800] sm:$0xff]  ;;  %v1037_v26 = vld [vmem:[%s9684_s6 + $0x1968] sm:$0xff] }
 0x1b7   : > { %6689 = vmatprep.subr.bf16.mxu0 %v8870_v37  ;;  %7017 = vmatprep.subr.bf16.mxu1 %v8872_v38  ;;  %v996_v35 = vld [vmem:[%s9684_s6 + $0x1820] sm:$0xff]  ;;  %v993_v37 = vld [vmem:[%s9684_s6 + $0x1808] sm:$0xff] }
 0x1b8   : > { %v997_v38 = vld [vmem:[%s9684_s6 + $0x1828] sm:$0xff]  ;;  %v8926_v42 = vcombine.high %v992_v34, %v996_v35  ;;  %v8925_v50 = vcombine.low %v992_v34, %v996_v35 }
 0x1b9   : > { %v8928_v43 = vcombine.high %v993_v37, %v997_v38  ;;  %v8927_v51 = vcombine.low %v993_v37, %v997_v38  ;;  %v1041_v34 = vld [vmem:[%s9684_s6 + $0x1988] sm:$0xff]  ;;  %v8967_v38 = vcombine.low %v1033_v59, %v1037_v26 }
 0x1ba   : > { %6690 = vmatpush1.bf16.msra.mxu0 %v8869_v25  ;;  %7018 = vmatpush1.bf16.msra.mxu1 %v8871_v44  ;;  %v1000_v25 = vld [vmem:[%s9684_s6 + $0x1840] sm:$0xff]  ;;  %v1045_v35 = vld [vmem:[%s9684_s6 + $0x19a8] sm:$0xff] }
 0x1bb   : > { %6691 = vmatprep.subr.bf16.mxu0 %v8878_v46  ;;  %7019 = vmatprep.subr.bf16.mxu1 %v8880_v47  ;;  %v1004_v44 = vld [vmem:[%s9684_s6 + $0x1860] sm:$0xff]  ;;  %v10184_v46 = vcombine.low %v10110_v19, %v10110_v19  ;;  %v1001_v47 = vld [vmem:[%s9684_s6 + $0x1848] sm:$0xff] }
 0x1bc   : > { %v1008_v19 = vld [vmem:[%s9684_s6 + $0x1880] sm:$0xff]  ;;  %v8933_v62 = vcombine.low %v1000_v25, %v1004_v44  ;;  %v8935_v63 = vcombine.low %v1001_v47, %v1005_v48 }
 0x1be   : > { %6692 = vmatpush1.bf16.msra.mxu0 %v8877_v52  ;;  %7020 = vmatpush1.bf16.msra.mxu1 %v8879_v54  ;;  %v8934_v52 = vcombine.high %v1000_v25, %v1004_v44  ;;  %v8936_v54 = vcombine.high %v1001_v47, %v1005_v48  ;;  %v1049_v25 = vld [vmem:[%s9684_s6 + $0x19c8] sm:$0xff]  ;;  %v8975_v48 = vcombine.low %v1041_v34, %v1045_v35 }
 0x1bf   : > { %6693 = vmatprep.subr.bf16.mxu0 %v8886_v56  ;;  %7021 = vmatprep.subr.bf16.mxu1 %v8888_v58  ;;  %v1012_v56 = vld [vmem:[%s9684_s6 + $0x18a0] sm:$0xff]  ;;  %v10197_v58 = vcombine.high %v10191_v49, %v10191_v49  ;;  %v1053_v44 = vld [vmem:[%s9684_s6 + $0x19e8] sm:$0xff] }
 0x1c0   : > { %v8941_v6 = vcombine.low %v1008_v19, %v1012_v56 }
 0x1c2   : > { %6694 = vmatpush1.bf16.msra.mxu0 %v8885_v39  ;;  %7022 = vmatpush1.bf16.msra.mxu1 %v8887_v0  ;;  %v8942_v39 = vcombine.high %v1008_v19, %v1012_v56  ;;  %v8944_v0 = vcombine.high %v1009_v60, %v1013_v61  ;;  %v1057_v19 = vld [vmem:[%s9684_s6 + $0x1a08] sm:$0xff]  ;;  %v8983_v61 = vcombine.low %v1049_v25, %v1053_v44 }
 0x1c3   : > { %6695 = vmatprep.subr.bf16.mxu0 %v8894_v2  ;;  %7023 = vmatprep.subr.bf16.mxu1 %v8896_v3  ;;  %v1016_v2 = vld [vmem:[%s9684_s6 + $0x18c0] sm:$0xff]  ;;  %v1061_v56 = vld [vmem:[%s9684_s6 + $0x1a28] sm:$0xff] }
 0x1c4   : > { %v1020_v3 = vld [vmem:[%s9684_s6 + $0x18e0] sm:$0xff] }
 0x1c5   : > { %v8949_v17 = vcombine.low %v1016_v2, %v1020_v3 }
 0x1c6   : > { %6696 = vmatpush1.bf16.msra.mxu0 %v8893_v8  ;;  %7024 = vmatpush1.bf16.msra.mxu1 %v8895_v9  ;;  %v8950_v8 = vcombine.high %v1016_v2, %v1020_v3  ;;  %v8952_v9 = vcombine.high %v1017_v4, %v1021_v5  ;;  %v1065_v2 = vld [vmem:[%s9684_s6 + $0x1a48] sm:$0xff]  ;;  %v8991_v5 = vcombine.low %v1057_v19, %v1061_v56 }
 0x1c7   : > { %6697 = vmatprep.subr.bf16.mxu0 %v8902_v10  ;;  %7025 = vmatprep.subr.bf16.mxu1 %v8904_v11  ;;  %v1024_v10 = vld [vmem:[%s9684_s6 + $0x1900] sm:$0xff]  ;;  %v1069_v3 = vld [vmem:[%s9684_s6 + $0x1a68] sm:$0xff] }
 0x1c8   : > { %v1028_v11 = vld [vmem:[%s9684_s6 + $0x1920] sm:$0xff] }
 0x1c9   : > { %v8957_v28 = vcombine.low %v1024_v10, %v1028_v11 }
 0x1ca   : > { %6698 = vmatpush1.bf16.msra.mxu0 %v8901_v53  ;;  %7026 = vmatpush1.bf16.msra.mxu1 %v8903_v20  ;;  %v8958_v53 = vcombine.high %v1024_v10, %v1028_v11  ;;  %v8960_v20 = vcombine.high %v1025_v13, %v1029_v14  ;;  %v1073_v10 = vld [vmem:[%s9684_s6 + $0x1a88] sm:$0xff]  ;;  %v8999_v14 = vcombine.low %v1065_v2, %v1069_v3 }
 0x1cb   : > { %6699 = vmatprep.subr.bf16.mxu0 %v8910_v23  ;;  %7027 = vmatprep.subr.bf16.mxu1 %v8912_v24  ;;  %v1032_v23 = vld [vmem:[%s9684_s6 + $0x1940] sm:$0xff]  ;;  %v1077_v11 = vld [vmem:[%s9684_s6 + $0x1aa8] sm:$0xff] }
 0x1cc   : > { %v1036_v24 = vld [vmem:[%s9684_s6 + $0x1960] sm:$0xff] }
 0x1cd   : > { %v8965_v37 = vcombine.low %v1032_v23, %v1036_v24 }
 0x1ce   : > { %6700 = vmatpush1.bf16.msra.mxu0 %v8909_v15  ;;  %7028 = vmatpush1.bf16.msra.mxu1 %v8911_v30  ;;  %v8966_v15 = vcombine.high %v1032_v23, %v1036_v24  ;;  %v8968_v30 = vcombine.high %v1033_v59, %v1037_v26  ;;  %v1081_v23 = vld [vmem:[%s9684_s6 + $0x1ac8] sm:$0xff]  ;;  %v9007_v26 = vcombine.low %v1073_v10, %v1077_v11 }
 0x1cf   : > { %6701 = vmatprep.subr.bf16.mxu0 %v8918_v32  ;;  %7029 = vmatprep.subr.bf16.mxu1 %v8920_v33  ;;  %v1040_v32 = vld [vmem:[%s9684_s6 + $0x1980] sm:$0xff]  ;;  %v1085_v24 = vld [vmem:[%s9684_s6 + $0x1ae8] sm:$0xff] }
 0x1d0   : > { %v1044_v33 = vld [vmem:[%s9684_s6 + $0x19a0] sm:$0xff] }
 0x1d1   : > { %v8973_v47 = vcombine.low %v1040_v32, %v1044_v33 }
 0x1d2   : > { %6702 = vmatpush1.bf16.msra.mxu0 %v8917_v40  ;;  %7030 = vmatpush1.bf16.msra.mxu1 %v8919_v41  ;;  %v8974_v40 = vcombine.high %v1040_v32, %v1044_v33  ;;  %v8976_v41 = vcombine.high %v1041_v34, %v1045_v35  ;;  %v1089_v32 = vld [vmem:[%s9684_s6 + $0x1b08] sm:$0xff]  ;;  %v9015_v35 = vcombine.low %v1081_v23, %v1085_v24 }
 0x1d3   : > { %6712 = vmatprep.subr.bf16.mxu0 %v8926_v42  ;;  %7040 = vmatprep.subr.bf16.mxu1 %v8928_v43  ;;  %v1048_v42 = vld [vmem:[%s9684_s6 + $0x19c0] sm:$0xff]  ;;  %v1093_v33 = vld [vmem:[%s9684_s6 + $0x1b28] sm:$0xff] }
 0x1d4   : > { %v1052_v43 = vld [vmem:[%s9684_s6 + $0x19e0] sm:$0xff] }
 0x1d5   : > { %6704 = vmatmul.mubr.bf16.vlgmr.msra.gmra.mrb[0].mxu0 %v10184_v46  ;;  %7032 = vmatmul.mubr.bf16.vlgmr.msra.gmra.mrb[0].mxu1 %v10184_v46  ;;  %v8981_v60 = vcombine.low %v1048_v42, %v1052_v43 }
 0x1d6   : > { %6713 = vmatpush1.bf16.msra.mxu0 %v8925_v50  ;;  %7041 = vmatpush1.bf16.msra.mxu1 %v8927_v51  ;;  %v8982_v50 = vcombine.high %v1048_v42, %v1052_v43  ;;  %v8984_v51 = vcombine.high %v1049_v25, %v1053_v44  ;;  %v1097_v42 = vld [vmem:[%s9684_s6 + $0x1b48] sm:$0xff]  ;;  %v9023_v44 = vcombine.low %v1089_v32, %v1093_v33 }
 0x1d7   : > { %6714 = vmatprep.subr.bf16.mxu0 %v8934_v52  ;;  %7042 = vmatprep.subr.bf16.mxu1 %v8936_v54  ;;  %v1056_v52 = vld [vmem:[%s9684_s6 + $0x1a00] sm:$0xff]  ;;  %v1101_v43 = vld [vmem:[%s9684_s6 + $0x1b68] sm:$0xff] }
 0x1d8   : > { %6744 = vmatprep.mubr.bf16.mxu0 %v10197_v58  ;;  %7072 = vmatprep.mubr.bf16.mxu1 %v10197_v58  ;;  %v1060_v54 = vld [vmem:[%s9684_s6 + $0x1a20] sm:$0xff] }
 0x1d9   : > { %v8989_v4 = vcombine.low %v1056_v52, %v1060_v54 }
 0x1da   : > { %6715 = vmatpush1.bf16.msra.mxu0 %v8933_v62  ;;  %7043 = vmatpush1.bf16.msra.mxu1 %v8935_v63  ;;  %v8990_v62 = vcombine.high %v1056_v52, %v1060_v54  ;;  %v8992_v63 = vcombine.high %v1057_v19, %v1061_v56  ;;  %v1105_v52 = vld [vmem:[%s9684_s6 + $0x1b88] sm:$0xff]  ;;  %v9031_v56 = vcombine.low %v1097_v42, %v1101_v43 }
 0x1db   : > { %6716 = vmatprep.subr.bf16.mxu0 %v8942_v39  ;;  %7044 = vmatprep.subr.bf16.mxu1 %v8944_v0  ;;  %v1064_v39 = vld [vmem:[%s9684_s6 + $0x1a40] sm:$0xff]  ;;  %v1109_v54 = vld [vmem:[%s9684_s6 + $0x1ba8] sm:$0xff] }
 0x1dc   : > { %v1068_v0 = vld [vmem:[%s9684_s6 + $0x1a60] sm:$0xff] }
 0x1dd   : > { %v8997_v13 = vcombine.low %v1064_v39, %v1068_v0 }
 0x1de   : > { %6717 = vmatpush1.bf16.msra.mxu0 %v8941_v6  ;;  %7045 = vmatpush1.bf16.msra.mxu1 %v8943_v7  ;;  %v8998_v6 = vcombine.high %v1064_v39, %v1068_v0  ;;  %v9000_v7 = vcombine.high %v1065_v2, %v1069_v3  ;;  %v1113_v39 = vld [vmem:[%s9684_s6 + $0x1bc8] sm:$0xff]  ;;  %v9039_v3 = vcombine.low %v1105_v52, %v1109_v54 }
 0x1df   : > { %6718 = vmatprep.subr.bf16.mxu0 %v8950_v8  ;;  %7046 = vmatprep.subr.bf16.mxu1 %v8952_v9  ;;  %v1072_v8 = vld [vmem:[%s9684_s6 + $0x1a80] sm:$0xff]  ;;  %v1117_v0 = vld [vmem:[%s9684_s6 + $0x1be8] sm:$0xff] }
 0x1e0   : > { %v1076_v9 = vld [vmem:[%s9684_s6 + $0x1aa0] sm:$0xff] }
 0x1e1   : > { %v9005_v59 = vcombine.low %v1072_v8, %v1076_v9 }
 0x1e2   : > { %6719 = vmatpush1.bf16.msra.mxu0 %v8949_v17  ;;  %7047 = vmatpush1.bf16.msra.mxu1 %v8951_v18  ;;  %v9006_v17 = vcombine.high %v1072_v8, %v1076_v9  ;;  %v9008_v18 = vcombine.high %v1073_v10, %v1077_v11  ;;  %v1121_v8 = vld [vmem:[%s9684_s6 + $0x1c08] sm:$0xff]  ;;  %v9047_v11 = vcombine.low %v1113_v39, %v1117_v0 }
 0x1e3   : > { %6720 = vmatprep.subr.bf16.mxu0 %v8958_v53  ;;  %7048 = vmatprep.subr.bf16.mxu1 %v8960_v20  ;;  %v1080_v53 = vld [vmem:[%s9684_s6 + $0x1ac0] sm:$0xff]  ;;  %v1125_v9 = vld [vmem:[%s9684_s6 + $0x1c28] sm:$0xff] }
 0x1e4   : > { %v1084_v20 = vld [vmem:[%s9684_s6 + $0x1ae0] sm:$0xff] }
 0x1e5   : > { %v9013_v34 = vcombine.low %v1080_v53, %v1084_v20 }
 0x1e6   : > { %6721 = vmatpush1.bf16.msra.mxu0 %v8957_v28  ;;  %7049 = vmatpush1.bf16.msra.mxu1 %v8959_v29  ;;  %v9014_v28 = vcombine.high %v1080_v53, %v1084_v20  ;;  %v9016_v29 = vcombine.high %v1081_v23, %v1085_v24  ;;  %v10265_v53 = vcombine.low %v10191_v49, %v10191_v49  ;;  %v1129_v20 = vld [vmem:[%s9684_s6 + $0x1c48] sm:$0xff]  ;;  %v10272_v24 = vld [vmem:[%s11366_s0 + $0x38] sm:$0xff]  ;;  %v1136_v49 = vld [vmem:[%s9684_s6 + $0x1c80] sm:$0xff] }
 0x1e7   : > { %6722 = vmatprep.subr.bf16.mxu0 %v8966_v15  ;;  %7050 = vmatprep.subr.bf16.mxu1 %v8968_v30  ;;  %v1088_v15 = vld [vmem:[%s9684_s6 + $0x1b00] sm:$0xff]  ;;  %v1133_v23 = vld [vmem:[%s9684_s6 + $0x1c68] sm:$0xff] }
 0x1e8   : > { %v1092_v30 = vld [vmem:[%s9684_s6 + $0x1b20] sm:$0xff] }
 0x1e9   : > { %v9021_v25 = vcombine.low %v1088_v15, %v1092_v30 }
 0x1ea   : > { %6723 = vmatpush1.bf16.msra.mxu0 %v8965_v37  ;;  %7051 = vmatpush1.bf16.msra.mxu1 %v8967_v38  ;;  %v9022_v37 = vcombine.high %v1088_v15, %v1092_v30  ;;  %v9024_v38 = vcombine.high %v1089_v32, %v1093_v33  ;;  %v1140_v15 = vld [vmem:[%s9684_s6 + $0x1ca0] sm:$0xff]  ;;  %v10278_v30 = vcombine.high %v10272_v24, %v10272_v24  ;;  %v1137_v32 = vld [vmem:[%s9684_s6 + $0x1c88] sm:$0xff] }
 0x1eb   : > { %6724 = vmatprep.subr.bf16.mxu0 %v8974_v40  ;;  %7052 = vmatprep.subr.bf16.mxu1 %v8976_v41  ;;  %v1096_v40 = vld [vmem:[%s9684_s6 + $0x1b40] sm:$0xff]  ;;  %v1141_v33 = vld [vmem:[%s9684_s6 + $0x1ca8] sm:$0xff] }
 0x1ec   : > { %v1100_v41 = vld [vmem:[%s9684_s6 + $0x1b60] sm:$0xff] }
 0x1ed   : > { %v9029_v19 = vcombine.low %v1096_v40, %v1100_v41 }
 0x1ee   : > { %6725 = vmatpush1.bf16.msra.mxu0 %v8973_v47  ;;  %7053 = vmatpush1.bf16.msra.mxu1 %v8975_v48  ;;  %v9030_v47 = vcombine.high %v1096_v40, %v1100_v41  ;;  %v9032_v48 = vcombine.high %v1097_v42, %v1101_v43  ;;  %v1144_v40 = vld [vmem:[%s9684_s6 + $0x1cc0] sm:$0xff]  ;;  %v1145_v42 = vld [vmem:[%s9684_s6 + $0x1cc8] sm:$0xff] }
 0x1ef   : > { %6726 = vmatprep.subr.bf16.mxu0 %v8982_v50  ;;  %7054 = vmatprep.subr.bf16.mxu1 %v8984_v51  ;;  %v1104_v50 = vld [vmem:[%s9684_s6 + $0x1b80] sm:$0xff]  ;;  %v1149_v43 = vld [vmem:[%s9684_s6 + $0x1ce8] sm:$0xff] }
 0x1f0   : > { %v1108_v51 = vld [vmem:[%s9684_s6 + $0x1ba0] sm:$0xff] }
 0x1f1   : > { %v9037_v2 = vcombine.low %v1104_v50, %v1108_v51  ;;  %v1148_v41 = vld [vmem:[%s9684_s6 + $0x1ce0] sm:$0xff] }
 0x1f2   : > { %6727 = vmatpush1.bf16.msra.mxu0 %v8981_v60  ;;  %7055 = vmatpush1.bf16.msra.mxu1 %v8983_v61  ;;  %v9038_v60 = vcombine.high %v1104_v50, %v1108_v51  ;;  %v9040_v61 = vcombine.high %v1105_v52, %v1109_v54  ;;  %v1152_v50 = vld [vmem:[%s9684_s6 + $0x1d00] sm:$0xff]  ;;  %v1153_v52 = vld [vmem:[%s9684_s6 + $0x1d08] sm:$0xff] }
 0x1f3   : > { %6728 = vmatprep.subr.bf16.mxu0 %v8990_v62  ;;  %7056 = vmatprep.subr.bf16.mxu1 %v8992_v63  ;;  %v1112_v62 = vld [vmem:[%s9684_s6 + $0x1bc0] sm:$0xff]  ;;  %v1157_v54 = vld [vmem:[%s9684_s6 + $0x1d28] sm:$0xff] }
 0x1f4   : > { %v1116_v63 = vld [vmem:[%s9684_s6 + $0x1be0] sm:$0xff] }
 0x1f5   : > { %v9045_v10 = vcombine.low %v1112_v62, %v1116_v63  ;;  %v1156_v51 = vld [vmem:[%s9684_s6 + $0x1d20] sm:$0xff] }
 0x1f6   : > { %6729 = vmatpush1.bf16.msra.mxu0 %v8989_v4  ;;  %7057 = vmatpush1.bf16.msra.mxu1 %v8991_v5  ;;  %v9046_v4 = vcombine.high %v1112_v62, %v1116_v63  ;;  %v9048_v5 = vcombine.high %v1113_v39, %v1117_v0  ;;  %v1160_v62 = vld [vmem:[%s9684_s6 + $0x1d40] sm:$0xff]  ;;  %v1161_v39 = vld [vmem:[%s9684_s6 + $0x1d48] sm:$0xff] }
 0x1f7   : > { %6730 = vmatprep.subr.bf16.mxu0 %v8998_v6  ;;  %7058 = vmatprep.subr.bf16.mxu1 %v9000_v7  ;;  %v1120_v6 = vld [vmem:[%s9684_s6 + $0x1c00] sm:$0xff]  ;;  %v1165_v0 = vld [vmem:[%s9684_s6 + $0x1d68] sm:$0xff] }
 0x1f8   : > { %v1124_v7 = vld [vmem:[%s9684_s6 + $0x1c20] sm:$0xff] }
 0x1f9   : > { %v1164_v63 = vld [vmem:[%s9684_s6 + $0x1d60] sm:$0xff] }
 0x1fa   : > { %6731 = vmatpush1.bf16.msra.mxu0 %v8997_v13  ;;  %7059 = vmatpush1.bf16.msra.mxu1 %v8999_v14  ;;  %v9054_v13 = vcombine.high %v1120_v6, %v1124_v7  ;;  %v9056_v14 = vcombine.high %v1121_v8, %v1125_v9 }
 0x1fb   : > { %6732 = vmatprep.subr.bf16.mxu0 %v9006_v17  ;;  %7060 = vmatprep.subr.bf16.mxu1 %v9008_v18  ;;  %v1128_v17 = vld [vmem:[%s9684_s6 + $0x1c40] sm:$0xff] }
 0x1fc   : > { %v1132_v18 = vld [vmem:[%s9684_s6 + $0x1c60] sm:$0xff] }
 0x1fe   : > { %6733 = vmatpush1.bf16.msra.mxu0 %v9005_v59  ;;  %7061 = vmatpush1.bf16.msra.mxu1 %v9007_v26  ;;  %v9053_v59 = vcombine.low %v1120_v6, %v1124_v7  ;;  %v9055_v26 = vcombine.low %v1121_v8, %v1125_v9  ;;  %v1168_v6 = vld [vmem:[%s9684_s6 + $0x1d80] sm:$0xff]  ;;  %v1169_v8 = vld [vmem:[%s9684_s6 + $0x1d88] sm:$0xff] }
 0x1ff   : > { %6734 = vmatprep.subr.bf16.mxu0 %v9014_v28  ;;  %7062 = vmatprep.subr.bf16.mxu1 %v9016_v29  ;;  %v9062_v28 = vcombine.high %v1128_v17, %v1132_v18  ;;  %v9064_v29 = vcombine.high %v1129_v20, %v1133_v23  ;;  %v1172_v7 = vld [vmem:[%s9684_s6 + $0x1da0] sm:$0xff]  ;;  %v1173_v9 = vld [vmem:[%s9684_s6 + $0x1da8] sm:$0xff] }
 0x202   : > { %6735 = vmatpush1.bf16.msra.mxu0 %v9013_v34  ;;  %7063 = vmatpush1.bf16.msra.mxu1 %v9015_v35  ;;  %v9061_v34 = vcombine.low %v1128_v17, %v1132_v18  ;;  %v9063_v35 = vcombine.low %v1129_v20, %v1133_v23  ;;  %v1176_v17 = vld [vmem:[%s9684_s6 + $0x1dc0] sm:$0xff]  ;;  %v1177_v20 = vld [vmem:[%s9684_s6 + $0x1dc8] sm:$0xff] }
 0x203   : > { %6736 = vmatprep.subr.bf16.mxu0 %v9022_v37  ;;  %7064 = vmatprep.subr.bf16.mxu1 %v9024_v38  ;;  %v9070_v37 = vcombine.high %v1136_v49, %v1140_v15  ;;  %v9072_v38 = vcombine.high %v1137_v32, %v1141_v33  ;;  %v1180_v18 = vld [vmem:[%s9684_s6 + $0x1de0] sm:$0xff]  ;;  %v1181_v23 = vld [vmem:[%s9684_s6 + $0x1de8] sm:$0xff] }
 0x206   : > { %6737 = vmatpush1.bf16.msra.mxu0 %v9021_v25  ;;  %7065 = vmatpush1.bf16.msra.mxu1 %v9023_v44  ;;  %v9069_v25 = vcombine.low %v1136_v49, %v1140_v15  ;;  %v9071_v44 = vcombine.low %v1137_v32, %v1141_v33  ;;  %v1184_v49 = vld [vmem:[%s9684_s6 + $0x1e00] sm:$0xff]  ;;  %v1185_v32 = vld [vmem:[%s9684_s6 + $0x1e08] sm:$0xff] }
 0x207   : > { %6738 = vmatprep.subr.bf16.mxu0 %v9030_v47  ;;  %7066 = vmatprep.subr.bf16.mxu1 %v9032_v48  ;;  %v9078_v47 = vcombine.high %v1144_v40, %v1148_v41  ;;  %v9080_v48 = vcombine.high %v1145_v42, %v1149_v43  ;;  %v1188_v15 = vld [vmem:[%s9684_s6 + $0x1e20] sm:$0xff]  ;;  %v1189_v33 = vld [vmem:[%s9684_s6 + $0x1e28] sm:$0xff] }
 0x20a   : > { %6739 = vmatpush1.bf16.msra.mxu0 %v9029_v19  ;;  %7067 = vmatpush1.bf16.msra.mxu1 %v9031_v56  ;;  %v9077_v19 = vcombine.low %v1144_v40, %v1148_v41  ;;  %v9079_v56 = vcombine.low %v1145_v42, %v1149_v43  ;;  %v1192_v40 = vld [vmem:[%s9684_s6 + $0x1e40] sm:$0xff]  ;;  %v1193_v42 = vld [vmem:[%s9684_s6 + $0x1e48] sm:$0xff] }
 0x20b   : > { %6740 = vmatprep.subr.bf16.mxu0 %v9038_v60  ;;  %7068 = vmatprep.subr.bf16.mxu1 %v9040_v61  ;;  %v9086_v60 = vcombine.high %v1152_v50, %v1156_v51  ;;  %v9088_v61 = vcombine.high %v1153_v52, %v1157_v54  ;;  %v1196_v41 = vld [vmem:[%s9684_s6 + $0x1e60] sm:$0xff]  ;;  %v1197_v43 = vld [vmem:[%s9684_s6 + $0x1e68] sm:$0xff] }
 0x20e   : > { %6741 = vmatpush1.bf16.msra.mxu0 %v9037_v2  ;;  %7069 = vmatpush1.bf16.msra.mxu1 %v9039_v3  ;;  %v9085_v2 = vcombine.low %v1152_v50, %v1156_v51  ;;  %v9087_v3 = vcombine.low %v1153_v52, %v1157_v54  ;;  %v1200_v50 = vld [vmem:[%s9684_s6 + $0x1e80] sm:$0xff]  ;;  %v1201_v52 = vld [vmem:[%s9684_s6 + $0x1e88] sm:$0xff] }
 0x20f   : > { %6742 = vmatprep.subr.bf16.mxu0 %v9046_v4  ;;  %7070 = vmatprep.subr.bf16.mxu1 %v9048_v5  ;;  %v9094_v4 = vcombine.high %v1160_v62, %v1164_v63  ;;  %v9096_v5 = vcombine.high %v1161_v39, %v1165_v0  ;;  %v1204_v51 = vld [vmem:[%s9684_s6 + $0x1ea0] sm:$0xff]  ;;  %v1205_v54 = vld [vmem:[%s9684_s6 + $0x1ea8] sm:$0xff] }
 0x212   : > { %6743 = vmatpush1.bf16.msra.mxu0 %v9045_v10  ;;  %7071 = vmatpush1.bf16.msra.mxu1 %v9047_v11  ;;  %v9093_v10 = vcombine.low %v1160_v62, %v1164_v63  ;;  %v9095_v11 = vcombine.low %v1161_v39, %v1165_v0  ;;  %v1208_v62 = vld [vmem:[%s9684_s6 + $0x1ec0] sm:$0xff]  ;;  %v1209_v39 = vld [vmem:[%s9684_s6 + $0x1ec8] sm:$0xff] }
 0x213   : > { %6753 = vmatprep.subr.bf16.mxu0 %v9054_v13  ;;  %7081 = vmatprep.subr.bf16.mxu1 %v9056_v14  ;;  %v9102_v13 = vcombine.high %v1168_v6, %v1172_v7  ;;  %v9104_v14 = vcombine.high %v1169_v8, %v1173_v9  ;;  %v1212_v63 = vld [vmem:[%s9684_s6 + $0x1ee0] sm:$0xff]  ;;  %v1213_v0 = vld [vmem:[%s9684_s6 + $0x1ee8] sm:$0xff] }
 0x215   : > { %6745 = vmatmul.mubr.bf16.vlgmr.msra.gmra.mrb[0].mxu0 %v10265_v53  ;;  %7073 = vmatmul.mubr.bf16.vlgmr.msra.gmra.mrb[0].mxu1 %v10265_v53 }
 0x216   : > { %6754 = vmatpush1.bf16.msra.mxu0 %v9053_v59  ;;  %7082 = vmatpush1.bf16.msra.mxu1 %v9055_v26  ;;  %v9101_v59 = vcombine.low %v1168_v6, %v1172_v7  ;;  %v9103_v26 = vcombine.low %v1169_v8, %v1173_v9  ;;  %v1216_v6 = vld [vmem:[%s9684_s6 + $0x1f00] sm:$0xff]  ;;  %v1217_v8 = vld [vmem:[%s9684_s6 + $0x1f08] sm:$0xff] }
 0x217   : > { %6755 = vmatprep.subr.bf16.mxu0 %v9062_v28  ;;  %7083 = vmatprep.subr.bf16.mxu1 %v9064_v29  ;;  %v9110_v28 = vcombine.high %v1176_v17, %v1180_v18  ;;  %v9112_v29 = vcombine.high %v1177_v20, %v1181_v23  ;;  %v1220_v7 = vld [vmem:[%s9684_s6 + $0x1f20] sm:$0xff]  ;;  %v1221_v9 = vld [vmem:[%s9684_s6 + $0x1f28] sm:$0xff] }
 0x218   : > { %6785 = vmatprep.mubr.bf16.mxu0 %v10278_v30  ;;  %7113 = vmatprep.mubr.bf16.mxu1 %v10278_v30 }
 0x21a   : > { %6756 = vmatpush1.bf16.msra.mxu0 %v9061_v34  ;;  %7084 = vmatpush1.bf16.msra.mxu1 %v9063_v35  ;;  %v9109_v34 = vcombine.low %v1176_v17, %v1180_v18  ;;  %v9111_v35 = vcombine.low %v1177_v20, %v1181_v23  ;;  %v1224_v17 = vld [vmem:[%s9684_s6 + $0x1f40] sm:$0xff]  ;;  %v1225_v20 = vld [vmem:[%s9684_s6 + $0x1f48] sm:$0xff] }
 0x21b   : > { %6757 = vmatprep.subr.bf16.mxu0 %v9070_v37  ;;  %7085 = vmatprep.subr.bf16.mxu1 %v9072_v38  ;;  %v9118_v37 = vcombine.high %v1184_v49, %v1188_v15  ;;  %v9120_v38 = vcombine.high %v1185_v32, %v1189_v33  ;;  %v1228_v18 = vld [vmem:[%s9684_s6 + $0x1f60] sm:$0xff]  ;;  %v1229_v23 = vld [vmem:[%s9684_s6 + $0x1f68] sm:$0xff] }
 0x21e   : > { %6758 = vmatpush1.bf16.msra.mxu0 %v9069_v25  ;;  %7086 = vmatpush1.bf16.msra.mxu1 %v9071_v44  ;;  %v9117_v25 = vcombine.low %v1184_v49, %v1188_v15  ;;  %v9119_v44 = vcombine.low %v1185_v32, %v1189_v33  ;;  %v1232_v49 = vld [vmem:[%s9684_s6 + $0x1f80] sm:$0xff]  ;;  %v1233_v32 = vld [vmem:[%s9684_s6 + $0x1f88] sm:$0xff] }
 0x21f   : > { %6759 = vmatprep.subr.bf16.mxu0 %v9078_v47  ;;  %7087 = vmatprep.subr.bf16.mxu1 %v9080_v48  ;;  %v9126_v47 = vcombine.high %v1192_v40, %v1196_v41  ;;  %v9128_v48 = vcombine.high %v1193_v42, %v1197_v43  ;;  %v1236_v15 = vld [vmem:[%s9684_s6 + $0x1fa0] sm:$0xff]  ;;  %v1237_v33 = vld [vmem:[%s9684_s6 + $0x1fa8] sm:$0xff] }
 0x222   : > { %6760 = vmatpush1.bf16.msra.mxu0 %v9077_v19  ;;  %7088 = vmatpush1.bf16.msra.mxu1 %v9079_v56  ;;  %v9125_v19 = vcombine.low %v1192_v40, %v1196_v41  ;;  %v9127_v56 = vcombine.low %v1193_v42, %v1197_v43  ;;  %v1240_v40 = vld [vmem:[%s9684_s6 + $0x1fc0] sm:$0xff]  ;;  %v1241_v42 = vld [vmem:[%s9684_s6 + $0x1fc8] sm:$0xff] }
 0x223   : > { %6761 = vmatprep.subr.bf16.mxu0 %v9086_v60  ;;  %7089 = vmatprep.subr.bf16.mxu1 %v9088_v61  ;;  %v9134_v60 = vcombine.high %v1200_v50, %v1204_v51  ;;  %v9136_v61 = vcombine.high %v1201_v52, %v1205_v54  ;;  %v1244_v41 = vld [vmem:[%s9684_s6 + $0x1fe0] sm:$0xff]  ;;  %v1245_v43 = vld [vmem:[%s9684_s6 + $0x1fe8] sm:$0xff] }
 0x226   : > { %6762 = vmatpush1.bf16.msra.mxu0 %v9085_v2  ;;  %7090 = vmatpush1.bf16.msra.mxu1 %v9087_v3  ;;  %v9133_v2 = vcombine.low %v1200_v50, %v1204_v51  ;;  %v9135_v3 = vcombine.low %v1201_v52, %v1205_v54  ;;  %v226_v50 = vld [vmem:[%s9684_s6 + $0x10] sm:$0xff]  ;;  %v227_v52 = vld [vmem:[%s9684_s6 + $0x18] sm:$0xff] }
 0x227   : > { %6763 = vmatprep.subr.bf16.mxu0 %v9094_v4  ;;  %7091 = vmatprep.subr.bf16.mxu1 %v9096_v5  ;;  %v9142_v4 = vcombine.high %v1208_v62, %v1212_v63  ;;  %v9144_v5 = vcombine.high %v1209_v39, %v1213_v0  ;;  %v230_v51 = vld [vmem:[%s9684_s6 + $0x30] sm:$0xff]  ;;  %v231_v54 = vld [vmem:[%s9684_s6 + $0x38] sm:$0xff] }
 0x22a   : > { %6764 = vmatpush1.bf16.msra.mxu0 %v9093_v10  ;;  %7092 = vmatpush1.bf16.msra.mxu1 %v9095_v11  ;;  %v9141_v10 = vcombine.low %v1208_v62, %v1212_v63  ;;  %v9143_v11 = vcombine.low %v1209_v39, %v1213_v0  ;;  %v234_v62 = vld [vmem:[%s9684_s6 + $0x50] sm:$0xff]  ;;  %v10346_v39 = vcombine.low %v10272_v24, %v10272_v24  ;;  %v235_v0 = vld [vmem:[%s9684_s6 + $0x58] sm:$0xff] }
 0x22b   : > { %6765 = vmatprep.subr.bf16.mxu0 %v9102_v13  ;;  %7093 = vmatprep.subr.bf16.mxu1 %v9104_v14  ;;  %v9150_v13 = vcombine.high %v1216_v6, %v1220_v7  ;;  %v9152_v14 = vcombine.high %v1217_v8, %v1221_v9  ;;  %v238_v63 = vld [vmem:[%s9684_s6 + $0x70] sm:$0xff]  ;;  %v243_v24 = vld [vmem:[%s9684_s6 + $0x98] sm:$0xff] }
 0x22e   : > { %6766 = vmatpush1.bf16.msra.mxu0 %v9101_v59  ;;  %7094 = vmatpush1.bf16.msra.mxu1 %v9103_v26  ;;  %v9149_v59 = vcombine.low %v1216_v6, %v1220_v7  ;;  %v9151_v26 = vcombine.low %v1217_v8, %v1221_v9  ;;  %v242_v7 = vld [vmem:[%s9684_s6 + $0x90] sm:$0xff]  ;;  %v247_v9 = vld [vmem:[%s9684_s6 + $0xb8] sm:$0xff] }
 0x22f   : > { %6767 = vmatprep.subr.bf16.mxu0 %v9110_v28  ;;  %7095 = vmatprep.subr.bf16.mxu1 %v9112_v29  ;;  %v9158_v28 = vcombine.high %v1224_v17, %v1228_v18  ;;  %v9160_v29 = vcombine.high %v1225_v20, %v1229_v23  ;;  %v246_v8 = vld [vmem:[%s9684_s6 + $0xb0] sm:$0xff] }
 0x232   : > { %6768 = vmatpush1.bf16.msra.mxu0 %v9109_v34  ;;  %7096 = vmatpush1.bf16.msra.mxu1 %v9111_v35  ;;  %v9157_v34 = vcombine.low %v1224_v17, %v1228_v18  ;;  %v9159_v35 = vcombine.low %v1225_v20, %v1229_v23  ;;  %v250_v17 = vld [vmem:[%s9684_s6 + $0xd0] sm:$0xff]  ;;  %v251_v20 = vld [vmem:[%s9684_s6 + $0xd8] sm:$0xff] }
 0x233   : > { %6769 = vmatprep.subr.bf16.mxu0 %v9118_v37  ;;  %7097 = vmatprep.subr.bf16.mxu1 %v9120_v38  ;;  %v9166_v37 = vcombine.high %v1232_v49, %v1236_v15  ;;  %v9168_v38 = vcombine.high %v1233_v32, %v1237_v33  ;;  %v254_v18 = vld [vmem:[%s9684_s6 + $0xf0] sm:$0xff]  ;;  %v255_v23 = vld [vmem:[%s9684_s6 + $0xf8] sm:$0xff] }
 0x236   : > { %6770 = vmatpush1.bf16.msra.mxu0 %v9117_v25  ;;  %7098 = vmatpush1.bf16.msra.mxu1 %v9119_v44  ;;  %v9165_v25 = vcombine.low %v1232_v49, %v1236_v15  ;;  %v9167_v44 = vcombine.low %v1233_v32, %v1237_v33  ;;  %v258_v49 = vld [vmem:[%s9684_s6 + $0x110] sm:$0xff]  ;;  %v259_v32 = vld [vmem:[%s9684_s6 + $0x118] sm:$0xff] }
 0x237   : > { %6771 = vmatprep.subr.bf16.mxu0 %v9126_v47  ;;  %7099 = vmatprep.subr.bf16.mxu1 %v9128_v48  ;;  %v9174_v47 = vcombine.high %v1240_v40, %v1244_v41  ;;  %v9176_v48 = vcombine.high %v1241_v42, %v1245_v43  ;;  %v262_v15 = vld [vmem:[%s9684_s6 + $0x130] sm:$0xff]  ;;  %v263_v33 = vld [vmem:[%s9684_s6 + $0x138] sm:$0xff] }
 0x23a   : > { %6772 = vmatpush1.bf16.msra.mxu0 %v9125_v19  ;;  %7100 = vmatpush1.bf16.msra.mxu1 %v9127_v56  ;;  %v9173_v19 = vcombine.low %v1240_v40, %v1244_v41  ;;  %v9175_v56 = vcombine.low %v1241_v42, %v1245_v43  ;;  %v270_v40 = vld [vmem:[%s9684_s6 + $0x170] sm:$0xff]  ;;  %v267_v41 = vld [vmem:[%s9684_s6 + $0x158] sm:$0xff]  ;;  %v8193_v43 = vcombine.low %v258_v49, %v262_v15 }
 0x23b   : > { %6773 = vmatprep.subr.bf16.mxu0 %v9134_v60  ;;  %7101 = vmatprep.subr.bf16.mxu1 %v9136_v61  ;;  %v8162_v60 = vcombine.high %v226_v50, %v230_v51  ;;  %v8164_v61 = vcombine.high %v227_v52, %v231_v54  ;;  %v271_v42 = vld [vmem:[%s9684_s6 + $0x178] sm:$0xff] }
 0x23e   : > { %6774 = vmatpush1.bf16.msra.mxu0 %v9133_v2  ;;  %7102 = vmatpush1.bf16.msra.mxu1 %v9135_v3  ;;  %v239_v2 = vld [vmem:[%s9684_s6 + $0x78] sm:$0xff]  ;;  %v8161_v3 = vcombine.low %v226_v50, %v230_v51  ;;  %v278_v50 = vld [vmem:[%s9684_s6 + $0x1b0] sm:$0xff] }
 0x23f   : > { %6775 = vmatprep.subr.bf16.mxu0 %v9142_v4  ;;  %7103 = vmatprep.subr.bf16.mxu1 %v9144_v5  ;;  %v8163_v4 = vcombine.low %v227_v52, %v231_v54  ;;  %v8170_v5 = vcombine.high %v234_v62, %v238_v63  ;;  %v8172_v6 = vcombine.high %v235_v0, %v239_v2  ;;  %v275_v51 = vld [vmem:[%s9684_s6 + $0x198] sm:$0xff] }
 0x240   : > { %v279_v52 = vld [vmem:[%s9684_s6 + $0x1b8] sm:$0xff] }
 0x242   : > { %6776 = vmatpush1.bf16.msra.mxu0 %v9141_v10  ;;  %7104 = vmatpush1.bf16.msra.mxu1 %v9143_v11  ;;  %v8169_v10 = vcombine.low %v234_v62, %v238_v63  ;;  %v8171_v11 = vcombine.low %v235_v0, %v239_v2  ;;  %v286_v62 = vld [vmem:[%s9684_s6 + $0x1f0] sm:$0xff]  ;;  %v283_v63 = vld [vmem:[%s9684_s6 + $0x1d8] sm:$0xff] }
 0x243   : > { %6777 = vmatprep.subr.bf16.mxu0 %v9150_v13  ;;  %7105 = vmatprep.subr.bf16.mxu1 %v9152_v14  ;;  %v8178_v13 = vcombine.high %v242_v7, %v246_v8  ;;  %v8180_v14 = vcombine.high %v243_v24, %v247_v9  ;;  %v287_v0 = vld [vmem:[%s9684_s6 + $0x1f8] sm:$0xff] }
 0x246   : > { %6778 = vmatpush1.bf16.msra.mxu0 %v9149_v59  ;;  %7106 = vmatpush1.bf16.msra.mxu1 %v9151_v26  ;;  %v8177_v59 = vcombine.low %v242_v7, %v246_v8  ;;  %v8179_v26 = vcombine.low %v243_v24, %v247_v9  ;;  %v294_v7 = vld [vmem:[%s9684_s6 + $0x230] sm:$0xff]  ;;  %v291_v8 = vld [vmem:[%s9684_s6 + $0x218] sm:$0xff] }
 0x247   : > { %6779 = vmatprep.subr.bf16.mxu0 %v9158_v28  ;;  %7107 = vmatprep.subr.bf16.mxu1 %v9160_v29  ;;  %v8186_v28 = vcombine.high %v250_v17, %v254_v18  ;;  %v8188_v29 = vcombine.high %v251_v20, %v255_v23  ;;  %v295_v24 = vld [vmem:[%s9684_s6 + $0x238] sm:$0xff] }
 0x24a   : > { %6780 = vmatpush1.bf16.msra.mxu0 %v9157_v34  ;;  %7108 = vmatpush1.bf16.msra.mxu1 %v9159_v35  ;;  %v8185_v34 = vcombine.low %v250_v17, %v254_v18  ;;  %v8194_v35 = vcombine.high %v258_v49, %v262_v15  ;;  %v302_v17 = vld [vmem:[%s9684_s6 + $0x270] sm:$0xff]  ;;  %v299_v18 = vld [vmem:[%s9684_s6 + $0x258] sm:$0xff] }
 0x24b   : > { %6781 = vmatprep.subr.bf16.mxu0 %v9166_v37  ;;  %7109 = vmatprep.subr.bf16.mxu1 %v9168_v38  ;;  %v8196_v37 = vcombine.high %v259_v32, %v263_v33  ;;  %v266_v38 = vld [vmem:[%s9684_s6 + $0x150] sm:$0xff]  ;;  %v307_v15 = vld [vmem:[%s9684_s6 + $0x298] sm:$0xff] }
 0x24c   : > { %v8201_v54 = vcombine.low %v266_v38, %v270_v40  ;;  %v310_v49 = vld [vmem:[%s9684_s6 + $0x2b0] sm:$0xff] }
 0x24e   : > { %6782 = vmatpush1.bf16.msra.mxu0 %v9165_v25  ;;  %7110 = vmatpush1.bf16.msra.mxu1 %v9167_v44  ;;  %v8195_v25 = vcombine.low %v259_v32, %v263_v33  ;;  %v8202_v44 = vcombine.high %v266_v38, %v270_v40  ;;  %v311_v32 = vld [vmem:[%s9684_s6 + $0x2b8] sm:$0xff]  ;;  %v318_v38 = vld [vmem:[%s9684_s6 + $0x2f0] sm:$0xff] }
 0x24f   : > { %6783 = vmatprep.subr.bf16.mxu0 %v9174_v47  ;;  %7111 = vmatprep.subr.bf16.mxu1 %v9176_v48  ;;  %v8204_v47 = vcombine.high %v267_v41, %v271_v42  ;;  %v274_v48 = vld [vmem:[%s9684_s6 + $0x190] sm:$0xff]  ;;  %v315_v40 = vld [vmem:[%s9684_s6 + $0x2d8] sm:$0xff] }
 0x250   : > { %v8209_v2 = vcombine.low %v274_v48, %v278_v50 }
 0x252   : > { %6784 = vmatpush1.bf16.msra.mxu0 %v9173_v19  ;;  %7112 = vmatpush1.bf16.msra.mxu1 %v9175_v56  ;;  %v8203_v19 = vcombine.low %v267_v41, %v271_v42  ;;  %v8210_v56 = vcombine.high %v274_v48, %v278_v50  ;;  %v319_v41 = vld [vmem:[%s9684_s6 + $0x2f8] sm:$0xff]  ;;  %v326_v48 = vld [vmem:[%s9684_s6 + $0x330] sm:$0xff] }
 0x253   : > { %7122 = vmatprep.subr.bf16.mxu0 %v8162_v60  ;;  %7450 = vmatprep.subr.bf16.mxu1 %v8164_v61  ;;  %v8212_v60 = vcombine.high %v275_v51, %v279_v52  ;;  %v282_v61 = vld [vmem:[%s9684_s6 + $0x1d0] sm:$0xff]  ;;  %v323_v50 = vld [vmem:[%s9684_s6 + $0x318] sm:$0xff] }
 0x254   : > { %v8217_v9 = vcombine.low %v282_v61, %v286_v62 }
 0x255   : > { %6786 = vmatmul.mubr.bf16.vlgmr.msra.gmra.mrb[0].mxu0 %v10346_v39  ;;  %7114 = vmatmul.mubr.bf16.vlgmr.msra.gmra.mrb[0].mxu1 %v10346_v39 }
 0x256   : > { %7123 = vmatpush1.bf16.msra.mxu0 %v8161_v3  ;;  %7451 = vmatpush1.bf16.msra.mxu1 %v8163_v4  ;;  %v8211_v3 = vcombine.low %v275_v51, %v279_v52  ;;  %v8218_v4 = vcombine.high %v282_v61, %v286_v62  ;;  %v327_v51 = vld [vmem:[%s9684_s6 + $0x338] sm:$0xff]  ;;  %v334_v61 = vld [vmem:[%s9684_s6 + $0x370] sm:$0xff] }
 0x257   : > { %7124 = vmatprep.subr.bf16.mxu0 %v8170_v5  ;;  %7452 = vmatprep.subr.bf16.mxu1 %v8172_v6  ;;  %v8220_v5 = vcombine.high %v283_v63, %v287_v0  ;;  %v290_v6 = vld [vmem:[%s9684_s6 + $0x210] sm:$0xff]  ;;  %v331_v62 = vld [vmem:[%s9684_s6 + $0x358] sm:$0xff] }
 0x258   : > { %7154 = vmatprep.mubr.bf16.mxu0 %v9733_v57  ;;  %7482 = vmatprep.mubr.bf16.mxu1 %v9733_v57  ;;  %v8187_v57 = vcombine.low %v251_v20, %v255_v23  ;;  %v303_v20 = vld [vmem:[%s9684_s6 + $0x278] sm:$0xff]  ;;  %v8225_v23 = vcombine.low %v290_v6, %v294_v7 }
 0x25a   : > { %7125 = vmatpush1.bf16.msra.mxu0 %v8169_v10  ;;  %7453 = vmatpush1.bf16.msra.mxu1 %v8171_v11  ;;  %v8219_v10 = vcombine.low %v283_v63, %v287_v0  ;;  %v8226_v11 = vcombine.high %v290_v6, %v294_v7  ;;  %v335_v63 = vld [vmem:[%s9684_s6 + $0x378] sm:$0xff]  ;;  %v342_v6 = vld [vmem:[%s9684_s6 + $0x3b0] sm:$0xff] }
 0x25b   : > { %7126 = vmatprep.subr.bf16.mxu0 %v8178_v13  ;;  %7454 = vmatprep.subr.bf16.mxu1 %v8180_v14  ;;  %v8228_v13 = vcombine.high %v291_v8, %v295_v24  ;;  %v298_v14 = vld [vmem:[%s9684_s6 + $0x250] sm:$0xff]  ;;  %v339_v7 = vld [vmem:[%s9684_s6 + $0x398] sm:$0xff] }
 0x25c   : > { %v8233_v33 = vcombine.low %v298_v14, %v302_v17 }
 0x25e   : > { %7127 = vmatpush1.bf16.msra.mxu0 %v8177_v59  ;;  %7455 = vmatpush1.bf16.msra.mxu1 %v8179_v26  ;;  %v8227_v59 = vcombine.low %v291_v8, %v295_v24  ;;  %v8234_v26 = vcombine.high %v298_v14, %v302_v17  ;;  %v343_v8 = vld [vmem:[%s9684_s6 + $0x3b8] sm:$0xff]  ;;  %v350_v14 = vld [vmem:[%s9684_s6 + $0x3f0] sm:$0xff] }
 0x25f   : > { %7128 = vmatprep.subr.bf16.mxu0 %v8186_v28  ;;  %7456 = vmatprep.subr.bf16.mxu1 %v8188_v29  ;;  %v8236_v28 = vcombine.high %v299_v18, %v303_v20  ;;  %v306_v29 = vld [vmem:[%s9684_s6 + $0x290] sm:$0xff]  ;;  %v347_v17 = vld [vmem:[%s9684_s6 + $0x3d8] sm:$0xff] }
 0x260   : > { %v8241_v42 = vcombine.low %v306_v29, %v310_v49 }
 0x262   : > { %7129 = vmatpush1.bf16.msra.mxu0 %v8185_v34  ;;  %7457 = vmatpush1.bf16.msra.mxu1 %v8187_v57  ;;  %v8235_v34 = vcombine.low %v299_v18, %v303_v20  ;;  %v8242_v57 = vcombine.high %v306_v29, %v310_v49  ;;  %v351_v18 = vld [vmem:[%s9684_s6 + $0x3f8] sm:$0xff]  ;;  %v358_v29 = vld [vmem:[%s9684_s6 + $0x430] sm:$0xff] }
 0x263   : > { %7130 = vmatprep.subr.bf16.mxu0 %v8194_v35  ;;  %7458 = vmatprep.subr.bf16.mxu1 %v8196_v37  ;;  %v8244_v35 = vcombine.high %v307_v15, %v311_v32  ;;  %v314_v37 = vld [vmem:[%s9684_s6 + $0x2d0] sm:$0xff]  ;;  %v355_v49 = vld [vmem:[%s9684_s6 + $0x418] sm:$0xff] }
 0x264   : > { %v8249_v52 = vcombine.low %v314_v37, %v318_v38 }
 0x266   : > { %7131 = vmatpush1.bf16.msra.mxu0 %v8193_v43  ;;  %7459 = vmatpush1.bf16.msra.mxu1 %v8195_v25  ;;  %v8243_v43 = vcombine.low %v307_v15, %v311_v32  ;;  %v8250_v25 = vcombine.high %v314_v37, %v318_v38  ;;  %v359_v15 = vld [vmem:[%s9684_s6 + $0x438] sm:$0xff]  ;;  %v366_v37 = vld [vmem:[%s9684_s6 + $0x470] sm:$0xff] }
 0x267   : > { %7132 = vmatprep.subr.bf16.mxu0 %v8202_v44  ;;  %7460 = vmatprep.subr.bf16.mxu1 %v8204_v47  ;;  %v8252_v44 = vcombine.high %v315_v40, %v319_v41  ;;  %v322_v47 = vld [vmem:[%s9684_s6 + $0x310] sm:$0xff]  ;;  %v363_v38 = vld [vmem:[%s9684_s6 + $0x458] sm:$0xff] }
 0x268   : > { %v8257_v0 = vcombine.low %v322_v47, %v326_v48 }
 0x26a   : > { %7133 = vmatpush1.bf16.msra.mxu0 %v8201_v54  ;;  %7461 = vmatpush1.bf16.msra.mxu1 %v8203_v19  ;;  %v8251_v54 = vcombine.low %v315_v40, %v319_v41  ;;  %v8258_v19 = vcombine.high %v322_v47, %v326_v48  ;;  %v367_v40 = vld [vmem:[%s9684_s6 + $0x478] sm:$0xff]  ;;  %v374_v47 = vld [vmem:[%s9684_s6 + $0x4b0] sm:$0xff] }
 0x26b   : > { %7134 = vmatprep.subr.bf16.mxu0 %v8210_v56  ;;  %7462 = vmatprep.subr.bf16.mxu1 %v8212_v60  ;;  %v8260_v56 = vcombine.high %v323_v50, %v327_v51  ;;  %v330_v60 = vld [vmem:[%s9684_s6 + $0x350] sm:$0xff]  ;;  %v371_v48 = vld [vmem:[%s9684_s6 + $0x498] sm:$0xff] }
 0x26c   : > { %v8265_v24 = vcombine.low %v330_v60, %v334_v61 }
 0x26e   : > { %7135 = vmatpush1.bf16.msra.mxu0 %v8209_v2  ;;  %7463 = vmatpush1.bf16.msra.mxu1 %v8211_v3  ;;  %v8259_v2 = vcombine.low %v323_v50, %v327_v51  ;;  %v8266_v3 = vcombine.high %v330_v60, %v334_v61  ;;  %v375_v50 = vld [vmem:[%s9684_s6 + $0x4b8] sm:$0xff]  ;;  %v382_v60 = vld [vmem:[%s9684_s6 + $0x4f0] sm:$0xff] }
 0x26f   : > { %7136 = vmatprep.subr.bf16.mxu0 %v8218_v4  ;;  %7464 = vmatprep.subr.bf16.mxu1 %v8220_v5  ;;  %v8268_v4 = vcombine.high %v331_v62, %v335_v63  ;;  %v338_v5 = vld [vmem:[%s9684_s6 + $0x390] sm:$0xff]  ;;  %v379_v61 = vld [vmem:[%s9684_s6 + $0x4d8] sm:$0xff] }
 0x270   : > { %v8273_v20 = vcombine.low %v338_v5, %v342_v6 }
 0x272   : > { %7137 = vmatpush1.bf16.msra.mxu0 %v8217_v9  ;;  %7465 = vmatpush1.bf16.msra.mxu1 %v8219_v10  ;;  %v8267_v9 = vcombine.low %v331_v62, %v335_v63  ;;  %v8274_v10 = vcombine.high %v338_v5, %v342_v6  ;;  %v383_v62 = vld [vmem:[%s9684_s6 + $0x4f8] sm:$0xff]  ;;  %v8307_v63 = vcombine.low %v371_v48, %v375_v50 }
 0x273   : > { %7138 = vmatprep.subr.bf16.mxu0 %v8226_v11  ;;  %7466 = vmatprep.subr.bf16.mxu1 %v8228_v13  ;;  %v8276_v11 = vcombine.high %v339_v7, %v343_v8  ;;  %v346_v13 = vld [vmem:[%s9684_s6 + $0x3d0] sm:$0xff]  ;;  %v387_v5 = vld [vmem:[%s9684_s6 + $0x518] sm:$0xff] }
 0x274   : > { %v8281_v32 = vcombine.low %v346_v13, %v350_v14  ;;  %v391_v6 = vld [vmem:[%s9684_s6 + $0x538] sm:$0xff] }
 0x276   : > { %7139 = vmatpush1.bf16.msra.mxu0 %v8225_v23  ;;  %7467 = vmatpush1.bf16.msra.mxu1 %v8227_v59  ;;  %v8275_v23 = vcombine.low %v339_v7, %v343_v8  ;;  %v8282_v59 = vcombine.high %v346_v13, %v350_v14  ;;  %v399_v13 = vld [vmem:[%s9684_s6 + $0x578] sm:$0xff] }
 0x277   : > { %7140 = vmatprep.subr.bf16.mxu0 %v8234_v26  ;;  %7468 = vmatprep.subr.bf16.mxu1 %v8236_v28  ;;  %v8284_v26 = vcombine.high %v347_v17, %v351_v18  ;;  %v354_v28 = vld [vmem:[%s9684_s6 + $0x410] sm:$0xff] }
 0x278   : > { %v8289_v41 = vcombine.low %v354_v28, %v358_v29 }
 0x27a   : > { %7141 = vmatpush1.bf16.msra.mxu0 %v8233_v33  ;;  %7469 = vmatpush1.bf16.msra.mxu1 %v8235_v34  ;;  %v8283_v33 = vcombine.low %v347_v17, %v351_v18  ;;  %v8290_v34 = vcombine.high %v354_v28, %v358_v29  ;;  %v8323_v17 = vcombine.low %v387_v5, %v391_v6  ;;  %v407_v28 = vld [vmem:[%s9684_s6 + $0x5b8] sm:$0xff] }
 0x27b   : > { %7142 = vmatprep.subr.bf16.mxu0 %v8242_v57  ;;  %7470 = vmatprep.subr.bf16.mxu1 %v8244_v35  ;;  %v8292_v57 = vcombine.high %v355_v49, %v359_v15  ;;  %v362_v35 = vld [vmem:[%s9684_s6 + $0x450] sm:$0xff] }
 0x27c   : > { %v8297_v51 = vcombine.low %v362_v35, %v366_v37 }
 0x27e   : > { %7143 = vmatpush1.bf16.msra.mxu0 %v8241_v42  ;;  %7471 = vmatpush1.bf16.msra.mxu1 %v8243_v43  ;;  %v8291_v42 = vcombine.low %v355_v49, %v359_v15  ;;  %v8298_v43 = vcombine.high %v362_v35, %v366_v37  ;;  %v415_v35 = vld [vmem:[%s9684_s6 + $0x5f8] sm:$0xff] }
 0x27f   : > { %7144 = vmatprep.subr.bf16.mxu0 %v8250_v25  ;;  %7472 = vmatprep.subr.bf16.mxu1 %v8252_v44  ;;  %v8300_v25 = vcombine.high %v363_v38, %v367_v40  ;;  %v370_v44 = vld [vmem:[%s9684_s6 + $0x490] sm:$0xff] }
 0x282   : > { %7145 = vmatpush1.bf16.msra.mxu0 %v8249_v52  ;;  %7473 = vmatpush1.bf16.msra.mxu1 %v8251_v54  ;;  %v8299_v52 = vcombine.low %v363_v38, %v367_v40  ;;  %v8306_v54 = vcombine.high %v370_v44, %v374_v47 }
 0x283   : > { %7146 = vmatprep.subr.bf16.mxu0 %v8258_v19  ;;  %7474 = vmatprep.subr.bf16.mxu1 %v8260_v56  ;;  %v8308_v19 = vcombine.high %v371_v48, %v375_v50  ;;  %v378_v56 = vld [vmem:[%s9684_s6 + $0x4d0] sm:$0xff] }
 0x284   : > { %v8313_v7 = vcombine.low %v378_v56, %v382_v60 }
 0x286   : > { %7147 = vmatpush1.bf16.msra.mxu0 %v8257_v0  ;;  %7475 = vmatpush1.bf16.msra.mxu1 %v8259_v2  ;;  %v8314_v0 = vcombine.high %v378_v56, %v382_v60  ;;  %v8316_v2 = vcombine.high %v379_v61, %v383_v62  ;;  %v431_v56 = vld [vmem:[%s9684_s6 + $0x678] sm:$0xff] }
 0x287   : > { %7148 = vmatprep.subr.bf16.mxu0 %v8266_v3  ;;  %7476 = vmatprep.subr.bf16.mxu1 %v8268_v4  ;;  %v386_v3 = vld [vmem:[%s9684_s6 + $0x510] sm:$0xff] }
 0x288   : > { %v390_v4 = vld [vmem:[%s9684_s6 + $0x530] sm:$0xff] }
 0x289   : > { %v8322_v8 = vcombine.high %v386_v3, %v390_v4  ;;  %v8321_v14 = vcombine.low %v386_v3, %v390_v4  ;;  %v439_v3 = vld [vmem:[%s9684_s6 + $0x6b8] sm:$0xff] }
 0x28a   : > { %7149 = vmatpush1.bf16.msra.mxu0 %v8265_v24  ;;  %7477 = vmatpush1.bf16.msra.mxu1 %v8267_v9  ;;  %v8324_v24 = vcombine.high %v387_v5, %v391_v6  ;;  %v394_v9 = vld [vmem:[%s9684_s6 + $0x550] sm:$0xff] }
 0x28b   : > { %7150 = vmatprep.subr.bf16.mxu0 %v8274_v10  ;;  %7478 = vmatprep.subr.bf16.mxu1 %v8276_v11  ;;  %v398_v10 = vld [vmem:[%s9684_s6 + $0x570] sm:$0xff]  ;;  %v395_v11 = vld [vmem:[%s9684_s6 + $0x558] sm:$0xff] }
 0x28c   : > { %v8330_v18 = vcombine.high %v394_v9, %v398_v10  ;;  %v8329_v29 = vcombine.low %v394_v9, %v398_v10  ;;  %v8331_v49 = vcombine.low %v395_v11, %v399_v13  ;;  %v447_v9 = vld [vmem:[%s9684_s6 + $0x6f8] sm:$0xff] }
 0x28e   : > { %7151 = vmatpush1.bf16.msra.mxu0 %v8273_v20  ;;  %7479 = vmatpush1.bf16.msra.mxu1 %v8275_v23  ;;  %v8332_v20 = vcombine.high %v395_v11, %v399_v13  ;;  %v402_v23 = vld [vmem:[%s9684_s6 + $0x590] sm:$0xff] }
 0x28f   : > { %7152 = vmatprep.subr.bf16.mxu0 %v8282_v59  ;;  %7480 = vmatprep.subr.bf16.mxu1 %v8284_v26  ;;  %v406_v59 = vld [vmem:[%s9684_s6 + $0x5b0] sm:$0xff]  ;;  %v403_v26 = vld [vmem:[%s9684_s6 + $0x598] sm:$0xff] }
 0x290   : > { %v8338_v15 = vcombine.high %v402_v23, %v406_v59  ;;  %v8337_v37 = vcombine.low %v402_v23, %v406_v59  ;;  %v8339_v38 = vcombine.low %v403_v26, %v407_v28  ;;  %v455_v23 = vld [vmem:[%s9684_s6 + $0x738] sm:$0xff] }
 0x292   : > { %7153 = vmatpush1.bf16.msra.mxu0 %v8281_v32  ;;  %7481 = vmatpush1.bf16.msra.mxu1 %v8283_v33  ;;  %v8340_v32 = vcombine.high %v403_v26, %v407_v28  ;;  %v410_v33 = vld [vmem:[%s9684_s6 + $0x5d0] sm:$0xff] }
 0x293   : > { %7163 = vmatprep.subr.bf16.mxu0 %v8290_v34  ;;  %7491 = vmatprep.subr.bf16.mxu1 %v8292_v57  ;;  %v414_v34 = vld [vmem:[%s9684_s6 + $0x5f0] sm:$0xff]  ;;  %v411_v57 = vld [vmem:[%s9684_s6 + $0x5d8] sm:$0xff] }
 0x294   : > { %v8346_v40 = vcombine.high %v410_v33, %v414_v34  ;;  %v8347_v48 = vcombine.low %v411_v57, %v415_v35 }
 0x295   : > { %7155 = vmatmul.mubr.bf16.vlgmr.msra.gmra.mrb[4].mxu0 %v9779_v12  ;;  %7483 = vmatmul.mubr.bf16.vlgmr.msra.gmra.mrb[4].mxu1 %v9779_v12  ;;  %v8305_v12 = vcombine.low %v370_v44, %v374_v47  ;;  %v423_v44 = vld [vmem:[%s9684_s6 + $0x638] sm:$0xff]  ;;  %v8345_v47 = vcombine.low %v410_v33, %v414_v34 }
 0x296   : > { %7164 = vmatpush1.bf16.msra.mxu0 %v8289_v41  ;;  %7492 = vmatpush1.bf16.msra.mxu1 %v8291_v42  ;;  %v8348_v41 = vcombine.high %v411_v57, %v415_v35  ;;  %v418_v42 = vld [vmem:[%s9684_s6 + $0x610] sm:$0xff]  ;;  %v463_v33 = vld [vmem:[%s9684_s6 + $0x778] sm:$0xff] }
 0x297   : > { %7165 = vmatprep.subr.bf16.mxu0 %v8298_v43  ;;  %7493 = vmatprep.subr.bf16.mxu1 %v8300_v25  ;;  %v422_v43 = vld [vmem:[%s9684_s6 + $0x630] sm:$0xff]  ;;  %v419_v25 = vld [vmem:[%s9684_s6 + $0x618] sm:$0xff] }
 0x298   : > { %7195 = vmatprep.mubr.bf16.mxu0 %v9792_v21  ;;  %7523 = vmatprep.mubr.bf16.mxu1 %v9792_v21  ;;  %v8315_v21 = vcombine.low %v379_v61, %v383_v62  ;;  %v8354_v50 = vcombine.high %v418_v42, %v422_v43  ;;  %v8353_v60 = vcombine.low %v418_v42, %v422_v43  ;;  %v471_v42 = vld [vmem:[%s9684_s6 + $0x7b8] sm:$0xff] }
 0x299   : > { %v8355_v61 = vcombine.low %v419_v25, %v423_v44 }
 0x29a   : > { %7166 = vmatpush1.bf16.msra.mxu0 %v8297_v51  ;;  %7494 = vmatpush1.bf16.msra.mxu1 %v8299_v52  ;;  %v8356_v51 = vcombine.high %v419_v25, %v423_v44  ;;  %v426_v52 = vld [vmem:[%s9684_s6 + $0x650] sm:$0xff] }
 0x29b   : > { %7167 = vmatprep.subr.bf16.mxu0 %v8306_v54  ;;  %7495 = vmatprep.subr.bf16.mxu1 %v8308_v19  ;;  %v430_v54 = vld [vmem:[%s9684_s6 + $0x670] sm:$0xff]  ;;  %v427_v19 = vld [vmem:[%s9684_s6 + $0x658] sm:$0xff] }
 0x29c   : > { %v8362_v62 = vcombine.high %v426_v52, %v430_v54  ;;  %v8361_v4 = vcombine.low %v426_v52, %v430_v54  ;;  %v8363_v5 = vcombine.low %v427_v19, %v431_v56  ;;  %v479_v52 = vld [vmem:[%s9684_s6 + $0x7f8] sm:$0xff] }
 0x29e   : > { %7168 = vmatpush1.bf16.msra.mxu0 %v8305_v12  ;;  %7496 = vmatpush1.bf16.msra.mxu1 %v8307_v63  ;;  %v8364_v12 = vcombine.high %v427_v19, %v431_v56  ;;  %v434_v63 = vld [vmem:[%s9684_s6 + $0x690] sm:$0xff] }
 0x29f   : > { %7169 = vmatprep.subr.bf16.mxu0 %v8314_v0  ;;  %7497 = vmatprep.subr.bf16.mxu1 %v8316_v2  ;;  %v438_v0 = vld [vmem:[%s9684_s6 + $0x6b0] sm:$0xff]  ;;  %v435_v2 = vld [vmem:[%s9684_s6 + $0x698] sm:$0xff] }
 0x2a0   : > { %v8370_v6 = vcombine.high %v434_v63, %v438_v0  ;;  %v8369_v10 = vcombine.low %v434_v63, %v438_v0  ;;  %v8371_v11 = vcombine.low %v435_v2, %v439_v3  ;;  %v487_v63 = vld [vmem:[%s9684_s6 + $0x838] sm:$0xff] }
 0x2a2   : > { %7170 = vmatpush1.bf16.msra.mxu0 %v8313_v7  ;;  %7498 = vmatpush1.bf16.msra.mxu1 %v8315_v21  ;;  %v8372_v7 = vcombine.high %v435_v2, %v439_v3  ;;  %v442_v21 = vld [vmem:[%s9684_s6 + $0x6d0] sm:$0xff] }
 0x2a3   : > { %7171 = vmatprep.subr.bf16.mxu0 %v8322_v8  ;;  %7499 = vmatprep.subr.bf16.mxu1 %v8324_v24  ;;  %v446_v8 = vld [vmem:[%s9684_s6 + $0x6f0] sm:$0xff]  ;;  %v443_v24 = vld [vmem:[%s9684_s6 + $0x6d8] sm:$0xff] }
 0x2a4   : > { %v8378_v13 = vcombine.high %v442_v21, %v446_v8  ;;  %v8377_v59 = vcombine.low %v442_v21, %v446_v8  ;;  %v8379_v26 = vcombine.low %v443_v24, %v447_v9  ;;  %v495_v21 = vld [vmem:[%s9684_s6 + $0x878] sm:$0xff] }
 0x2a6   : > { %7172 = vmatpush1.bf16.msra.mxu0 %v8321_v14  ;;  %7500 = vmatpush1.bf16.msra.mxu1 %v8323_v17  ;;  %v8380_v14 = vcombine.high %v443_v24, %v447_v9  ;;  %v450_v17 = vld [vmem:[%s9684_s6 + $0x710] sm:$0xff] }
 0x2a7   : > { %7173 = vmatprep.subr.bf16.mxu0 %v8330_v18  ;;  %7501 = vmatprep.subr.bf16.mxu1 %v8332_v20  ;;  %v454_v18 = vld [vmem:[%s9684_s6 + $0x730] sm:$0xff]  ;;  %v451_v20 = vld [vmem:[%s9684_s6 + $0x718] sm:$0xff] }
 0x2a8   : > { %v8386_v28 = vcombine.high %v450_v17, %v454_v18  ;;  %v8385_v34 = vcombine.low %v450_v17, %v454_v18  ;;  %v8387_v57 = vcombine.low %v451_v20, %v455_v23  ;;  %v503_v17 = vld [vmem:[%s9684_s6 + $0x8b8] sm:$0xff] }
 0x2aa   : > { %7174 = vmatpush1.bf16.msra.mxu0 %v8329_v29  ;;  %7502 = vmatpush1.bf16.msra.mxu1 %v8331_v49  ;;  %v8388_v29 = vcombine.high %v451_v20, %v455_v23  ;;  %v458_v49 = vld [vmem:[%s9684_s6 + $0x750] sm:$0xff] }
 0x2ab   : > { %7175 = vmatprep.subr.bf16.mxu0 %v8338_v15  ;;  %7503 = vmatprep.subr.bf16.mxu1 %v8340_v32  ;;  %v462_v15 = vld [vmem:[%s9684_s6 + $0x770] sm:$0xff]  ;;  %v459_v32 = vld [vmem:[%s9684_s6 + $0x758] sm:$0xff] }
 0x2ac   : > { %v8394_v35 = vcombine.high %v458_v49, %v462_v15  ;;  %v8393_v43 = vcombine.low %v458_v49, %v462_v15  ;;  %v8395_v25 = vcombine.low %v459_v32, %v463_v33  ;;  %v511_v49 = vld [vmem:[%s9684_s6 + $0x8f8] sm:$0xff] }
 0x2ae   : > { %7176 = vmatpush1.bf16.msra.mxu0 %v8337_v37  ;;  %7504 = vmatpush1.bf16.msra.mxu1 %v8339_v38  ;;  %v8396_v37 = vcombine.high %v459_v32, %v463_v33  ;;  %v466_v38 = vld [vmem:[%s9684_s6 + $0x790] sm:$0xff] }
 0x2af   : > { %7177 = vmatprep.subr.bf16.mxu0 %v8346_v40  ;;  %7505 = vmatprep.subr.bf16.mxu1 %v8348_v41  ;;  %v470_v40 = vld [vmem:[%s9684_s6 + $0x7b0] sm:$0xff]  ;;  %v467_v41 = vld [vmem:[%s9684_s6 + $0x798] sm:$0xff] }
 0x2b0   : > { %v8402_v44 = vcombine.high %v466_v38, %v470_v40  ;;  %v8401_v54 = vcombine.low %v466_v38, %v470_v40  ;;  %v8403_v19 = vcombine.low %v467_v41, %v471_v42 }
 0x2b2   : > { %7178 = vmatpush1.bf16.msra.mxu0 %v8345_v47  ;;  %7506 = vmatpush1.bf16.msra.mxu1 %v8347_v48  ;;  %v8404_v47 = vcombine.high %v467_v41, %v471_v42  ;;  %v474_v48 = vld [vmem:[%s9684_s6 + $0x7d0] sm:$0xff] }
 0x2b3   : > { %7179 = vmatprep.subr.bf16.mxu0 %v8354_v50  ;;  %7507 = vmatprep.subr.bf16.mxu1 %v8356_v51  ;;  %v478_v50 = vld [vmem:[%s9684_s6 + $0x7f0] sm:$0xff]  ;;  %v475_v51 = vld [vmem:[%s9684_s6 + $0x7d8] sm:$0xff] }
 0x2b4   : > { %v8410_v56 = vcombine.high %v474_v48, %v478_v50  ;;  %v8409_v0 = vcombine.low %v474_v48, %v478_v50  ;;  %v8411_v2 = vcombine.low %v475_v51, %v479_v52  ;;  %v522_v42 = vld [vmem:[%s9684_s6 + $0x950] sm:$0xff] }
 0x2b6   : > { %7180 = vmatpush1.bf16.msra.mxu0 %v8353_v60  ;;  %7508 = vmatpush1.bf16.msra.mxu1 %v8355_v61  ;;  %v8412_v60 = vcombine.high %v475_v51, %v479_v52  ;;  %v482_v61 = vld [vmem:[%s9684_s6 + $0x810] sm:$0xff] }
 0x2b7   : > { %7181 = vmatprep.subr.bf16.mxu0 %v8362_v62  ;;  %7509 = vmatprep.subr.bf16.mxu1 %v8364_v12  ;;  %v486_v62 = vld [vmem:[%s9684_s6 + $0x830] sm:$0xff]  ;;  %v483_v12 = vld [vmem:[%s9684_s6 + $0x818] sm:$0xff] }
 0x2b8   : > { %v8418_v3 = vcombine.high %v482_v61, %v486_v62  ;;  %v8417_v8 = vcombine.low %v482_v61, %v486_v62  ;;  %v8419_v24 = vcombine.low %v483_v12, %v487_v63  ;;  %v530_v52 = vld [vmem:[%s9684_s6 + $0x990] sm:$0xff] }
 0x2ba   : > { %7182 = vmatpush1.bf16.msra.mxu0 %v8361_v4  ;;  %7510 = vmatpush1.bf16.msra.mxu1 %v8363_v5  ;;  %v8420_v4 = vcombine.high %v483_v12, %v487_v63  ;;  %v490_v5 = vld [vmem:[%s9684_s6 + $0x850] sm:$0xff] }
 0x2bb   : > { %7183 = vmatprep.subr.bf16.mxu0 %v8370_v6  ;;  %7511 = vmatprep.subr.bf16.mxu1 %v8372_v7  ;;  %v494_v6 = vld [vmem:[%s9684_s6 + $0x870] sm:$0xff]  ;;  %v491_v7 = vld [vmem:[%s9684_s6 + $0x858] sm:$0xff] }
 0x2bc   : > { %v8426_v9 = vcombine.high %v490_v5, %v494_v6  ;;  %v8425_v18 = vcombine.low %v490_v5, %v494_v6  ;;  %v8427_v20 = vcombine.low %v491_v7, %v495_v21  ;;  %v538_v63 = vld [vmem:[%s9684_s6 + $0x9d0] sm:$0xff] }
 0x2be   : > { %7184 = vmatpush1.bf16.msra.mxu0 %v8369_v10  ;;  %7512 = vmatpush1.bf16.msra.mxu1 %v8371_v11  ;;  %v8428_v10 = vcombine.high %v491_v7, %v495_v21  ;;  %v498_v11 = vld [vmem:[%s9684_s6 + $0x890] sm:$0xff] }
 0x2bf   : > { %7185 = vmatprep.subr.bf16.mxu0 %v8378_v13  ;;  %7513 = vmatprep.subr.bf16.mxu1 %v8380_v14  ;;  %v502_v13 = vld [vmem:[%s9684_s6 + $0x8b0] sm:$0xff]  ;;  %v499_v14 = vld [vmem:[%s9684_s6 + $0x898] sm:$0xff] }
 0x2c0   : > { %v8434_v23 = vcombine.high %v498_v11, %v502_v13  ;;  %v8435_v15 = vcombine.low %v499_v14, %v503_v17  ;;  %v546_v21 = vld [vmem:[%s9684_s6 + $0xa10] sm:$0xff] }
 0x2c2   : > { %7186 = vmatpush1.bf16.msra.mxu0 %v8377_v59  ;;  %7514 = vmatpush1.bf16.msra.mxu1 %v8379_v26  ;;  %v8436_v59 = vcombine.high %v499_v14, %v503_v17  ;;  %v506_v26 = vld [vmem:[%s9684_s6 + $0x8d0] sm:$0xff] }
 0x2c3   : > { %7187 = vmatprep.subr.bf16.mxu0 %v8386_v28  ;;  %7515 = vmatprep.subr.bf16.mxu1 %v8388_v29  ;;  %v510_v28 = vld [vmem:[%s9684_s6 + $0x8f0] sm:$0xff]  ;;  %v507_v29 = vld [vmem:[%s9684_s6 + $0x8d8] sm:$0xff] }
 0x2c4   : > { %v8442_v32 = vcombine.high %v506_v26, %v510_v28  ;;  %v8444_v33 = vcombine.high %v507_v29, %v511_v49  ;;  %v8441_v38 = vcombine.low %v506_v26, %v510_v28  ;;  %v554_v17 = vld [vmem:[%s9684_s6 + $0xa50] sm:$0xff] }
 0x2c6   : > { %7188 = vmatpush1.bf16.msra.mxu0 %v8385_v34  ;;  %7516 = vmatpush1.bf16.msra.mxu1 %v8387_v57  ;;  %v514_v34 = vld [vmem:[%s9684_s6 + $0x910] sm:$0xff] }
 0x2c7   : > { %7189 = vmatprep.subr.bf16.mxu0 %v8394_v35  ;;  %7517 = vmatprep.subr.bf16.mxu1 %v8396_v37  ;;  %v518_v57 = vld [vmem:[%s9684_s6 + $0x930] sm:$0xff]  ;;  %v515_v35 = vld [vmem:[%s9684_s6 + $0x918] sm:$0xff] }
 0x2c8   : > { %v519_v37 = vld [vmem:[%s9684_s6 + $0x938] sm:$0xff]  ;;  %v8450_v40 = vcombine.high %v514_v34, %v518_v57 }
 0x2c9   : > { %v8452_v41 = vcombine.high %v515_v35, %v519_v37  ;;  %v8451_v48 = vcombine.low %v515_v35, %v519_v37  ;;  %v570_v37 = vld [vmem:[%s9684_s6 + $0xad0] sm:$0xff] }
 0x2ca   : > { %7190 = vmatpush1.bf16.msra.mxu0 %v8393_v43  ;;  %7518 = vmatpush1.bf16.msra.mxu1 %v8395_v25  ;;  %v526_v43 = vld [vmem:[%s9684_s6 + $0x970] sm:$0xff]  ;;  %v523_v25 = vld [vmem:[%s9684_s6 + $0x958] sm:$0xff] }
 0x2cb   : > { %7191 = vmatprep.subr.bf16.mxu0 %v8402_v44  ;;  %7519 = vmatprep.subr.bf16.mxu1 %v8404_v47  ;;  %v527_v44 = vld [vmem:[%s9684_s6 + $0x978] sm:$0xff]  ;;  %v8449_v47 = vcombine.low %v514_v34, %v518_v57  ;;  %v8458_v50 = vcombine.high %v522_v42, %v526_v43 }
 0x2cc   : > { %v8460_v51 = vcombine.high %v523_v25, %v527_v44  ;;  %v8459_v61 = vcombine.low %v523_v25, %v527_v44  ;;  %v578_v44 = vld [vmem:[%s9684_s6 + $0xb10] sm:$0xff] }
 0x2ce   : > { %7192 = vmatpush1.bf16.msra.mxu0 %v8401_v54  ;;  %7520 = vmatpush1.bf16.msra.mxu1 %v8403_v19  ;;  %v534_v54 = vld [vmem:[%s9684_s6 + $0x9b0] sm:$0xff]  ;;  %v531_v19 = vld [vmem:[%s9684_s6 + $0x998] sm:$0xff] }
 0x2cf   : > { %7193 = vmatprep.subr.bf16.mxu0 %v8410_v56  ;;  %7521 = vmatprep.subr.bf16.mxu1 %v8412_v60  ;;  %v535_v56 = vld [vmem:[%s9684_s6 + $0x9b8] sm:$0xff]  ;;  %v8457_v60 = vcombine.low %v522_v42, %v526_v43  ;;  %v8466_v62 = vcombine.high %v530_v52, %v534_v54 }
 0x2d0   : > { %v8468_v12 = vcombine.high %v531_v19, %v535_v56  ;;  %v8467_v5 = vcombine.low %v531_v19, %v535_v56  ;;  %v586_v56 = vld [vmem:[%s9684_s6 + $0xb50] sm:$0xff] }
 0x2d2   : > { %7194 = vmatpush1.bf16.msra.mxu0 %v8409_v0  ;;  %7522 = vmatpush1.bf16.msra.mxu1 %v8411_v2  ;;  %v542_v0 = vld [vmem:[%s9684_s6 + $0x9f0] sm:$0xff]  ;;  %v539_v2 = vld [vmem:[%s9684_s6 + $0x9d8] sm:$0xff] }
 0x2d3   : > { %7204 = vmatprep.subr.bf16.mxu0 %v8418_v3  ;;  %7532 = vmatprep.subr.bf16.mxu1 %v8420_v4  ;;  %v543_v3 = vld [vmem:[%s9684_s6 + $0x9f8] sm:$0xff]  ;;  %v8465_v4 = vcombine.low %v530_v52, %v534_v54  ;;  %v8474_v6 = vcombine.high %v538_v63, %v542_v0 }
 0x2d4   : > { %v8476_v7 = vcombine.high %v539_v2, %v543_v3 }
 0x2d5   : > { %7196 = vmatmul.mubr.bf16.vlgmr.msra.gmra.mrb[4].mxu0 %v9860_v22  ;;  %7524 = vmatmul.mubr.bf16.vlgmr.msra.gmra.mrb[4].mxu1 %v9860_v22  ;;  %v8433_v22 = vcombine.low %v498_v11, %v502_v13  ;;  %v8475_v11 = vcombine.low %v539_v2, %v543_v3  ;;  %v594_v3 = vld [vmem:[%s9684_s6 + $0xb90] sm:$0xff] }
 0x2d6   : > { %7205 = vmatpush1.bf16.msra.mxu0 %v8417_v8  ;;  %7533 = vmatpush1.bf16.msra.mxu1 %v8419_v24  ;;  %v550_v8 = vld [vmem:[%s9684_s6 + $0xa30] sm:$0xff]  ;;  %v547_v24 = vld [vmem:[%s9684_s6 + $0xa18] sm:$0xff] }
 0x2d7   : > { %7206 = vmatprep.subr.bf16.mxu0 %v8426_v9  ;;  %7534 = vmatprep.subr.bf16.mxu1 %v8428_v10  ;;  %v551_v9 = vld [vmem:[%s9684_s6 + $0xa38] sm:$0xff]  ;;  %v8473_v10 = vcombine.low %v538_v63, %v542_v0  ;;  %v8482_v13 = vcombine.high %v546_v21, %v550_v8 }
 0x2d8   : > { %7236 = vmatprep.mubr.bf16.mxu0 %v9873_v31  ;;  %7564 = vmatprep.mubr.bf16.mxu1 %v9873_v31  ;;  %v8443_v31 = vcombine.low %v507_v29, %v511_v49  ;;  %v8484_v14 = vcombine.high %v547_v24, %v551_v9  ;;  %v8483_v26 = vcombine.low %v547_v24, %v551_v9  ;;  %v562_v49 = vld [vmem:[%s9684_s6 + $0xa90] sm:$0xff] }
 0x2d9   : > { %v602_v9 = vld [vmem:[%s9684_s6 + $0xbd0] sm:$0xff] }
 0x2da   : > { %7207 = vmatpush1.bf16.msra.mxu0 %v8425_v18  ;;  %7535 = vmatpush1.bf16.msra.mxu1 %v8427_v20  ;;  %v558_v18 = vld [vmem:[%s9684_s6 + $0xa70] sm:$0xff]  ;;  %v555_v20 = vld [vmem:[%s9684_s6 + $0xa58] sm:$0xff] }
 0x2db   : > { %7208 = vmatprep.subr.bf16.mxu0 %v8434_v23  ;;  %7536 = vmatprep.subr.bf16.mxu1 %v8436_v59  ;;  %v559_v23 = vld [vmem:[%s9684_s6 + $0xa78] sm:$0xff]  ;;  %v8481_v59 = vcombine.low %v546_v21, %v550_v8  ;;  %v8490_v28 = vcombine.high %v554_v17, %v558_v18 }
 0x2dc   : > { %v8492_v29 = vcombine.high %v555_v20, %v559_v23  ;;  %v8491_v34 = vcombine.low %v555_v20, %v559_v23  ;;  %v610_v23 = vld [vmem:[%s9684_s6 + $0xc10] sm:$0xff] }
 0x2de   : > { %7209 = vmatpush1.bf16.msra.mxu0 %v8433_v22  ;;  %7537 = vmatpush1.bf16.msra.mxu1 %v8435_v15  ;;  %v566_v22 = vld [vmem:[%s9684_s6 + $0xab0] sm:$0xff]  ;;  %v563_v15 = vld [vmem:[%s9684_s6 + $0xa98] sm:$0xff] }
 0x2df   : > { %7210 = vmatprep.subr.bf16.mxu0 %v8442_v32  ;;  %7538 = vmatprep.subr.bf16.mxu1 %v8444_v33  ;;  %v567_v32 = vld [vmem:[%s9684_s6 + $0xab8] sm:$0xff]  ;;  %v8489_v33 = vcombine.low %v554_v17, %v558_v18  ;;  %v8498_v57 = vcombine.high %v562_v49, %v566_v22 }
 0x2e0   : > { %v8500_v35 = vcombine.high %v563_v15, %v567_v32  ;;  %v8499_v42 = vcombine.low %v563_v15, %v567_v32  ;;  %v618_v32 = vld [vmem:[%s9684_s6 + $0xc50] sm:$0xff] }
 0x2e2   : > { %7211 = vmatpush1.bf16.msra.mxu0 %v8441_v38  ;;  %7539 = vmatpush1.bf16.msra.mxu1 %v8443_v31  ;;  %v574_v38 = vld [vmem:[%s9684_s6 + $0xaf0] sm:$0xff]  ;;  %v571_v31 = vld [vmem:[%s9684_s6 + $0xad8] sm:$0xff] }
 0x2e3   : > { %7212 = vmatprep.subr.bf16.mxu0 %v8450_v40  ;;  %7540 = vmatprep.subr.bf16.mxu1 %v8452_v41  ;;  %v575_v40 = vld [vmem:[%s9684_s6 + $0xaf8] sm:$0xff]  ;;  %v8497_v41 = vcombine.low %v562_v49, %v566_v22  ;;  %v8506_v43 = vcombine.high %v570_v37, %v574_v38 }
 0x2e4   : > { %v8508_v25 = vcombine.high %v571_v31, %v575_v40  ;;  %v8507_v52 = vcombine.low %v571_v31, %v575_v40  ;;  %v626_v40 = vld [vmem:[%s9684_s6 + $0xc90] sm:$0xff] }
 0x2e6   : > { %7213 = vmatpush1.bf16.msra.mxu0 %v8449_v47  ;;  %7541 = vmatpush1.bf16.msra.mxu1 %v8451_v48  ;;  %v582_v47 = vld [vmem:[%s9684_s6 + $0xb30] sm:$0xff]  ;;  %v579_v48 = vld [vmem:[%s9684_s6 + $0xb18] sm:$0xff] }
 0x2e7   : > { %7214 = vmatprep.subr.bf16.mxu0 %v8458_v50  ;;  %7542 = vmatprep.subr.bf16.mxu1 %v8460_v51  ;;  %v583_v50 = vld [vmem:[%s9684_s6 + $0xb38] sm:$0xff]  ;;  %v8505_v51 = vcombine.low %v570_v37, %v574_v38  ;;  %v8514_v54 = vcombine.high %v578_v44, %v582_v47 }
 0x2e8   : > { %v8516_v19 = vcombine.high %v579_v48, %v583_v50  ;;  %v8515_v63 = vcombine.low %v579_v48, %v583_v50  ;;  %v634_v50 = vld [vmem:[%s9684_s6 + $0xcd0] sm:$0xff] }
 0x2ea   : > { %7215 = vmatpush1.bf16.msra.mxu0 %v8457_v60  ;;  %7543 = vmatpush1.bf16.msra.mxu1 %v8459_v61  ;;  %v590_v60 = vld [vmem:[%s9684_s6 + $0xb70] sm:$0xff]  ;;  %v587_v61 = vld [vmem:[%s9684_s6 + $0xb58] sm:$0xff] }
 0x2eb   : > { %7216 = vmatprep.subr.bf16.mxu0 %v8466_v62  ;;  %7544 = vmatprep.subr.bf16.mxu1 %v8468_v12  ;;  %v591_v62 = vld [vmem:[%s9684_s6 + $0xb78] sm:$0xff]  ;;  %v8513_v12 = vcombine.low %v578_v44, %v582_v47  ;;  %v8522_v0 = vcombine.high %v586_v56, %v590_v60 }
 0x2ec   : > { %v8524_v2 = vcombine.high %v587_v61, %v591_v62  ;;  %v8523_v21 = vcombine.low %v587_v61, %v591_v62  ;;  %v642_v62 = vld [vmem:[%s9684_s6 + $0xd10] sm:$0xff] }
 0x2ee   : > { %7217 = vmatpush1.bf16.msra.mxu0 %v8465_v4  ;;  %7545 = vmatpush1.bf16.msra.mxu1 %v8467_v5  ;;  %v598_v4 = vld [vmem:[%s9684_s6 + $0xbb0] sm:$0xff]  ;;  %v595_v5 = vld [vmem:[%s9684_s6 + $0xb98] sm:$0xff] }
 0x2ef   : > { %7218 = vmatprep.subr.bf16.mxu0 %v8474_v6  ;;  %7546 = vmatprep.subr.bf16.mxu1 %v8476_v7  ;;  %v599_v6 = vld [vmem:[%s9684_s6 + $0xbb8] sm:$0xff]  ;;  %v8521_v7 = vcombine.low %v586_v56, %v590_v60  ;;  %v8530_v8 = vcombine.high %v594_v3, %v598_v4 }
 0x2f0   : > { %v8532_v24 = vcombine.high %v595_v5, %v599_v6  ;;  %v8531_v17 = vcombine.low %v595_v5, %v599_v6  ;;  %v650_v6 = vld [vmem:[%s9684_s6 + $0xd50] sm:$0xff] }
 0x2f2   : > { %7219 = vmatpush1.bf16.msra.mxu0 %v8473_v10  ;;  %7547 = vmatpush1.bf16.msra.mxu1 %v8475_v11  ;;  %v606_v10 = vld [vmem:[%s9684_s6 + $0xbf0] sm:$0xff]  ;;  %v603_v11 = vld [vmem:[%s9684_s6 + $0xbd8] sm:$0xff] }
 0x2f3   : > { %7220 = vmatprep.subr.bf16.mxu0 %v8482_v13  ;;  %7548 = vmatprep.subr.bf16.mxu1 %v8484_v14  ;;  %v607_v13 = vld [vmem:[%s9684_s6 + $0xbf8] sm:$0xff]  ;;  %v8529_v14 = vcombine.low %v594_v3, %v598_v4  ;;  %v8538_v18 = vcombine.high %v602_v9, %v606_v10 }
 0x2f4   : > { %v8540_v20 = vcombine.high %v603_v11, %v607_v13  ;;  %v8539_v49 = vcombine.low %v603_v11, %v607_v13 }
 0x2f6   : > { %7221 = vmatpush1.bf16.msra.mxu0 %v8481_v59  ;;  %7549 = vmatpush1.bf16.msra.mxu1 %v8483_v26  ;;  %v614_v59 = vld [vmem:[%s9684_s6 + $0xc30] sm:$0xff]  ;;  %v611_v26 = vld [vmem:[%s9684_s6 + $0xc18] sm:$0xff] }
 0x2f7   : > { %7222 = vmatprep.subr.bf16.mxu0 %v8490_v28  ;;  %7550 = vmatprep.subr.bf16.mxu1 %v8492_v29  ;;  %v615_v28 = vld [vmem:[%s9684_s6 + $0xc38] sm:$0xff]  ;;  %v8537_v29 = vcombine.low %v602_v9, %v606_v10  ;;  %v8546_v22 = vcombine.high %v610_v23, %v614_v59  ;;  %v1248_v10 = vld [vmem:[%s9690_s9] sm:$0xff] }
 0x2f8   : > { %v8548_v15 = vcombine.high %v611_v26, %v615_v28  ;;  %v8547_v37 = vcombine.low %v611_v26, %v615_v28  ;;  %v659_v28 = vld [vmem:[%s9684_s6 + $0xd98] sm:$0xff] }
 0x2fa   : > { %7223 = vmatpush1.bf16.msra.mxu0 %v8489_v33  ;;  %7551 = vmatpush1.bf16.msra.mxu1 %v8491_v34  ;;  %v622_v33 = vld [vmem:[%s9684_s6 + $0xc70] sm:$0xff]  ;;  %v619_v34 = vld [vmem:[%s9684_s6 + $0xc58] sm:$0xff] }
 0x2fb   : > { %7224 = vmatprep.subr.bf16.mxu0 %v8498_v57  ;;  %7552 = vmatprep.subr.bf16.mxu1 %v8500_v35  ;;  %v623_v57 = vld [vmem:[%s9684_s6 + $0xc78] sm:$0xff]  ;;  %v8545_v35 = vcombine.low %v610_v23, %v614_v59  ;;  %v8554_v38 = vcombine.high %v618_v32, %v622_v33  ;;  %v658_v23 = vld [vmem:[%s9684_s6 + $0xd90] sm:$0xff] }
 0x2fc   : > { %v8556_v31 = vcombine.high %v619_v34, %v623_v57  ;;  %v8555_v44 = vcombine.low %v619_v34, %v623_v57  ;;  %v662_v59 = vld [vmem:[%s9684_s6 + $0xdb0] sm:$0xff] }
 0x2fd   : > { %v8594_v34 = vcombine.high %v658_v23, %v662_v59 }
 0x2fe   : > { %7225 = vmatpush1.bf16.msra.mxu0 %v8497_v41  ;;  %7553 = vmatpush1.bf16.msra.mxu1 %v8499_v42  ;;  %v630_v41 = vld [vmem:[%s9684_s6 + $0xcb0] sm:$0xff]  ;;  %v627_v42 = vld [vmem:[%s9684_s6 + $0xc98] sm:$0xff] }
 0x2ff   : > { %7226 = vmatprep.subr.bf16.mxu0 %v8506_v43  ;;  %7554 = vmatprep.subr.bf16.mxu1 %v8508_v25  ;;  %v631_v43 = vld [vmem:[%s9684_s6 + $0xcb8] sm:$0xff]  ;;  %v8553_v25 = vcombine.low %v618_v32, %v622_v33  ;;  %v8562_v47 = vcombine.high %v626_v40, %v630_v41 }
 0x300   : > { %v8564_v48 = vcombine.high %v627_v42, %v631_v43  ;;  %v8563_v56 = vcombine.low %v627_v42, %v631_v43  ;;  %v667_v42 = vld [vmem:[%s9684_s6 + $0xdd8] sm:$0xff] }
 0x301   : > { %v671_v43 = vld [vmem:[%s9684_s6 + $0xdf8] sm:$0xff] }
 0x302   : > { %7227 = vmatpush1.bf16.msra.mxu0 %v8505_v51  ;;  %7555 = vmatpush1.bf16.msra.mxu1 %v8507_v52  ;;  %v638_v51 = vld [vmem:[%s9684_s6 + $0xcf0] sm:$0xff]  ;;  %v635_v52 = vld [vmem:[%s9684_s6 + $0xcd8] sm:$0xff] }
 0x303   : > { %7228 = vmatprep.subr.bf16.mxu0 %v8514_v54  ;;  %7556 = vmatprep.subr.bf16.mxu1 %v8516_v19  ;;  %v639_v54 = vld [vmem:[%s9684_s6 + $0xcf8] sm:$0xff]  ;;  %v1250_v19 = vlaneseq  ;;  %v8570_v60 = vcombine.high %v634_v50, %v638_v51 }
 0x304   : > { %v8572_v61 = vcombine.high %v635_v52, %v639_v54  ;;  %v8571_v3 = vcombine.low %v635_v52, %v639_v54 }
 0x306   : > { %7229 = vmatpush1.bf16.msra.mxu0 %v8513_v12  ;;  %7557 = vmatpush1.bf16.msra.mxu1 %v8515_v63  ;;  %v646_v12 = vld [vmem:[%s9684_s6 + $0xd30] sm:$0xff]  ;;  %v643_v63 = vld [vmem:[%s9684_s6 + $0xd18] sm:$0xff] }
 0x307   : > { %7230 = vmatprep.subr.bf16.mxu0 %v8522_v0  ;;  %7558 = vmatprep.subr.bf16.mxu1 %v8524_v2  ;;  %v647_v0 = vld [vmem:[%s9684_s6 + $0xd38] sm:$0xff]  ;;  %v10570_v2 = vshrl.u32 %v1250_v19, 7  ;;  %v8578_v4 = vcombine.high %v642_v62, %v646_v12  ;;  %v8577_v9 = vcombine.low %v642_v62, %v646_v12  ;;  %v678_v62 = vld [vmem:[%s9684_s6 + $0xe30] sm:$0xff] }
 0x308   : > { %v8580_v5 = vcombine.high %v643_v63, %v647_v0  ;;  %v675_v12 = vld [vmem:[%s9684_s6 + $0xe18] sm:$0xff] }
 0x309   : > { %v1260_v11 = vsub.s32 2, %v10570_v2  ;;  %v1256_v13 = vsub.s32 1, %v10570_v2 }
 0x30a   : > { %7231 = vmatpush1.bf16.msra.mxu0 %v8521_v7  ;;  %7559 = vmatpush1.bf16.msra.mxu1 %v8523_v21  ;;  %v654_v7 = vld [vmem:[%s9684_s6 + $0xd70] sm:$0xff]  ;;  %v1252_v21 = vsub.s32 0, %v10570_v2 }
 0x30b   : > { %7232 = vmatprep.subr.bf16.mxu0 %v8530_v8  ;;  %7560 = vmatprep.subr.bf16.mxu1 %v8532_v24  ;;  %v651_v8 = vld [vmem:[%s9684_s6 + $0xd58] sm:$0xff] }
 0x30c   : > { %v655_v24 = vld [vmem:[%s9684_s6 + $0xd78] sm:$0xff]  ;;  %v1253_v26 = vrot.slane %v1248_v10, %v1252_v21 }
 0x30d   : > { %v8587_v33 = vcombine.low %v651_v8, %v655_v24  ;;  %v687_v21 = vld [vmem:[%s9684_s6 + $0xe78] sm:$0xff] }
 0x30e   : > { %7233 = vmatpush1.bf16.msra.mxu0 %v8529_v14  ;;  %7561 = vmatpush1.bf16.msra.mxu1 %v8531_v17  ;;  %v8579_v14 = vcombine.low %v643_v63, %v647_v0  ;;  %v1264_v17 = vsub.s32 3, %v10570_v2  ;;  %v679_v63 = vld [vmem:[%s9684_s6 + $0xe38] sm:$0xff] }
 0x30f   : > { %7234 = vmatprep.subr.bf16.mxu0 %v8538_v18  ;;  %7562 = vmatprep.subr.bf16.mxu1 %v8540_v20  ;;  %v8586_v18 = vcombine.high %v650_v6, %v654_v7  ;;  %v8588_v20 = vcombine.high %v651_v8, %v655_v24  ;;  %v8611_v24 = vcombine.low %v675_v12, %v679_v63 }
 0x310   : > { %v1265_v32 = vrot.slane %v1248_v10, %v1264_v17  ;;  %v695_v17 = vld [vmem:[%s9684_s6 + $0xeb8] sm:$0xff] }
 0x312   : > { %7235 = vmatpush1.bf16.msra.mxu0 %v8537_v29  ;;  %7563 = vmatpush1.bf16.msra.mxu1 %v8539_v49  ;;  %v663_v29 = vld [vmem:[%s9684_s6 + $0xdb8] sm:$0xff]  ;;  %v1261_v49 = vrot.slane %v1248_v10, %v1260_v11  ;;  %v690_v11 = vld [vmem:[%s9684_s6 + $0xe90] sm:$0xff] }
 0x313   : > { %7245 = vmatprep.subr.bf16.mxu0 %v8546_v22  ;;  %7573 = vmatprep.subr.bf16.mxu1 %v8548_v15  ;;  %v1257_v22 = vrot.slane %v1248_v10, %v1256_v13  ;;  %v8585_v15 = vcombine.low %v650_v6, %v654_v7  ;;  %v8595_v19 = vcombine.low %v659_v28, %v663_v29  ;;  %v686_v6 = vld [vmem:[%s9684_s6 + $0xe70] sm:$0xff]  ;;  %v683_v7 = vld [vmem:[%s9684_s6 + $0xe58] sm:$0xff] }
 0x314   : > { %v8620_v10 = vcombine.high %v683_v7, %v687_v21  ;;  %v694_v13 = vld [vmem:[%s9684_s6 + $0xeb0] sm:$0xff] }
 0x315   : > { %7237 = vmatmul.mubr.bf16.vlgmr.msra.gmra.mrb[4].mxu0 %v9941_v36  ;;  %7565 = vmatmul.mubr.bf16.vlgmr.msra.gmra.mrb[4].mxu1 %v9941_v36  ;;  %v8561_v36 = vcombine.low %v626_v40, %v630_v41 }
 0x316   : > { %7246 = vmatpush1.bf16.msra.mxu0 %v8545_v35  ;;  %7574 = vmatpush1.bf16.msra.mxu1 %v8547_v37  ;;  %v8596_v35 = vcombine.high %v659_v28, %v663_v29  ;;  %v666_v37 = vld [vmem:[%s9684_s6 + $0xdd0] sm:$0xff]  ;;  %v699_v29 = vld [vmem:[%s9684_s6 + $0xed8] sm:$0xff] }
 0x317   : > { %7247 = vmatprep.subr.bf16.mxu0 %v8554_v38  ;;  %7575 = vmatprep.subr.bf16.mxu1 %v8556_v31  ;;  %v670_v38 = vld [vmem:[%s9684_s6 + $0xdf0] sm:$0xff] }
 0x318   : > { %7277 = vmatprep.mubr.bf16.mxu0 %v9954_v45  ;;  %7605 = vmatprep.mubr.bf16.mxu1 %v9954_v45  ;;  %v8569_v45 = vcombine.low %v634_v50, %v638_v51  ;;  %v8593_v50 = vcombine.low %v658_v23, %v662_v59  ;;  %v8601_v0 = vcombine.low %v666_v37, %v670_v38  ;;  %v702_v28 = vld [vmem:[%s9684_s6 + $0xef0] sm:$0xff] }
 0x319   : > { %v8626_v23 = vcombine.high %v690_v11, %v694_v13 }
 0x31a   : > { %7248 = vmatpush1.bf16.msra.mxu0 %v8553_v25  ;;  %7576 = vmatpush1.bf16.msra.mxu1 %v8555_v44 }
 0x31b   : > { %7249 = vmatprep.subr.bf16.mxu0 %v8562_v47  ;;  %7577 = vmatprep.subr.bf16.mxu1 %v8564_v48 }
 0x31e   : > { %7250 = vmatpush1.bf16.msra.mxu0 %v8561_v36  ;;  %7578 = vmatpush1.bf16.msra.mxu1 %v8563_v56  ;;  %v8602_v36 = vcombine.high %v666_v37, %v670_v38  ;;  %v711_v37 = vld [vmem:[%s9684_s6 + $0xf38] sm:$0xff] }
 0x31f   : > { %7251 = vmatprep.subr.bf16.mxu0 %v8570_v60  ;;  %7579 = vmatprep.subr.bf16.mxu1 %v8572_v61  ;;  %v8604_v60 = vcombine.high %v667_v42, %v671_v43  ;;  %v674_v61 = vld [vmem:[%s9684_s6 + $0xe10] sm:$0xff] }
 0x320   : > { %v8609_v8 = vcombine.low %v674_v61, %v678_v62 }
 0x322   : > { %7252 = vmatpush1.bf16.msra.mxu0 %v8569_v45  ;;  %7580 = vmatpush1.bf16.msra.mxu1 %v8571_v3  ;;  %v8603_v45 = vcombine.low %v667_v42, %v671_v43  ;;  %v8610_v3 = vcombine.high %v674_v61, %v678_v62  ;;  %v714_v42 = vld [vmem:[%s9684_s6 + $0xf50] sm:$0xff] }
 0x323   : > { %7253 = vmatprep.subr.bf16.mxu0 %v8578_v4  ;;  %7581 = vmatprep.subr.bf16.mxu1 %v8580_v5  ;;  %v8612_v4 = vcombine.high %v675_v12, %v679_v63  ;;  %v682_v5 = vld [vmem:[%s9684_s6 + $0xe50] sm:$0xff] }
 0x324   : > { %v718_v43 = vld [vmem:[%s9684_s6 + $0xf70] sm:$0xff] }
 0x325   : > { %v730_v12 = vld [vmem:[%s9684_s6 + $0xfd0] sm:$0xff] }
 0x326   : > { %7254 = vmatpush1.bf16.msra.mxu0 %v8577_v9  ;;  %7582 = vmatpush1.bf16.msra.mxu1 %v8579_v14  ;;  %v8618_v9 = vcombine.high %v682_v5, %v686_v6  ;;  %v691_v14 = vld [vmem:[%s9684_s6 + $0xe98] sm:$0xff]  ;;  %v734_v63 = vld [vmem:[%s9684_s6 + $0xff0] sm:$0xff] }
 0x327   : > { %7255 = vmatprep.subr.bf16.mxu0 %v8586_v18  ;;  %7583 = vmatprep.subr.bf16.mxu1 %v8588_v20  ;;  %v8617_v18 = vcombine.low %v682_v5, %v686_v6  ;;  %v8619_v20 = vcombine.low %v683_v7, %v687_v21  ;;  %v8628_v59 = vcombine.high %v691_v14, %v695_v17  ;;  %v738_v7 = vld [vmem:[%s9684_s6 + $0x1010] sm:$0xff] }
 0x328   : > { %v6787_v57 = vpop.f32.mrb[0].mxu0  ;;  %v7115_v40 = vpop.f32.mrb[0].mxu1  ;;  %v8666_v5 = vcombine.high %v730_v12, %v734_v63  ;;  %v742_v21 = vld [vmem:[%s9684_s6 + $0x1030] sm:$0xff] }
 0x329   : > { %v9189_v31 = vadd.f32 %v6787_v57, %v1253_v26  ;;  %v6789_v41 = vpop.f32.mrb[1].mxu0  ;;  %v9191_v25 = vadd.f32 %v7115_v40, %v1261_v49  ;;  %v7117_v47 = vpop.f32.mrb[1].mxu1  ;;  %v698_v26 = vld [vmem:[%s9684_s6 + $0xed0] sm:$0xff]  ;;  %v703_v49 = vld [vmem:[%s9684_s6 + $0xef8] sm:$0xff] }
 0x32a   : > { %v9190_v44 = vadd.f32 %v6789_v41, %v1257_v22  ;;  %v6791_v48 = vpop.f32.mrb[2].mxu0  ;;  %7256 = vmatpush1.bf16.msra.mxu0 %v8585_v15  ;;  %v9192_v51 = vadd.f32 %v7117_v47, %v1265_v32  ;;  %v7119_v52 = vpop.f32.mrb[2].mxu1  ;;  %7584 = vmatpush1.bf16.msra.mxu1 %v8587_v33  ;;  %v8625_v22 = vcombine.low %v690_v11, %v694_v13  ;;  %v710_v57 = vld [vmem:[%s9684_s6 + $0xf30] sm:$0xff] }
 0x32b   : > { %7781 = vst [vmem:[%s10589_s30] sm:$0xff] %v9189_v31  ;;  %v6792_v54 = vpop.f32.mrb[3].mxu0  ;;  %7257 = vmatprep.subr.bf16.mxu0 %v8594_v34  ;;  %7783 = vst [vmem:[%s10589_s30 + $0x10] sm:$0xff] %v9191_v25  ;;  %v7120_v56 = vpop.f32.mrb[3].mxu1  ;;  %7585 = vmatprep.subr.bf16.mxu1 %v8596_v35  ;;  %v8627_v15 = vcombine.low %v691_v14, %v695_v17  ;;  %v8634_v32 = vcombine.high %v698_v26, %v702_v28  ;;  %v706_v34 = vld [vmem:[%s9684_s6 + $0xf10] sm:$0xff]  ;;  %v707_v35 = vld [vmem:[%s9684_s6 + $0xf18] sm:$0xff] }
 0x32c   : > { %7782 = vst [vmem:[%s10589_s30 + $0x8] sm:$0xff] %v9190_v44  ;;  %7784 = vst [vmem:[%s10589_s30 + $0x18] sm:$0xff] %v9192_v51  ;;  %v8636_v33 = vcombine.high %v699_v29, %v703_v49  ;;  %v8633_v38 = vcombine.low %v698_v26, %v702_v28  ;;  %v8635_v31 = vcombine.low %v699_v29, %v703_v49  ;;  %v715_v25 = vld [vmem:[%s9684_s6 + $0xf58] sm:$0xff]  ;;  %v722_v52 = vld [vmem:[%s9684_s6 + $0xf90] sm:$0xff] }
 0x32d   : > { %v8642_v40 = vcombine.high %v706_v34, %v710_v57  ;;  %v8644_v41 = vcombine.high %v707_v35, %v711_v37  ;;  %v719_v44 = vld [vmem:[%s9684_s6 + $0xf78] sm:$0xff]  ;;  %v8641_v47 = vcombine.low %v706_v34, %v710_v57  ;;  %v8643_v48 = vcombine.low %v707_v35, %v711_v37  ;;  %v726_v54 = vld [vmem:[%s9684_s6 + $0xfb0] sm:$0xff] }
 0x32e   : > { %7258 = vmatpush1.bf16.msra.mxu0 %v8593_v50  ;;  %7586 = vmatpush1.bf16.msra.mxu1 %v8595_v19  ;;  %v8650_v50 = vcombine.high %v714_v42, %v718_v43  ;;  %v8652_v51 = vcombine.high %v715_v25, %v719_v44  ;;  %v723_v19 = vld [vmem:[%s9684_s6 + $0xf98] sm:$0xff]  ;;  %v8649_v56 = vcombine.low %v714_v42, %v718_v43  ;;  %v746_v14 = vld [vmem:[%s9684_s6 + $0x1050] sm:$0xff] }
 0x32f   : > { %7259 = vmatprep.subr.bf16.mxu0 %v8602_v36  ;;  %7587 = vmatprep.subr.bf16.mxu1 %v8604_v60  ;;  %v727_v36 = vld [vmem:[%s9684_s6 + $0xfb8] sm:$0xff]  ;;  %v8651_v60 = vcombine.low %v715_v25, %v719_v44  ;;  %v8658_v61 = vcombine.high %v722_v52, %v726_v54  ;;  %v8674_v11 = vcombine.high %v738_v7, %v742_v21  ;;  %v750_v17 = vld [vmem:[%s9684_s6 + $0x1070] sm:$0xff] }
 0x330   : > { %v8660_v62 = vcombine.high %v723_v19, %v727_v36  ;;  %v8682_v26 = vcombine.high %v746_v14, %v750_v17  ;;  %v754_v29 = vld [vmem:[%s9684_s6 + $0x1090] sm:$0xff]  ;;  %v771_v44 = vld [vmem:[%s9684_s6 + $0x1118] sm:$0xff] }
 0x331   : > { %v758_v49 = vld [vmem:[%s9684_s6 + $0x10b0] sm:$0xff] }
 0x332   : > { %7260 = vmatpush1.bf16.msra.mxu0 %v8601_v0  ;;  %7588 = vmatpush1.bf16.msra.mxu1 %v8603_v45  ;;  %v731_v0 = vld [vmem:[%s9684_s6 + $0xfd8] sm:$0xff]  ;;  %v8690_v34 = vcombine.high %v754_v29, %v758_v49  ;;  %v762_v35 = vld [vmem:[%s9684_s6 + $0x10d0] sm:$0xff] }
 0x333   : > { %7261 = vmatprep.subr.bf16.mxu0 %v8610_v3  ;;  %7589 = vmatprep.subr.bf16.mxu1 %v8612_v4  ;;  %v735_v45 = vld [vmem:[%s9684_s6 + $0xff8] sm:$0xff]  ;;  %v8657_v3 = vcombine.low %v722_v52, %v726_v54  ;;  %v8659_v4 = vcombine.low %v723_v19, %v727_v36  ;;  %v766_v37 = vld [vmem:[%s9684_s6 + $0x10f0] sm:$0xff] }
 0x334   : > { %v8668_v6 = vcombine.high %v731_v0, %v735_v45  ;;  %v770_v43 = vld [vmem:[%s9684_s6 + $0x1110] sm:$0xff]  ;;  %v779_v19 = vld [vmem:[%s9684_s6 + $0x1158] sm:$0xff] }
 0x335   : > { %v774_v25 = vld [vmem:[%s9684_s6 + $0x1130] sm:$0xff]  ;;  %v783_v36 = vld [vmem:[%s9684_s6 + $0x1178] sm:$0xff] }
 0x336   : > { %7262 = vmatpush1.bf16.msra.mxu0 %v8609_v8  ;;  %7590 = vmatpush1.bf16.msra.mxu1 %v8611_v24  ;;  %v739_v8 = vld [vmem:[%s9684_s6 + $0x1018] sm:$0xff]  ;;  %v778_v52 = vld [vmem:[%s9684_s6 + $0x1150] sm:$0xff] }
 0x337   : > { %7263 = vmatprep.subr.bf16.mxu0 %v8618_v9  ;;  %7591 = vmatprep.subr.bf16.mxu1 %v8620_v10  ;;  %v743_v24 = vld [vmem:[%s9684_s6 + $0x1038] sm:$0xff]  ;;  %v8665_v9 = vcombine.low %v730_v12, %v734_v63  ;;  %v8667_v10 = vcombine.low %v731_v0, %v735_v45  ;;  %v782_v54 = vld [vmem:[%s9684_s6 + $0x1170] sm:$0xff] }
 0x338   : > { %v8676_v13 = vcombine.high %v739_v8, %v743_v24  ;;  %v786_v12 = vld [vmem:[%s9684_s6 + $0x1190] sm:$0xff]  ;;  %v787_v0 = vld [vmem:[%s9684_s6 + $0x1198] sm:$0xff] }
 0x339   : > { %v790_v63 = vld [vmem:[%s9684_s6 + $0x11b0] sm:$0xff]  ;;  %v791_v45 = vld [vmem:[%s9684_s6 + $0x11b8] sm:$0xff] }
 0x33a   : > { %7264 = vmatpush1.bf16.msra.mxu0 %v8617_v18  ;;  %7592 = vmatpush1.bf16.msra.mxu1 %v8619_v20  ;;  %v747_v18 = vld [vmem:[%s9684_s6 + $0x1058] sm:$0xff] }
 0x33b   : > { %7265 = vmatprep.subr.bf16.mxu0 %v8626_v23  ;;  %7593 = vmatprep.subr.bf16.mxu1 %v8628_v59  ;;  %v751_v20 = vld [vmem:[%s9684_s6 + $0x1078] sm:$0xff]  ;;  %v8673_v23 = vcombine.low %v738_v7, %v742_v21  ;;  %v8675_v59 = vcombine.low %v739_v8, %v743_v24  ;;  %v794_v7 = vld [vmem:[%s9684_s6 + $0x11d0] sm:$0xff] }
 0x33c   : > { %v8684_v28 = vcombine.high %v747_v18, %v751_v20  ;;  %v798_v21 = vld [vmem:[%s9684_s6 + $0x11f0] sm:$0xff]  ;;  %v795_v8 = vld [vmem:[%s9684_s6 + $0x11d8] sm:$0xff] }
 0x33d   : > { %v799_v24 = vld [vmem:[%s9684_s6 + $0x11f8] sm:$0xff] }
 0x33e   : > { %7266 = vmatpush1.bf16.msra.mxu0 %v8625_v22  ;;  %7594 = vmatpush1.bf16.msra.mxu1 %v8627_v15  ;;  %v755_v22 = vld [vmem:[%s9684_s6 + $0x1098] sm:$0xff] }
 0x33f   : > { %7267 = vmatprep.subr.bf16.mxu0 %v8634_v32  ;;  %7595 = vmatprep.subr.bf16.mxu1 %v8636_v33  ;;  %v759_v15 = vld [vmem:[%s9684_s6 + $0x10b8] sm:$0xff]  ;;  %v8681_v32 = vcombine.low %v746_v14, %v750_v17  ;;  %v8683_v33 = vcombine.low %v747_v18, %v751_v20  ;;  %v802_v14 = vld [vmem:[%s9684_s6 + $0x1210] sm:$0xff] }
 0x340   : > { %v8692_v57 = vcombine.high %v755_v22, %v759_v15  ;;  %v806_v17 = vld [vmem:[%s9684_s6 + $0x1230] sm:$0xff]  ;;  %v803_v18 = vld [vmem:[%s9684_s6 + $0x1218] sm:$0xff] }
 0x341   : > { %v807_v20 = vld [vmem:[%s9684_s6 + $0x1238] sm:$0xff] }
 0x342   : > { %7268 = vmatpush1.bf16.msra.mxu0 %v8633_v38  ;;  %7596 = vmatpush1.bf16.msra.mxu1 %v8635_v31  ;;  %v763_v38 = vld [vmem:[%s9684_s6 + $0x10d8] sm:$0xff] }
 0x343   : > { %7269 = vmatprep.subr.bf16.mxu0 %v8642_v40  ;;  %7597 = vmatprep.subr.bf16.mxu1 %v8644_v41  ;;  %v767_v31 = vld [vmem:[%s9684_s6 + $0x10f8] sm:$0xff]  ;;  %v8691_v40 = vcombine.low %v755_v22, %v759_v15  ;;  %v8698_v41 = vcombine.high %v762_v35, %v766_v37 }
 0x344   : > { %v8700_v42 = vcombine.high %v763_v38, %v767_v31  ;;  %v811_v22 = vld [vmem:[%s9684_s6 + $0x1258] sm:$0xff] }
 0x345   : > { %v815_v15 = vld [vmem:[%s9684_s6 + $0x1278] sm:$0xff] }
 0x346   : > { %7270 = vmatpush1.bf16.msra.mxu0 %v8641_v47  ;;  %7598 = vmatpush1.bf16.msra.mxu1 %v8643_v48  ;;  %v775_v47 = vld [vmem:[%s9684_s6 + $0x1138] sm:$0xff]  ;;  %v8697_v48 = vcombine.low %v762_v35, %v766_v37  ;;  %v818_v35 = vld [vmem:[%s9684_s6 + $0x1290] sm:$0xff] }
 0x347   : > { %7271 = vmatprep.subr.bf16.mxu0 %v8650_v50  ;;  %7599 = vmatprep.subr.bf16.mxu1 %v8652_v51  ;;  %v8706_v50 = vcombine.high %v770_v43, %v774_v25  ;;  %v8708_v51 = vcombine.high %v771_v44, %v775_v47  ;;  %v822_v37 = vld [vmem:[%s9684_s6 + $0x12b0] sm:$0xff] }
 0x34a   : > { %7272 = vmatpush1.bf16.msra.mxu0 %v8649_v56  ;;  %7600 = vmatpush1.bf16.msra.mxu1 %v8651_v60  ;;  %v8705_v56 = vcombine.low %v770_v43, %v774_v25  ;;  %v8707_v60 = vcombine.low %v771_v44, %v775_v47  ;;  %v826_v43 = vld [vmem:[%s9684_s6 + $0x12d0] sm:$0xff]  ;;  %v827_v44 = vld [vmem:[%s9684_s6 + $0x12d8] sm:$0xff] }
 0x34b   : > { %7273 = vmatprep.subr.bf16.mxu0 %v8658_v61  ;;  %7601 = vmatprep.subr.bf16.mxu1 %v8660_v62  ;;  %v8714_v61 = vcombine.high %v778_v52, %v782_v54  ;;  %v8716_v62 = vcombine.high %v779_v19, %v783_v36  ;;  %v830_v25 = vld [vmem:[%s9684_s6 + $0x12f0] sm:$0xff]  ;;  %v831_v47 = vld [vmem:[%s9684_s6 + $0x12f8] sm:$0xff] }
 0x34e   : > { %7274 = vmatpush1.bf16.msra.mxu0 %v8657_v3  ;;  %7602 = vmatpush1.bf16.msra.mxu1 %v8659_v4  ;;  %v8713_v3 = vcombine.low %v778_v52, %v782_v54  ;;  %v8715_v4 = vcombine.low %v779_v19, %v783_v36  ;;  %v834_v52 = vld [vmem:[%s9684_s6 + $0x1310] sm:$0xff]  ;;  %v835_v19 = vld [vmem:[%s9684_s6 + $0x1318] sm:$0xff] }
 0x34f   : > { %7275 = vmatprep.subr.bf16.mxu0 %v8666_v5  ;;  %7603 = vmatprep.subr.bf16.mxu1 %v8668_v6  ;;  %v8722_v5 = vcombine.high %v786_v12, %v790_v63  ;;  %v8724_v6 = vcombine.high %v787_v0, %v791_v45  ;;  %v838_v54 = vld [vmem:[%s9684_s6 + $0x1330] sm:$0xff]  ;;  %v839_v36 = vld [vmem:[%s9684_s6 + $0x1338] sm:$0xff] }
 0x352   : > { %7276 = vmatpush1.bf16.msra.mxu0 %v8665_v9  ;;  %7604 = vmatpush1.bf16.msra.mxu1 %v8667_v10  ;;  %v8721_v9 = vcombine.low %v786_v12, %v790_v63  ;;  %v8723_v10 = vcombine.low %v787_v0, %v791_v45  ;;  %v842_v12 = vld [vmem:[%s9684_s6 + $0x1350] sm:$0xff]  ;;  %v843_v0 = vld [vmem:[%s9684_s6 + $0x1358] sm:$0xff] }
 0x353   : > { %7286 = vmatprep.subr.bf16.mxu0 %v8674_v11  ;;  %7614 = vmatprep.subr.bf16.mxu1 %v8676_v13  ;;  %v8730_v11 = vcombine.high %v794_v7, %v798_v21  ;;  %v8732_v13 = vcombine.high %v795_v8, %v799_v24  ;;  %v846_v63 = vld [vmem:[%s9684_s6 + $0x1370] sm:$0xff]  ;;  %v847_v45 = vld [vmem:[%s9684_s6 + $0x1378] sm:$0xff] }
 0x355   : > { %7278 = vmatmul.mubr.bf16.vlgmr.msra.gmra.mrb[4].mxu0 %v10022_v55  ;;  %7606 = vmatmul.mubr.bf16.vlgmr.msra.gmra.mrb[4].mxu1 %v10022_v55  ;;  %v8689_v55 = vcombine.low %v754_v29, %v758_v49  ;;  %v810_v29 = vld [vmem:[%s9684_s6 + $0x1250] sm:$0xff] }
 0x356   : > { %7287 = vmatpush1.bf16.msra.mxu0 %v8673_v23  ;;  %7615 = vmatpush1.bf16.msra.mxu1 %v8675_v59  ;;  %v8729_v23 = vcombine.low %v794_v7, %v798_v21  ;;  %v8731_v59 = vcombine.low %v795_v8, %v799_v24  ;;  %v814_v49 = vld [vmem:[%s9684_s6 + $0x1270] sm:$0xff]  ;;  %v851_v8 = vld [vmem:[%s9684_s6 + $0x1398] sm:$0xff] }
 0x357   : > { %7288 = vmatprep.subr.bf16.mxu0 %v8682_v26  ;;  %7616 = vmatprep.subr.bf16.mxu1 %v8684_v28  ;;  %v8738_v26 = vcombine.high %v802_v14, %v806_v17  ;;  %v8740_v28 = vcombine.high %v803_v18, %v807_v20  ;;  %v850_v7 = vld [vmem:[%s9684_s6 + $0x1390] sm:$0xff]  ;;  %v855_v24 = vld [vmem:[%s9684_s6 + $0x13b8] sm:$0xff] }
 0x358   : > { %7318 = vmatprep.mubr.bf16.mxu0 %v10035_v1  ;;  %7646 = vmatprep.mubr.bf16.mxu1 %v10035_v1  ;;  %v8699_v1 = vcombine.low %v763_v38, %v767_v31  ;;  %v819_v38 = vld [vmem:[%s9684_s6 + $0x1298] sm:$0xff]  ;;  %v854_v21 = vld [vmem:[%s9684_s6 + $0x13b0] sm:$0xff] }
 0x359   : > { %v823_v31 = vld [vmem:[%s9684_s6 + $0x12b8] sm:$0xff] }
 0x35a   : > { %7289 = vmatpush1.bf16.msra.mxu0 %v8681_v32  ;;  %7617 = vmatpush1.bf16.msra.mxu1 %v8683_v33  ;;  %v8737_v32 = vcombine.low %v802_v14, %v806_v17  ;;  %v8739_v33 = vcombine.low %v803_v18, %v807_v20  ;;  %v858_v14 = vld [vmem:[%s9684_s6 + $0x13d0] sm:$0xff]  ;;  %v859_v18 = vld [vmem:[%s9684_s6 + $0x13d8] sm:$0xff] }
 0x35b   : > { %7290 = vmatprep.subr.bf16.mxu0 %v8690_v34  ;;  %7618 = vmatprep.subr.bf16.mxu1 %v8692_v57  ;;  %v8746_v34 = vcombine.high %v810_v29, %v814_v49  ;;  %v8748_v57 = vcombine.high %v811_v22, %v815_v15  ;;  %v862_v17 = vld [vmem:[%s9684_s6 + $0x13f0] sm:$0xff]  ;;  %v863_v20 = vld [vmem:[%s9684_s6 + $0x13f8] sm:$0xff] }
 0x35e   : > { %7291 = vmatpush1.bf16.msra.mxu0 %v8689_v55  ;;  %7619 = vmatpush1.bf16.msra.mxu1 %v8691_v40  ;;  %v8745_v55 = vcombine.low %v810_v29, %v814_v49  ;;  %v8747_v40 = vcombine.low %v811_v22, %v815_v15  ;;  %v866_v29 = vld [vmem:[%s9684_s6 + $0x1410] sm:$0xff]  ;;  %v867_v22 = vld [vmem:[%s9684_s6 + $0x1418] sm:$0xff] }
 0x35f   : > { %7292 = vmatprep.subr.bf16.mxu0 %v8698_v41  ;;  %7620 = vmatprep.subr.bf16.mxu1 %v8700_v42  ;;  %v8754_v41 = vcombine.high %v818_v35, %v822_v37  ;;  %v8756_v42 = vcombine.high %v819_v38, %v823_v31  ;;  %v870_v49 = vld [vmem:[%s9684_s6 + $0x1430] sm:$0xff]  ;;  %v871_v15 = vld [vmem:[%s9684_s6 + $0x1438] sm:$0xff] }
 0x362   : > { %7293 = vmatpush1.bf16.msra.mxu0 %v8697_v48  ;;  %7621 = vmatpush1.bf16.msra.mxu1 %v8699_v1  ;;  %v8753_v48 = vcombine.low %v818_v35, %v822_v37  ;;  %v8755_v1 = vcombine.low %v819_v38, %v823_v31  ;;  %v874_v35 = vld [vmem:[%s9684_s6 + $0x1450] sm:$0xff]  ;;  %v875_v38 = vld [vmem:[%s9684_s6 + $0x1458] sm:$0xff] }
 0x363   : > { %7294 = vmatprep.subr.bf16.mxu0 %v8706_v50  ;;  %7622 = vmatprep.subr.bf16.mxu1 %v8708_v51  ;;  %v8762_v50 = vcombine.high %v826_v43, %v830_v25  ;;  %v8764_v51 = vcombine.high %v827_v44, %v831_v47  ;;  %v878_v37 = vld [vmem:[%s9684_s6 + $0x1470] sm:$0xff]  ;;  %v879_v31 = vld [vmem:[%s9684_s6 + $0x1478] sm:$0xff] }
 0x366   : > { %7295 = vmatpush1.bf16.msra.mxu0 %v8705_v56  ;;  %7623 = vmatpush1.bf16.msra.mxu1 %v8707_v60  ;;  %v8761_v56 = vcombine.low %v826_v43, %v830_v25  ;;  %v8763_v60 = vcombine.low %v827_v44, %v831_v47  ;;  %v882_v43 = vld [vmem:[%s9684_s6 + $0x1490] sm:$0xff]  ;;  %v883_v44 = vld [vmem:[%s9684_s6 + $0x1498] sm:$0xff] }
 0x367   : > { %7296 = vmatprep.subr.bf16.mxu0 %v8714_v61  ;;  %7624 = vmatprep.subr.bf16.mxu1 %v8716_v62  ;;  %v8770_v61 = vcombine.high %v834_v52, %v838_v54  ;;  %v8772_v62 = vcombine.high %v835_v19, %v839_v36  ;;  %v886_v25 = vld [vmem:[%s9684_s6 + $0x14b0] sm:$0xff]  ;;  %v887_v47 = vld [vmem:[%s9684_s6 + $0x14b8] sm:$0xff] }
 0x36a   : > { %7297 = vmatpush1.bf16.msra.mxu0 %v8713_v3  ;;  %7625 = vmatpush1.bf16.msra.mxu1 %v8715_v4  ;;  %v8769_v3 = vcombine.low %v834_v52, %v838_v54  ;;  %v8771_v4 = vcombine.low %v835_v19, %v839_v36  ;;  %v890_v52 = vld [vmem:[%s9684_s6 + $0x14d0] sm:$0xff]  ;;  %v891_v19 = vld [vmem:[%s9684_s6 + $0x14d8] sm:$0xff] }
 0x36b   : > { %7298 = vmatprep.subr.bf16.mxu0 %v8722_v5  ;;  %7626 = vmatprep.subr.bf16.mxu1 %v8724_v6  ;;  %v8778_v5 = vcombine.high %v842_v12, %v846_v63  ;;  %v8780_v6 = vcombine.high %v843_v0, %v847_v45  ;;  %v894_v54 = vld [vmem:[%s9684_s6 + $0x14f0] sm:$0xff]  ;;  %v895_v36 = vld [vmem:[%s9684_s6 + $0x14f8] sm:$0xff] }
 0x36e   : > { %7299 = vmatpush1.bf16.msra.mxu0 %v8721_v9  ;;  %7627 = vmatpush1.bf16.msra.mxu1 %v8723_v10  ;;  %v8777_v9 = vcombine.low %v842_v12, %v846_v63  ;;  %v8779_v10 = vcombine.low %v843_v0, %v847_v45  ;;  %v902_v12 = vld [vmem:[%s9684_s6 + $0x1530] sm:$0xff]  ;;  %v899_v63 = vld [vmem:[%s9684_s6 + $0x1518] sm:$0xff]  ;;  %v8825_v45 = vcombine.low %v890_v52, %v894_v54 }
 0x36f   : > { %7300 = vmatprep.subr.bf16.mxu0 %v8730_v11  ;;  %7628 = vmatprep.subr.bf16.mxu1 %v8732_v13  ;;  %v8786_v11 = vcombine.high %v850_v7, %v854_v21  ;;  %v8788_v13 = vcombine.high %v851_v8, %v855_v24  ;;  %v903_v0 = vld [vmem:[%s9684_s6 + $0x1538] sm:$0xff] }
 0x372   : > { %7301 = vmatpush1.bf16.msra.mxu0 %v8729_v23  ;;  %7629 = vmatpush1.bf16.msra.mxu1 %v8731_v59  ;;  %v8785_v23 = vcombine.low %v850_v7, %v854_v21  ;;  %v8787_v59 = vcombine.low %v851_v8, %v855_v24  ;;  %v907_v7 = vld [vmem:[%s9684_s6 + $0x1558] sm:$0xff]  ;;  %v8835_v24 = vcombine.low %v899_v63, %v903_v0 }
 0x373   : > { %7302 = vmatprep.subr.bf16.mxu0 %v8738_v26  ;;  %7630 = vmatprep.subr.bf16.mxu1 %v8740_v28  ;;  %v8794_v26 = vcombine.high %v858_v14, %v862_v17  ;;  %v8796_v28 = vcombine.high %v859_v18, %v863_v20  ;;  %v911_v21 = vld [vmem:[%s9684_s6 + $0x1578] sm:$0xff] }
 0x376   : > { %7303 = vmatpush1.bf16.msra.mxu0 %v8737_v32  ;;  %7631 = vmatpush1.bf16.msra.mxu1 %v8739_v33  ;;  %v8793_v32 = vcombine.low %v858_v14, %v862_v17  ;;  %v8795_v33 = vcombine.low %v859_v18, %v863_v20  ;;  %v915_v14 = vld [vmem:[%s9684_s6 + $0x1598] sm:$0xff]  ;;  %v8843_v20 = vcombine.low %v907_v7, %v911_v21 }
 0x377   : > { %7304 = vmatprep.subr.bf16.mxu0 %v8746_v34  ;;  %7632 = vmatprep.subr.bf16.mxu1 %v8748_v57  ;;  %v8802_v34 = vcombine.high %v866_v29, %v870_v49  ;;  %v8804_v57 = vcombine.high %v867_v22, %v871_v15  ;;  %v919_v17 = vld [vmem:[%s9684_s6 + $0x15b8] sm:$0xff] }
 0x37a   : > { %7305 = vmatpush1.bf16.msra.mxu0 %v8745_v55  ;;  %7633 = vmatpush1.bf16.msra.mxu1 %v8747_v40  ;;  %v8801_v55 = vcombine.low %v866_v29, %v870_v49  ;;  %v8803_v40 = vcombine.low %v867_v22, %v871_v15  ;;  %v923_v29 = vld [vmem:[%s9684_s6 + $0x15d8] sm:$0xff]  ;;  %v8851_v15 = vcombine.low %v915_v14, %v919_v17 }
 0x37b   : > { %7306 = vmatprep.subr.bf16.mxu0 %v8754_v41  ;;  %7634 = vmatprep.subr.bf16.mxu1 %v8756_v42  ;;  %v8810_v41 = vcombine.high %v874_v35, %v878_v37  ;;  %v8812_v42 = vcombine.high %v875_v38, %v879_v31  ;;  %v927_v49 = vld [vmem:[%s9684_s6 + $0x15f8] sm:$0xff] }
 0x37e   : > { %7307 = vmatpush1.bf16.msra.mxu0 %v8753_v48  ;;  %7635 = vmatpush1.bf16.msra.mxu1 %v8755_v1  ;;  %v8809_v48 = vcombine.low %v874_v35, %v878_v37  ;;  %v8811_v1 = vcombine.low %v875_v38, %v879_v31  ;;  %v931_v35 = vld [vmem:[%s9684_s6 + $0x1618] sm:$0xff]  ;;  %v8859_v31 = vcombine.low %v923_v29, %v927_v49 }
 0x37f   : > { %7308 = vmatprep.subr.bf16.mxu0 %v8762_v50  ;;  %7636 = vmatprep.subr.bf16.mxu1 %v8764_v51  ;;  %v8818_v50 = vcombine.high %v882_v43, %v886_v25  ;;  %v8820_v51 = vcombine.high %v883_v44, %v887_v47  ;;  %v935_v37 = vld [vmem:[%s9684_s6 + $0x1638] sm:$0xff] }
 0x382   : > { %7309 = vmatpush1.bf16.msra.mxu0 %v8761_v56  ;;  %7637 = vmatpush1.bf16.msra.mxu1 %v8763_v60  ;;  %v8819_v56 = vcombine.low %v883_v44, %v887_v47  ;;  %v8826_v60 = vcombine.high %v890_v52, %v894_v54  ;;  %v8867_v47 = vcombine.low %v931_v35, %v935_v37  ;;  %v947_v52 = vld [vmem:[%s9684_s6 + $0x1698] sm:$0xff] }
 0x383   : > { %7310 = vmatprep.subr.bf16.mxu0 %v8770_v61  ;;  %7638 = vmatprep.subr.bf16.mxu1 %v8772_v62  ;;  %v8828_v61 = vcombine.high %v891_v19, %v895_v36  ;;  %v898_v62 = vld [vmem:[%s9684_s6 + $0x1510] sm:$0xff]  ;;  %v951_v54 = vld [vmem:[%s9684_s6 + $0x16b8] sm:$0xff] }
 0x384   : > { %v8833_v8 = vcombine.low %v898_v62, %v902_v12 }
 0x386   : > { %7311 = vmatpush1.bf16.msra.mxu0 %v8769_v3  ;;  %7639 = vmatpush1.bf16.msra.mxu1 %v8771_v4  ;;  %v8834_v3 = vcombine.high %v898_v62, %v902_v12  ;;  %v8836_v4 = vcombine.high %v899_v63, %v903_v0  ;;  %v955_v62 = vld [vmem:[%s9684_s6 + $0x16d8] sm:$0xff]  ;;  %v8883_v0 = vcombine.low %v947_v52, %v951_v54 }
 0x387   : > { %7312 = vmatprep.subr.bf16.mxu0 %v8778_v5  ;;  %7640 = vmatprep.subr.bf16.mxu1 %v8780_v6  ;;  %v906_v5 = vld [vmem:[%s9684_s6 + $0x1550] sm:$0xff]  ;;  %v959_v12 = vld [vmem:[%s9684_s6 + $0x16f8] sm:$0xff] }
 0x388   : > { %v910_v6 = vld [vmem:[%s9684_s6 + $0x1570] sm:$0xff] }
 0x389   : > { %v8841_v18 = vcombine.low %v906_v5, %v910_v6 }
 0x38a   : > { %7313 = vmatpush1.bf16.msra.mxu0 %v8777_v9  ;;  %7641 = vmatpush1.bf16.msra.mxu1 %v8779_v10  ;;  %v8842_v9 = vcombine.high %v906_v5, %v910_v6  ;;  %v8844_v10 = vcombine.high %v907_v7, %v911_v21  ;;  %v963_v5 = vld [vmem:[%s9684_s6 + $0x1718] sm:$0xff]  ;;  %v8891_v21 = vcombine.low %v955_v62, %v959_v12 }
 0x38b   : > { %7314 = vmatprep.subr.bf16.mxu0 %v8786_v11  ;;  %7642 = vmatprep.subr.bf16.mxu1 %v8788_v13  ;;  %v914_v11 = vld [vmem:[%s9684_s6 + $0x1590] sm:$0xff]  ;;  %v967_v6 = vld [vmem:[%s9684_s6 + $0x1738] sm:$0xff] }
 0x38c   : > { %v918_v13 = vld [vmem:[%s9684_s6 + $0x15b0] sm:$0xff] }
 0x38d   : > { %v8849_v22 = vcombine.low %v914_v11, %v918_v13 }
 0x38e   : > { %7315 = vmatpush1.bf16.msra.mxu0 %v8785_v23  ;;  %7643 = vmatpush1.bf16.msra.mxu1 %v8787_v59  ;;  %v8850_v23 = vcombine.high %v914_v11, %v918_v13  ;;  %v8852_v59 = vcombine.high %v915_v14, %v919_v17  ;;  %v971_v11 = vld [vmem:[%s9684_s6 + $0x1758] sm:$0xff]  ;;  %v8899_v17 = vcombine.low %v963_v5, %v967_v6 }
 0x38f   : > { %7316 = vmatprep.subr.bf16.mxu0 %v8794_v26  ;;  %7644 = vmatprep.subr.bf16.mxu1 %v8796_v28  ;;  %v922_v26 = vld [vmem:[%s9684_s6 + $0x15d0] sm:$0xff]  ;;  %v975_v13 = vld [vmem:[%s9684_s6 + $0x1778] sm:$0xff] }
 0x390   : > { %v926_v28 = vld [vmem:[%s9684_s6 + $0x15f0] sm:$0xff] }
 0x391   : > { %v8857_v38 = vcombine.low %v922_v26, %v926_v28 }
 0x392   : > { %7317 = vmatpush1.bf16.msra.mxu0 %v8793_v32  ;;  %7645 = vmatpush1.bf16.msra.mxu1 %v8795_v33  ;;  %v8858_v32 = vcombine.high %v922_v26, %v926_v28  ;;  %v8860_v33 = vcombine.high %v923_v29, %v927_v49  ;;  %v979_v26 = vld [vmem:[%s9684_s6 + $0x1798] sm:$0xff]  ;;  %v8907_v49 = vcombine.low %v971_v11, %v975_v13 }
 0x393   : > { %7327 = vmatprep.subr.bf16.mxu0 %v8802_v34  ;;  %7655 = vmatprep.subr.bf16.mxu1 %v8804_v57  ;;  %v930_v34 = vld [vmem:[%s9684_s6 + $0x1610] sm:$0xff]  ;;  %v983_v28 = vld [vmem:[%s9684_s6 + $0x17b8] sm:$0xff] }
 0x394   : > { %v934_v57 = vld [vmem:[%s9684_s6 + $0x1630] sm:$0xff] }
 0x395   : > { %7319 = vmatmul.mubr.bf16.vlgmr.msra.gmra.mrb[4].mxu0 %v10103_v16  ;;  %7647 = vmatmul.mubr.bf16.vlgmr.msra.gmra.mrb[4].mxu1 %v10103_v16  ;;  %v8817_v16 = vcombine.low %v882_v43, %v886_v25  ;;  %v939_v43 = vld [vmem:[%s9684_s6 + $0x1658] sm:$0xff]  ;;  %v8865_v44 = vcombine.low %v930_v34, %v934_v57 }
 0x396   : > { %7328 = vmatpush1.bf16.msra.mxu0 %v8801_v55  ;;  %7656 = vmatpush1.bf16.msra.mxu1 %v8803_v40  ;;  %v8866_v55 = vcombine.high %v930_v34, %v934_v57  ;;  %v8868_v40 = vcombine.high %v931_v35, %v935_v37  ;;  %v943_v25 = vld [vmem:[%s9684_s6 + $0x1678] sm:$0xff]  ;;  %v8915_v37 = vcombine.low %v979_v26, %v983_v28 }
 0x397   : > { %7329 = vmatprep.subr.bf16.mxu0 %v8810_v41  ;;  %7657 = vmatprep.subr.bf16.mxu1 %v8812_v42  ;;  %v938_v41 = vld [vmem:[%s9684_s6 + $0x1650] sm:$0xff]  ;;  %v987_v34 = vld [vmem:[%s9684_s6 + $0x17d8] sm:$0xff] }
 0x398   : > { %7359 = vmatprep.mubr.bf16.mxu0 %v10116_v27  ;;  %7687 = vmatprep.mubr.bf16.mxu1 %v10116_v27  ;;  %v8827_v27 = vcombine.low %v891_v19, %v895_v36  ;;  %v942_v42 = vld [vmem:[%s9684_s6 + $0x1670] sm:$0xff]  ;;  %v8875_v36 = vcombine.low %v939_v43, %v943_v25  ;;  %v991_v57 = vld [vmem:[%s9684_s6 + $0x17f8] sm:$0xff] }
 0x399   : > { %v8873_v19 = vcombine.low %v938_v41, %v942_v42 }
 0x39a   : > { %7330 = vmatpush1.bf16.msra.mxu0 %v8809_v48  ;;  %7658 = vmatpush1.bf16.msra.mxu1 %v8811_v1  ;;  %v8874_v48 = vcombine.high %v938_v41, %v942_v42  ;;  %v8876_v1 = vcombine.high %v939_v43, %v943_v25  ;;  %v995_v41 = vld [vmem:[%s9684_s6 + $0x1818] sm:$0xff]  ;;  %v8923_v25 = vcombine.low %v987_v34, %v991_v57 }
 0x39b   : > { %7331 = vmatprep.subr.bf16.mxu0 %v8818_v50  ;;  %7659 = vmatprep.subr.bf16.mxu1 %v8820_v51  ;;  %v946_v50 = vld [vmem:[%s9684_s6 + $0x1690] sm:$0xff]  ;;  %v999_v42 = vld [vmem:[%s9684_s6 + $0x1838] sm:$0xff] }
 0x39c   : > { %v950_v51 = vld [vmem:[%s9684_s6 + $0x16b0] sm:$0xff] }
 0x39d   : > { %v8881_v63 = vcombine.low %v946_v50, %v950_v51 }
 0x39e   : > { %7332 = vmatpush1.bf16.msra.mxu0 %v8817_v16  ;;  %7660 = vmatpush1.bf16.msra.mxu1 %v8819_v56  ;;  %v8882_v16 = vcombine.high %v946_v50, %v950_v51  ;;  %v8884_v56 = vcombine.high %v947_v52, %v951_v54  ;;  %v1003_v50 = vld [vmem:[%s9684_s6 + $0x1858] sm:$0xff]  ;;  %v8931_v54 = vcombine.low %v995_v41, %v999_v42 }
 0x39f   : > { %7333 = vmatprep.subr.bf16.mxu0 %v8826_v60  ;;  %7661 = vmatprep.subr.bf16.mxu1 %v8828_v61  ;;  %v954_v60 = vld [vmem:[%s9684_s6 + $0x16d0] sm:$0xff]  ;;  %v1007_v51 = vld [vmem:[%s9684_s6 + $0x1878] sm:$0xff] }
 0x3a0   : > { %v958_v61 = vld [vmem:[%s9684_s6 + $0x16f0] sm:$0xff] }
 0x3a1   : > { %v8889_v7 = vcombine.low %v954_v60, %v958_v61 }
 0x3a2   : > { %7334 = vmatpush1.bf16.msra.mxu0 %v8825_v45  ;;  %7662 = vmatpush1.bf16.msra.mxu1 %v8827_v27  ;;  %v8890_v45 = vcombine.high %v954_v60, %v958_v61  ;;  %v8892_v27 = vcombine.high %v955_v62, %v959_v12  ;;  %v1011_v60 = vld [vmem:[%s9684_s6 + $0x1898] sm:$0xff]  ;;  %v8939_v12 = vcombine.low %v1003_v50, %v1007_v51 }
 0x3a3   : > { %7335 = vmatprep.subr.bf16.mxu0 %v8834_v3  ;;  %7663 = vmatprep.subr.bf16.mxu1 %v8836_v4  ;;  %v962_v3 = vld [vmem:[%s9684_s6 + $0x1710] sm:$0xff]  ;;  %v1015_v61 = vld [vmem:[%s9684_s6 + $0x18b8] sm:$0xff] }
 0x3a4   : > { %v966_v4 = vld [vmem:[%s9684_s6 + $0x1730] sm:$0xff] }
 0x3a5   : > { %v8897_v14 = vcombine.low %v962_v3, %v966_v4 }
 0x3a6   : > { %7336 = vmatpush1.bf16.msra.mxu0 %v8833_v8  ;;  %7664 = vmatpush1.bf16.msra.mxu1 %v8835_v24  ;;  %v8898_v8 = vcombine.high %v962_v3, %v966_v4  ;;  %v8900_v24 = vcombine.high %v963_v5, %v967_v6  ;;  %v1019_v3 = vld [vmem:[%s9684_s6 + $0x18d8] sm:$0xff]  ;;  %v8947_v5 = vcombine.low %v1011_v60, %v1015_v61 }
 0x3a7   : > { %7337 = vmatprep.subr.bf16.mxu0 %v8842_v9  ;;  %7665 = vmatprep.subr.bf16.mxu1 %v8844_v10  ;;  %v970_v9 = vld [vmem:[%s9684_s6 + $0x1750] sm:$0xff]  ;;  %v1023_v4 = vld [vmem:[%s9684_s6 + $0x18f8] sm:$0xff] }
 0x3a8   : > { %v974_v10 = vld [vmem:[%s9684_s6 + $0x1770] sm:$0xff] }
 0x3a9   : > { %v8905_v29 = vcombine.low %v970_v9, %v974_v10 }
 0x3aa   : > { %7338 = vmatpush1.bf16.msra.mxu0 %v8841_v18  ;;  %7666 = vmatpush1.bf16.msra.mxu1 %v8843_v20  ;;  %v8906_v18 = vcombine.high %v970_v9, %v974_v10  ;;  %v8908_v20 = vcombine.high %v971_v11, %v975_v13  ;;  %v1031_v9 = vld [vmem:[%s9684_s6 + $0x1938] sm:$0xff] }
 0x3ab   : > { %7339 = vmatprep.subr.bf16.mxu0 %v8850_v23  ;;  %7667 = vmatprep.subr.bf16.mxu1 %v8852_v59  ;;  %v978_v23 = vld [vmem:[%s9684_s6 + $0x1790] sm:$0xff] }
 0x3ac   : > { %v982_v59 = vld [vmem:[%s9684_s6 + $0x17b0] sm:$0xff] }
 0x3ad   : > { %v8913_v35 = vcombine.low %v978_v23, %v982_v59 }
 0x3ae   : > { %7340 = vmatpush1.bf16.msra.mxu0 %v8849_v22  ;;  %7668 = vmatpush1.bf16.msra.mxu1 %v8851_v15  ;;  %v8914_v22 = vcombine.high %v978_v23, %v982_v59  ;;  %v8916_v15 = vcombine.high %v979_v26, %v983_v28 }
 0x3af   : > { %7341 = vmatprep.subr.bf16.mxu0 %v8858_v32  ;;  %7669 = vmatprep.subr.bf16.mxu1 %v8860_v33  ;;  %v986_v32 = vld [vmem:[%s9684_s6 + $0x17d0] sm:$0xff] }
 0x3b0   : > { %v990_v33 = vld [vmem:[%s9684_s6 + $0x17f0] sm:$0xff] }
 0x3b1   : > { %v8921_v43 = vcombine.low %v986_v32, %v990_v33 }
 0x3b2   : > { %7342 = vmatpush1.bf16.msra.mxu0 %v8857_v38  ;;  %7670 = vmatpush1.bf16.msra.mxu1 %v8859_v31  ;;  %v8922_v38 = vcombine.high %v986_v32, %v990_v33  ;;  %v8924_v31 = vcombine.high %v987_v34, %v991_v57 }
 0x3b3   : > { %7343 = vmatprep.subr.bf16.mxu0 %v8866_v55  ;;  %7671 = vmatprep.subr.bf16.mxu1 %v8868_v40  ;;  %v994_v55 = vld [vmem:[%s9684_s6 + $0x1810] sm:$0xff] }
 0x3b4   : > { %v998_v40 = vld [vmem:[%s9684_s6 + $0x1830] sm:$0xff] }
 0x3b5   : > { %v8929_v52 = vcombine.low %v994_v55, %v998_v40 }
 0x3b6   : > { %7344 = vmatpush1.bf16.msra.mxu0 %v8865_v44  ;;  %7672 = vmatpush1.bf16.msra.mxu1 %v8867_v47  ;;  %v8930_v44 = vcombine.high %v994_v55, %v998_v40  ;;  %v8932_v47 = vcombine.high %v995_v41, %v999_v42 }
 0x3b7   : > { %7345 = vmatprep.subr.bf16.mxu0 %v8874_v48  ;;  %7673 = vmatprep.subr.bf16.mxu1 %v8876_v1  ;;  %v1002_v48 = vld [vmem:[%s9684_s6 + $0x1850] sm:$0xff] }
 0x3b8   : > { %v1006_v1 = vld [vmem:[%s9684_s6 + $0x1870] sm:$0xff] }
 0x3b9   : > { %v8937_v62 = vcombine.low %v1002_v48, %v1006_v1 }
 0x3ba   : > { %7346 = vmatpush1.bf16.msra.mxu0 %v8873_v19  ;;  %7674 = vmatpush1.bf16.msra.mxu1 %v8875_v36  ;;  %v8938_v19 = vcombine.high %v1002_v48, %v1006_v1  ;;  %v8940_v36 = vcombine.high %v1003_v50, %v1007_v51 }
 0x3bb   : > { %7347 = vmatprep.subr.bf16.mxu0 %v8882_v16  ;;  %7675 = vmatprep.subr.bf16.mxu1 %v8884_v56  ;;  %v1010_v16 = vld [vmem:[%s9684_s6 + $0x1890] sm:$0xff] }
 0x3bc   : > { %v1014_v56 = vld [vmem:[%s9684_s6 + $0x18b0] sm:$0xff] }
 0x3be   : > { %7348 = vmatpush1.bf16.msra.mxu0 %v8881_v63  ;;  %7676 = vmatpush1.bf16.msra.mxu1 %v8883_v0  ;;  %v8946_v63 = vcombine.high %v1010_v16, %v1014_v56  ;;  %v8948_v0 = vcombine.high %v1011_v60, %v1015_v61 }
 0x3bf   : > { %7349 = vmatprep.subr.bf16.mxu0 %v8890_v45  ;;  %7677 = vmatprep.subr.bf16.mxu1 %v8892_v27  ;;  %v1018_v45 = vld [vmem:[%s9684_s6 + $0x18d0] sm:$0xff] }
 0x3c0   : > { %v1022_v27 = vld [vmem:[%s9684_s6 + $0x18f0] sm:$0xff] }
 0x3c1   : > { %v8954_v6 = vcombine.high %v1018_v45, %v1022_v27  ;;  %v8953_v10 = vcombine.low %v1018_v45, %v1022_v27 }
 0x3c2   : > { %7350 = vmatpush1.bf16.msra.mxu0 %v8889_v7  ;;  %7678 = vmatpush1.bf16.msra.mxu1 %v8891_v21  ;;  %v8956_v7 = vcombine.high %v1019_v3, %v1023_v4  ;;  %v1026_v21 = vld [vmem:[%s9684_s6 + $0x1910] sm:$0xff] }
 0x3c3   : > { %7351 = vmatprep.subr.bf16.mxu0 %v8898_v8  ;;  %7679 = vmatprep.subr.bf16.mxu1 %v8900_v24  ;;  %v1030_v8 = vld [vmem:[%s9684_s6 + $0x1930] sm:$0xff]  ;;  %v1027_v24 = vld [vmem:[%s9684_s6 + $0x1918] sm:$0xff] }
 0x3c4   : > { %v8962_v11 = vcombine.high %v1026_v21, %v1030_v8  ;;  %v8964_v13 = vcombine.high %v1027_v24, %v1031_v9  ;;  %v8961_v23 = vcombine.low %v1026_v21, %v1030_v8  ;;  %v8963_v59 = vcombine.low %v1027_v24, %v1031_v9 }
 0x3c6   : > { %7352 = vmatpush1.bf16.msra.mxu0 %v8897_v14  ;;  %7680 = vmatpush1.bf16.msra.mxu1 %v8899_v17  ;;  %v1034_v14 = vld [vmem:[%s9684_s6 + $0x1950] sm:$0xff] }
 0x3c7   : > { %7353 = vmatprep.subr.bf16.mxu0 %v8906_v18  ;;  %7681 = vmatprep.subr.bf16.mxu1 %v8908_v20  ;;  %v1038_v17 = vld [vmem:[%s9684_s6 + $0x1970] sm:$0xff]  ;;  %v1035_v18 = vld [vmem:[%s9684_s6 + $0x1958] sm:$0xff] }
 0x3c8   : > { %v1039_v20 = vld [vmem:[%s9684_s6 + $0x1978] sm:$0xff]  ;;  %v8970_v26 = vcombine.high %v1034_v14, %v1038_v17  ;;  %v8969_v32 = vcombine.low %v1034_v14, %v1038_v17 }
 0x3c9   : > { %v8972_v28 = vcombine.high %v1035_v18, %v1039_v20  ;;  %v8971_v33 = vcombine.low %v1035_v18, %v1039_v20 }
 0x3ca   : > { %7354 = vmatpush1.bf16.msra.mxu0 %v8905_v29  ;;  %7682 = vmatpush1.bf16.msra.mxu1 %v8907_v49  ;;  %v1042_v29 = vld [vmem:[%s9684_s6 + $0x1990] sm:$0xff] }
 0x3cb   : > { %7355 = vmatprep.subr.bf16.mxu0 %v8914_v22  ;;  %7683 = vmatprep.subr.bf16.mxu1 %v8916_v15  ;;  %v1046_v49 = vld [vmem:[%s9684_s6 + $0x19b0] sm:$0xff]  ;;  %v1043_v22 = vld [vmem:[%s9684_s6 + $0x1998] sm:$0xff] }
 0x3cc   : > { %v1047_v15 = vld [vmem:[%s9684_s6 + $0x19b8] sm:$0xff]  ;;  %v8978_v34 = vcombine.high %v1042_v29, %v1046_v49  ;;  %v8977_v55 = vcombine.low %v1042_v29, %v1046_v49 }
 0x3cd   : > { %v8980_v57 = vcombine.high %v1043_v22, %v1047_v15  ;;  %v8979_v40 = vcombine.low %v1043_v22, %v1047_v15 }
 0x3ce   : > { %7356 = vmatpush1.bf16.msra.mxu0 %v8913_v35  ;;  %7684 = vmatpush1.bf16.msra.mxu1 %v8915_v37  ;;  %v1050_v35 = vld [vmem:[%s9684_s6 + $0x19d0] sm:$0xff] }
 0x3cf   : > { %7357 = vmatprep.subr.bf16.mxu0 %v8922_v38  ;;  %7685 = vmatprep.subr.bf16.mxu1 %v8924_v31  ;;  %v1054_v37 = vld [vmem:[%s9684_s6 + $0x19f0] sm:$0xff]  ;;  %v1051_v38 = vld [vmem:[%s9684_s6 + $0x19d8] sm:$0xff] }
 0x3d0   : > { %v1055_v31 = vld [vmem:[%s9684_s6 + $0x19f8] sm:$0xff]  ;;  %v8986_v41 = vcombine.high %v1050_v35, %v1054_v37  ;;  %v8985_v48 = vcombine.low %v1050_v35, %v1054_v37 }
 0x3d1   : > { %v8988_v42 = vcombine.high %v1051_v38, %v1055_v31  ;;  %v8987_v1 = vcombine.low %v1051_v38, %v1055_v31 }
 0x3d2   : > { %7358 = vmatpush1.bf16.msra.mxu0 %v8921_v43  ;;  %7686 = vmatpush1.bf16.msra.mxu1 %v8923_v25  ;;  %v1058_v43 = vld [vmem:[%s9684_s6 + $0x1a10] sm:$0xff] }
 0x3d3   : > { %7368 = vmatprep.subr.bf16.mxu0 %v8930_v44  ;;  %7696 = vmatprep.subr.bf16.mxu1 %v8932_v47  ;;  %v1062_v25 = vld [vmem:[%s9684_s6 + $0x1a30] sm:$0xff]  ;;  %v1059_v44 = vld [vmem:[%s9684_s6 + $0x1a18] sm:$0xff] }
 0x3d4   : > { %v1063_v47 = vld [vmem:[%s9684_s6 + $0x1a38] sm:$0xff]  ;;  %v8994_v50 = vcombine.high %v1058_v43, %v1062_v25 }
 0x3d5   : > { %7360 = vmatmul.mubr.bf16.vlgmr.msra.gmra.mrb[4].mxu0 %v10184_v46  ;;  %7688 = vmatmul.mubr.bf16.vlgmr.msra.gmra.mrb[4].mxu1 %v10184_v46  ;;  %v8945_v46 = vcombine.low %v1010_v16, %v1014_v56  ;;  %v8996_v51 = vcombine.high %v1059_v44, %v1063_v47  ;;  %v8993_v16 = vcombine.low %v1058_v43, %v1062_v25 }
 0x3d6   : > { %7369 = vmatpush1.bf16.msra.mxu0 %v8929_v52  ;;  %7697 = vmatpush1.bf16.msra.mxu1 %v8931_v54  ;;  %v1066_v52 = vld [vmem:[%s9684_s6 + $0x1a50] sm:$0xff]  ;;  %v8995_v56 = vcombine.low %v1059_v44, %v1063_v47 }
 0x3d7   : > { %7370 = vmatprep.subr.bf16.mxu0 %v8938_v19  ;;  %7698 = vmatprep.subr.bf16.mxu1 %v8940_v36  ;;  %v1070_v54 = vld [vmem:[%s9684_s6 + $0x1a70] sm:$0xff]  ;;  %v1067_v19 = vld [vmem:[%s9684_s6 + $0x1a58] sm:$0xff] }
 0x3d8   : > { %7400 = vmatprep.mubr.bf16.mxu0 %v10197_v58  ;;  %7728 = vmatprep.mubr.bf16.mxu1 %v10197_v58  ;;  %v8955_v58 = vcombine.low %v1019_v3, %v1023_v4  ;;  %v1071_v36 = vld [vmem:[%s9684_s6 + $0x1a78] sm:$0xff]  ;;  %v9002_v60 = vcombine.high %v1066_v52, %v1070_v54  ;;  %v9001_v45 = vcombine.low %v1066_v52, %v1070_v54 }
 0x3d9   : > { %v9004_v61 = vcombine.high %v1067_v19, %v1071_v36  ;;  %v9003_v27 = vcombine.low %v1067_v19, %v1071_v36 }
 0x3da   : > { %7371 = vmatpush1.bf16.msra.mxu0 %v8937_v62  ;;  %7699 = vmatpush1.bf16.msra.mxu1 %v8939_v12  ;;  %v1074_v62 = vld [vmem:[%s9684_s6 + $0x1a90] sm:$0xff] }
 0x3db   : > { %7372 = vmatprep.subr.bf16.mxu0 %v8946_v63  ;;  %7700 = vmatprep.subr.bf16.mxu1 %v8948_v0  ;;  %v1078_v12 = vld [vmem:[%s9684_s6 + $0x1ab0] sm:$0xff]  ;;  %v1075_v63 = vld [vmem:[%s9684_s6 + $0x1a98] sm:$0xff] }
 0x3dc   : > { %v1079_v0 = vld [vmem:[%s9684_s6 + $0x1ab8] sm:$0xff]  ;;  %v9010_v3 = vcombine.high %v1074_v62, %v1078_v12  ;;  %v9009_v21 = vcombine.low %v1074_v62, %v1078_v12 }
 0x3dd   : > { %v9012_v4 = vcombine.high %v1075_v63, %v1079_v0  ;;  %v9011_v8 = vcombine.low %v1075_v63, %v1079_v0 }
 0x3de   : > { %7373 = vmatpush1.bf16.msra.mxu0 %v8945_v46  ;;  %7701 = vmatpush1.bf16.msra.mxu1 %v8947_v5  ;;  %v1082_v46 = vld [vmem:[%s9684_s6 + $0x1ad0] sm:$0xff] }
 0x3df   : > { %7374 = vmatprep.subr.bf16.mxu0 %v8954_v6  ;;  %7702 = vmatprep.subr.bf16.mxu1 %v8956_v7  ;;  %v1086_v5 = vld [vmem:[%s9684_s6 + $0x1af0] sm:$0xff]  ;;  %v1083_v6 = vld [vmem:[%s9684_s6 + $0x1ad8] sm:$0xff] }
 0x3e0   : > { %v1087_v7 = vld [vmem:[%s9684_s6 + $0x1af8] sm:$0xff]  ;;  %v9018_v24 = vcombine.high %v1082_v46, %v1086_v5  ;;  %v9017_v14 = vcombine.low %v1082_v46, %v1086_v5 }
 0x3e1   : > { %v9020_v9 = vcombine.high %v1083_v6, %v1087_v7  ;;  %v9019_v17 = vcombine.low %v1083_v6, %v1087_v7 }
 0x3e2   : > { %7375 = vmatpush1.bf16.msra.mxu0 %v8953_v10  ;;  %7703 = vmatpush1.bf16.msra.mxu1 %v8955_v58  ;;  %v1090_v10 = vld [vmem:[%s9684_s6 + $0x1b10] sm:$0xff] }
 0x3e3   : > { %7376 = vmatprep.subr.bf16.mxu0 %v8962_v11  ;;  %7704 = vmatprep.subr.bf16.mxu1 %v8964_v13  ;;  %v1094_v58 = vld [vmem:[%s9684_s6 + $0x1b30] sm:$0xff]  ;;  %v1091_v11 = vld [vmem:[%s9684_s6 + $0x1b18] sm:$0xff] }
 0x3e4   : > { %v1095_v13 = vld [vmem:[%s9684_s6 + $0x1b38] sm:$0xff]  ;;  %v9026_v18 = vcombine.high %v1090_v10, %v1094_v58  ;;  %v9025_v29 = vcombine.low %v1090_v10, %v1094_v58 }
 0x3e5   : > { %v9028_v20 = vcombine.high %v1091_v11, %v1095_v13  ;;  %v9027_v49 = vcombine.low %v1091_v11, %v1095_v13  ;;  %v1154_v13 = vld [vmem:[%s9684_s6 + $0x1d10] sm:$0xff] }
 0x3e6   : > { %7377 = vmatpush1.bf16.msra.mxu0 %v8961_v23  ;;  %7705 = vmatpush1.bf16.msra.mxu1 %v8963_v59  ;;  %v1098_v23 = vld [vmem:[%s9684_s6 + $0x1b50] sm:$0xff] }
 0x3e7   : > { %7378 = vmatprep.subr.bf16.mxu0 %v8970_v26  ;;  %7706 = vmatprep.subr.bf16.mxu1 %v8972_v28  ;;  %v1102_v59 = vld [vmem:[%s9684_s6 + $0x1b70] sm:$0xff]  ;;  %v1099_v26 = vld [vmem:[%s9684_s6 + $0x1b58] sm:$0xff] }
 0x3e8   : > { %v1103_v28 = vld [vmem:[%s9684_s6 + $0x1b78] sm:$0xff]  ;;  %v9034_v22 = vcombine.high %v1098_v23, %v1102_v59  ;;  %v9033_v35 = vcombine.low %v1098_v23, %v1102_v59 }
 0x3e9   : > { %v9036_v15 = vcombine.high %v1099_v26, %v1103_v28  ;;  %v9035_v37 = vcombine.low %v1099_v26, %v1103_v28  ;;  %v1162_v26 = vld [vmem:[%s9684_s6 + $0x1d50] sm:$0xff] }
 0x3ea   : > { %7379 = vmatpush1.bf16.msra.mxu0 %v8969_v32  ;;  %7707 = vmatpush1.bf16.msra.mxu1 %v8971_v33  ;;  %v1106_v32 = vld [vmem:[%s9684_s6 + $0x1b90] sm:$0xff] }
 0x3eb   : > { %7380 = vmatprep.subr.bf16.mxu0 %v8978_v34  ;;  %7708 = vmatprep.subr.bf16.mxu1 %v8980_v57  ;;  %v1110_v33 = vld [vmem:[%s9684_s6 + $0x1bb0] sm:$0xff]  ;;  %v1107_v34 = vld [vmem:[%s9684_s6 + $0x1b98] sm:$0xff] }
 0x3ec   : > { %v1111_v57 = vld [vmem:[%s9684_s6 + $0x1bb8] sm:$0xff]  ;;  %v9042_v38 = vcombine.high %v1106_v32, %v1110_v33  ;;  %v9041_v43 = vcombine.low %v1106_v32, %v1110_v33  ;;  %v1166_v28 = vld [vmem:[%s9684_s6 + $0x1d70] sm:$0xff] }
 0x3ed   : > { %v9044_v31 = vcombine.high %v1107_v34, %v1111_v57  ;;  %v9043_v25 = vcombine.low %v1107_v34, %v1111_v57  ;;  %v9098_v32 = vcombine.high %v1162_v26, %v1166_v28  ;;  %v1170_v34 = vld [vmem:[%s9684_s6 + $0x1d90] sm:$0xff] }
 0x3ee   : > { %7381 = vmatpush1.bf16.msra.mxu0 %v8977_v55  ;;  %7709 = vmatpush1.bf16.msra.mxu1 %v8979_v40  ;;  %v1114_v55 = vld [vmem:[%s9684_s6 + $0x1bd0] sm:$0xff] }
 0x3ef   : > { %7382 = vmatprep.subr.bf16.mxu0 %v8986_v41  ;;  %7710 = vmatprep.subr.bf16.mxu1 %v8988_v42  ;;  %v1118_v40 = vld [vmem:[%s9684_s6 + $0x1bf0] sm:$0xff]  ;;  %v1115_v41 = vld [vmem:[%s9684_s6 + $0x1bd8] sm:$0xff] }
 0x3f0   : > { %v1119_v42 = vld [vmem:[%s9684_s6 + $0x1bf8] sm:$0xff]  ;;  %v9050_v44 = vcombine.high %v1114_v55, %v1118_v40  ;;  %v9049_v52 = vcombine.low %v1114_v55, %v1118_v40  ;;  %v1174_v57 = vld [vmem:[%s9684_s6 + $0x1db0] sm:$0xff] }
 0x3f1   : > { %v9052_v47 = vcombine.high %v1115_v41, %v1119_v42  ;;  %v9051_v54 = vcombine.low %v1115_v41, %v1119_v42  ;;  %v9106_v55 = vcombine.high %v1170_v34, %v1174_v57  ;;  %v1178_v41 = vld [vmem:[%s9684_s6 + $0x1dd0] sm:$0xff] }
 0x3f2   : > { %7383 = vmatpush1.bf16.msra.mxu0 %v8985_v48  ;;  %7711 = vmatpush1.bf16.msra.mxu1 %v8987_v1  ;;  %v1122_v48 = vld [vmem:[%s9684_s6 + $0x1c10] sm:$0xff] }
 0x3f3   : > { %7384 = vmatprep.subr.bf16.mxu0 %v8994_v50  ;;  %7712 = vmatprep.subr.bf16.mxu1 %v8996_v51  ;;  %v1126_v1 = vld [vmem:[%s9684_s6 + $0x1c30] sm:$0xff]  ;;  %v1123_v50 = vld [vmem:[%s9684_s6 + $0x1c18] sm:$0xff] }
 0x3f4   : > { %v1127_v51 = vld [vmem:[%s9684_s6 + $0x1c38] sm:$0xff]  ;;  %v9058_v19 = vcombine.high %v1122_v48, %v1126_v1  ;;  %v9057_v62 = vcombine.low %v1122_v48, %v1126_v1  ;;  %v1182_v42 = vld [vmem:[%s9684_s6 + $0x1df0] sm:$0xff] }
 0x3f5   : > { %v9060_v36 = vcombine.high %v1123_v50, %v1127_v51  ;;  %v9059_v12 = vcombine.low %v1123_v50, %v1127_v51  ;;  %v9114_v48 = vcombine.high %v1178_v41, %v1182_v42  ;;  %v1186_v50 = vld [vmem:[%s9684_s6 + $0x1e10] sm:$0xff] }
 0x3f6   : > { %7385 = vmatpush1.bf16.msra.mxu0 %v8993_v16  ;;  %7713 = vmatpush1.bf16.msra.mxu1 %v8995_v56  ;;  %v1130_v16 = vld [vmem:[%s9684_s6 + $0x1c50] sm:$0xff] }
 0x3f7   : > { %7386 = vmatprep.subr.bf16.mxu0 %v9002_v60  ;;  %7714 = vmatprep.subr.bf16.mxu1 %v9004_v61  ;;  %v1134_v56 = vld [vmem:[%s9684_s6 + $0x1c70] sm:$0xff]  ;;  %v1131_v60 = vld [vmem:[%s9684_s6 + $0x1c58] sm:$0xff] }
 0x3f8   : > { %v1135_v61 = vld [vmem:[%s9684_s6 + $0x1c78] sm:$0xff]  ;;  %v9066_v63 = vcombine.high %v1130_v16, %v1134_v56  ;;  %v9065_v46 = vcombine.low %v1130_v16, %v1134_v56  ;;  %v1190_v51 = vld [vmem:[%s9684_s6 + $0x1e30] sm:$0xff] }
 0x3f9   : > { %v9068_v0 = vcombine.high %v1131_v60, %v1135_v61  ;;  %v9067_v5 = vcombine.low %v1131_v60, %v1135_v61  ;;  %v9122_v16 = vcombine.high %v1186_v50, %v1190_v51  ;;  %v1194_v60 = vld [vmem:[%s9684_s6 + $0x1e50] sm:$0xff] }
 0x3fa   : > { %7387 = vmatpush1.bf16.msra.mxu0 %v9001_v45  ;;  %7715 = vmatpush1.bf16.msra.mxu1 %v9003_v27  ;;  %v1138_v45 = vld [vmem:[%s9684_s6 + $0x1c90] sm:$0xff] }
 0x3fb   : > { %7388 = vmatprep.subr.bf16.mxu0 %v9010_v3  ;;  %7716 = vmatprep.subr.bf16.mxu1 %v9012_v4  ;;  %v1142_v27 = vld [vmem:[%s9684_s6 + $0x1cb0] sm:$0xff]  ;;  %v1139_v3 = vld [vmem:[%s9684_s6 + $0x1c98] sm:$0xff] }
 0x3fc   : > { %v1143_v4 = vld [vmem:[%s9684_s6 + $0x1cb8] sm:$0xff]  ;;  %v9074_v6 = vcombine.high %v1138_v45, %v1142_v27  ;;  %v1198_v61 = vld [vmem:[%s9684_s6 + $0x1e70] sm:$0xff] }
 0x3fd   : > { %v9076_v7 = vcombine.high %v1139_v3, %v1143_v4  ;;  %v9075_v10 = vcombine.low %v1139_v3, %v1143_v4  ;;  %v1202_v3 = vld [vmem:[%s9684_s6 + $0x1e90] sm:$0xff] }
 0x3fe   : > { %7389 = vmatpush1.bf16.msra.mxu0 %v9009_v21  ;;  %7717 = vmatpush1.bf16.msra.mxu1 %v9011_v8  ;;  %v1146_v21 = vld [vmem:[%s9684_s6 + $0x1cd0] sm:$0xff] }
 0x3ff   : > { %7390 = vmatprep.subr.bf16.mxu0 %v9018_v24  ;;  %7718 = vmatprep.subr.bf16.mxu1 %v9020_v9  ;;  %v1150_v8 = vld [vmem:[%s9684_s6 + $0x1cf0] sm:$0xff]  ;;  %v1147_v24 = vld [vmem:[%s9684_s6 + $0x1cd8] sm:$0xff] }
 0x400   : > { %v1151_v9 = vld [vmem:[%s9684_s6 + $0x1cf8] sm:$0xff]  ;;  %v9082_v58 = vcombine.high %v1146_v21, %v1150_v8  ;;  %v1206_v4 = vld [vmem:[%s9684_s6 + $0x1eb0] sm:$0xff] }
 0x401   : > { %v9084_v11 = vcombine.high %v1147_v24, %v1151_v9 }
 0x402   : > { %7391 = vmatpush1.bf16.msra.mxu0 %v9017_v14  ;;  %7719 = vmatpush1.bf16.msra.mxu1 %v9019_v17  ;;  %v1158_v14 = vld [vmem:[%s9684_s6 + $0x1d30] sm:$0xff]  ;;  %v1155_v17 = vld [vmem:[%s9684_s6 + $0x1d18] sm:$0xff] }
 0x403   : > { %7392 = vmatprep.subr.bf16.mxu0 %v9026_v18  ;;  %7720 = vmatprep.subr.bf16.mxu1 %v9028_v20  ;;  %v1159_v18 = vld [vmem:[%s9684_s6 + $0x1d38] sm:$0xff]  ;;  %v9081_v20 = vcombine.low %v1146_v21, %v1150_v8  ;;  %v9090_v23 = vcombine.high %v1154_v13, %v1158_v14  ;;  %v9138_v21 = vcombine.high %v1202_v3, %v1206_v4 }
 0x404   : > { %v9092_v59 = vcombine.high %v1155_v17, %v1159_v18 }
 0x406   : > { %7393 = vmatpush1.bf16.msra.mxu0 %v9025_v29  ;;  %7721 = vmatpush1.bf16.msra.mxu1 %v9027_v49  ;;  %v1163_v29 = vld [vmem:[%s9684_s6 + $0x1d58] sm:$0xff] }
 0x407   : > { %7394 = vmatprep.subr.bf16.mxu0 %v9034_v22  ;;  %7722 = vmatprep.subr.bf16.mxu1 %v9036_v15  ;;  %v1167_v49 = vld [vmem:[%s9684_s6 + $0x1d78] sm:$0xff]  ;;  %v9089_v22 = vcombine.low %v1154_v13, %v1158_v14  ;;  %v9091_v15 = vcombine.low %v1155_v17, %v1159_v18  ;;  %v1218_v17 = vld [vmem:[%s9684_s6 + $0x1f10] sm:$0xff] }
 0x408   : > { %v9100_v33 = vcombine.high %v1163_v29, %v1167_v49  ;;  %v1222_v18 = vld [vmem:[%s9684_s6 + $0x1f30] sm:$0xff] }
 0x40a   : > { %7395 = vmatpush1.bf16.msra.mxu0 %v9033_v35  ;;  %7723 = vmatpush1.bf16.msra.mxu1 %v9035_v37  ;;  %v1171_v35 = vld [vmem:[%s9684_s6 + $0x1d98] sm:$0xff] }
 0x40b   : > { %7396 = vmatprep.subr.bf16.mxu0 %v9042_v38  ;;  %7724 = vmatprep.subr.bf16.mxu1 %v9044_v31  ;;  %v1175_v37 = vld [vmem:[%s9684_s6 + $0x1db8] sm:$0xff]  ;;  %v9097_v38 = vcombine.low %v1162_v26, %v1166_v28  ;;  %v9099_v31 = vcombine.low %v1163_v29, %v1167_v49  ;;  %v9154_v26 = vcombine.high %v1218_v17, %v1222_v18  ;;  %v1226_v29 = vld [vmem:[%s9684_s6 + $0x1f50] sm:$0xff] }
 0x40c   : > { %v9108_v40 = vcombine.high %v1171_v35, %v1175_v37  ;;  %v1230_v49 = vld [vmem:[%s9684_s6 + $0x1f70] sm:$0xff] }
 0x40e   : > { %7397 = vmatpush1.bf16.msra.mxu0 %v9041_v43  ;;  %7725 = vmatpush1.bf16.msra.mxu1 %v9043_v25  ;;  %v1179_v43 = vld [vmem:[%s9684_s6 + $0x1dd8] sm:$0xff] }
 0x40f   : > { %7398 = vmatprep.subr.bf16.mxu0 %v9050_v44  ;;  %7726 = vmatprep.subr.bf16.mxu1 %v9052_v47  ;;  %v1183_v25 = vld [vmem:[%s9684_s6 + $0x1df8] sm:$0xff]  ;;  %v9105_v44 = vcombine.low %v1170_v34, %v1174_v57  ;;  %v9107_v47 = vcombine.low %v1171_v35, %v1175_v37  ;;  %v9162_v34 = vcombine.high %v1226_v29, %v1230_v49  ;;  %v1234_v35 = vld [vmem:[%s9684_s6 + $0x1f90] sm:$0xff] }
 0x410   : > { %v9116_v1 = vcombine.high %v1179_v43, %v1183_v25  ;;  %v1238_v37 = vld [vmem:[%s9684_s6 + $0x1fb0] sm:$0xff] }
 0x412   : > { %7399 = vmatpush1.bf16.msra.mxu0 %v9049_v52  ;;  %7727 = vmatpush1.bf16.msra.mxu1 %v9051_v54  ;;  %v1187_v52 = vld [vmem:[%s9684_s6 + $0x1e18] sm:$0xff] }
 0x413   : > { %7409 = vmatprep.subr.bf16.mxu0 %v9058_v19  ;;  %7737 = vmatprep.subr.bf16.mxu1 %v9060_v36  ;;  %v1191_v54 = vld [vmem:[%s9684_s6 + $0x1e38] sm:$0xff]  ;;  %v9113_v19 = vcombine.low %v1178_v41, %v1182_v42  ;;  %v9115_v36 = vcombine.low %v1179_v43, %v1183_v25  ;;  %v9170_v41 = vcombine.high %v1234_v35, %v1238_v37  ;;  %v1242_v43 = vld [vmem:[%s9684_s6 + $0x1fd0] sm:$0xff] }
 0x414   : > { %v9124_v56 = vcombine.high %v1187_v52, %v1191_v54  ;;  %v1246_v25 = vld [vmem:[%s9684_s6 + $0x1ff0] sm:$0xff] }
 0x415   : > { %7401 = vmatmul.mubr.bf16.vlgmr.msra.gmra.mrb[4].mxu0 %v10265_v53  ;;  %7729 = vmatmul.mubr.bf16.vlgmr.msra.gmra.mrb[4].mxu1 %v10265_v53  ;;  %v9073_v53 = vcombine.low %v1138_v45, %v1142_v27  ;;  %v9130_v45 = vcombine.high %v1194_v60, %v1198_v61 }
 0x416   : > { %7410 = vmatpush1.bf16.msra.mxu0 %v9057_v62  ;;  %7738 = vmatpush1.bf16.msra.mxu1 %v9059_v12  ;;  %v1195_v62 = vld [vmem:[%s9684_s6 + $0x1e58] sm:$0xff] }
 0x417   : > { %7411 = vmatprep.subr.bf16.mxu0 %v9066_v63  ;;  %7739 = vmatprep.subr.bf16.mxu1 %v9068_v0  ;;  %v1199_v12 = vld [vmem:[%s9684_s6 + $0x1e78] sm:$0xff]  ;;  %v9121_v63 = vcombine.low %v1186_v50, %v1190_v51  ;;  %v9123_v0 = vcombine.low %v1187_v52, %v1191_v54  ;;  %v9178_v50 = vcombine.high %v1242_v43, %v1246_v25 }
 0x418   : > { %7441 = vmatprep.mubr.bf16.mxu0 %v10278_v30  ;;  %7769 = vmatprep.mubr.bf16.mxu1 %v10278_v30  ;;  %v9083_v30 = vcombine.low %v1147_v24, %v1151_v9  ;;  %v9132_v27 = vcombine.high %v1195_v62, %v1199_v12  ;;  %v1210_v24 = vld [vmem:[%s9684_s6 + $0x1ed0] sm:$0xff]  ;;  %v9177_v52 = vcombine.low %v1242_v43, %v1246_v25 }
 0x419   : > { %v1214_v9 = vld [vmem:[%s9684_s6 + $0x1ef0] sm:$0xff] }
 0x41a   : > { %7412 = vmatpush1.bf16.msra.mxu0 %v9065_v46  ;;  %7740 = vmatpush1.bf16.msra.mxu1 %v9067_v5  ;;  %v1203_v46 = vld [vmem:[%s9684_s6 + $0x1e98] sm:$0xff]  ;;  %v9146_v13 = vcombine.high %v1210_v24, %v1214_v9 }
 0x41b   : > { %7413 = vmatprep.subr.bf16.mxu0 %v9074_v6  ;;  %7741 = vmatprep.subr.bf16.mxu1 %v9076_v7  ;;  %v1207_v5 = vld [vmem:[%s9684_s6 + $0x1eb8] sm:$0xff]  ;;  %v9129_v6 = vcombine.low %v1194_v60, %v1198_v61  ;;  %v9131_v7 = vcombine.low %v1195_v62, %v1199_v12  ;;  %v9372_v60 = vld [vmem:[%s9690_s9] sm:$0xff] }
 0x41c   : > { %v9140_v8 = vcombine.high %v1203_v46, %v1207_v5 }
 0x41e   : > { %7414 = vmatpush1.bf16.msra.mxu0 %v9073_v53  ;;  %7742 = vmatpush1.bf16.msra.mxu1 %v9075_v10  ;;  %v1211_v53 = vld [vmem:[%s9684_s6 + $0x1ed8] sm:$0xff] }
 0x41f   : > { %7415 = vmatprep.subr.bf16.mxu0 %v9082_v58  ;;  %7743 = vmatprep.subr.bf16.mxu1 %v9084_v11  ;;  %v1215_v10 = vld [vmem:[%s9684_s6 + $0x1ef8] sm:$0xff]  ;;  %v9137_v58 = vcombine.low %v1202_v3, %v1206_v4  ;;  %v9139_v11 = vcombine.low %v1203_v46, %v1207_v5 }
 0x420   : > { %v9148_v14 = vcombine.high %v1211_v53, %v1215_v10 }
 0x422   : > { %7416 = vmatpush1.bf16.msra.mxu0 %v9081_v20  ;;  %7744 = vmatpush1.bf16.msra.mxu1 %v9083_v30  ;;  %v1219_v20 = vld [vmem:[%s9684_s6 + $0x1f18] sm:$0xff] }
 0x423   : > { %7417 = vmatprep.subr.bf16.mxu0 %v9090_v23  ;;  %7745 = vmatprep.subr.bf16.mxu1 %v9092_v59  ;;  %v1223_v30 = vld [vmem:[%s9684_s6 + $0x1f38] sm:$0xff]  ;;  %v9145_v23 = vcombine.low %v1210_v24, %v1214_v9  ;;  %v9147_v59 = vcombine.low %v1211_v53, %v1215_v10 }
 0x424   : > { %v9156_v28 = vcombine.high %v1219_v20, %v1223_v30 }
 0x426   : > { %7418 = vmatpush1.bf16.msra.mxu0 %v9089_v22  ;;  %7746 = vmatpush1.bf16.msra.mxu1 %v9091_v15  ;;  %v1227_v22 = vld [vmem:[%s9684_s6 + $0x1f58] sm:$0xff] }
 0x427   : > { %7419 = vmatprep.subr.bf16.mxu0 %v9098_v32  ;;  %7747 = vmatprep.subr.bf16.mxu1 %v9100_v33  ;;  %v1231_v15 = vld [vmem:[%s9684_s6 + $0x1f78] sm:$0xff]  ;;  %v9153_v32 = vcombine.low %v1218_v17, %v1222_v18  ;;  %v9155_v33 = vcombine.low %v1219_v20, %v1223_v30 }
 0x428   : > { %v9164_v57 = vcombine.high %v1227_v22, %v1231_v15 }
 0x42a   : > { %7420 = vmatpush1.bf16.msra.mxu0 %v9097_v38  ;;  %7748 = vmatpush1.bf16.msra.mxu1 %v9099_v31  ;;  %v1235_v38 = vld [vmem:[%s9684_s6 + $0x1f98] sm:$0xff] }
 0x42b   : > { %7421 = vmatprep.subr.bf16.mxu0 %v9106_v55  ;;  %7749 = vmatprep.subr.bf16.mxu1 %v9108_v40  ;;  %v1239_v31 = vld [vmem:[%s9684_s6 + $0x1fb8] sm:$0xff]  ;;  %v9161_v55 = vcombine.low %v1226_v29, %v1230_v49  ;;  %v9163_v40 = vcombine.low %v1227_v22, %v1231_v15 }
 0x42c   : > { %v9172_v42 = vcombine.high %v1235_v38, %v1239_v31 }
 0x42e   : > { %7422 = vmatpush1.bf16.msra.mxu0 %v9105_v44  ;;  %7750 = vmatpush1.bf16.msra.mxu1 %v9107_v47  ;;  %v1243_v44 = vld [vmem:[%s9684_s6 + $0x1fd8] sm:$0xff] }
 0x42f   : > { %7423 = vmatprep.subr.bf16.mxu0 %v9114_v48  ;;  %7751 = vmatprep.subr.bf16.mxu1 %v9116_v1  ;;  %v1247_v47 = vld [vmem:[%s9684_s6 + $0x1ff8] sm:$0xff]  ;;  %v9169_v48 = vcombine.low %v1234_v35, %v1238_v37  ;;  %v9171_v1 = vcombine.low %v1235_v38, %v1239_v31 }
 0x430   : > { %v9180_v51 = vcombine.high %v1243_v44, %v1247_v47  ;;  %v9179_v54 = vcombine.low %v1243_v44, %v1247_v47 }
 0x432   : > { %7424 = vmatpush1.bf16.msra.mxu0 %v9113_v19  ;;  %7752 = vmatpush1.bf16.msra.mxu1 %v9115_v36  ;;  %v1268_v19 = vsub.s32 4, %v10570_v2  ;;  %v1276_v36 = vsub.s32 6, %v10570_v2 }
 0x433   : > { %7425 = vmatprep.subr.bf16.mxu0 %v9122_v16  ;;  %7753 = vmatprep.subr.bf16.mxu1 %v9124_v56  ;;  %v1272_v16 = vsub.s32 5, %v10570_v2  ;;  %v1280_v56 = vsub.s32 7, %v10570_v2 }
 0x434   : > { %v1269_v61 = vrot.slane %v9372_v60, %v1268_v19  ;;  %v1277_v62 = vrot.slane %v9372_v60, %v1276_v36 }
 0x435   : > { %v1273_v12 = vrot.slane %v9372_v60, %v1272_v16 }
 0x436   : > { %7426 = vmatpush1.bf16.msra.mxu0 %v9121_v63  ;;  %7754 = vmatpush1.bf16.msra.mxu1 %v9123_v0  ;;  %v1281_v63 = vrot.slane %v9372_v60, %v1280_v56 }
 0x437   : > { %7427 = vmatprep.subr.bf16.mxu0 %v9130_v45  ;;  %7755 = vmatprep.subr.bf16.mxu1 %v9132_v27 }
 0x43a   : > { %7428 = vmatpush1.bf16.msra.mxu0 %v9129_v6  ;;  %7756 = vmatpush1.bf16.msra.mxu1 %v9131_v7 }
 0x43b   : > { %7429 = vmatprep.subr.bf16.mxu0 %v9138_v21  ;;  %7757 = vmatprep.subr.bf16.mxu1 %v9140_v8 }
 0x43e   : > { %7430 = vmatpush1.bf16.msra.mxu0 %v9137_v58  ;;  %7758 = vmatpush1.bf16.msra.mxu1 %v9139_v11 }
 0x43f   : > { %7431 = vmatprep.subr.bf16.mxu0 %v9146_v13  ;;  %7759 = vmatprep.subr.bf16.mxu1 %v9148_v14 }
 0x442   : > { %7432 = vmatpush1.bf16.msra.mxu0 %v9145_v23  ;;  %7760 = vmatpush1.bf16.msra.mxu1 %v9147_v59 }
 0x443   : > { %7433 = vmatprep.subr.bf16.mxu0 %v9154_v26  ;;  %7761 = vmatprep.subr.bf16.mxu1 %v9156_v28 }
 0x446   : > { %7434 = vmatpush1.bf16.msra.mxu0 %v9153_v32  ;;  %7762 = vmatpush1.bf16.msra.mxu1 %v9155_v33 }
 0x447   : > { %7435 = vmatprep.subr.bf16.mxu0 %v9162_v34  ;;  %7763 = vmatprep.subr.bf16.mxu1 %v9164_v57 }
 0x44a   : > { %7436 = vmatpush1.bf16.msra.mxu0 %v9161_v55  ;;  %7764 = vmatpush1.bf16.msra.mxu1 %v9163_v40 }
 0x44b   : > { %7437 = vmatprep.subr.bf16.mxu0 %v9170_v41  ;;  %7765 = vmatprep.subr.bf16.mxu1 %v9172_v42 }
 0x44e   : > { %7438 = vmatpush1.bf16.msra.mxu0 %v9169_v48  ;;  %7766 = vmatpush1.bf16.msra.mxu1 %v9171_v1 }
 0x44f   : > { %7439 = vmatprep.subr.bf16.mxu0 %v9178_v50  ;;  %7767 = vmatprep.subr.bf16.mxu1 %v9180_v51 }
 0x452   : > { %7440 = vmatpush1.bf16.msra.mxu0 %v9177_v52  ;;  %7768 = vmatpush1.bf16.msra.mxu1 %v9179_v54 }
 0x455   : > { %7442 = vmatmul.mubr.bf16.vlgmr.msra.gmra.mrb[4].mxu0 %v10346_v39  ;;  %7770 = vmatmul.mubr.bf16.vlgmr.msra.gmra.mrb[4].mxu1 %v10346_v39 }
 0x526   : > { %7792 = sbr.rel (%p9183_p7) target bundleno = 1723 (0x6bb), region = 44 }
 0x528   : > { %v7443_v0 = vpop.f32.mrb[4].mxu0  ;;  %v7771_v39 = vpop.f32.mrb[4].mxu1 }
 0x529   : > { %v9193_v45 = vadd.f32 %v7443_v0, %v1269_v61  ;;  %v7445_v27 = vpop.f32.mrb[5].mxu0  ;;  %v9195_v3 = vadd.f32 %v7771_v39, %v1277_v62  ;;  %v7773_v46 = vpop.f32.mrb[5].mxu1 }
 0x52a   : > { %v9194_v4 = vadd.f32 %v7445_v27, %v1273_v12  ;;  %v7447_v5 = vpop.f32.mrb[6].mxu0  ;;  %v9196_v6 = vadd.f32 %v7773_v46, %v1281_v63  ;;  %v7775_v7 = vpop.f32.mrb[6].mxu1 }
 0x52b   : > { %7785 = vst [vmem:[%s10589_s30 + $0x20] sm:$0xff] %v9193_v45  ;;  %v7448_v2 = vpop.f32.mrb[7].mxu0  ;;  %7787 = vst [vmem:[%s10589_s30 + $0x30] sm:$0xff] %v9195_v3  ;;  %v7776_v21 = vpop.f32.mrb[7].mxu1 }
 0x52c   : > { %7786 = vst [vmem:[%s10589_s30 + $0x28] sm:$0xff] %v9194_v4  ;;  %7788 = vst [vmem:[%s10589_s30 + $0x38] sm:$0xff] %v9196_v6 }
 0x533   : > { %v10918_v8 = vld [vmem:[%s11369_s3 + $0x80] sm:$0xff]  ;;  %v10923_v24 = vld [vmem:[%s11369_s3 + $0x88] sm:$0xff]  ;;  %v10928_v9 = vld [vmem:[%s11369_s3 + $0x90] sm:$0xff] }
 0x534   : > { %v7843_v53 = vmax.f32 %v10918_v8, %v10923_v24  ;;  %v10935_v10 = vld [vmem:[%s11369_s3 + $0x98] sm:$0xff]  ;;  %v10940_v58 = vld [vmem:[%s11369_s3] sm:$0xff]  ;;  %v10946_v13 = vld [vmem:[%s11369_s3 + $0x8] sm:$0xff] }
 0x535   : > { %v10951_v14 = vld [vmem:[%s11369_s3 + $0x10] sm:$0xff]  ;;  %v10956_v17 = vld [vmem:[%s11369_s3 + $0xa0] sm:$0xff]  ;;  %v7825_v18 = vmax.f32 %v10940_v58, %v10946_v13  ;;  %v10964_v30 = vld [vmem:[%s11369_s3 + $0x18] sm:$0xff] }
 0x536   : > { %v7844_v11 = vmax.f32 %v7843_v53, %v10928_v9  ;;  %v10969_v23 = vld [vmem:[%s11369_s3 + $0xc0] sm:$0xff]  ;;  %v10974_v59 = vld [vmem:[%s11369_s3 + $0xc8] sm:$0xff]  ;;  %v10985_v29 = vld [vmem:[%s11369_s3 + $0xd0] sm:$0xff] }
 0x537   : > { %v10979_v26 = vld [vmem:[%s11369_s3 + $0xa8] sm:$0xff]  ;;  %v7826_v28 = vmax.f32 %v7825_v18, %v10951_v14  ;;  %v7852_v49 = vmax.f32 %v10969_v23, %v10974_v59  ;;  %v10992_v22 = vld [vmem:[%s11369_s3 + $0xb0] sm:$0xff]  ;;  %v10998_v32 = vld [vmem:[%s11369_s3 + $0x20] sm:$0xff] }
 0x538   : > { %v7845_v20 = vmax.f32 %v7844_v11, %v10935_v10  ;;  %v11003_v33 = vld [vmem:[%s11369_s3 + $0xd8] sm:$0xff]  ;;  %v7801_v35 = vld [vmem:[%s11369_s3 + $0x40] sm:$0xff]  ;;  %v7802_v37 = vld [vmem:[%s11369_s3 + $0x48] sm:$0xff] }
 0x539   : > { %v7827_v34 = vmax.f32 %v7826_v28, %v10964_v30  ;;  %v7853_v57 = vmax.f32 %v7852_v49, %v10985_v29  ;;  %v7803_v38 = vld [vmem:[%s11369_s3 + $0x50] sm:$0xff]  ;;  %v11020_v55 = vld [vmem:[%s11369_s3 + $0x28] sm:$0xff]  ;;  %v11025_v40 = vld [vmem:[%s11369_s3 + $0xe0] sm:$0xff]  ;;  %v7834_v41 = vmax.f32 %v7801_v35, %v7802_v37 }
 0x53a   : > { %v7846_v15 = vmax.f32 %v7845_v20, %v10956_v17  ;;  %v11030_v42 = vld [vmem:[%s11369_s3 + $0xb8] sm:$0xff]  ;;  %v11041_v48 = vld [vmem:[%s11369_s3 + $0x30] sm:$0xff]  ;;  %v11046_v1 = vld [vmem:[%s11369_s3 + $0xe8] sm:$0xff] }
 0x53b   : > { %v7828_v43 = vmax.f32 %v7827_v34, %v10998_v32  ;;  %v7854_v25 = vmax.f32 %v7853_v57, %v11003_v33  ;;  %v7804_v44 = vld [vmem:[%s11369_s3 + $0x58] sm:$0xff]  ;;  %v7835_v50 = vmax.f32 %v7834_v41, %v7803_v38  ;;  %v7805_v54 = vld [vmem:[%s11369_s3 + $0x60] sm:$0xff]  ;;  %v11062_v16 = vld [vmem:[%s11369_s3 + $0xf0] sm:$0xff] }
 0x53c   : > { %v7847_v31 = vmax.f32 %v7846_v15, %v10979_v26  ;;  %v11057_v36 = vld [vmem:[%s11369_s3 + $0x38] sm:$0xff]  ;;  %v7806_v62 = vld [vmem:[%s11369_s3 + $0x68] sm:$0xff]  ;;  %v7807_v39 = vld [vmem:[%s11369_s3 + $0x70] sm:$0xff] }
 0x53d   : > { %v7829_v51 = vmax.f32 %v7828_v43, %v11020_v55  ;;  %v7855_v52 = vmax.f32 %v7854_v25, %v11025_v40  ;;  %v7836_v56 = vmax.f32 %v7835_v50, %v7804_v44  ;;  %v11072_v12 = vld [vmem:[%s11369_s3 + $0xf8] sm:$0xff] }
 0x53e   : > { %v7848_v47 = vmax.f32 %v7847_v31, %v10992_v22  ;;  %v7808_v4 = vld [vmem:[%s11369_s3 + $0x78] sm:$0xff] }
 0x53f   : > { %v7830_v60 = vmax.f32 %v7829_v51, %v11041_v48  ;;  %v7856_v61 = vmax.f32 %v7855_v52, %v11046_v1  ;;  %v7837_v63 = vmax.f32 %v7836_v56, %v7805_v54 }
 0x540   : > { %v7849_v19 = vmax.f32 %v7848_v47, %v11030_v42 }
 0x541   : > { %v7831_v0 = vmax.f32 %v7830_v60, %v11057_v36  ;;  %v7857_v45 = vmax.f32 %v7856_v61, %v11062_v16  ;;  %v7838_v27 = vmax.f32 %v7837_v63, %v7806_v62 }
 0x542   : > { %7850 = vmax.xlane.f32.xlu1 %v7849_v19 }
 0x543   : > { %7832 = vmax.xlane.f32.xlu0 %v7831_v0  ;;  %v7858_v3 = vmax.f32 %v7857_v45, %v11072_v12  ;;  %v7839_v46 = vmax.f32 %v7838_v27, %v7807_v39 }
 0x545   : > { %v7840_v5 = vmax.f32 %v7839_v46, %v7808_v4 }
 0x546   : > { %7859 = vmax.xlane.f32.xlu1 %v7858_v3 }
 0x547   : > { %7841 = vmax.xlane.f32.xlu0 %v7840_v5 }
 0x5cf   : > { %v7851_v6 = vpop.xlane.xlu1 %7850 }
 0x5d0   : > { %v7833_v7 = vpop.xlane.xlu0 %7832 }
 0x5d3   : > { %v7860_v2 = vpop.xlane.xlu1 %7859 }
 0x5d4   : > { %v7842_v21 = vpop.xlane.xlu0 %7841  ;;  %v7862_v53 = vmax.f32 %v7851_v6, %v7860_v2 }
 0x5d5   : > { %v7861_v11 = vmax.f32 %v7833_v7, %v7842_v21 }
 0x5d7   : > { %v11083_v18 = vmax.f32 %v7861_v11, %v7862_v53 }
 0x5d9   : > { %v7872_v20 = vsub.f32 %v7801_v35, %v11083_v18  ;;  %v7873_v28 = vsub.f32 %v7802_v37, %v11083_v18  ;;  %v7874_v49 = vsub.f32 %v7803_v38, %v11083_v18  ;;  %v7875_v15 = vsub.f32 %v7804_v44, %v11083_v18 }
 0x5da   : > { %v7876_v34 = vsub.f32 %v7805_v54, %v11083_v18  ;;  %v7877_v41 = vsub.f32 %v7806_v62, %v11083_v18  ;;  %v7864_v25 = vsub.f32 %v10940_v58, %v11083_v18  ;;  %v7865_v35 = vsub.f32 %v10946_v13, %v11083_v18 }
 0x5db   : > { %v7912_v57 = vmul.f32 1.442695, %v7872_v20  ;;  %v7914_v31 = vmul.f32 1.442695, %v7873_v28  ;;  %v7916_v43 = vmul.f32 1.442695, %v7874_v49  ;;  %v7878_v38 = vsub.f32 %v7807_v39, %v11083_v18 }
 0x5dc   : > { %v7918_v37 = vmul.f32 1.442695, %v7875_v15  ;;  %v7920_v47 = vmul.f32 1.442695, %v7876_v34  ;;  %v7866_v44 = vsub.f32 %v10951_v14, %v11083_v18  ;;  %v7922_v50 = vmul.f32 1.442695, %v7877_v41 }
 0x5dd   : > { %9373 = vpow2.f32 %v7912_v57  ;;  %v7879_v51 = vsub.f32 %v7808_v4, %v11083_v18  ;;  %v7896_v52 = vmul.f32 1.442695, %v7864_v25  ;;  %v7867_v58 = vsub.f32 %v10964_v30, %v11083_v18 }
 0x5de   : > { %9375 = vpow2.f32 %v7914_v31  ;;  %v7898_v54 = vmul.f32 1.442695, %v7865_v35  ;;  %v7868_v13 = vsub.f32 %v10998_v32, %v11083_v18  ;;  %v7924_v19 = vmul.f32 1.442695, %v7878_v38 }
 0x5df   : > { %9377 = vpow2.f32 %v7916_v43  ;;  %v7869_v56 = vsub.f32 %v11020_v55, %v11083_v18  ;;  %v7900_v14 = vmul.f32 1.442695, %v7866_v44  ;;  %v7880_v60 = vsub.f32 %v10918_v8, %v11083_v18 }
 0x5e0   : > { %9379 = vpow2.f32 %v7918_v37  ;;  %v7926_v61 = vmul.f32 1.442695, %v7879_v51  ;;  %v7881_v30 = vsub.f32 %v10923_v24, %v11083_v18  ;;  %v7902_v62 = vmul.f32 1.442695, %v7867_v58 }
 0x5e1   : > { %9381 = vpow2.f32 %v7920_v47  ;;  %v7870_v32 = vsub.f32 %v11041_v48, %v11083_v18  ;;  %v7904_v0 = vmul.f32 1.442695, %v7868_v13  ;;  %v7882_v45 = vsub.f32 %v10928_v9, %v11083_v18 }
 0x5e2   : > { %9383 = vpow2.f32 %v7922_v50  ;;  %v7906_v8 = vmul.f32 1.442695, %v7869_v56  ;;  %v7871_v39 = vsub.f32 %v11057_v36, %v11083_v18  ;;  %v7928_v27 = vmul.f32 1.442695, %v7880_v60 }
 0x5e3   : > { %9385 = vpow2.f32 %v7896_v52  ;;  %v7883_v48 = vsub.f32 %v10935_v10, %v11083_v18  ;;  %v7930_v4 = vmul.f32 1.442695, %v7881_v30  ;;  %v7884_v9 = vsub.f32 %v10956_v17, %v11083_v18 }
 0x5e4   : > { %9387 = vpow2.f32 %v7898_v54  ;;  %v7908_v5 = vmul.f32 1.442695, %v7870_v32  ;;  %v7885_v6 = vsub.f32 %v10979_v26, %v11083_v18  ;;  %v7932_v7 = vmul.f32 1.442695, %v7882_v45 }
 0x5e5   : > { %9389 = vpow2.f32 %v7924_v19  ;;  %v7888_v10 = vsub.f32 %v10969_v23, %v11083_v18  ;;  %v7910_v53 = vmul.f32 1.442695, %v7871_v39  ;;  %v7889_v11 = vsub.f32 %v10974_v59, %v11083_v18 }
 0x5e6   : > { %9391 = vpow2.f32 %v7900_v14  ;;  %v7934_v20 = vmul.f32 1.442695, %v7883_v48  ;;  %v7886_v26 = vsub.f32 %v10992_v22, %v11083_v18  ;;  %v7936_v15 = vmul.f32 1.442695, %v7884_v9 }
 0x5e7   : > { %v11109_v63 = vpop.eup %9373  ;;  %9393 = vpow2.f32 %v7926_v61  ;;  %v7887_v34 = vsub.f32 %v11030_v42, %v11083_v18  ;;  %v7890_v57 = vsub.f32 %v10985_v29, %v11083_v18  ;;  %v7938_v59 = vmul.f32 1.442695, %v7885_v6 }
 0x5e8   : > { %v11113_v55 = vpop.eup %9375  ;;  %9395 = vpow2.f32 %v7902_v62  ;;  %v7944_v43 = vmul.f32 1.442695, %v7888_v10  ;;  %v7891_v35 = vsub.f32 %v11003_v33, %v11083_v18  ;;  %v7946_v42 = vmul.f32 1.442695, %v7889_v11 }
 0x5e9   : > { %v7969_v24 = vadd.f32 %v11113_v55, %v11109_v63  ;;  %v11121_v3 = vpop.eup %9377  ;;  %9397 = vpow2.f32 %v7904_v0  ;;  %v7940_v38 = vmul.f32 1.442695, %v7886_v26  ;;  %v7892_v50 = vsub.f32 %v11025_v40, %v11083_v18 }
 0x5ea   : > { %v11128_v36 = vpop.eup %9379  ;;  %9399 = vpow2.f32 %v7906_v8  ;;  %v7948_v51 = vmul.f32 1.442695, %v7890_v57  ;;  %v7942_v58 = vmul.f32 1.442695, %v7887_v34  ;;  %v7893_v19 = vsub.f32 %v11046_v1, %v11083_v18 }
 0x5eb   : > { %v7970_v46 = vadd.f32 %v11121_v3, %v7969_v24  ;;  %v11132_v2 = vpop.eup %9381  ;;  %9401 = vpow2.f32 %v7928_v27  ;;  %v7950_v56 = vmul.f32 1.442695, %v7891_v35  ;;  %v7894_v61 = vsub.f32 %v11062_v16, %v11083_v18 }
 0x5ec   : > { %v11137_v17 = vpop.eup %9383  ;;  %9403 = vpow2.f32 %v7930_v4  ;;  %v7952_v30 = vmul.f32 1.442695, %v7892_v50  ;;  %v7895_v45 = vsub.f32 %v11072_v12, %v11083_v18  ;;  %v7954_v8 = vmul.f32 1.442695, %v7893_v19 }
 0x5ed   : > { %v7971_v21 = vadd.f32 %v11128_v36, %v7970_v46  ;;  %v11141_v28 = vpop.eup %9385  ;;  %9405 = vpow2.f32 %v7908_v5  ;;  %v7956_v48 = vmul.f32 1.442695, %v7894_v61 }
 0x5ee   : > { %v11146_v23 = vpop.eup %9387  ;;  %9407 = vpow2.f32 %v7932_v7  ;;  %v7958_v6 = vmul.f32 1.442695, %v7895_v45 }
 0x5ef   : > { %v7972_v49 = vadd.f32 %v11132_v2, %v7971_v21  ;;  %v11152_v31 = vpop.eup %9389  ;;  %9409 = vpow2.f32 %v7910_v53  ;;  %v7960_v22 = vadd.f32 %v11146_v23, %v11141_v28 }
 0x5f0   : > { %v11157_v25 = vpop.eup %9391  ;;  %9411 = vpow2.f32 %v7934_v20 }
 0x5f1   : > { %v7973_v41 = vadd.f32 %v11137_v17, %v7972_v49  ;;  %v11161_v37 = vpop.eup %9393  ;;  %v7961_v47 = vadd.f32 %v11157_v25, %v7960_v22  ;;  %9413 = vpow2.f32 %v7936_v15 }
 0x5f2   : > { %v11165_v44 = vpop.eup %9395  ;;  %9415 = vpow2.f32 %v7938_v59 }
 0x5f3   : > { %v7974_v29 = vadd.f32 %v11152_v31, %v7973_v41  ;;  %v11169_v52 = vpop.eup %9397  ;;  %v7962_v54 = vadd.f32 %v11165_v44, %v7961_v47  ;;  %9417 = vpow2.f32 %v7944_v43 }
 0x5f4   : > { %v11173_v13 = vpop.eup %9399  ;;  %9419 = vpow2.f32 %v7946_v42 }
 0x5f5   : > { %v7975_v33 = vadd.f32 %v11161_v37, %v7974_v29  ;;  %v11177_v14 = vpop.eup %9401  ;;  %v7963_v40 = vadd.f32 %v11169_v52, %v7962_v54  ;;  %9421 = vpow2.f32 %v7940_v38 }
 0x5f6   : > { %v11180_v60 = vpop.eup %9403  ;;  %9423 = vpow2.f32 %v7948_v51 }
 0x5f7   : > { %7976 = vadd.xlane.f32.xlu1 %v7975_v33  ;;  %v9406_v62 = vpop.eup %9405  ;;  %v7964_v32 = vadd.f32 %v11173_v13, %v7963_v40  ;;  %9425 = vpow2.f32 %v7942_v58  ;;  %v7978_v1 = vadd.f32 %v11180_v60, %v11177_v14 }
 0x5f8   : > { %v11187_v0 = vpop.eup %9407  ;;  %9427 = vpow2.f32 %v7950_v56 }
 0x5f9   : > { %v9410_v39 = vpop.eup %9409  ;;  %v7965_v24 = vadd.f32 %v9406_v62, %v7964_v32  ;;  %v7979_v16 = vadd.f32 %v11187_v0, %v7978_v1  ;;  %9429 = vpow2.f32 %v7952_v30 }
 0x5fa   : > { %v11192_v27 = vpop.eup %9411  ;;  %9431 = vpow2.f32 %v7954_v8 }
 0x5fb   : > { %v11194_v4 = vpop.eup %9413  ;;  %v7966_v9 = vadd.f32 %v9410_v39, %v7965_v24  ;;  %v7980_v46 = vadd.f32 %v11192_v27, %v7979_v16  ;;  %9433 = vpow2.f32 %v7956_v48 }
 0x5fc   : > { %v11197_v5 = vpop.eup %9415  ;;  %9435 = vpow2.f32 %v7958_v6 }
 0x5fd   : > { %v11199_v12 = vpop.eup %9417  ;;  %7967 = vadd.xlane.f32.xlu0 %v7966_v9  ;;  %v7981_v18 = vadd.f32 %v11194_v4, %v7980_v46 }
 0x5fe   : > { %v11202_v7 = vpop.eup %9419 }
 0x5ff   : > { %v11204_v10 = vpop.eup %9421  ;;  %v7987_v21 = vadd.f32 %v11202_v7, %v11199_v12  ;;  %v7982_v53 = vadd.f32 %v11197_v5, %v7981_v18 }
 0x600   : > { %v11209_v11 = vpop.eup %9423 }
 0x601   : > { %v9426_v20 = vpop.eup %9425  ;;  %v7988_v26 = vadd.f32 %v11209_v11, %v7987_v21  ;;  %v7983_v49 = vadd.f32 %v11204_v10, %v7982_v53 }
 0x602   : > { %v11213_v15 = vpop.eup %9427 }
 0x603   : > { %v7989_v34 = vadd.f32 %v11213_v15, %v7988_v26  ;;  %v7984_v57 = vadd.f32 %v9426_v20, %v7983_v49  ;;  %v11216_v59 = vpop.eup %9429 }
 0x604   : > { %v11219_v43 = vpop.eup %9431 }
 0x605   : > { %v7990_v41 = vadd.f32 %v11216_v59, %v7989_v34  ;;  %7985 = vadd.xlane.f32.xlu0 %v7984_v57  ;;  %v11222_v35 = vpop.eup %9433 }
 0x606   : > { %v11225_v29 = vpop.eup %9435 }
 0x607   : > { %v7991_v22 = vadd.f32 %v11219_v43, %v7990_v41 }
 0x609   : > { %v7992_v42 = vadd.f32 %v11222_v35, %v7991_v22 }
 0x60b   : > { %v7993_v38 = vadd.f32 %v11225_v29, %v7992_v42 }
 0x60d   : > { %7994 = vadd.xlane.f32.xlu1 %v7993_v38 }
 0x684   : > { %v7977_v50 = vpop.xlane.xlu1 %7976 }
 0x68a   : > { %v7968_v47 = vpop.xlane.xlu0 %7967 }
 0x68b   : > { %v7996_v33 = vadd.f32 %v7977_v50, %v7968_v47 }
 0x692   : > { %v7986_v51 = vpop.xlane.xlu0 %7985 }
 0x693   : > { %v7997_v58 = vadd.f32 %v7996_v33, %v7986_v51 }
 0x69a   : > { %v7995_v54 = vpop.xlane.xlu1 %7994 }
 0x69b   : > { %v7998_v19 = vadd.f32 %v7997_v58, %v7995_v54 }
 0x69d   : > { %9437 = vrcp.f32 %v7998_v19 }
 0x6a7   : > { %v9438_v56 = vpop.eup %9437 }
 0x6a8   : > { %v8001_v40 = vmul.f32 %v9438_v56, %v11141_v28  ;;  %v8002_v61 = vmul.f32 %v9438_v56, %v11146_v23  ;;  %v8003_v30 = vmul.f32 %v9438_v56, %v11157_v25  ;;  %v8004_v32 = vmul.f32 %v9438_v56, %v11165_v44 }
 0x6a9   : > { %v8005_v1 = vmul.f32 %v9438_v56, %v11169_v52  ;;  %v8006_v45 = vmul.f32 %v9438_v56, %v11173_v13  ;;  %v8007_v8 = vmul.f32 %v9438_v56, %v9406_v62  ;;  %v8008_v24 = vmul.f32 %v9438_v56, %v9410_v39 }
 0x6aa   : > { %v8009_v16 = vmul.f32 %v9438_v56, %v11109_v63  ;;  %v8010_v48 = vmul.f32 %v9438_v56, %v11113_v55  ;;  %v8011_v9 = vmul.f32 %v9438_v56, %v11121_v3  ;;  %v8012_v28 = vmul.f32 %v9438_v56, %v11128_v36  ;;  %8033 = vst [vmem:[%s11369_s3] sm:$0xff] %v8001_v40 }
 0x6ab   : > { %8034 = vst [vmem:[%s11369_s3 + $0x8] sm:$0xff] %v8002_v61  ;;  %8035 = vst [vmem:[%s11369_s3 + $0x10] sm:$0xff] %v8003_v30  ;;  %v8013_v63 = vmul.f32 %v9438_v56, %v11132_v2  ;;  %v8014_v55 = vmul.f32 %v9438_v56, %v11137_v17  ;;  %v8015_v3 = vmul.f32 %v9438_v56, %v11152_v31 }
 0x6ac   : > { %8036 = vst [vmem:[%s11369_s3 + $0x18] sm:$0xff] %v8004_v32  ;;  %v8016_v36 = vmul.f32 %v9438_v56, %v11161_v37  ;;  %8037 = vst [vmem:[%s11369_s3 + $0x20] sm:$0xff] %v8005_v1  ;;  %v8017_v2 = vmul.f32 %v9438_v56, %v11177_v14  ;;  %v8018_v17 = vmul.f32 %v9438_v56, %v11180_v60 }
 0x6ad   : > { %8038 = vst [vmem:[%s11369_s3 + $0x28] sm:$0xff] %v8006_v45  ;;  %8039 = vst [vmem:[%s11369_s3 + $0x30] sm:$0xff] %v8007_v8  ;;  %v8019_v23 = vmul.f32 %v9438_v56, %v11187_v0  ;;  %v8020_v31 = vmul.f32 %v9438_v56, %v11192_v27  ;;  %v8021_v25 = vmul.f32 %v9438_v56, %v11194_v4 }
 0x6ae   : > { %8040 = vst [vmem:[%s11369_s3 + $0x38] sm:$0xff] %v8008_v24  ;;  %8041 = vst [vmem:[%s11369_s3 + $0x40] sm:$0xff] %v8009_v16  ;;  %v8022_v37 = vmul.f32 %v9438_v56, %v11197_v5  ;;  %v8023_v44 = vmul.f32 %v9438_v56, %v11204_v10  ;;  %v8024_v52 = vmul.f32 %v9438_v56, %v9426_v20 }
 0x6af   : > { %8042 = vst [vmem:[%s11369_s3 + $0x48] sm:$0xff] %v8010_v48  ;;  %8043 = vst [vmem:[%s11369_s3 + $0x50] sm:$0xff] %v8011_v9  ;;  %v8025_v13 = vmul.f32 %v9438_v56, %v11199_v12  ;;  %v8026_v14 = vmul.f32 %v9438_v56, %v11202_v7  ;;  %v8027_v60 = vmul.f32 %v9438_v56, %v11209_v11 }
 0x6b0   : > { %8044 = vst [vmem:[%s11369_s3 + $0x58] sm:$0xff] %v8012_v28  ;;  %8045 = vst [vmem:[%s11369_s3 + $0x60] sm:$0xff] %v8013_v63  ;;  %v8028_v62 = vmul.f32 %v9438_v56, %v11213_v15  ;;  %v8029_v0 = vmul.f32 %v9438_v56, %v11216_v59  ;;  %v8030_v39 = vmul.f32 %v9438_v56, %v11219_v43 }
 0x6b1   : > { %8046 = vst [vmem:[%s11369_s3 + $0x68] sm:$0xff] %v8014_v55  ;;  %8047 = vst [vmem:[%s11369_s3 + $0x70] sm:$0xff] %v8015_v3  ;;  %v8031_v27 = vmul.f32 %v9438_v56, %v11222_v35  ;;  %v8032_v4 = vmul.f32 %v9438_v56, %v11225_v29 }
 0x6b2   : > { %8048 = vst [vmem:[%s11369_s3 + $0x78] sm:$0xff] %v8016_v36  ;;  %8049 = vst [vmem:[%s11369_s3 + $0x80] sm:$0xff] %v8017_v2 }
 0x6b3   : > { %8050 = vst [vmem:[%s11369_s3 + $0x88] sm:$0xff] %v8018_v17  ;;  %8051 = vst [vmem:[%s11369_s3 + $0x90] sm:$0xff] %v8019_v23 }
 0x6b4   : > { %8052 = vst [vmem:[%s11369_s3 + $0x98] sm:$0xff] %v8020_v31  ;;  %8053 = vst [vmem:[%s11369_s3 + $0xa0] sm:$0xff] %v8021_v25 }
 0x6b5   : > { %8054 = vst [vmem:[%s11369_s3 + $0xa8] sm:$0xff] %v8022_v37  ;;  %8055 = vst [vmem:[%s11369_s3 + $0xb0] sm:$0xff] %v8023_v44 }
 0x6b6   : > { %8056 = vst [vmem:[%s11369_s3 + $0xb8] sm:$0xff] %v8024_v52  ;;  %8057 = vst [vmem:[%s11369_s3 + $0xc0] sm:$0xff] %v8025_v13 }
 0x6b7   : > { %8058 = vst [vmem:[%s11369_s3 + $0xc8] sm:$0xff] %v8026_v14  ;;  %8059 = vst [vmem:[%s11369_s3 + $0xd0] sm:$0xff] %v8027_v60 }
 0x6b8   : > { %8060 = vst [vmem:[%s11369_s3 + $0xd8] sm:$0xff] %v8028_v62  ;;  %8061 = vst [vmem:[%s11369_s3 + $0xe0] sm:$0xff] %v8029_v0 }
 0x6b9   : > { %8062 = vst [vmem:[%s11369_s3 + $0xe8] sm:$0xff] %v8030_v39  ;;  %8063 = vst [vmem:[%s11369_s3 + $0xf0] sm:$0xff] %v8031_v27 }
 0x6ba   : > { %8064 = vst [vmem:[%s11369_s3 + $0xf8] sm:$0xff] %v8032_v4 }
 0x6bb PF: > { %p16_p8 = scmp.ge.s32.totalorder %s9586_s17, 6   ;;  %s11376_s12 = smov %s9529_s13 }
 0x6bc   : > { %s11377_s13 = smov %s9533_s14  ;;  %s11378_s14 = smov %s9596_s20 }
 0x6bd   : > { %s11379_s15 = smov %s9586_s17  ;;  %18 = sbr.rel (!%p16_p8) target bundleno = 5 (0x5), region = 86 }
 0x6c4   :  { %8076 = vsyncpa [#allocation3], 1 }
 0x6c5   :  { %8078 = vsyncpa [#allocation3 + $0x1], 1 }
 0x6c6   :  { %8079 = vsyncpa [#allocation5], 1 }
 0x6c7   :  { %8081 = vsyncpa [#allocation5 + $0x1], 1 }

</bundles_post_ra>
